<compile_context>
chip_gen: v7x
topology: tpu7x:2x2x1
jax: 0.10.0
libtpu: 0.0.40
codegen_flags: <defaults>
</compile_context>

<pallas_src>
import jax
import jax.numpy as jnp
from jax.experimental import pallas as pl
from jax.experimental.pallas import tpu as pltpu

EPS = 1e-5


def _make_block_kernel(N, H1, W1, Cin, P, stride, has_downsample):
    rows = N * H1 * W1
    inv_rows = 1.0 / rows
    s = stride

    def bn_scale_shift(acc, g, b):
        # one-pass batch statistics (biased variance), fused scale/shift
        m = jnp.sum(acc, axis=0, keepdims=True) * inv_rows
        q = jnp.sum(acc * acc, axis=0, keepdims=True) * inv_rows
        v = jnp.maximum(q - m * m, 0.0)
        scale = g * jax.lax.rsqrt(v + EPS)
        shift = b - m * scale
        return acc * scale + shift

    def kernel(*refs):
        if has_downsample:
            (xin_ref, w1_ref, g1_ref, b1_ref, w2_ref, g2_ref, b2_ref,
             wd_ref, gd_ref, bd_ref, out_ref, mid_ref) = refs
        else:
            (xin_ref, w1_ref, g1_ref, b1_ref, w2_ref, g2_ref, b2_ref,
             out_ref, mid_ref) = refs

        # (s*s, N, Hp, Wp, Cin) bf16 phase planes of the zero-padded input.
        xin = xin_ref[...]

        # ---- conv1: im2col (9 taps on the lane axis) -> one MXU GEMM ----
        taps = []
        for dy in range(3):
            for dx in range(3):
                ph = (dy % s) * s + (dx % s)           # phase plane
                oy, ox = dy // s, dx // s              # offset inside the plane
                t = xin[ph, :, oy:oy + H1, ox:ox + W1, :]   # (N,H1,W1,Cin)
                taps.append(t.reshape(rows, Cin))
        t1 = jnp.concatenate(taps, axis=1)             # (rows, 9*Cin) bf16
        acc1 = jnp.dot(t1, w1_ref[...], preferred_element_type=jnp.float32)

        # ---- bn1 (batch stats) + relu ----
        y1 = jnp.maximum(bn_scale_shift(acc1, g1_ref[...], b1_ref[...]), 0.0)
        y1 = y1.astype(jnp.bfloat16)

        # ---- conv2: halo-zeroed VMEM pad + im2col -> one GEMM ----
        zrow = jnp.zeros((N, 1, W1 + 2, P), jnp.bfloat16)
        zcol = jnp.zeros((N, H1 + 2, 1, P), jnp.bfloat16)
        mid_ref[:, 0:1, :, :] = zrow
        mid_ref[:, H1 + 1:H1 + 2, :, :] = zrow
        mid_ref[:, :, 0:1, :] = zcol
        mid_ref[:, :, W1 + 1:W1 + 2, :] = zcol
        mid_ref[:, 1:1 + H1, 1:1 + W1, :] = y1.reshape(N, H1, W1, P)
        mid = mid_ref[...]                             # (N, H1+2, W1+2, P)
        taps2 = [mid[:, dy:dy + H1, dx:dx + W1, :].reshape(rows, P)
                 for dy in range(3) for dx in range(3)]
        t2 = jnp.concatenate(taps2, axis=1)            # (rows, 9*P) bf16
        acc2 = jnp.dot(t2, w2_ref[...], preferred_element_type=jnp.float32)

        # ---- bn2 ----
        y2 = bn_scale_shift(acc2, g2_ref[...], b2_ref[...])

        # ---- identity / downsample (1x1 conv stride s + bn) ----
        ph = (1 % s) * s + (1 % s)
        off = 1 // s
        xid = xin[ph, :, off:off + H1, off:off + W1, :].reshape(rows, Cin)
        if has_downsample:
            idn = jnp.dot(xid, wd_ref[...], preferred_element_type=jnp.float32)
            idn = bn_scale_shift(idn, gd_ref[...], bd_ref[...])
        else:
            idn = xid.astype(jnp.float32)   # stride==1 and Cin==P (asserted)

        out_ref[...] = jnp.maximum(y2 + idn, 0.0)      # (rows, P) f32

    return kernel


def cifar_basic_block(x_nchw, params, *, stride=1, downsample=False):
    """Pallas implementation of CIFARBasicBlock.forward. x_nchw: (N, C, H, W)."""
    assert stride in (1, 2)
    x = jnp.transpose(x_nchw, (0, 2, 3, 1))                       # NCHW -> NHWC
    N, H, W, Cin = x.shape
    P = params["w1"].shape[0]
    assert H % stride == 0 and W % stride == 0
    if not downsample:
        assert stride == 1 and Cin == P, "identity path needs stride=1, Cin==planes"
    H1, W1 = H // stride, W // stride

    # zero-pad once, then decompose into stride x stride phase planes so the
    # kernel never does strided reads and never computes discarded positions.
    xp = jnp.pad(x, ((0, 0), (1, 1), (1, 1), (0, 0))).astype(jnp.bfloat16)
    if stride == 1:
        xin = xp[None]                                            # (1,N,H+2,W+2,Cin)
    else:
        Hp, Wp = (H + 2) // stride, (W + 2) // stride
        xin = xp.reshape(N, Hp, stride, Wp, stride, Cin)
        xin = jnp.transpose(xin, (2, 4, 0, 1, 3, 5))
        xin = xin.reshape(stride * stride, N, Hp, Wp, Cin)

    # PyTorch conv weight (O, I, kh, kw) -> (kh*kw*I, O) im2col GEMM rhs (bf16)
    w1 = jnp.transpose(params["w1"], (2, 3, 1, 0)).reshape(9 * Cin, P).astype(jnp.bfloat16)
    w2 = jnp.transpose(params["w2"], (2, 3, 1, 0)).reshape(9 * P, P).astype(jnp.bfloat16)
    g1 = params["g1"].reshape(1, P).astype(jnp.float32)
    b1 = params["b1"].reshape(1, P).astype(jnp.float32)
    g2 = params["g2"].reshape(1, P).astype(jnp.float32)
    b2 = params["b2"].reshape(1, P).astype(jnp.float32)

    inputs = [xin, w1, g1, b1, w2, g2, b2]
    if downsample:
        wd = jnp.transpose(params["wd"].reshape(P, Cin), (1, 0)).astype(jnp.bfloat16)
        gd = params["gd"].reshape(1, P).astype(jnp.float32)
        bd = params["bd"].reshape(1, P).astype(jnp.float32)
        inputs += [wd, gd, bd]

    rows = N * H1 * W1
    # explicit scoped-VMEM limit: inputs + output + scratch + im2col temporaries
    est = (xin.size * 2 + (w1.size + w2.size) * 2 + 8 * P * 4
           + rows * P * 4                                # output (f32)
           + N * (H1 + 2) * (W1 + 2) * P * 2             # mid scratch (bf16)
           + rows * 9 * Cin * 2 + rows * 9 * P * 2       # im2col matrices (bf16)
           + 8 * rows * P * 4)                           # f32 temporaries
    vmem_limit = int(min(max(2 * est, 16 * 1024 * 1024), 64 * 1024 * 1024))

    kernel = _make_block_kernel(N, H1, W1, Cin, P, stride, downsample)
    out2d = pl.pallas_call(
        kernel,
        out_shape=jax.ShapeDtypeStruct((rows, P), jnp.float32),
        in_specs=[pl.BlockSpec(memory_space=pltpu.MemorySpace.VMEM)] * len(inputs),
        out_specs=pl.BlockSpec(memory_space=pltpu.MemorySpace.VMEM),
        scratch_shapes=[pltpu.VMEM((N, H1 + 2, W1 + 2, P), jnp.bfloat16)],
        compiler_params=pltpu.CompilerParams(vmem_limit_bytes=vmem_limit),
    )(*inputs)

    out_nhwc = out2d.reshape(N, H1, W1, P)
    return jnp.transpose(out_nhwc, (0, 3, 1, 2))                  # NHWC -> NCHW


# ----------------------- deterministic parameter init -----------------------
def init_params(key, inplanes, planes, downsample):
    ks = jax.random.split(key, 8)

    def conv_init(k, shape):
        fan_in = shape[1] * shape[2] * shape[3]
        return jax.random.normal(k, shape, jnp.float32) * (2.0 / fan_in) ** 0.5

    p = {
        "w1": conv_init(ks[0], (planes, inplanes, 3, 3)),
        "g1": 1.0 + 0.1 * jax.random.normal(ks[1], (planes,), jnp.float32),
        "b1": 0.1 * jax.random.normal(ks[2], (planes,), jnp.float32),
        "w2": conv_init(ks[3], (planes, planes, 3, 3)),
        "g2": 1.0 + 0.1 * jax.random.normal(ks[4], (planes,), jnp.float32),
        "b2": 0.1 * jax.random.normal(ks[5], (planes,), jnp.float32),
    }
    if downsample:
        p["wd"] = conv_init(ks[6], (planes, inplanes, 1, 1))
        kd1, kd2 = jax.random.split(ks[7])
        p["gd"] = 1.0 + 0.1 * jax.random.normal(kd1, (planes,), jnp.float32)
        p["bd"] = 0.1 * jax.random.normal(kd2, (planes,), jnp.float32)
    return p


# --------------------------- pure-JAX reference -----------------------------
def ref_block(x, p, *, stride, downsample):
    def conv(xi, w, s, pad):
        return jax.lax.conv_general_dilated(
            xi, w, window_strides=(s, s), padding=pad,
            dimension_numbers=("NCHW", "OIHW", "NCHW"))

    def bn(xi, g, b):
        m = jnp.mean(xi, axis=(0, 2, 3), keepdims=True)
        v = jnp.mean((xi - m) ** 2, axis=(0, 2, 3), keepdims=True)
        return (xi - m) * jax.lax.rsqrt(v + EPS) * g.reshape(1, -1, 1, 1) \
            + b.reshape(1, -1, 1, 1)

    out = jax.nn.relu(bn(conv(x, p["w1"], stride, ((1, 1), (1, 1))), p["g1"], p["b1"]))
    out = bn(conv(out, p["w2"], 1, ((1, 1), (1, 1))), p["g2"], p["b2"])
    if downsample:
        idn = bn(conv(x, p["wd"], stride, ((0, 0), (0, 0))), p["gd"], p["bd"])
    else:
        idn = x
    return jax.nn.relu(out + idn)


if __name__ == "__main__":
    key = jax.random.PRNGKey(0)
    kx, kp1, kp2 = jax.random.split(key, 3)
    x = jax.random.normal(kx, (2, 4, 16, 16), jnp.float32)   # NCHW, like PyTorch

    configs = [
        # (inplanes, planes, stride, downsample)
        (4, 4, 1, False),
        (4, 8, 2, True),
    ]
    pkeys = [kp1, kp2]

    for (inpl, planes, stride, ds), pk in zip(configs, pkeys):
        params = init_params(pk, inpl, planes, ds)
        out = cifar_basic_block(x, params, stride=stride, downsample=ds)
        out = jax.block_until_ready(out)
        ref = jax.block_until_ready(ref_block(x, params, stride=stride, downsample=ds))
        if out.shape != ref.shape:
            raise ValueError(f"shape mismatch: {out.shape} vs {ref.shape}")
        # tolerance accounts for bf16 activations/weights on the MXU
        # (f32 accumulation; reference is pure f32).
        if not bool(jnp.allclose(out, ref, atol=6e-2, rtol=6e-2)):
            raise ValueError(
                f"mismatch (max abs diff {float(jnp.max(jnp.abs(out - ref)))})")

    print("KERNEL_OK")
</pallas_src>

<mosaic_0001>
module attributes {stable_mosaic.version = 11 : i64} {
  func.func @kernel(%arg0: memref<1x2x18x18x4xbf16, #tpu.memory_space<vmem>>, %arg1: memref<36x4xbf16, #tpu.memory_space<vmem>>, %arg2: memref<1x4xf32, #tpu.memory_space<vmem>>, %arg3: memref<1x4xf32, #tpu.memory_space<vmem>>, %arg4: memref<36x4xbf16, #tpu.memory_space<vmem>>, %arg5: memref<1x4xf32, #tpu.memory_space<vmem>>, %arg6: memref<1x4xf32, #tpu.memory_space<vmem>>, %arg7: memref<512x4xf32, #tpu.memory_space<vmem>>, %arg8: memref<2x18x18x4xbf16, #tpu.memory_space<vmem>>) attributes {dimension_semantics = [], scalar_prefetch = 0 : i64, scratch_operands = 1 : i64, tpu.core_type = #tpu.core_type<tc>} {
    %c0 = arith.constant 0 : index
    %c0_0 = arith.constant 0 : index
    %c0_1 = arith.constant 0 : index
    %c0_2 = arith.constant 0 : index
    %c0_3 = arith.constant 0 : index
    %0 = vector.load %arg0[%c0, %c0_0, %c0_1, %c0_2, %c0_3] : memref<1x2x18x18x4xbf16, #tpu.memory_space<vmem>>, vector<1x2x18x18x4xbf16>
    %1 = vector.extract_strided_slice %0 {offsets = [0, 0, 0, 0, 0], sizes = [1, 2, 16, 16, 4], strides = [1, 1, 1, 1, 1]} : vector<1x2x18x18x4xbf16> to vector<1x2x16x16x4xbf16>
    %2 = vector.shape_cast %1 : vector<1x2x16x16x4xbf16> to vector<2x16x16x4xbf16>
    %3 = vector.shape_cast %2 : vector<2x16x16x4xbf16> to vector<512x4xbf16>
    %4 = vector.extract_strided_slice %0 {offsets = [0, 0, 0, 1, 0], sizes = [1, 2, 16, 16, 4], strides = [1, 1, 1, 1, 1]} : vector<1x2x18x18x4xbf16> to vector<1x2x16x16x4xbf16>
    %5 = vector.shape_cast %4 : vector<1x2x16x16x4xbf16> to vector<2x16x16x4xbf16>
    %6 = vector.shape_cast %5 : vector<2x16x16x4xbf16> to vector<512x4xbf16>
    %7 = vector.extract_strided_slice %0 {offsets = [0, 0, 0, 2, 0], sizes = [1, 2, 16, 16, 4], strides = [1, 1, 1, 1, 1]} : vector<1x2x18x18x4xbf16> to vector<1x2x16x16x4xbf16>
    %8 = vector.shape_cast %7 : vector<1x2x16x16x4xbf16> to vector<2x16x16x4xbf16>
    %9 = vector.shape_cast %8 : vector<2x16x16x4xbf16> to vector<512x4xbf16>
    %10 = vector.extract_strided_slice %0 {offsets = [0, 0, 1, 0, 0], sizes = [1, 2, 16, 16, 4], strides = [1, 1, 1, 1, 1]} : vector<1x2x18x18x4xbf16> to vector<1x2x16x16x4xbf16>
    %11 = vector.shape_cast %10 : vector<1x2x16x16x4xbf16> to vector<2x16x16x4xbf16>
    %12 = vector.shape_cast %11 : vector<2x16x16x4xbf16> to vector<512x4xbf16>
    %13 = vector.extract_strided_slice %0 {offsets = [0, 0, 1, 1, 0], sizes = [1, 2, 16, 16, 4], strides = [1, 1, 1, 1, 1]} : vector<1x2x18x18x4xbf16> to vector<1x2x16x16x4xbf16>
    %14 = vector.shape_cast %13 : vector<1x2x16x16x4xbf16> to vector<2x16x16x4xbf16>
    %15 = vector.shape_cast %14 : vector<2x16x16x4xbf16> to vector<512x4xbf16>
    %16 = vector.extract_strided_slice %0 {offsets = [0, 0, 1, 2, 0], sizes = [1, 2, 16, 16, 4], strides = [1, 1, 1, 1, 1]} : vector<1x2x18x18x4xbf16> to vector<1x2x16x16x4xbf16>
    %17 = vector.shape_cast %16 : vector<1x2x16x16x4xbf16> to vector<2x16x16x4xbf16>
    %18 = vector.shape_cast %17 : vector<2x16x16x4xbf16> to vector<512x4xbf16>
    %19 = vector.extract_strided_slice %0 {offsets = [0, 0, 2, 0, 0], sizes = [1, 2, 16, 16, 4], strides = [1, 1, 1, 1, 1]} : vector<1x2x18x18x4xbf16> to vector<1x2x16x16x4xbf16>
    %20 = vector.shape_cast %19 : vector<1x2x16x16x4xbf16> to vector<2x16x16x4xbf16>
    %21 = vector.shape_cast %20 : vector<2x16x16x4xbf16> to vector<512x4xbf16>
    %22 = vector.extract_strided_slice %0 {offsets = [0, 0, 2, 1, 0], sizes = [1, 2, 16, 16, 4], strides = [1, 1, 1, 1, 1]} : vector<1x2x18x18x4xbf16> to vector<1x2x16x16x4xbf16>
    %23 = vector.shape_cast %22 : vector<1x2x16x16x4xbf16> to vector<2x16x16x4xbf16>
    %24 = vector.shape_cast %23 : vector<2x16x16x4xbf16> to vector<512x4xbf16>
    %25 = vector.extract_strided_slice %0 {offsets = [0, 0, 2, 2, 0], sizes = [1, 2, 16, 16, 4], strides = [1, 1, 1, 1, 1]} : vector<1x2x18x18x4xbf16> to vector<1x2x16x16x4xbf16>
    %26 = vector.shape_cast %25 : vector<1x2x16x16x4xbf16> to vector<2x16x16x4xbf16>
    %27 = vector.shape_cast %26 : vector<2x16x16x4xbf16> to vector<512x4xbf16>
    %28 = tpu.concatenate %3, %6, %9, %12, %15, %18, %21, %24, %27 in 1 : vector<512x4xbf16>, vector<512x4xbf16>, vector<512x4xbf16>, vector<512x4xbf16>, vector<512x4xbf16>, vector<512x4xbf16>, vector<512x4xbf16>, vector<512x4xbf16>, vector<512x4xbf16> -> vector<512x36xbf16>
    %c0_4 = arith.constant 0 : index
    %c0_5 = arith.constant 0 : index
    %29 = vector.load %arg1[%c0_4, %c0_5] : memref<36x4xbf16, #tpu.memory_space<vmem>>, vector<36x4xbf16>
    %cst = arith.constant dense<0.000000e+00> : vector<512x4xf32>
    %30 = tpu.matmul %28, %29, %cst {dimension_numbers = #tpu.dot_dimension_numbers<[1], [0], [0], [1], [0, 0, 1, 1], [], []>} : vector<512x36xbf16>, vector<36x4xbf16>, vector<512x4xf32> -> vector<512x4xf32>
    %c0_6 = arith.constant 0 : index
    %c0_7 = arith.constant 0 : index
    %31 = vector.load %arg2[%c0_6, %c0_7] : memref<1x4xf32, #tpu.memory_space<vmem>>, vector<1x4xf32>
    %c0_8 = arith.constant 0 : index
    %c0_9 = arith.constant 0 : index
    %32 = vector.load %arg3[%c0_8, %c0_9] : memref<1x4xf32, #tpu.memory_space<vmem>>, vector<1x4xf32>
    %cst_10 = arith.constant dense<0.000000e+00> : vector<4xf32>
    %33 = vector.multi_reduction <add>, %30, %cst_10 [0] : vector<512x4xf32> to vector<4xf32>
    %34 = vector.shape_cast %33 : vector<4xf32> to vector<1x4xf32>
    %cst_11 = arith.constant 0.001953125 : f32
    %35 = vector.broadcast %cst_11 : f32 to vector<1x4xf32>
    %36 = arith.mulf %34, %35 : vector<1x4xf32>
    %37 = arith.mulf %30, %30 : vector<512x4xf32>
    %cst_12 = arith.constant dense<0.000000e+00> : vector<4xf32>
    %38 = vector.multi_reduction <add>, %37, %cst_12 [0] : vector<512x4xf32> to vector<4xf32>
    %39 = vector.shape_cast %38 : vector<4xf32> to vector<1x4xf32>
    %cst_13 = arith.constant 0.001953125 : f32
    %40 = vector.broadcast %cst_13 : f32 to vector<1x4xf32>
    %41 = arith.mulf %39, %40 : vector<1x4xf32>
    %42 = arith.mulf %36, %36 : vector<1x4xf32>
    %43 = arith.subf %41, %42 : vector<1x4xf32>
    %cst_14 = arith.constant 0.000000e+00 : f32
    %44 = vector.broadcast %cst_14 : f32 to vector<1x4xf32>
    %45 = arith.maximumf %43, %44 : vector<1x4xf32>
    %cst_15 = arith.constant 9.99999974E-6 : f32
    %46 = vector.broadcast %cst_15 : f32 to vector<1x4xf32>
    %47 = arith.addf %45, %46 : vector<1x4xf32>
    %48 = math.rsqrt %47 : vector<1x4xf32>
    %49 = arith.mulf %31, %48 : vector<1x4xf32>
    %50 = arith.mulf %36, %49 : vector<1x4xf32>
    %51 = arith.subf %32, %50 : vector<1x4xf32>
    %52 = vector.broadcast %49 : vector<1x4xf32> to vector<512x4xf32>
    %53 = arith.mulf %30, %52 : vector<512x4xf32>
    %54 = vector.broadcast %51 : vector<1x4xf32> to vector<512x4xf32>
    %55 = arith.addf %53, %54 : vector<512x4xf32>
    %cst_16 = arith.constant 0.000000e+00 : f32
    %56 = vector.broadcast %cst_16 : f32 to vector<512x4xf32>
    %57 = arith.maximumf %55, %56 : vector<512x4xf32>
    %58 = arith.truncf %57 : vector<512x4xf32> to vector<512x4xbf16>
    %cst_17 = arith.constant 0.000000e+00 : bf16
    %59 = vector.broadcast %cst_17 : bf16 to vector<2x1x18x4xbf16>
    %cst_18 = arith.constant 0.000000e+00 : bf16
    %60 = vector.broadcast %cst_18 : bf16 to vector<2x18x1x4xbf16>
    %c0_19 = arith.constant 0 : index
    %c0_20 = arith.constant 0 : index
    %c0_21 = arith.constant 0 : index
    %c0_22 = arith.constant 0 : index
    %61 = vector.load %arg8[%c0_19, %c0_20, %c0_21, %c0_22] : memref<2x18x18x4xbf16, #tpu.memory_space<vmem>>, vector<2x1x18x4xbf16>
    tpu.vector_store %arg8[%c0_19, %c0_20, %c0_21, %c0_22], %59 {strides = array<i32>} : memref<2x18x18x4xbf16, #tpu.memory_space<vmem>>, vector<2x1x18x4xbf16>,
    %c0_23 = arith.constant 0 : index
    %c17 = arith.constant 17 : index
    %c0_24 = arith.constant 0 : index
    %c0_25 = arith.constant 0 : index
    %62 = vector.load %arg8[%c0_23, %c17, %c0_24, %c0_25] : memref<2x18x18x4xbf16, #tpu.memory_space<vmem>>, vector<2x1x18x4xbf16>
    tpu.vector_store %arg8[%c0_23, %c17, %c0_24, %c0_25], %59 {strides = array<i32>} : memref<2x18x18x4xbf16, #tpu.memory_space<vmem>>, vector<2x1x18x4xbf16>,
    %c0_26 = arith.constant 0 : index
    %c0_27 = arith.constant 0 : index
    %c0_28 = arith.constant 0 : index
    %c0_29 = arith.constant 0 : index
    %63 = vector.load %arg8[%c0_26, %c0_27, %c0_28, %c0_29] : memref<2x18x18x4xbf16, #tpu.memory_space<vmem>>, vector<2x18x1x4xbf16>
    tpu.vector_store %arg8[%c0_26, %c0_27, %c0_28, %c0_29], %60 {strides = array<i32>} : memref<2x18x18x4xbf16, #tpu.memory_space<vmem>>, vector<2x18x1x4xbf16>,
    %c0_30 = arith.constant 0 : index
    %c0_31 = arith.constant 0 : index
    %c17_32 = arith.constant 17 : index
    %c0_33 = arith.constant 0 : index
    %64 = vector.load %arg8[%c0_30, %c0_31, %c17_32, %c0_33] : memref<2x18x18x4xbf16, #tpu.memory_space<vmem>>, vector<2x18x1x4xbf16>
    tpu.vector_store %arg8[%c0_30, %c0_31, %c17_32, %c0_33], %60 {strides = array<i32>} : memref<2x18x18x4xbf16, #tpu.memory_space<vmem>>, vector<2x18x1x4xbf16>,
    %65 = vector.shape_cast %58 : vector<512x4xbf16> to vector<2x16x16x4xbf16>
    %c0_34 = arith.constant 0 : index
    %c1 = arith.constant 1 : index
    %c1_35 = arith.constant 1 : index
    %c0_36 = arith.constant 0 : index
    %66 = vector.load %arg8[%c0_34, %c1, %c1_35, %c0_36] : memref<2x18x18x4xbf16, #tpu.memory_space<vmem>>, vector<2x16x16x4xbf16>
    tpu.vector_store %arg8[%c0_34, %c1, %c1_35, %c0_36], %65 {strides = array<i32>} : memref<2x18x18x4xbf16, #tpu.memory_space<vmem>>, vector<2x16x16x4xbf16>,
    %c0_37 = arith.constant 0 : index
    %c0_38 = arith.constant 0 : index
    %c0_39 = arith.constant 0 : index
    %c0_40 = arith.constant 0 : index
    %67 = vector.load %arg8[%c0_37, %c0_38, %c0_39, %c0_40] : memref<2x18x18x4xbf16, #tpu.memory_space<vmem>>, vector<2x18x18x4xbf16>
    %68 = vector.extract_strided_slice %67 {offsets = [0, 0, 0, 0], sizes = [2, 16, 16, 4], strides = [1, 1, 1, 1]} : vector<2x18x18x4xbf16> to vector<2x16x16x4xbf16>
    %69 = vector.shape_cast %68 : vector<2x16x16x4xbf16> to vector<512x4xbf16>
    %70 = vector.extract_strided_slice %67 {offsets = [0, 0, 1, 0], sizes = [2, 16, 16, 4], strides = [1, 1, 1, 1]} : vector<2x18x18x4xbf16> to vector<2x16x16x4xbf16>
    %71 = vector.shape_cast %70 : vector<2x16x16x4xbf16> to vector<512x4xbf16>
    %72 = vector.extract_strided_slice %67 {offsets = [0, 0, 2, 0], sizes = [2, 16, 16, 4], strides = [1, 1, 1, 1]} : vector<2x18x18x4xbf16> to vector<2x16x16x4xbf16>
    %73 = vector.shape_cast %72 : vector<2x16x16x4xbf16> to vector<512x4xbf16>
    %74 = vector.extract_strided_slice %67 {offsets = [0, 1, 0, 0], sizes = [2, 16, 16, 4], strides = [1, 1, 1, 1]} : vector<2x18x18x4xbf16> to vector<2x16x16x4xbf16>
    %75 = vector.shape_cast %74 : vector<2x16x16x4xbf16> to vector<512x4xbf16>
    %76 = vector.extract_strided_slice %67 {offsets = [0, 1, 1, 0], sizes = [2, 16, 16, 4], strides = [1, 1, 1, 1]} : vector<2x18x18x4xbf16> to vector<2x16x16x4xbf16>
    %77 = vector.shape_cast %76 : vector<2x16x16x4xbf16> to vector<512x4xbf16>
    %78 = vector.extract_strided_slice %67 {offsets = [0, 1, 2, 0], sizes = [2, 16, 16, 4], strides = [1, 1, 1, 1]} : vector<2x18x18x4xbf16> to vector<2x16x16x4xbf16>
    %79 = vector.shape_cast %78 : vector<2x16x16x4xbf16> to vector<512x4xbf16>
    %80 = vector.extract_strided_slice %67 {offsets = [0, 2, 0, 0], sizes = [2, 16, 16, 4], strides = [1, 1, 1, 1]} : vector<2x18x18x4xbf16> to vector<2x16x16x4xbf16>
    %81 = vector.shape_cast %80 : vector<2x16x16x4xbf16> to vector<512x4xbf16>
    %82 = vector.extract_strided_slice %67 {offsets = [0, 2, 1, 0], sizes = [2, 16, 16, 4], strides = [1, 1, 1, 1]} : vector<2x18x18x4xbf16> to vector<2x16x16x4xbf16>
    %83 = vector.shape_cast %82 : vector<2x16x16x4xbf16> to vector<512x4xbf16>
    %84 = vector.extract_strided_slice %67 {offsets = [0, 2, 2, 0], sizes = [2, 16, 16, 4], strides = [1, 1, 1, 1]} : vector<2x18x18x4xbf16> to vector<2x16x16x4xbf16>
    %85 = vector.shape_cast %84 : vector<2x16x16x4xbf16> to vector<512x4xbf16>
    %86 = tpu.concatenate %69, %71, %73, %75, %77, %79, %81, %83, %85 in 1 : vector<512x4xbf16>, vector<512x4xbf16>, vector<512x4xbf16>, vector<512x4xbf16>, vector<512x4xbf16>, vector<512x4xbf16>, vector<512x4xbf16>, vector<512x4xbf16>, vector<512x4xbf16> -> vector<512x36xbf16>
    %c0_41 = arith.constant 0 : index
    %c0_42 = arith.constant 0 : index
    %87 = vector.load %arg4[%c0_41, %c0_42] : memref<36x4xbf16, #tpu.memory_space<vmem>>, vector<36x4xbf16>
    %cst_43 = arith.constant dense<0.000000e+00> : vector<512x4xf32>
    %88 = tpu.matmul %86, %87, %cst_43 {dimension_numbers = #tpu.dot_dimension_numbers<[1], [0], [0], [1], [0, 0, 1, 1], [], []>} : vector<512x36xbf16>, vector<36x4xbf16>, vector<512x4xf32> -> vector<512x4xf32>
    %c0_44 = arith.constant 0 : index
    %c0_45 = arith.constant 0 : index
    %89 = vector.load %arg5[%c0_44, %c0_45] : memref<1x4xf32, #tpu.memory_space<vmem>>, vector<1x4xf32>
    %c0_46 = arith.constant 0 : index
    %c0_47 = arith.constant 0 : index
    %90 = vector.load %arg6[%c0_46, %c0_47] : memref<1x4xf32, #tpu.memory_space<vmem>>, vector<1x4xf32>
    %cst_48 = arith.constant dense<0.000000e+00> : vector<4xf32>
    %91 = vector.multi_reduction <add>, %88, %cst_48 [0] : vector<512x4xf32> to vector<4xf32>
    %92 = vector.shape_cast %91 : vector<4xf32> to vector<1x4xf32>
    %cst_49 = arith.constant 0.001953125 : f32
    %93 = vector.broadcast %cst_49 : f32 to vector<1x4xf32>
    %94 = arith.mulf %92, %93 : vector<1x4xf32>
    %95 = arith.mulf %88, %88 : vector<512x4xf32>
    %cst_50 = arith.constant dense<0.000000e+00> : vector<4xf32>
    %96 = vector.multi_reduction <add>, %95, %cst_50 [0] : vector<512x4xf32> to vector<4xf32>
    %97 = vector.shape_cast %96 : vector<4xf32> to vector<1x4xf32>
    %cst_51 = arith.constant 0.001953125 : f32
    %98 = vector.broadcast %cst_51 : f32 to vector<1x4xf32>
    %99 = arith.mulf %97, %98 : vector<1x4xf32>
    %100 = arith.mulf %94, %94 : vector<1x4xf32>
    %101 = arith.subf %99, %100 : vector<1x4xf32>
    %cst_52 = arith.constant 0.000000e+00 : f32
    %102 = vector.broadcast %cst_52 : f32 to vector<1x4xf32>
    %103 = arith.maximumf %101, %102 : vector<1x4xf32>
    %cst_53 = arith.constant 9.99999974E-6 : f32
    %104 = vector.broadcast %cst_53 : f32 to vector<1x4xf32>
    %105 = arith.addf %103, %104 : vector<1x4xf32>
    %106 = math.rsqrt %105 : vector<1x4xf32>
    %107 = arith.mulf %89, %106 : vector<1x4xf32>
    %108 = arith.mulf %94, %107 : vector<1x4xf32>
    %109 = arith.subf %90, %108 : vector<1x4xf32>
    %110 = vector.broadcast %107 : vector<1x4xf32> to vector<512x4xf32>
    %111 = arith.mulf %88, %110 : vector<512x4xf32>
    %112 = vector.broadcast %109 : vector<1x4xf32> to vector<512x4xf32>
    %113 = arith.addf %111, %112 : vector<512x4xf32>
    %114 = vector.extract_strided_slice %0 {offsets = [0, 0, 1, 1, 0], sizes = [1, 2, 16, 16, 4], strides = [1, 1, 1, 1, 1]} : vector<1x2x18x18x4xbf16> to vector<1x2x16x16x4xbf16>
    %115 = vector.shape_cast %114 : vector<1x2x16x16x4xbf16> to vector<2x16x16x4xbf16>
    %116 = vector.shape_cast %115 : vector<2x16x16x4xbf16> to vector<512x4xbf16>
    %117 = arith.extf %116 : vector<512x4xbf16> to vector<512x4xf32>
    %118 = arith.addf %113, %117 : vector<512x4xf32>
    %cst_54 = arith.constant 0.000000e+00 : f32
    %119 = vector.broadcast %cst_54 : f32 to vector<512x4xf32>
    %120 = arith.maximumf %118, %119 : vector<512x4xf32>
    %c0_55 = arith.constant 0 : index
    %c0_56 = arith.constant 0 : index
    %121 = vector.load %arg7[%c0_55, %c0_56] : memref<512x4xf32, #tpu.memory_space<vmem>>, vector<512x4xf32>
    tpu.vector_store %arg7[%c0_55, %c0_56], %120 {strides = array<i32>} : memref<512x4xf32, #tpu.memory_space<vmem>>, vector<512x4xf32>,
    return
  }
}

</mosaic_0001>

<bundles_post_ra>
// kernel: tpu_custom_call.1
= control target key start
LH: loop header
LB: loop body
LE: loop exit
PB: predicated region body
PF: predicated region fallthrough
CT: control target
= control target key end

     0   :  { %vm135_vm0 = vsmask.f32 3328  ;;  %vm136_vm1 = vsmask.f32 7440  ;;  %v18718_v26 = vmov 0  ;;  %s9830_s23 = smov 4   ;;  %s18314_s0 = inlined_call_operand.vmem [shape: bf16[1,2,18,18,4], index: 0, kind: input, shape index: {}]   ;;  %s18315_s1 = inlined_call_operand.vmem [shape: bf16[36,4], index: 1, kind: input, shape index: {}]   ;;  %s18316_s2 = inlined_call_operand.vmem [shape: f32[1,4], index: 2, kind: input, shape index: {}]   ;;  %s18317_s3 = inlined_call_operand.vmem [shape: f32[1,4], index: 3, kind: input, shape index: {}]   ;;  %s18318_s4 = inlined_call_operand.vmem [shape: bf16[36,4], index: 4, kind: input, shape index: {}]   ;;  %s18319_s5 = inlined_call_operand.vmem [shape: f32[1,4], index: 5, kind: input, shape index: {}]   ;;  %s18320_s6 = inlined_call_operand.vmem [shape: f32[1,4], index: 6, kind: input, shape index: {}]   ;;  %s18321_s7 = inlined_call_operand.vmem [shape: f32[512,4], index: 7, kind: output, shape index: {}]  }
   0x1   :  { %v33_v0 = vld [vmem:[%s18314_s0 + $0x18] sm:$0xf]  ;;  %v34_v1 = vld [vmem:[%s18314_s0 + $0x1c] sm:$0xf]  ;;  %v35_v2 = vld [vmem:[%s18314_s0 + $0x20] sm:$0x1] }
   0x2   :  { %v187_v3 = vshrl.u32 %v33_v0, 16  ;;  %v190_v4 = vshll.u32 %v33_v0, 16  ;;  %v196_v5 = vshll.u32 %v34_v1, 16  ;;  %v200_v6 = vshrl.u32 %v34_v1, 16  ;;  %v27_v7 = vld [vmem:[%s18314_s0] sm:$0xf]  ;;  %vm9905_vm2 = vmor %vm135_vm0, %vm136_vm1 }
   0x3   :  { %v206_v8 = vshll.u32 %v35_v2, 16  ;;  %v28_v9 = vld [vmem:[%s18314_s0 + $0x4] sm:$0xf]  ;;  %v29_v10 = vld [vmem:[%s18314_s0 + $0x8] sm:$0x1]  ;;  %v139_v11 = vshrl.u32 %v27_v7, 16 }
   0x4   :  { %v189_v12 = vrot.slane %v187_v3, 4  ;;  %v192_v13 = vrot.slane %v190_v4, 5  ;;  %v198_v14 = vrot.slane %v196_v5, 5  ;;  %v202_v15 = vrot.slane %v200_v6, 4  ;;  %v36_v16 = vld [vmem:[%s18314_s0 + $0x24] sm:$0xf] }
   0x5   :  { %v208_v17 = vrot.slane %v206_v8, 5  ;;  %v141_v18 = vrot.slane %v139_v11, 4  ;;  %v142_v19 = vshll.u32 %v27_v7, 16  ;;  %v148_v20 = vshll.u32 %v28_v9, 16  ;;  %v37_v25 = vld [vmem:[%s18314_s0 + $0x28] sm:$0xf] }
   0x6   :  { %v193_v21 = vor.u32 %v192_v13, %v189_v12  ;;  %v203_v22 = vor.u32 %v202_v15, %v198_v14  ;;  %v152_v23 = vshrl.u32 %v28_v9, 16  ;;  %v158_v24 = vshll.u32 %v29_v10, 16  ;;  %v38_v42 = vld [vmem:[%s18314_s0 + $0x2c] sm:$0x1]  ;;  %v31_v47 = vld [vmem:[%s18314_s0 + $0x10] sm:$0xf] }
   0x7   :  { %v18719_v26 = vsel %vm9905_vm2, 4294967295, %v18718_v26  ;;  %v144_v27 = vrot.slane %v142_v19, 5  ;;  %v150_v28 = vrot.slane %v148_v20, 5  ;;  %v211_v29 = vshrl.u32 %v36_v16, 16  ;;  %v30_v44 = vld [vmem:[%s18314_s0 + $0xc] sm:$0xf] }
   0x8   :  { %18720 = vst [vmem:[#allocation3_spill] sm:$0xff] %v18719_v26  ;;  %v214_v30 = vshll.u32 %v36_v16, 16  ;;  %v194_v31 = vrot.slane %v193_v21, 4  ;;  %v204_v32 = vrot.slane %v203_v22, 4  ;;  %v154_v33 = vrot.slane %v152_v23, 4  ;;  %s9831_s19 = smov 8  }
   0x9   :  { %v160_v34 = vrot.slane %v158_v24, 5  ;;  %v145_v35 = vor.u32 %v144_v27, %v141_v18  ;;  %v213_v36 = vrot.slane %v211_v29, 4  ;;  %v220_v38 = vshll.u32 %v37_v25, 16  ;;  %v32_v59 = vld [vmem:[%s18314_s0 + $0x14] sm:$0x1]  ;;  %s9832_s29 = smov 12  }
   0xa   :  { %v216_v37 = vrot.slane %v214_v30, 5  ;;  %v9911_v39 = vsel %vm9905_vm2, %v194_v31, %v198_v14  ;;  %v9915_v40 = vsel %vm9905_vm2, %v204_v32, %v208_v17  ;;  %v155_v41 = vor.u32 %v154_v33, %v150_v28  ;;  %v42_v61 = vld [vmem:[%s18314_s0 + $0x3c] sm:$0xf]  ;;  %v43_v2 = vld [vmem:[%s18314_s0 + $0x40] sm:$0xf]  ;;  %s9833_s9 = smov 16  }
   0xb   :  { %18721 = vst [vmem:[#allocation4_spill] sm:$0xff] %v9911_v39  ;;  %18722 = vst [vmem:[#allocation5_spill] sm:$0xff] %v9915_v40  ;;  %v224_v43 = vshrl.u32 %v37_v25, 16  ;;  %v9925_v45 = vcombine.low %v9911_v39, %v9915_v40  ;;  %v146_v46 = vrot.slane %v145_v35, 4  ;;  %v222_v50 = vrot.slane %v220_v38, 5  ;;  %s9834_s12 = smov 20  }
   0xc   :  { %v156_v48 = vrot.slane %v155_v41, 4  ;;  %v217_v49 = vor.u32 %v216_v37, %v213_v36  ;;  %v230_v53 = vshll.u32 %v38_v42, 16  ;;  %v163_v54 = vshrl.u32 %v30_v44, 16  ;;  %v44_v9 = vld [vmem:[%s18314_s0 + $0x44] sm:$0x1]  ;;  %s9835_s15 = smov 24  }
   0xd   :  { %v226_v51 = vrot.slane %v224_v43, 4  ;;  %1625 = vrot.lane.b32.xlu1 %v9925_v45, %s9830_s23  ;;  %v151_v52 = vsel %vm9905_vm2, %v146_v46, %v150_v28  ;;  %v166_v55 = vshll.u32 %v30_v44, 16  ;;  %v172_v60 = vshll.u32 %v31_v47, 16  ;;  %v39_v15 = vld [vmem:[%s18314_s0 + $0x30] sm:$0xf]  ;;  %s9837_s16 = smov 32  }
   0xe   :  { %v161_v56 = vsel %vm9905_vm2, %v156_v48, %v160_v34  ;;  %v218_v57 = vrot.slane %v217_v49, 4  ;;  %v232_v63 = vrot.slane %v230_v53, 5  ;;  %v165_v0 = vrot.slane %v163_v54, 4  ;;  %v40_v22 = vld [vmem:[%s18314_s0 + $0x34] sm:$0xf] }
   0xf   :  { %v227_v58 = vor.u32 %v226_v51, %v222_v50  ;;  %v8936_v62 = vcombine.low %v151_v52, %v161_v56  ;;  %v168_v1 = vrot.slane %v166_v55, 5  ;;  %v174_v5 = vrot.slane %v172_v60, 5  ;;  %v41_v33 = vld [vmem:[%s18314_s0 + $0x38] sm:$0x1]  ;;  %v48_v42 = vld [vmem:[%s18314_s0 + $0x54] sm:$0xf] }
  0x10   :  { %v9947_v3 = vsel %vm9905_vm2, %v218_v57, %v222_v50  ;;  %v176_v6 = vshrl.u32 %v31_v47, 16  ;;  %v182_v8 = vshll.u32 %v32_v59, 16  ;;  %v259_v10 = vshrl.u32 %v42_v61, 16  ;;  %v49_v48 = vld [vmem:[%s18314_s0 + $0x58] sm:$0xf] }
  0x11   :  { %18723 = vst [vmem:[#allocation6_spill] sm:$0xff] %v9947_v3  ;;  %v228_v4 = vrot.slane %v227_v58, 4  ;;  %1621 = vrot.lane.b32.xlu0 %v8936_v62, %s9830_s23  ;;  %v169_v7 = vor.u32 %v168_v1, %v165_v0  ;;  %v262_v13 = vshll.u32 %v42_v61, 16  ;;  %v268_v14 = vshll.u32 %v43_v2, 16  ;;  %v50_v59 = vld [vmem:[%s18314_s0 + $0x5c] sm:$0x1] }
  0x12   :  { %v178_v12 = vrot.slane %v176_v6, 4  ;;  %v184_v19 = vrot.slane %v182_v8, 5  ;;  %v261_v20 = vrot.slane %v259_v10, 4  ;;  %v272_v24 = vshrl.u32 %v43_v2, 16  ;;  %v45_v1 = vld [vmem:[%s18314_s0 + $0x48] sm:$0xf] }
  0x13   :  { %v9955_v11 = vsel %vm9905_vm2, %v228_v4, %v232_v63  ;;  %v170_v17 = vrot.slane %v169_v7, 4  ;;  %v264_v21 = vrot.slane %v262_v13, 5  ;;  %v270_v23 = vrot.slane %v268_v14, 5  ;;  %v47_v13 = vld [vmem:[%s18314_s0 + $0x50] sm:$0x1] }
  0x14   :  { %18724 = vst [vmem:[#allocation7_spill] sm:$0xff] %v9955_v11  ;;  %v9962_v16 = vcombine.low %v9947_v3, %v9955_v11  ;;  %v179_v18 = vor.u32 %v178_v12, %v174_v5  ;;  %v278_v25 = vshll.u32 %v44_v9, 16  ;;  %v235_v27 = vshrl.u32 %v39_v15, 16  ;;  %v46_v9 = vld [vmem:[%s18314_s0 + $0x4c] sm:$0xf] }
  0x15   :  { %v9971_v28 = vsel %vm9905_vm2, %v170_v17, %v174_v5  ;;  %v265_v30 = vor.u32 %v264_v21, %v261_v20  ;;  %v238_v31 = vshll.u32 %v39_v15, 16  ;;  %v274_v32 = vrot.slane %v272_v24, 4  ;;  %v54_v20 = vld [vmem:[%s18314_s0 + $0x6c] sm:$0xf]  ;;  %v9666_v11 = vld [vmem:[%s18314_s0 + $0x38] sm:$0x1] }
  0x16   :  { %1627 = vrot.lane.b32.xlu1 %v9962_v16, %s9830_s23  ;;  %18725 = vst [vmem:[#allocation8_spill] sm:$0xff] %v9971_v28  ;;  %v180_v29 = vrot.slane %v179_v18, 4  ;;  %v237_v34 = vrot.slane %v235_v27, 4  ;;  %v244_v35 = vshll.u32 %v40_v22, 16  ;;  %v248_v41 = vshrl.u32 %v40_v22, 16 }
  0x17   :  { %v266_v37 = vrot.slane %v265_v30, 4  ;;  %v240_v38 = vrot.slane %v238_v31, 5  ;;  %v275_v44 = vor.u32 %v274_v32, %v270_v23  ;;  %v280_v46 = vrot.slane %v278_v25, 5 }
  0x18   :  { %v9978_v36 = vsel %vm9905_vm2, %v180_v29, %v184_v19  ;;  %v246_v47 = vrot.slane %v244_v35, 5  ;;  %v250_v50 = vrot.slane %v248_v41, 4  ;;  %v254_v51 = vshll.u32 %v41_v33, 16  ;;  %v55_v33 = vld [vmem:[%s18314_s0 + $0x70] sm:$0xf] }
  0x19   :  { %18726 = vst [vmem:[#allocation9_spill] sm:$0xff] %v9978_v36  ;;  %v9985_v43 = vcombine.low %v9971_v28, %v9978_v36  ;;  %v241_v49 = vor.u32 %v240_v38, %v237_v34  ;;  %v9994_v52 = vsel %vm9905_vm2, %v266_v37, %v270_v23  ;;  %v276_v53 = vrot.slane %v275_v44, 4  ;;  %v56_v38 = vld [vmem:[%s18314_s0 + $0x74] sm:$0x1] }
  0x1a   :  { %18727 = vst [vmem:[#allocation10_spill] sm:$0xff] %v9994_v52  ;;  %v307_v54 = vshrl.u32 %v48_v42, 16  ;;  %v310_v55 = vshll.u32 %v48_v42, 16  ;;  %v251_v57 = vor.u32 %v250_v50, %v246_v47  ;;  %v256_v58 = vrot.slane %v254_v51, 5  ;;  %v51_v42 = vld [vmem:[%s18314_s0 + $0x60] sm:$0xf] }
  0x1b   :  { %1623 = vrot.lane.b32.xlu0 %v9985_v43, %s9830_s23  ;;  %v242_v56 = vrot.slane %v241_v49, 4  ;;  %v316_v60 = vshll.u32 %v49_v48, 16  ;;  %v10001_v61 = vsel %vm9905_vm2, %v276_v53, %v280_v46  ;;  %v320_v0 = vshrl.u32 %v49_v48, 16  ;;  %v10721_v28 = vld [vmem:[%s18314_s0 + $0x34] sm:$0xf] }
  0x1c   :  { %18728 = vst [vmem:[#allocation11_spill] sm:$0xff] %v10001_v61  ;;  %v309_v62 = vrot.slane %v307_v54, 4  ;;  %v312_v63 = vrot.slane %v310_v55, 5  ;;  %v10008_v2 = vcombine.low %v9994_v52, %v10001_v61  ;;  %v252_v5 = vrot.slane %v251_v57, 4  ;;  %v52_v55 = vld [vmem:[%s18314_s0 + $0x64] sm:$0xf] }
  0x1d   :  { %v10012_v4 = vsel %vm9905_vm2, %v242_v56, %v246_v47  ;;  %v318_v7 = vrot.slane %v316_v60, 5  ;;  %v322_v8 = vrot.slane %v320_v0, 4  ;;  %v326_v12 = vshll.u32 %v50_v59, 16  ;;  %v53_v0 = vld [vmem:[%s18314_s0 + $0x68] sm:$0x1] }
  0x1e   :  { %18729 = vst [vmem:[#allocation12_spill] sm:$0xff] %v10012_v4  ;;  %v313_v6 = vor.u32 %v312_v63, %v309_v62  ;;  %1631 = vrot.lane.b32.xlu1 %v10008_v2, %s9830_s23  ;;  %v10021_v10 = vsel %vm9905_vm2, %v252_v5, %v256_v58  ;;  %v283_v14 = vshrl.u32 %v45_v1, 16  ;;  %v286_v15 = vshll.u32 %v45_v1, 16 }
  0x1f   :  { %18730 = vst [vmem:[#allocation13_spill] sm:$0xff] %v10021_v10  ;;  %v10028_v17 = vcombine.low %v10012_v4, %v10021_v10  ;;  %v323_v19 = vor.u32 %v322_v8, %v318_v7  ;;  %v328_v21 = vrot.slane %v326_v12, 5  ;;  %v292_v24 = vshll.u32 %v46_v9, 16  ;;  %v60_v12 = vld [vmem:[%s18314_s0 + $0x84] sm:$0xf] }
  0x20   :  { %v314_v18 = vrot.slane %v313_v6, 4  ;;  %v285_v22 = vrot.slane %v283_v14, 4  ;;  %v288_v23 = vrot.slane %v286_v15, 5  ;;  %v296_v29 = vshrl.u32 %v46_v9, 16  ;;  %v9660_v10 = vld [vmem:[%s18314_s0 + $0x20] sm:$0x1] }
  0x21   :  { %1629 = vrot.lane.b32.xlu0 %v10028_v17, %s9830_s23  ;;  %v324_v27 = vrot.slane %v323_v19, 4  ;;  %v302_v30 = vshll.u32 %v47_v13, 16  ;;  %v294_v32 = vrot.slane %v292_v24, 5  ;;  %v355_v34 = vshrl.u32 %v54_v20, 16  ;;  %v61_v19 = vld [vmem:[%s18314_s0 + $0x88] sm:$0xf] }
  0x22   :  { %v10037_v25 = vsel %vm9905_vm2, %v314_v18, %v318_v7  ;;  %v289_v31 = vor.u32 %v288_v23, %v285_v22  ;;  %v298_v37 = vrot.slane %v296_v29, 4  ;;  %v358_v41 = vshll.u32 %v54_v20, 16 }
  0x23   :  { %18731 = vst [vmem:[#allocation14_spill] sm:$0xff] %v10037_v25  ;;  %v10044_v35 = vsel %vm9905_vm2, %v324_v27, %v328_v21  ;;  %v304_v47 = vrot.slane %v302_v30, 5  ;;  %v357_v48 = vrot.slane %v355_v34, 4  ;;  %v364_v51 = vshll.u32 %v55_v33, 16 }
  0x24   :  { %18732 = vst [vmem:[#allocation15_spill] sm:$0xff] %v10044_v35  ;;  %v10054_v44 = vcombine.low %v10037_v25, %v10044_v35  ;;  %v290_v46 = vrot.slane %v289_v31, 4  ;;  %v299_v49 = vor.u32 %v298_v37, %v294_v32  ;;  %v360_v50 = vrot.slane %v358_v41, 5 }
  0x25   :  { %v368_v53 = vshrl.u32 %v55_v33, 16  ;;  %v374_v54 = vshll.u32 %v56_v38, 16  ;;  %v331_v56 = vshrl.u32 %v51_v42, 16  ;;  %v334_v57 = vshll.u32 %v51_v42, 16  ;;  %v57_v42 = vld [vmem:[%s18314_s0 + $0x78] sm:$0xf] }
  0x26   :  { %1635 = vrot.lane.b32.xlu1 %v10054_v44, %s9830_s23  ;;  %v10063_v58 = vsel %vm9905_vm2, %v290_v46, %v294_v32  ;;  %v300_v59 = vrot.slane %v299_v49, 4  ;;  %v361_v60 = vor.u32 %v360_v50, %v357_v48  ;;  %v366_v62 = vrot.slane %v364_v51, 5  ;;  %v62_v32 = vld [vmem:[%s18314_s0 + $0x8c] sm:$0x1]  ;;  %v58_v46 = vld [vmem:[%s18314_s0 + $0x7c] sm:$0xf] }
  0x27   :  { %18733 = vst [vmem:[#allocation16_spill] sm:$0xff] %v10063_v58  ;;  %v370_v63 = vrot.slane %v368_v53, 4  ;;  %v333_v1 = vrot.slane %v331_v56, 4  ;;  %v336_v5 = vrot.slane %v334_v57, 5  ;;  %v340_v8 = vshll.u32 %v52_v55, 16 }
  0x28   :  { %v10070_v6 = vsel %vm9905_vm2, %v300_v59, %v304_v47  ;;  %v362_v7 = vrot.slane %v361_v60, 4  ;;  %v344_v9 = vshrl.u32 %v52_v55, 16  ;;  %v376_v15 = vrot.slane %v374_v54, 5  ;;  %v59_v56 = vld [vmem:[%s18314_s0 + $0x80] sm:$0x1] }
  0x29   :  { %18734 = vst [vmem:[#allocation17_spill] sm:$0xff] %v10070_v6  ;;  %v10077_v13 = vcombine.low %v10063_v58, %v10070_v6  ;;  %v371_v14 = vor.u32 %v370_v63, %v366_v62  ;;  %v337_v18 = vor.u32 %v336_v5, %v333_v1  ;;  %v342_v20 = vrot.slane %v340_v8, 5  ;;  %v66_v1 = vld [vmem:[%s18314_s0 + $0x9c] sm:$0xf]  ;;  %v67_v5 = vld [vmem:[%s18314_s0 + $0xa0] sm:$0xf] }
  0x2a   :  { %v346_v21 = vrot.slane %v344_v9, 4  ;;  %v350_v22 = vshll.u32 %v53_v0, 16  ;;  %v10086_v23 = vsel %vm9905_vm2, %v362_v7, %v366_v62  ;;  %v403_v29 = vshrl.u32 %v60_v12, 16 }
  0x2b   :  { %1633 = vrot.lane.b32.xlu0 %v10077_v13, %s9830_s23  ;;  %18735 = vst [vmem:[#allocation18_spill] sm:$0xff] %v10086_v23  ;;  %v372_v24 = vrot.slane %v371_v14, 4  ;;  %v338_v27 = vrot.slane %v337_v18, 4  ;;  %v406_v33 = vshll.u32 %v60_v12, 16  ;;  %v412_v34 = vshll.u32 %v61_v19, 16 }
  0x2c   :  { %v347_v30 = vor.u32 %v346_v21, %v342_v20  ;;  %v352_v31 = vrot.slane %v350_v22, 5  ;;  %v405_v38 = vrot.slane %v403_v29, 4  ;;  %v416_v41 = vshrl.u32 %v61_v19, 16 }
  0x2d   :  { %v10093_v37 = vsel %vm9905_vm2, %v372_v24, %v376_v15  ;;  %v10107_v48 = vsel %vm9905_vm2, %v338_v27, %v342_v20  ;;  %v408_v50 = vrot.slane %v406_v33, 5  ;;  %v414_v51 = vrot.slane %v412_v34, 5  ;;  %v63_v34 = vld [vmem:[%s18314_s0 + $0x90] sm:$0xf] }
  0x2e   :  { %18736 = vst [vmem:[#allocation19_spill] sm:$0xff] %v10093_v37  ;;  %v10103_v47 = vcombine.low %v10086_v23, %v10093_v37  ;;  %18737 = vst [vmem:[#allocation20_spill] sm:$0xff] %v10107_v48  ;;  %v348_v49 = vrot.slane %v347_v30, 4  ;;  %v418_v53 = vrot.slane %v416_v41, 4  ;;  %v422_v54 = vshll.u32 %v62_v32, 16 }
  0x2f   :  { %v379_v57 = vshrl.u32 %v57_v42, 16  ;;  %v382_v59 = vshll.u32 %v57_v42, 16  ;;  %v388_v60 = vshll.u32 %v58_v46, 16  ;;  %v409_v63 = vor.u32 %v408_v50, %v405_v38 }
  0x30   :  { %1639 = vrot.lane.b32.xlu1 %v10103_v47, %s9830_s23  ;;  %v10113_v55 = vsel %vm9905_vm2, %v348_v49, %v352_v31  ;;  %v419_v0 = vor.u32 %v418_v53, %v414_v51  ;;  %v424_v7 = vrot.slane %v422_v54, 5  ;;  %v392_v18 = vshrl.u32 %v58_v46, 16  ;;  %v68_v31 = vld [vmem:[%s18314_s0 + $0xa4] sm:$0x1]  ;;  %v10151_v49 = vld [vmem:[%s18314_s0 + $0x94] sm:$0xf] }
  0x31   :  { %18738 = vst [vmem:[#allocation21_spill] sm:$0xff] %v10113_v55  ;;  %v10120_v62 = vcombine.low %v10107_v48, %v10113_v55  ;;  %v381_v8 = vrot.slane %v379_v57, 4  ;;  %v384_v9 = vrot.slane %v382_v59, 5  ;;  %v390_v12 = vrot.slane %v388_v60, 5  ;;  %v112_v55 = vld [vmem:[%s18314_s0 + $0x154] sm:$0xf] }
  0x32   :  { %v410_v14 = vrot.slane %v409_v63, 4  ;;  %v420_v15 = vrot.slane %v419_v0, 4  ;;  %v398_v19 = vshll.u32 %v59_v56, 16  ;;  %v451_v21 = vshrl.u32 %v66_v1, 16  ;;  %v10162_v63 = vld [vmem:[%s18314_s0 + $0x98] sm:$0x1] }
  0x33   :  { %1637 = vrot.lane.b32.xlu0 %v10120_v62, %s9830_s23  ;;  %v385_v20 = vor.u32 %v384_v9, %v381_v8  ;;  %v454_v22 = vshll.u32 %v66_v1, 16  ;;  %v460_v24 = vshll.u32 %v67_v5, 16  ;;  %v394_v30 = vrot.slane %v392_v18, 4 }
  0x34   :  { %v10132_v27 = vsel %vm9905_vm2, %v410_v14, %v414_v51  ;;  %v10136_v29 = vsel %vm9905_vm2, %v420_v15, %v424_v7  ;;  %v400_v41 = vrot.slane %v398_v19, 5  ;;  %v453_v42 = vrot.slane %v451_v21, 4 }
  0x35   :  { %18739 = vst [vmem:[#allocation22_spill] sm:$0xff] %v10132_v27  ;;  %18740 = vst [vmem:[#allocation23_spill] sm:$0xff] %v10136_v29  ;;  %v10143_v32 = vcombine.low %v10132_v27, %v10136_v29  ;;  %v386_v33 = vrot.slane %v385_v20, 4  ;;  %v395_v38 = vor.u32 %v394_v30, %v390_v12  ;;  %v456_v46 = vrot.slane %v454_v22, 5  ;;  %v73_v20 = vld [vmem:[%s18314_s0 + $0xb8] sm:$0xf] }
  0x36   :  { %v462_v50 = vrot.slane %v460_v24, 5  ;;  %v464_v51 = vshrl.u32 %v67_v5, 16  ;;  %v470_v53 = vshll.u32 %v68_v31, 16  ;;  %v427_v59 = vshrl.u32 %v63_v34, 16 }
  0x37   :  { %1643 = vrot.lane.b32.xlu1 %v10143_v32, %s9830_s23  ;;  %v10157_v54 = vsel %vm9905_vm2, %v386_v33, %v390_v12  ;;  %v396_v56 = vrot.slane %v395_v38, 4  ;;  %v457_v57 = vor.u32 %v456_v46, %v453_v42  ;;  %v430_v0 = vshll.u32 %v63_v34, 16  ;;  %v72_v12 = vld [vmem:[%s18314_s0 + $0xb4] sm:$0xf]  ;;  %v74_v42 = vld [vmem:[%s18314_s0 + $0xbc] sm:$0x1] }
  0x38   :  { %18741 = vst [vmem:[#allocation24_spill] sm:$0xff] %v10157_v54  ;;  %v466_v60 = vrot.slane %v464_v51, 4  ;;  %v436_v1 = vshll.u32 %v10151_v49, 16  ;;  %v429_v8 = vrot.slane %v427_v59, 4  ;;  %v440_v9 = vshrl.u32 %v10151_v49, 16 }
  0x39   :  { %v10167_v5 = vsel %vm9905_vm2, %v396_v56, %v400_v41  ;;  %v458_v7 = vrot.slane %v457_v57, 4  ;;  %v472_v18 = vrot.slane %v470_v53, 5  ;;  %v432_v19 = vrot.slane %v430_v0, 5 }
  0x3a   :  { %18742 = vst [vmem:[#allocation25_spill] sm:$0xff] %v10167_v5  ;;  %v10175_v14 = vcombine.low %v10157_v54, %v10167_v5  ;;  %v467_v15 = vor.u32 %v466_v60, %v462_v50  ;;  %v438_v21 = vrot.slane %v436_v1, 5  ;;  %v442_v22 = vrot.slane %v440_v9, 4  ;;  %v69_v1 = vld [vmem:[%s18314_s0 + $0xa8] sm:$0xf] }
  0x3b   :  { %v446_v24 = vshll.u32 %v10162_v63, 16  ;;  %v10185_v30 = vsel %vm9905_vm2, %v458_v7, %v462_v50  ;;  %v433_v33 = vor.u32 %v432_v19, %v429_v8  ;;  %v499_v34 = vshrl.u32 %v72_v12, 16 }
  0x3c   :  { %1641 = vrot.lane.b32.xlu0 %v10175_v14, %s9830_s23  ;;  %18743 = vst [vmem:[#allocation26_spill] sm:$0xff] %v10185_v30  ;;  %v468_v31 = vrot.slane %v467_v15, 4  ;;  %v443_v38 = vor.u32 %v442_v22, %v438_v21  ;;  %v502_v46 = vshll.u32 %v72_v12, 16  ;;  %v508_v51 = vshll.u32 %v73_v20, 16  ;;  %v70_v15 = vld [vmem:[%s18314_s0 + $0xac] sm:$0xf] }
  0x3d   :  { %v448_v41 = vrot.slane %v446_v24, 5  ;;  %v434_v56 = vrot.slane %v433_v33, 4  ;;  %v501_v57 = vrot.slane %v499_v34, 4  ;;  %v512_v59 = vshrl.u32 %v73_v20, 16  ;;  %v71_v20 = vld [vmem:[%s18314_s0 + $0xb0] sm:$0x1] }
  0x3e   :  { %v10192_v53 = vsel %vm9905_vm2, %v468_v31, %v472_v18  ;;  %v444_v60 = vrot.slane %v443_v38, 4  ;;  %v504_v0 = vrot.slane %v502_v46, 5  ;;  %v510_v8 = vrot.slane %v508_v51, 5  ;;  %v84_v51 = vld [vmem:[%s18314_s0 + $0xe4] sm:$0xf] }
  0x3f   :  { %18744 = vst [vmem:[#allocation27_spill] sm:$0xff] %v10192_v53  ;;  %v10196_v50 = vcombine.low %v10185_v30, %v10192_v53  ;;  %v10203_v7 = vsel %vm9905_vm2, %v434_v56, %v438_v21  ;;  %v514_v9 = vrot.slane %v512_v59, 4  ;;  %v518_v12 = vshll.u32 %v74_v42, 16 }
  0x40   :  { %18746 = vst [vmem:[#allocation29_spill] sm:$0xff] %v10203_v7  ;;  %v10212_v18 = vsel %vm9905_vm2, %v444_v60, %v448_v41  ;;  %v505_v19 = vor.u32 %v504_v0, %v501_v57  ;;  %v475_v33 = vshrl.u32 %v69_v1, 16  ;;  %v478_v34 = vshll.u32 %v69_v1, 16  ;;  %v85_v0 = vld [vmem:[%s18314_s0 + $0xe8] sm:$0xf] }
  0x41   :  { %18745 = vst [vmem:[#allocation28_spill] sm:$0xff] %v10196_v50  ;;  %1647 = vrot.lane.b32.xlu1 %v10196_v50, %s9830_s23  ;;  %18747 = vst [vmem:[#allocation30_spill] sm:$0xff] %v10212_v18  ;;  %v10219_v21 = vcombine.low %v10203_v7, %v10212_v18  ;;  %v515_v22 = vor.u32 %v514_v9, %v510_v8  ;;  %v520_v24 = vrot.slane %v518_v12, 5  ;;  %v484_v38 = vshll.u32 %v70_v15, 16  ;;  %v86_v12 = vld [vmem:[%s18314_s0 + $0xec] sm:$0x1] }
  0x42   :  { %v506_v31 = vrot.slane %v505_v19, 4  ;;  %v488_v42 = vshrl.u32 %v70_v15, 16  ;;  %v494_v46 = vshll.u32 %v71_v20, 16  ;;  %v477_v57 = vrot.slane %v475_v33, 4 }
  0x43   :  { %18748 = vst [vmem:[#allocation31_spill] sm:$0xff] %v10219_v21  ;;  %1645 = vrot.lane.b32.xlu0 %v10219_v21, %s9830_s23  ;;  %v516_v41 = vrot.slane %v515_v22, 4  ;;  %v480_v59 = vrot.slane %v478_v34, 5  ;;  %v486_v60 = vrot.slane %v484_v38, 5  ;;  %v547_v20 = vshrl.u32 %v84_v51, 16 }
  0x44   :  { %v10228_v56 = vsel %vm9905_vm2, %v506_v31, %v510_v8  ;;  %v490_v9 = vrot.slane %v488_v42, 4  ;;  %v496_v19 = vrot.slane %v494_v46, 5  ;;  %v550_v31 = vshll.u32 %v84_v51, 16  ;;  %v82_v51 = vld [vmem:[%s18314_s0 + $0xdc] sm:$0xf] }
  0x45   :  { %18749 = vst [vmem:[#allocation32_spill] sm:$0xff] %v10228_v56  ;;  %v10235_v1 = vsel %vm9905_vm2, %v516_v41, %v520_v24  ;;  %v481_v15 = vor.u32 %v480_v59, %v477_v57  ;;  %v556_v33 = vshll.u32 %v85_v0, 16  ;;  %v560_v34 = vshrl.u32 %v85_v0, 16  ;;  %v81_v24 = vld [vmem:[%s18314_s0 + $0xd8] sm:$0xf] }
  0x46   :  { %18750 = vst [vmem:[#allocation33_spill] sm:$0xff] %v10235_v1  ;;  %v10242_v8 = vcombine.low %v10228_v56, %v10235_v1  ;;  %v491_v22 = vor.u32 %v490_v9, %v486_v60  ;;  %v549_v41 = vrot.slane %v547_v20, 4  ;;  %v566_v42 = vshll.u32 %v86_v12, 16 }
  0x47   :  { %v482_v38 = vrot.slane %v481_v15, 4  ;;  %v552_v1 = vrot.slane %v550_v31, 5  ;;  %v558_v56 = vrot.slane %v556_v33, 5  ;;  %v562_v57 = vrot.slane %v560_v34, 4 }
  0x48   :  { %18751 = vst [vmem:[#allocation34_spill] sm:$0xff] %v10242_v8  ;;  %1651 = vrot.lane.b32.xlu1 %v10242_v8, %s9830_s23  ;;  %v492_v18 = vrot.slane %v491_v22, 4  ;;  %v523_v59 = vshrl.u32 %v81_v24, 16  ;;  %v526_v0 = vshll.u32 %v81_v24, 16  ;;  %v568_v20 = vrot.slane %v566_v42, 5 }
  0x49   :  { %v10251_v46 = vsel %vm9905_vm2, %v482_v38, %v486_v60  ;;  %v553_v15 = vor.u32 %v552_v1, %v549_v41  ;;  %v563_v12 = vor.u32 %v562_v57, %v558_v56  ;;  %v83_v22 = vld [vmem:[%s18314_s0 + $0xe0] sm:$0x1]  ;;  %v90_v60 = vld [vmem:[%s18314_s0 + $0xfc] sm:$0xf]  ;;  %v536_v1 = vshrl.u32 %v82_v51, 16 }
  0x4a   :  { %18752 = vst [vmem:[#allocation35_spill] sm:$0xff] %v10251_v46  ;;  %v10258_v9 = vsel %vm9905_vm2, %v492_v18, %v496_v19  ;;  %v525_v33 = vrot.slane %v523_v59, 4  ;;  %v528_v34 = vrot.slane %v526_v0, 5  ;;  %v532_v19 = vshll.u32 %v82_v51, 16  ;;  %v91_v51 = vld [vmem:[%s18314_s0 + $0x100] sm:$0xf] }
  0x4b   :  { %18753 = vst [vmem:[#allocation36_spill] sm:$0xff] %v10258_v9  ;;  %v10268_v31 = vcombine.low %v10251_v46, %v10258_v9  ;;  %v554_v24 = vrot.slane %v553_v15, 4  ;;  %v564_v18 = vrot.slane %v563_v12, 4  ;;  %v542_v41 = vshll.u32 %v83_v22, 16  ;;  %v92_v15 = vld [vmem:[%s18314_s0 + $0x104] sm:$0x1] }
  0x4c   :  { %v529_v38 = vor.u32 %v528_v34, %v525_v33  ;;  %v595_v42 = vshrl.u32 %v90_v60, 16  ;;  %v534_v59 = vrot.slane %v532_v19, 5  ;;  %v538_v0 = vrot.slane %v536_v1, 4 }
  0x4d   :  { %18754 = vst [vmem:[#allocation37_spill] sm:$0xff] %v10268_v31  ;;  %1649 = vrot.lane.b32.xlu0 %v10268_v31, %s9830_s23  ;;  %v10274_v57 = vsel %vm9905_vm2, %v554_v24, %v558_v56  ;;  %v10278_v9 = vsel %vm9905_vm2, %v564_v18, %v568_v20  ;;  %v87_v20 = vld [vmem:[%s18314_s0 + $0xf0] sm:$0xf]  ;;  %v544_v33 = vrot.slane %v542_v41, 5  ;;  %v598_v24 = vshll.u32 %v90_v60, 16 }
  0x4e   :  { %18755 = vst [vmem:[#allocation38_spill] sm:$0xff] %v10274_v57  ;;  %18756 = vst [vmem:[#allocation39_spill] sm:$0xff] %v10278_v9  ;;  %v10288_v12 = vcombine.low %v10274_v57, %v10278_v9  ;;  %v530_v56 = vrot.slane %v529_v38, 4  ;;  %v539_v22 = vor.u32 %v538_v0, %v534_v59  ;;  %v597_v34 = vrot.slane %v595_v42, 4  ;;  %v88_v9 = vld [vmem:[%s18314_s0 + $0xf4] sm:$0xf] }
  0x4f   :  { %v604_v18 = vshll.u32 %v91_v51, 16  ;;  %v608_v19 = vshrl.u32 %v91_v51, 16  ;;  %v614_v1 = vshll.u32 %v92_v15, 16  ;;  %v600_v46 = vrot.slane %v598_v24, 5  ;;  %v89_v60 = vld [vmem:[%s18314_s0 + $0xf8] sm:$0x1] }
  0x50   :  { %18757 = vst [vmem:[#allocation40_spill] sm:$0xff] %v10288_v12  ;;  %1655 = vrot.lane.b32.xlu1 %v10288_v12, %s9830_s23  ;;  %v535_v38 = vsel %vm9905_vm2, %v530_v56, %v534_v59  ;;  %v540_v57 = vrot.slane %v539_v22, 4  ;;  %v571_v7 = vshrl.u32 %v87_v20, 16  ;;  %v574_v53 = vshll.u32 %v87_v20, 16  ;;  %v96_v59 = vld [vmem:[%s18314_s0 + $0x114] sm:$0xf] }
  0x51   :  { %v606_v0 = vrot.slane %v604_v18, 5  ;;  %v610_v41 = vrot.slane %v608_v19, 4  ;;  %v616_v42 = vrot.slane %v614_v1, 5  ;;  %v601_v15 = vor.u32 %v600_v46, %v597_v34  ;;  %v97_v19 = vld [vmem:[%s18314_s0 + $0x118] sm:$0xf] }
  0x52   :  { %v545_v51 = vsel %vm9905_vm2, %v540_v57, %v544_v33  ;;  %v573_v30 = vrot.slane %v571_v7, 4  ;;  %v580_v5 = vshll.u32 %v88_v9, 16  ;;  %v576_v24 = vrot.slane %v574_v53, 5  ;;  %v9684_v12 = vld [vmem:[%s18314_s0 + $0x80] sm:$0x1] }
  0x53   :  { %v8952_v56 = vcombine.low %v535_v38, %v545_v51  ;;  %v611_v22 = vor.u32 %v610_v41, %v606_v0  ;;  %v584_v18 = vshrl.u32 %v88_v9, 16  ;;  %v602_v1 = vrot.slane %v601_v15, 4 }
  0x54   :  { %v582_v20 = vrot.slane %v580_v5, 5  ;;  %v590_v54 = vshll.u32 %v89_v60, 16  ;;  %v577_v7 = vor.u32 %v576_v24, %v573_v30  ;;  %v643_v33 = vshrl.u32 %v96_v59, 16  ;;  %v98_v60 = vld [vmem:[%s18314_s0 + $0x11c] sm:$0x1] }
  0x55   :  { %1653 = vrot.lane.b32.xlu0 %v8952_v56, %s9830_s23  ;;  %v612_v46 = vrot.slane %v611_v22, 4  ;;  %v586_v57 = vrot.slane %v584_v18, 4  ;;  %v10314_v34 = vsel %vm9905_vm2, %v602_v1, %v606_v0  ;;  %v646_v38 = vshll.u32 %v96_v59, 16  ;;  %v93_v59 = vld [vmem:[%s18314_s0 + $0x108] sm:$0xf] }
  0x56   :  { %18758 = vst [vmem:[#allocation41_spill] sm:$0xff] %v10314_v34  ;;  %v652_v53 = vshll.u32 %v97_v19, 16  ;;  %v578_v41 = vrot.slane %v577_v7, 4  ;;  %v592_v5 = vrot.slane %v590_v54, 5  ;;  %v645_v15 = vrot.slane %v643_v33, 4 }
  0x57   :  { %v10318_v9 = vsel %vm9905_vm2, %v612_v46, %v616_v42  ;;  %v587_v51 = vor.u32 %v586_v57, %v582_v20  ;;  %v648_v0 = vrot.slane %v646_v38, 5  ;;  %v656_v22 = vshrl.u32 %v97_v19, 16  ;;  %v94_v1 = vld [vmem:[%s18314_s0 + $0x10c] sm:$0xf] }
  0x58   :  { %18759 = vst [vmem:[#allocation42_spill] sm:$0xff] %v10318_v9  ;;  %v10325_v30 = vcombine.low %v10314_v34, %v10318_v9  ;;  %v10332_v42 = vsel %vm9905_vm2, %v578_v41, %v582_v20  ;;  %v654_v54 = vrot.slane %v652_v53, 5  ;;  %v662_v18 = vshll.u32 %v98_v60, 16  ;;  %v95_v20 = vld [vmem:[%s18314_s0 + $0x110] sm:$0x1] }
  0x59   :  { %18761 = vst [vmem:[#allocation44_spill] sm:$0xff] %v10332_v42  ;;  %v588_v56 = vrot.slane %v587_v51, 4  ;;  %v649_v24 = vor.u32 %v648_v0, %v645_v15  ;;  %v658_v7 = vrot.slane %v656_v22, 4  ;;  %v619_v57 = vshrl.u32 %v93_v59, 16 }
  0x5a   :  { %18760 = vst [vmem:[#allocation43_spill] sm:$0xff] %v10325_v30  ;;  %1659 = vrot.lane.b32.xlu1 %v10325_v30, %s9830_s23  ;;  %v622_v19 = vshll.u32 %v93_v59, 16  ;;  %v664_v53 = vrot.slane %v662_v18, 5  ;;  %v628_v15 = vshll.u32 %v94_v1, 16  ;;  %v632_v0 = vshrl.u32 %v94_v1, 16 }
  0x5b   :  { %v10341_v46 = vsel %vm9905_vm2, %v588_v56, %v592_v5  ;;  %v650_v38 = vrot.slane %v649_v24, 4  ;;  %v659_v41 = vor.u32 %v658_v7, %v654_v54  ;;  %v621_v51 = vrot.slane %v619_v57, 4  ;;  %v102_v5 = vld [vmem:[%s18314_s0 + $0x12c] sm:$0xf]  ;;  %v103_v59 = vld [vmem:[%s18314_s0 + $0x130] sm:$0xf] }
  0x5c   :  { %18762 = vst [vmem:[#allocation45_spill] sm:$0xff] %v10341_v46  ;;  %v10348_v33 = vcombine.low %v10332_v42, %v10341_v46  ;;  %v624_v60 = vrot.slane %v622_v19, 5  ;;  %v638_v56 = vshll.u32 %v95_v20, 16  ;;  %v630_v7 = vrot.slane %v628_v15, 5  ;;  %v104_v20 = vld [vmem:[%s18314_s0 + $0x134] sm:$0x1] }
  0x5d   :  { %v10360_v22 = vsel %vm9905_vm2, %v650_v38, %v654_v54  ;;  %v660_v24 = vrot.slane %v659_v41, 4  ;;  %v634_v57 = vrot.slane %v632_v0, 4  ;;  %v691_v19 = vshrl.u32 %v102_v5, 16  ;;  %v100_v0 = vld [vmem:[%s18314_s0 + $0x124] sm:$0xf] }
  0x5e   :  { %18763 = vst [vmem:[#allocation46_spill] sm:$0xff] %v10348_v33  ;;  %1657 = vrot.lane.b32.xlu0 %v10348_v33, %s9830_s23  ;;  %18764 = vst [vmem:[#allocation47_spill] sm:$0xff] %v10360_v22  ;;  %v625_v18 = vor.u32 %v624_v60, %v621_v51  ;;  %v694_v46 = vshll.u32 %v102_v5, 16  ;;  %v700_v9 = vshll.u32 %v103_v59, 16  ;;  %v704_v34 = vshrl.u32 %v103_v59, 16 }
  0x5f   :  { %v10364_v42 = vsel %vm9905_vm2, %v660_v24, %v664_v53  ;;  %v635_v38 = vor.u32 %v634_v57, %v630_v7  ;;  %v640_v41 = vrot.slane %v638_v56, 5  ;;  %v693_v51 = vrot.slane %v691_v19, 4  ;;  %v99_v60 = vld [vmem:[%s18314_s0 + $0x120] sm:$0xf]  ;;  %v10853_v30 = vld [vmem:[%s18314_s0 + $0x7c] sm:$0xf] }
  0x60   :  { %18765 = vst [vmem:[#allocation48_spill] sm:$0xff] %v10364_v42  ;;  %v626_v1 = vrot.slane %v625_v18, 4  ;;  %v10371_v54 = vcombine.low %v10360_v22, %v10364_v42  ;;  %v696_v53 = vrot.slane %v694_v46, 5  ;;  %v702_v15 = vrot.slane %v700_v9, 5  ;;  %v101_v46 = vld [vmem:[%s18314_s0 + $0x128] sm:$0x1] }
  0x61   :  { %v706_v5 = vrot.slane %v704_v34, 4  ;;  %v636_v56 = vrot.slane %v635_v38, 4  ;;  %v710_v24 = vshll.u32 %v104_v20, 16  ;;  %v667_v19 = vshrl.u32 %v99_v60, 16 }
  0x62   :  { %18766 = vst [vmem:[#allocation49_spill] sm:$0xff] %v10371_v54  ;;  %1663 = vrot.lane.b32.xlu1 %v10371_v54, %s9830_s23  ;;  %v10383_v59 = vsel %vm9905_vm2, %v626_v1, %v630_v7  ;;  %v697_v18 = vor.u32 %v696_v53, %v693_v51  ;;  %v670_v42 = vshll.u32 %v99_v60, 16  ;;  %v676_v22 = vshll.u32 %v100_v0, 16 }
  0x63   :  { %18767 = vst [vmem:[#allocation50_spill] sm:$0xff] %v10383_v59  ;;  %v707_v57 = vor.u32 %v706_v5, %v702_v15  ;;  %v10387_v34 = vsel %vm9905_vm2, %v636_v56, %v640_v41  ;;  %v712_v9 = vrot.slane %v710_v24, 5  ;;  %v680_v29 = vshrl.u32 %v100_v0, 16  ;;  %v108_v41 = vld [vmem:[%s18314_s0 + $0x144] sm:$0xf] }
  0x64   :  { %18768 = vst [vmem:[#allocation51_spill] sm:$0xff] %v10387_v34  ;;  %v10394_v7 = vcombine.low %v10383_v59, %v10387_v34  ;;  %v698_v1 = vrot.slane %v697_v18, 4  ;;  %v669_v38 = vrot.slane %v667_v19, 4  ;;  %v672_v51 = vrot.slane %v670_v42, 5  ;;  %v110_v42 = vld [vmem:[%s18314_s0 + $0x14c] sm:$0x1] }
  0x65   :  { %v708_v20 = vrot.slane %v707_v57, 4  ;;  %v678_v60 = vrot.slane %v676_v22, 5  ;;  %v682_v53 = vrot.slane %v680_v29, 4  ;;  %v686_v56 = vshll.u32 %v101_v46, 16  ;;  %v109_v29 = vld [vmem:[%s18314_s0 + $0x148] sm:$0xf] }
  0x66   :  { %18769 = vst [vmem:[#allocation52_spill] sm:$0xff] %v10394_v7  ;;  %1661 = vrot.lane.b32.xlu0 %v10394_v7, %s9830_s23  ;;  %v10403_v5 = vsel %vm9905_vm2, %v698_v1, %v702_v15  ;;  %v673_v24 = vor.u32 %v672_v51, %v669_v38  ;;  %v739_v57 = vshrl.u32 %v108_v41, 16  ;;  %v742_v19 = vshll.u32 %v108_v41, 16  ;;  %v105_v34 = vld [vmem:[%s18314_s0 + $0x138] sm:$0xf] }
  0x67   :  { %18770 = vst [vmem:[#allocation53_spill] sm:$0xff] %v10403_v5  ;;  %v10407_v0 = vsel %vm9905_vm2, %v708_v20, %v712_v9  ;;  %v683_v15 = vor.u32 %v682_v53, %v678_v60  ;;  %v688_v18 = vrot.slane %v686_v56, 5  ;;  %v748_v46 = vshll.u32 %v109_v29, 16  ;;  %v106_v41 = vld [vmem:[%s18314_s0 + $0x13c] sm:$0xf] }
  0x68   :  { %18771 = vst [vmem:[#allocation54_spill] sm:$0xff] %v10407_v0  ;;  %v10417_v22 = vcombine.low %v10403_v5, %v10407_v0  ;;  %v674_v9 = vrot.slane %v673_v24, 4  ;;  %v752_v1 = vshrl.u32 %v109_v29, 16  ;;  %v758_v20 = vshll.u32 %v110_v42, 16  ;;  %v107_v42 = vld [vmem:[%s18314_s0 + $0x140] sm:$0x1] }
  0x69   :  { %v684_v59 = vrot.slane %v683_v15, 4  ;;  %v741_v27 = vrot.slane %v739_v57, 4  ;;  %v744_v0 = vrot.slane %v742_v19, 5  ;;  %v750_v51 = vrot.slane %v748_v46, 5 }
  0x6a   :  { %18772 = vst [vmem:[#allocation55_spill] sm:$0xff] %v10417_v22  ;;  %1667 = vrot.lane.b32.xlu1 %v10417_v22, %s9830_s23  ;;  %v10426_v38 = vsel %vm9905_vm2, %v674_v9, %v678_v60  ;;  %v754_v53 = vrot.slane %v752_v1, 4  ;;  %v715_v24 = vshrl.u32 %v105_v34, 16  ;;  %v760_v57 = vrot.slane %v758_v20, 5  ;;  %v114_v9 = vld [vmem:[%s18314_s0 + $0x15c] sm:$0xf] }
  0x6b   :  { %18773 = vst [vmem:[#allocation56_spill] sm:$0xff] %v10426_v38  ;;  %v10433_v56 = vsel %vm9905_vm2, %v684_v59, %v688_v18  ;;  %v745_v29 = vor.u32 %v744_v0, %v741_v27  ;;  %v718_v19 = vshll.u32 %v105_v34, 16  ;;  %v724_v18 = vshll.u32 %v106_v41, 16 }
  0x6c   :  { %18774 = vst [vmem:[#allocation57_spill] sm:$0xff] %v10433_v56  ;;  %v10440_v60 = vcombine.low %v10426_v38, %v10433_v56  ;;  %v755_v15 = vor.u32 %v754_v53, %v750_v51  ;;  %v717_v59 = vrot.slane %v715_v24, 4  ;;  %v728_v27 = vshrl.u32 %v106_v41, 16  ;;  %v115_v53 = vld [vmem:[%s18314_s0 + $0x160] sm:$0xf] }
  0x6d   :  { %v746_v46 = vrot.slane %v745_v29, 4  ;;  %v720_v1 = vrot.slane %v718_v19, 5  ;;  %v734_v5 = vshll.u32 %v107_v42, 16  ;;  %v726_v20 = vrot.slane %v724_v18, 5  ;;  %v116_v42 = vld [vmem:[%s18314_s0 + $0x164] sm:$0x1] }
  0x6e   :  { %18775 = vst [vmem:[#allocation58_spill] sm:$0xff] %v10440_v60  ;;  %1665 = vrot.lane.b32.xlu0 %v10440_v60, %s9830_s23  ;;  %v756_v0 = vrot.slane %v755_v15, 4  ;;  %v730_v34 = vrot.slane %v728_v27, 4  ;;  %v787_v29 = vshrl.u32 %v114_v9, 16  ;;  %v790_v38 = vshll.u32 %v114_v9, 16 }
  0x6f   :  { %v10449_v56 = vsel %vm9905_vm2, %v746_v46, %v750_v51  ;;  %v721_v24 = vor.u32 %v720_v1, %v717_v59  ;;  %v111_v51 = vld [vmem:[%s18314_s0 + $0x150] sm:$0xf]  ;;  %v736_v46 = vrot.slane %v734_v5, 5  ;;  %v806_v1 = vshll.u32 %v116_v42, 16  ;;  %v113_v9 = vld [vmem:[%s18314_s0 + $0x158] sm:$0x1] }
  0x70   :  { %18776 = vst [vmem:[#allocation59_spill] sm:$0xff] %v10449_v56  ;;  %v10456_v41 = vsel %vm9905_vm2, %v756_v0, %v760_v57  ;;  %v731_v19 = vor.u32 %v730_v34, %v726_v20  ;;  %v789_v18 = vrot.slane %v787_v29, 4  ;;  %v796_v57 = vshll.u32 %v115_v53, 16  ;;  %v120_v42 = vld [vmem:[%s18314_s0 + $0x174] sm:$0xf] }
  0x71   :  { %18777 = vst [vmem:[#allocation60_spill] sm:$0xff] %v10456_v41  ;;  %v10466_v15 = vcombine.low %v10449_v56, %v10456_v41  ;;  %v722_v27 = vrot.slane %v721_v24, 4  ;;  %v800_v0 = vshrl.u32 %v115_v53, 16  ;;  %v763_v48 = vshrl.u32 %v111_v51, 16 }
  0x72   :  { %v732_v59 = vrot.slane %v731_v19, 4  ;;  %v792_v5 = vrot.slane %v790_v38, 5  ;;  %v798_v34 = vrot.slane %v796_v57, 5  ;;  %v808_v24 = vrot.slane %v806_v1, 5 }
  0x73   :  { %18778 = vst [vmem:[#allocation61_spill] sm:$0xff] %v10466_v15  ;;  %1671 = vrot.lane.b32.xlu1 %v10466_v15, %s9830_s23  ;;  %v10475_v41 = vsel %vm9905_vm2, %v722_v27, %v726_v20  ;;  %v802_v29 = vrot.slane %v800_v0, 4  ;;  %v765_v27 = vrot.slane %v763_v48, 4  ;;  %v766_v57 = vshll.u32 %v111_v51, 16  ;;  %v122_v51 = vld [vmem:[%s18314_s0 + $0x17c] sm:$0x1] }
  0x74   :  { %18779 = vst [vmem:[#allocation62_spill] sm:$0xff] %v10475_v41  ;;  %v10482_v53 = vsel %vm9905_vm2, %v732_v59, %v736_v46  ;;  %v793_v38 = vor.u32 %v792_v5, %v789_v18  ;;  %v772_v0 = vshll.u32 %v112_v55, 16  ;;  %v776_v56 = vshrl.u32 %v112_v55, 16 }
  0x75   :  { %18780 = vst [vmem:[#allocation63_spill] sm:$0xff] %v10482_v53  ;;  %v10489_v20 = vcombine.low %v10475_v41, %v10482_v53  ;;  %v803_v19 = vor.u32 %v802_v29, %v798_v34  ;;  %v782_v37 = vshll.u32 %v113_v9, 16  ;;  %v835_v1 = vshrl.u32 %v120_v42, 16  ;;  %v121_v53 = vld [vmem:[%s18314_s0 + $0x178] sm:$0xf] }
  0x76   :  { %v794_v46 = vrot.slane %v793_v38, 4  ;;  %v768_v23 = vrot.slane %v766_v57, 5  ;;  %v774_v6 = vrot.slane %v772_v0, 5  ;;  %v778_v58 = vrot.slane %v776_v56, 4  ;;  %v117_v56 = vld [vmem:[%s18314_s0 + $0x168] sm:$0xf] }
  0x77   :  { %18781 = vst [vmem:[#allocation64_spill] sm:$0xff] %v10489_v20  ;;  %1669 = vrot.lane.b32.xlu0 %v10489_v20, %s9830_s23  ;;  %v804_v59 = vrot.slane %v803_v19, 4  ;;  %v837_v18 = vrot.slane %v835_v1, 4  ;;  %v838_v5 = vshll.u32 %v120_v42, 16  ;;  %v784_v9 = vrot.slane %v782_v37, 5 }
  0x78   :  { %v10498_v48 = vsel %vm9905_vm2, %v794_v46, %v798_v34  ;;  %v769_v34 = vor.u32 %v768_v23, %v765_v27  ;;  %v779_v38 = vor.u32 %v778_v58, %v774_v6  ;;  %v848_v57 = vshrl.u32 %v121_v53, 16  ;;  %v119_v23 = vld [vmem:[%s18314_s0 + $0x170] sm:$0x1] }
  0x79   :  { %18782 = vst [vmem:[#allocation65_spill] sm:$0xff] %v10498_v48  ;;  %v10502_v55 = vsel %vm9905_vm2, %v804_v59, %v808_v24  ;;  %v840_v19 = vrot.slane %v838_v5, 5  ;;  %v844_v24 = vshll.u32 %v121_v53, 16  ;;  %v854_v46 = vshll.u32 %v122_v51, 16 }
  0x7a   :  { %18783 = vst [vmem:[#allocation66_spill] sm:$0xff] %v10502_v55  ;;  %v10512_v29 = vcombine.low %v10498_v48, %v10502_v55  ;;  %v770_v0 = vrot.slane %v769_v34, 4  ;;  %v811_v42 = vshrl.u32 %v117_v56, 16  ;;  %v780_v59 = vrot.slane %v779_v38, 4  ;;  %v118_v55 = vld [vmem:[%s18314_s0 + $0x16c] sm:$0xf] }
  0x7b   :  { %v841_v1 = vor.u32 %v840_v19, %v837_v18  ;;  %v846_v41 = vrot.slane %v844_v24, 5  ;;  %v850_v35 = vrot.slane %v848_v57, 4  ;;  %v814_v53 = vshll.u32 %v117_v56, 16  ;;  %v126_v19 = vld [vmem:[%s18314_s0 + $0x18c] sm:$0xf] }
  0x7c   :  { %18784 = vst [vmem:[#allocation67_spill] sm:$0xff] %v10512_v29  ;;  %1675 = vrot.lane.b32.xlu1 %v10512_v29, %s9830_s23  ;;  %v10521_v58 = vsel %vm9905_vm2, %v770_v0, %v774_v6  ;;  %v813_v37 = vrot.slane %v811_v42, 4  ;;  %v10528_v27 = vsel %vm9905_vm2, %v780_v59, %v784_v9  ;;  %v856_v5 = vrot.slane %v854_v46, 5  ;;  %v127_v46 = vld [vmem:[%s18314_s0 + $0x190] sm:$0xf] }
  0x7d   :  { %18785 = vst [vmem:[#allocation68_spill] sm:$0xff] %v10521_v58  ;;  %18786 = vst [vmem:[#allocation69_spill] sm:$0xff] %v10528_v27  ;;  %v842_v51 = vrot.slane %v841_v1, 4  ;;  %v851_v18 = vor.u32 %v850_v35, %v846_v41  ;;  %v10532_v34 = vcombine.low %v10521_v58, %v10528_v27  ;;  %v816_v38 = vrot.slane %v814_v53, 5 }
  0x7e   :  { %v820_v6 = vshll.u32 %v118_v55, 16  ;;  %v824_v9 = vshrl.u32 %v118_v55, 16  ;;  %v830_v57 = vshll.u32 %v119_v23, 16  ;;  %v883_v55 = vshrl.u32 %v126_v19, 16 }
  0x7f   :  { %18787 = vst [vmem:[#allocation70_spill] sm:$0xff] %v10532_v34  ;;  %v10539_v56 = vsel %vm9905_vm2, %v842_v51, %v846_v41  ;;  %v852_v24 = vrot.slane %v851_v18, 4  ;;  %1673 = vrot.lane.b32.xlu0 %v10532_v34, %s9830_s23  ;;  %v817_v35 = vor.u32 %v816_v38, %v813_v37  ;;  %v128_v41 = vld [vmem:[%s18314_s0 + $0x194] sm:$0x1]  ;;  %v886_v53 = vshll.u32 %v126_v19, 16 }
  0x80   :  { %18788 = vst [vmem:[#allocation71_spill] sm:$0xff] %v10539_v56  ;;  %v822_v0 = vrot.slane %v820_v6, 5  ;;  %v826_v59 = vrot.slane %v824_v9, 4  ;;  %v832_v37 = vrot.slane %v830_v57, 5  ;;  %v885_v18 = vrot.slane %v883_v55, 4 }
  0x81   :  { %v10548_v42 = vsel %vm9905_vm2, %v852_v24, %v856_v5  ;;  %v818_v23 = vrot.slane %v817_v35, 4  ;;  %v892_v38 = vshll.u32 %v127_v46, 16  ;;  %v896_v6 = vshrl.u32 %v127_v46, 16  ;;  %v123_v5 = vld [vmem:[%s18314_s0 + $0x180] sm:$0xf] }
  0x82   :  { %18789 = vst [vmem:[#allocation72_spill] sm:$0xff] %v10548_v42  ;;  %v10555_v1 = vcombine.low %v10539_v56, %v10548_v42  ;;  %v827_v51 = vor.u32 %v826_v59, %v822_v0  ;;  %v888_v24 = vrot.slane %v886_v53, 5  ;;  %v902_v9 = vshll.u32 %v128_v41, 16  ;;  %v124_v42 = vld [vmem:[%s18314_s0 + $0x184] sm:$0xf] }
  0x83   :  { %v10567_v19 = vsel %vm9905_vm2, %v818_v23, %v822_v0  ;;  %v894_v35 = vrot.slane %v892_v38, 5  ;;  %v898_v46 = vrot.slane %v896_v6, 4  ;;  %v859_v56 = vshrl.u32 %v123_v5, 16  ;;  %v125_v53 = vld [vmem:[%s18314_s0 + $0x188] sm:$0x1] }
  0x84   :  { %18790 = vst [vmem:[#allocation73_spill] sm:$0xff] %v10555_v1  ;;  %1679 = vrot.lane.b32.xlu1 %v10555_v1, %s9830_s23  ;;  %18791 = vst [vmem:[#allocation74_spill] sm:$0xff] %v10567_v19  ;;  %v828_v57 = vrot.slane %v827_v51, 4  ;;  %v889_v59 = vor.u32 %v888_v24, %v885_v18  ;;  %v904_v55 = vrot.slane %v902_v9, 5  ;;  %v862_v27 = vshll.u32 %v123_v5, 16 }
  0x85   :  { %v899_v41 = vor.u32 %v898_v46, %v894_v35  ;;  %v868_v48 = vshll.u32 %v124_v42, 16  ;;  %v872_v25 = vshrl.u32 %v124_v42, 16  ;;  %v861_v51 = vrot.slane %v859_v56, 4 }
  0x86   :  { %v10571_v58 = vsel %vm9905_vm2, %v828_v57, %v832_v37  ;;  %v890_v23 = vrot.slane %v889_v59, 4  ;;  %v864_v38 = vrot.slane %v862_v27, 5  ;;  %v878_v24 = vshll.u32 %v125_v53, 16  ;;  %v9651_v53 = vld [vmem:[%s18314_s0 + $0x14] sm:$0x1] }
  0x87   :  { %18792 = vst [vmem:[#allocation75_spill] sm:$0xff] %v10571_v58  ;;  %v10578_v0 = vcombine.low %v10567_v19, %v10571_v58  ;;  %v900_v18 = vrot.slane %v899_v41, 4  ;;  %v870_v6 = vrot.slane %v868_v48, 5  ;;  %v874_v5 = vrot.slane %v872_v25, 4 }
  0x88   :  { %v10584_v37 = vsel %vm9905_vm2, %v890_v23, %v894_v35  ;;  %vm1002_vm3 = vcmask 1042432   ;;  %v865_v9 = vor.u32 %v864_v38, %v861_v51  ;;  %v880_v25 = vrot.slane %v878_v24, 5  ;;  %v10601_v35 = vld [vmem:[%s18314_s0 + $0xc] sm:$0xf]  ;;  %v10618_v51 = vld [vmem:[%s18314_s0] sm:$0xf] }
  0x89   :  { %18793 = vst [vmem:[#allocation76_spill] sm:$0xff] %v10578_v0  ;;  %1677 = vrot.lane.b32.xlu0 %v10578_v0, %s9830_s23  ;;  %18794 = vst [vmem:[#allocation77_spill] sm:$0xff] %v10584_v37  ;;  %v10588_v42 = vsel %vm9905_vm2, %v900_v18, %v904_v55  ;;  %v875_v57 = vor.u32 %v874_v5, %v870_v6  ;;  %vm1003_vm4 = vcmask 1046532   ;;  %v18797_v46 = vmov 0  ;;  %v10607_v55 = vld [vmem:[%s18314_s0 + $0x10] sm:$0xf] }
  0x8a   :  { %18795 = vst [vmem:[#allocation78_spill] sm:$0xff] %v10588_v42  ;;  %v10592_v27 = vcombine.low %v10584_v37, %v10588_v42  ;;  %v866_v48 = vrot.slane %v865_v9, 4  ;;  %vm10594_vm5 = vmor %vm1002_vm3, %vm1003_vm4  ;;  %v8869_v59 = vrot.slane %v10601_v35, 9  ;;  %v1014_v41 = vrot.slane %v10607_v55, 5  ;;  %v10624_v38 = vld [vmem:[%s18314_s0 + $0x4] sm:$0xf] }
  0x8b   :  { %v876_v56 = vrot.slane %v875_v57, 4  ;;  %v18798_v46 = vsel %vm10594_vm5, 4294967295, %v18797_v46  ;;  %v1017_v23 = vrot.slane %v9651_v53, 5  ;;  %v8868_v18 = vrot.slane %v10618_v51, 9  ;;  %v9654_v24 = vld [vmem:[%s18314_s0 + $0x8] sm:$0x1] }
  0x8c   :  { %18796 = vst [vmem:[#allocation79_spill] sm:$0xff] %v10592_v27  ;;  %18799 = vst [vmem:[#allocation80_spill] sm:$0xff] %v18798_v46  ;;  %1683 = vrot.lane.b32.xlu1 %v10592_v27, %s9830_s23  ;;  %v1007_v5 = vrot.slane %v10624_v38, 5  ;;  %v1010_v9 = vrot.slane %v9654_v24, 5  ;;  %v10632_v57 = vsel %vm9905_vm2, %v866_v48, %v870_v6  ;;  %v1015_v42 = vsel %vm10594_vm5, %v8869_v59, %v1014_v41  ;;  %v10761_v27 = vld [vmem:[%s18314_s0 + $0x4c] sm:$0xf] }
  0x8d   :  { %18800 = vst [vmem:[#allocation81_spill] sm:$0xff] %v10632_v57  ;;  %v10636_v53 = vsel %vm9905_vm2, %v876_v56, %v880_v25  ;;  %v1016_v37 = vrot.slane %v1014_v41, 4  ;;  %v10651_v25 = vld [vmem:[%s18314_s0 + $0x24] sm:$0xf]  ;;  %v10657_v56 = vld [vmem:[%s18314_s0 + $0x28] sm:$0xf] }
  0x8e   :  { %18801 = vst [vmem:[#allocation82_spill] sm:$0xff] %v10636_v53  ;;  %v10642_v58 = vcombine.low %v10632_v57, %v10636_v53  ;;  %v1008_v19 = vsel %vm10594_vm5, %v8868_v18, %v1007_v5  ;;  %v1009_v6 = vrot.slane %v1007_v5, 4  ;;  %v8871_v48 = vrot.slane %v10651_v25, 9  ;;  %v10670_v18 = vld [vmem:[%s18314_s0 + $0x18] sm:$0xf] }
  0x8f   :  { %v1018_v24 = vsel %vm10594_vm5, %v1016_v37, %v1017_v23  ;;  %v1028_v59 = vrot.slane %v10657_v56, 5  ;;  %v9657_v37 = vld [vmem:[%s18314_s0 + $0x2c] sm:$0x1]  ;;  %v8870_v5 = vrot.slane %v10670_v18, 9  ;;  %v10676_v53 = vld [vmem:[%s18314_s0 + $0x1c] sm:$0xf] }
  0x90   :  { %18802 = vst [vmem:[#allocation83_spill] sm:$0xff] %v10642_v58  ;;  %1681 = vrot.lane.b32.xlu0 %v10642_v58, %s9830_s23  ;;  %v10662_v41 = vcombine.low %v1015_v42, %v1018_v24  ;;  %v1031_v23 = vrot.slane %v9657_v37, 5  ;;  %v1021_v42 = vrot.slane %v10676_v53, 5  ;;  %v1011_v24 = vsel %vm10594_vm5, %v1009_v6, %v1010_v9  ;;  %v10693_v9 = vld [vmem:[%s18314_s0 + $0x3c] sm:$0xf] }
  0x91   :  { %v1029_v37 = vsel %vm10594_vm5, %v8871_v48, %v1028_v59  ;;  %v1030_v57 = vrot.slane %v1028_v59, 4  ;;  %v1024_v4 = vrot.slane %v9660_v10, 5  ;;  %v8968_v61 = vcombine.low %v1008_v19, %v1011_v24  ;;  %v10701_v10 = vld [vmem:[%s18314_s0 + $0x40] sm:$0xf]  ;;  %v9663_v59 = vld [vmem:[%s18314_s0 + $0x44] sm:$0x1] }
  0x92   :  { %1783 = vrot.lane.b32.xlu1 %v10662_v41, %s9831_s19  ;;  %v1022_v52 = vsel %vm10594_vm5, %v8870_v5, %v1021_v42  ;;  %v1023_v36 = vrot.slane %v1021_v42, 4  ;;  %v8873_v6 = vrot.slane %v10693_v9, 9  ;;  %v1042_v19 = vrot.slane %v10701_v10, 5  ;;  %v10710_v42 = vld [vmem:[%s18314_s0 + $0x30] sm:$0xf] }
  0x93   :  { %v1032_v48 = vsel %vm10594_vm5, %v1030_v57, %v1031_v23  ;;  %v1045_v5 = vrot.slane %v9663_v59, 5  ;;  %v8872_v24 = vrot.slane %v10710_v42, 9  ;;  %v1035_v59 = vrot.slane %v10721_v28, 5 }
  0x94   :  { %1781 = vrot.lane.b32.xlu0 %v8968_v61, %s9831_s19  ;;  %v10714_v57 = vcombine.low %v1029_v37, %v1032_v48  ;;  %v1025_v23 = vsel %vm10594_vm5, %v1023_v36, %v1024_v4  ;;  %v1038_v3 = vrot.slane %v9666_v11, 5  ;;  %v1043_v61 = vsel %vm10594_vm5, %v8873_v6, %v1042_v19  ;;  %v10734_v36 = vld [vmem:[%s18314_s0 + $0x54] sm:$0xf] }
  0x95   :  { %v10727_v40 = vcombine.low %v1022_v52, %v1025_v23  ;;  %v1044_v37 = vrot.slane %v1042_v19, 4  ;;  %v8875_v4 = vrot.slane %v10734_v36, 9  ;;  %v1036_v48 = vsel %vm10594_vm5, %v8872_v24, %v1035_v59  ;;  %v10744_v52 = vld [vmem:[%s18314_s0 + $0x58] sm:$0xf]  ;;  %v9669_v19 = vld [vmem:[%s18314_s0 + $0x5c] sm:$0x1] }
  0x96   :  { %1787 = vrot.lane.b32.xlu1 %v10714_v57, %s9831_s19  ;;  %v1037_v11 = vrot.slane %v1035_v59, 4  ;;  %v1056_v6 = vrot.slane %v10744_v52, 5  ;;  %v1059_v23 = vrot.slane %v9669_v19, 5  ;;  %v10755_v24 = vld [vmem:[%s18314_s0 + $0x48] sm:$0xf]  ;;  %v1049_v58 = vrot.slane %v10761_v27, 5 }
  0x97   :  { %v1046_v39 = vsel %vm10594_vm5, %v1044_v37, %v1045_v5  ;;  %v8874_v59 = vrot.slane %v10755_v24, 9  ;;  %v9672_v19 = vld [vmem:[%s18314_s0 + $0x50] sm:$0x1]  ;;  %v1080_v33 = vrot.slane %v9684_v12, 5  ;;  %vm18483_vm6 = vcmask 1041408  }
  0x98   :  { %v1052_v1 = vrot.slane %v9672_v19, 5  ;;  %1785 = vrot.lane.b32.xlu0 %v10727_v40, %s9831_s19  ;;  %v10769_v5 = vcombine.low %v1043_v61, %v1046_v39  ;;  %v1039_v37 = vsel %vm10594_vm5, %v1037_v11, %v1038_v3  ;;  %v1057_v0 = vsel %vm10594_vm5, %v8875_v4, %v1056_v6  ;;  %v10782_v19 = vld [vmem:[%s18314_s0 + $0x6c] sm:$0xf]  ;;  %v10792_v61 = vld [vmem:[%s18314_s0 + $0x70] sm:$0xf] }
  0x99   :  { %v1058_v29 = vrot.slane %v1056_v6, 4  ;;  %v10775_v34 = vcombine.low %v1036_v48, %v1039_v37  ;;  %v1050_v15 = vsel %vm10594_vm5, %v8874_v59, %v1049_v58  ;;  %v1051_v20 = vrot.slane %v1049_v58, 4  ;;  %v9675_v4 = vld [vmem:[%s18314_s0 + $0x74] sm:$0x1]  ;;  %v10801_v11 = vld [vmem:[%s18314_s0 + $0x60] sm:$0xf] }
  0x9a   :  { %v8877_v39 = vrot.slane %v10782_v19, 9  ;;  %1791 = vrot.lane.b32.xlu1 %v10769_v5, %s9831_s19  ;;  %v1070_v58 = vrot.slane %v10792_v61, 5  ;;  %v1073_v48 = vrot.slane %v9675_v4, 5  ;;  %v8876_v6 = vrot.slane %v10801_v11, 9  ;;  %v10811_v59 = vld [vmem:[%s18314_s0 + $0x64] sm:$0xf] }
  0x9b   :  { %v1060_v3 = vsel %vm10594_vm5, %v1058_v29, %v1059_v23  ;;  %v1053_v23 = vsel %vm10594_vm5, %v1051_v20, %v1052_v1  ;;  %v1063_v37 = vrot.slane %v10811_v59, 5  ;;  %v9678_v4 = vld [vmem:[%s18314_s0 + $0x68] sm:$0x1]  ;;  %vm2265_vm7 = vcmask 31744  }
  0x9c   :  { %v10804_v29 = vcombine.low %v1057_v0, %v1060_v3  ;;  %v1066_v22 = vrot.slane %v9678_v4, 5  ;;  %1789 = vrot.lane.b32.xlu0 %v10775_v34, %s9831_s19  ;;  %v10819_v0 = vcombine.low %v1050_v15, %v1053_v23  ;;  %v1071_v20 = vsel %vm10594_vm5, %v8877_v39, %v1070_v58  ;;  %v10826_v3 = vld [vmem:[%s18314_s0 + $0x84] sm:$0xf]  ;;  %v10834_v15 = vld [vmem:[%s18314_s0 + $0x88] sm:$0xf] }
  0x9d   :  { %v1072_v1 = vrot.slane %v1070_v58, 4  ;;  %v8879_v60 = vrot.slane %v10826_v3, 9  ;;  %v1064_v54 = vsel %vm10594_vm5, %v8876_v6, %v1063_v37  ;;  %v1065_v4 = vrot.slane %v1063_v37, 4  ;;  %v9681_v39 = vld [vmem:[%s18314_s0 + $0x8c] sm:$0x1] }
  0x9e   :  { %v1084_v23 = vrot.slane %v10834_v15, 5  ;;  %v1087_v58 = vrot.slane %v9681_v39, 5  ;;  %1795 = vrot.lane.b32.xlu1 %v10804_v29, %s9831_s19  ;;  %v10847_v6 = vld [vmem:[%s18314_s0 + $0x78] sm:$0xf]  ;;  %v1077_v39 = vrot.slane %v10853_v30, 5  ;;  %vm2362_vm8 = vcmask 64512  }
  0x9f   :  { %v1074_v7 = vsel %vm10594_vm5, %v1072_v1, %v1073_v48  ;;  %v8878_v37 = vrot.slane %v10847_v6, 9  ;;  %v1067_v1 = vsel %vm10594_vm5, %v1065_v4, %v1066_v22  ;;  %vm2427_vm9 = vcmask 97280  }
  0xa0   :  { %v10859_v48 = vcombine.low %v1071_v20, %v1074_v7  ;;  %v1085_v26 = vsel %vm10594_vm5, %v8879_v60, %v1084_v23  ;;  %v1086_v8 = vrot.slane %v1084_v23, 4  ;;  %1793 = vrot.lane.b32.xlu0 %v10819_v0, %s9831_s19  ;;  %v10867_v31 = vcombine.low %v1064_v54, %v1067_v1  ;;  %v10876_v7 = vld [vmem:[%s18314_s0 + $0x90] sm:$0xf] }
  0xa1   :  { %v1078_v50 = vsel %vm10594_vm5, %v8878_v37, %v1077_v39  ;;  %v1079_v21 = vrot.slane %v1077_v39, 4  ;;  %v8880_v22 = vrot.slane %v10876_v7, 9  ;;  %v1091_v60 = vrot.slane %v10151_v49, 5  ;;  %v9607_v37 = vld [vmem:[%s18315_s1] sm:$0xff]   ;;  %v9608_v39 = vld [vmem:[%s18315_s1 + $0x8] sm:$0xff]  }
  0xa2   :  { %v1088_v12 = vsel %vm10594_vm5, %v1086_v8, %v1087_v58  ;;  %v1094_v20 = vrot.slane %v10162_v63, 5  ;;  %1799 = vrot.lane.b32.xlu1 %v10859_v48, %s9831_s19  ;;  %v10891_v58 = vpop.permute.xlu1 %1625  ;;  %9424 = vmatprep.subr.bf16.mxu0 %v9607_v37  ;;  %vm2492_vm10 = vcmask 130048   ;;  %vm2557_vm11 = vcmask 162816  }
  0xa3   :  { %v10883_v54 = vcombine.low %v1085_v26, %v1088_v12  ;;  %v1081_v4 = vsel %vm10594_vm5, %v1079_v21, %v1080_v33  ;;  %v1093_v8 = vrot.slane %v1091_v60, 4  ;;  %v1092_v49 = vsel %vm10594_vm5, %v8880_v22, %v1091_v60  ;;  %v10907_v21 = vpop.permute.xlu0 %1621  ;;  %9425 = vmatpush3.bf16.msra.mxu0 %v9607_v37 }
  0xa4   :  { %1797 = vrot.lane.b32.xlu0 %v10867_v31, %s9831_s19  ;;  %v10889_v23 = vcombine.low %v1078_v50, %v1081_v4  ;;  %v10901_v26 = vcombine.low %v10601_v35, %v10607_v55  ;;  %v10920_v35 = vcombine.low %v10670_v18, %v10676_v53  ;;  %9426 = vmatprep.subr.bf16.mxu0 %v9608_v39  ;;  %vm2622_vm12 = vcmask 195584  }
  0xa5   :  { %v1095_v63 = vsel %vm10594_vm5, %v1093_v8, %v1094_v20  ;;  %v10952_v12 = vcombine.low %v10651_v25, %v10657_v56  ;;  %v10976_v56 = vcombine.low %v10710_v42, %v10721_v28  ;;  %vm2687_vm13 = vcmask 228352  }
  0xa6   :  { %1803 = vrot.lane.b32.xlu1 %v10883_v54, %s9831_s19  ;;  %v10905_v50 = vcombine.low %v1092_v49, %v1095_v63  ;;  %v10911_v33 = vpop.permute.xlu1 %1627  ;;  %vm18521_vm14 = vcmask 261120   ;;  %vm18500_vm15 = vcmask 293888   ;;  %vm3776_vm0 = vcmask 24576  }
  0xa7   :  { %v10924_v55 = vpop.permute.xlu0 %1623  ;;  %9427 = vmatpush3.bf16.msra.mxu0 %v9608_v39  ;;  %vm3789_vm1 = vsmask.f32 256  ;;  %vm3899_vm4 = vsmask.f32 7938 }
  0xa8   :  { %1801 = vrot.lane.b32.xlu0 %v10889_v23, %s9831_s19  ;;  %vm11573_vm3 = vmand %vm3776_vm0, %vm3789_vm1 }
  0xaa   :  { %1851 = vrot.lane.b32.xlu1 %v10901_v26, %s9832_s29  ;;  %v10931_v1 = vpop.permute.xlu1 %1631 }
  0xab   :  { %v10940_v53 = vpop.permute.xlu0 %1629 }
  0xac   :  { %1805 = vrot.lane.b32.xlu0 %v10905_v50, %s9831_s19 }
  0xae   :  { %1921 = vrot.lane.b32.xlu1 %v9985_v43, %s9833_s9  ;;  %v9609_v43 = vld [vmem:[%s18315_s1 + $0x10] ss:$0 sps:$4 sm:$0x33]   ;;  %s9836_s1 = smov 28  }
  0xaf   :  { %9564 = vmatprep.subr.msk.bf16.mxu0 %vm18483_vm6, %v9609_v43  ;;  %v2904_v18 = vsel %vm18483_vm6, %v9609_v43, 0  ;;  %v10956_v22 = vpop.permute.xlu0 %1633  ;;  %vm11590_vm6 = vmand %vm3776_vm0, %vm3899_vm4 }
  0xb0   :  { %1853 = vrot.lane.b32.xlu0 %v10920_v35, %s9832_s29  ;;  %9429 = vmatpush3.bf16.msra.mxu0 %v2904_v18 }
  0xb2   :  { %1991 = vrot.lane.b32.xlu1 %v10662_v41, %s9834_s12  ;;  %v10946_v41 = vpop.permute.xlu1 %1635 }
  0xb3   :  { %v10966_v25 = vpop.permute.xlu0 %1637 }
  0xb4   :  { %1923 = vrot.lane.b32.xlu0 %v9925_v45, %s9833_s9 }
  0xb6   :  { %2061 = vrot.lane.b32.xlu1 %v10920_v35, %s9835_s15  ;;  %v10960_v60 = vpop.permute.xlu1 %1639 }
  0xb8   :  { %1993 = vrot.lane.b32.xlu0 %v10727_v40, %s9834_s12 }
  0xba   :  { %2131 = vrot.lane.b32.xlu1 %v9925_v45, %s9836_s1  ;;  %v10970_v45 = vpop.permute.xlu1 %1643 }
  0xbc   :  { %2063 = vrot.lane.b32.xlu0 %v10952_v12, %s9835_s15 }
  0xbe   :  { %2201 = vrot.lane.b32.xlu1 %v10727_v40, %s9837_s16  ;;  %v10980_v40 = vpop.permute.xlu0 %1641  ;;  %v10984_v20 = vpop.permute.xlu1 %1647 }
  0xc0   :  { %2133 = vrot.lane.b32.xlu0 %v9962_v16, %s9836_s1 }
  0xc2   :  { %1855 = vrot.lane.b32.xlu1 %v10952_v12, %s9832_s29  ;;  %v10990_v4 = vpop.permute.xlu0 %1645  ;;  %v10994_v28 = vpop.permute.xlu1 %1651 }
  0xc3   :  { %18803 = vst [vmem:[#allocation84_spill] sm:$0xff] %v10994_v28 }
  0xc4   :  { %2203 = vrot.lane.b32.xlu0 %v10714_v57, %s9837_s16 }
  0xc6   :  { %1925 = vrot.lane.b32.xlu1 %v9962_v16, %s9833_s9  ;;  %v11000_v16 = vcombine.low %v10693_v9, %v10701_v10  ;;  %v11004_v42 = vpop.permute.xlu0 %1649 }
  0xc7   :  { %18804 = vst [vmem:[#allocation85_spill] sm:$0xff] %v11004_v42 }
  0xc8   :  { %1857 = vrot.lane.b32.xlu0 %v10976_v56, %s9832_s29 }
  0xca   :  { %1995 = vrot.lane.b32.xlu1 %v10714_v57, %s9834_s12  ;;  %v11008_v57 = vpop.permute.xlu1 %1655  ;;  %v11014_v8 = vpop.permute.xlu0 %1653 }
  0xcb   :  { %18805 = vst [vmem:[#allocation86_spill] sm:$0xff] %v11008_v57  ;;  %18806 = vst [vmem:[#allocation87_spill] sm:$0xff] %v11014_v8 }
  0xcc   :  { %1927 = vrot.lane.b32.xlu0 %v10028_v17, %s9833_s9 }
  0xce   :  { %2065 = vrot.lane.b32.xlu1 %v10976_v56, %s9835_s15  ;;  %v11018_v9 = vpop.permute.xlu1 %1659 }
  0xcf   :  { %18807 = vst [vmem:[#allocation88_spill] sm:$0xff] %v11018_v9 }
  0xd0   :  { %1997 = vrot.lane.b32.xlu0 %v10775_v34, %s9834_s12 }
  0xd2   :  { %2135 = vrot.lane.b32.xlu1 %v10028_v17, %s9836_s1  ;;  %v11024_v17 = vcombine.low %v10755_v24, %v10761_v27 }
  0xd4   :  { %2067 = vrot.lane.b32.xlu0 %v11000_v16, %s9835_s15  ;;  %v11032_v10 = vpop.permute.xlu1 %1663 }
  0xd5   :  { %18809 = vst [vmem:[#allocation90_spill] sm:$0xff] %v11032_v10 }
  0xd6   :  { %2205 = vrot.lane.b32.xlu1 %v10775_v34, %s9837_s16  ;;  %v11028_v34 = vpop.permute.xlu0 %1657 }
  0xd7   :  { %18808 = vst [vmem:[#allocation89_spill] sm:$0xff] %v11028_v34 }
  0xd8   :  { %2137 = vrot.lane.b32.xlu0 %v10008_v2, %s9836_s1 }
  0xda   :  { %1859 = vrot.lane.b32.xlu1 %v11000_v16, %s9832_s29  ;;  %v11038_v49 = vpop.permute.xlu0 %1661 }
  0xdb   :  { %18810 = vst [vmem:[#allocation91_spill] sm:$0xff] %v11038_v49 }
  0xdc   :  { %2207 = vrot.lane.b32.xlu0 %v10769_v5, %s9837_s16  ;;  %v11042_v27 = vpop.permute.xlu1 %1667 }
  0xdd   :  { %18811 = vst [vmem:[#allocation92_spill] sm:$0xff] %v11042_v27  ;;  %v18822_v27 = vld [vmem:[#allocation31_spill] sm:$0xff] }
  0xde   :  { %1929 = vrot.lane.b32.xlu1 %v10008_v2, %s9833_s9  ;;  %v11048_v2 = vcombine.low %v10734_v36, %v10744_v52 }
  0xe0   :  { %1861 = vrot.lane.b32.xlu0 %v11024_v17, %s9832_s29  ;;  %v11052_v24 = vpop.permute.xlu0 %1665 }
  0xe1   :  { %18812 = vst [vmem:[#allocation93_spill] sm:$0xff] %v11052_v24 }
  0xe2   :  { %1999 = vrot.lane.b32.xlu1 %v10769_v5, %s9834_s12 }
  0xe4   :  { %1931 = vrot.lane.b32.xlu0 %v10077_v13, %s9833_s9 }
  0xe5   :  { %v11056_v5 = vpop.permute.xlu1 %1671 }
  0xe6   :  { %2069 = vrot.lane.b32.xlu1 %v11024_v17, %s9835_s15  ;;  %18813 = vst [vmem:[#allocation94_spill] sm:$0xff] %v11056_v5 }
  0xe8   :  { %2001 = vrot.lane.b32.xlu0 %v10819_v0, %s9834_s12 }
  0xe9   :  { %v11062_v63 = vpop.permute.xlu0 %1669 }
  0xea   :  { %2139 = vrot.lane.b32.xlu1 %v10077_v13, %s9836_s1  ;;  %18814 = vst [vmem:[#allocation95_spill] sm:$0xff] %v11062_v63  ;;  %v11072_v13 = vcombine.low %v10801_v11, %v10811_v59 }
  0xec   :  { %2071 = vrot.lane.b32.xlu0 %v11048_v2, %s9835_s15 }
  0xee   :  { %2209 = vrot.lane.b32.xlu1 %v10819_v0, %s9837_s16  ;;  %v11066_v36 = vpop.permute.xlu1 %1675 }
  0xef   :  { %18815 = vst [vmem:[#allocation96_spill] sm:$0xff] %v11066_v36  ;;  %v9686_v36 = vld [vmem:[%s18314_s0 + $0x94] sm:$0xf] }
  0xf0   :  { %2141 = vrot.lane.b32.xlu0 %v10054_v44, %s9836_s1 }
  0xf1   :  { %v11076_v52 = vpop.permute.xlu0 %1673 }
  0xf2   :  { %1863 = vrot.lane.b32.xlu1 %v11048_v2, %s9832_s29  ;;  %18816 = vst [vmem:[#allocation97_spill] sm:$0xff] %v11076_v52 }
  0xf4   :  { %2211 = vrot.lane.b32.xlu0 %v10804_v29, %s9837_s16 }
  0xf6   :  { %1933 = vrot.lane.b32.xlu1 %v10054_v44, %s9833_s9  ;;  %v11080_v0 = vpop.permute.xlu1 %1679  ;;  %v11096_v44 = vcombine.low %v10782_v19, %v10792_v61  ;;  %v11122_v61 = vcombine.low %v10847_v6, %v10853_v30 }
  0xf7   :  { %18817 = vst [vmem:[#allocation98_spill] sm:$0xff] %v11080_v0 }
  0xf8   :  { %1865 = vrot.lane.b32.xlu0 %v11072_v13, %s9832_s29 }
  0xfa   :  { %2003 = vrot.lane.b32.xlu1 %v10804_v29, %s9834_s12 }
  0xfb   :  { %v11086_v37 = vpop.permute.xlu0 %1677 }
  0xfc   :  { %1935 = vrot.lane.b32.xlu0 %v10120_v62, %s9833_s9  ;;  %18818 = vst [vmem:[#allocation99_spill] sm:$0xff] %v11086_v37 }
  0xfe   :  { %2073 = vrot.lane.b32.xlu1 %v11072_v13, %s9835_s15  ;;  %v11090_v11 = vpop.permute.xlu1 %1683 }
  0xff   :  { %18819 = vst [vmem:[#allocation100_spill] sm:$0xff] %v11090_v11  ;;  %v11150_v11 = vcombine.low %v10826_v3, %v10834_v15  ;;  %v8904_v15 = vcombine.low %v10618_v51, %v10624_v38 }
 0x100   :  { %2005 = vrot.lane.b32.xlu0 %v10867_v31, %s9834_s12 }
 0x101   :  { %v2268_v51 = vsel %vm2265_vm7, %v8904_v15, %v10907_v21 }
 0x102   :  { %v11098_v59 = vpop.permute.xlu0 %1681  ;;  %2143 = vrot.lane.b32.xlu1 %v10120_v62, %s9836_s1 }
 0x103   :  { %18820 = vst [vmem:[#allocation101_spill] sm:$0xff] %v11098_v59 }
 0x104   :  { %2075 = vrot.lane.b32.xlu0 %v11096_v44, %s9835_s15  ;;  %v11104_v29 = vpop.permute.xlu1 %1783 }
 0x106   :  { %v1782_v39 = vpop.permute.xlu0 %1781  ;;  %2213 = vrot.lane.b32.xlu1 %v10867_v31, %s9837_s16 }
 0x108   :  { %2145 = vrot.lane.b32.xlu0 %v10103_v47, %s9836_s1  ;;  %v11110_v43 = vpop.permute.xlu1 %1787 }
 0x10a   :  { %v11112_v19 = vpop.permute.xlu0 %1785  ;;  %1867 = vrot.lane.b32.xlu1 %v11096_v44, %s9832_s29 }
 0x10c   :  { %2215 = vrot.lane.b32.xlu0 %v10859_v48, %s9837_s16  ;;  %v11118_v62 = vpop.permute.xlu1 %1791 }
 0x10e   :  { %v11124_v31 = vpop.permute.xlu0 %1789  ;;  %1937 = vrot.lane.b32.xlu1 %v10103_v47, %s9833_s9 }
 0x110   :  { %1869 = vrot.lane.b32.xlu0 %v11122_v61, %s9832_s29  ;;  %v11130_v18 = vpop.permute.xlu1 %1795 }
 0x112   :  { %v11132_v59 = vpop.permute.xlu0 %1793  ;;  %2007 = vrot.lane.b32.xlu1 %v10859_v48, %s9834_s12 }
 0x114   :  { %1939 = vrot.lane.b32.xlu0 %v10175_v14, %s9833_s9  ;;  %v11138_v30 = vpop.permute.xlu1 %1799 }
 0x116   :  { %v11140_v6 = vpop.permute.xlu0 %1797  ;;  %2077 = vrot.lane.b32.xlu1 %v11122_v61, %s9835_s15 }
 0x118   :  { %2009 = vrot.lane.b32.xlu0 %v10889_v23, %s9834_s12  ;;  %v11146_v47 = vpop.permute.xlu1 %1803 }
 0x11a   :  { %v11152_v48 = vpop.permute.xlu0 %1801  ;;  %2147 = vrot.lane.b32.xlu1 %v10175_v14, %s9836_s1 }
 0x11c   :  { %2079 = vrot.lane.b32.xlu0 %v11150_v11, %s9835_s15  ;;  %v1852_v37 = vpop.permute.xlu1 %1851 }
 0x11e   :  { %v11158_v0 = vpop.permute.xlu0 %1805  ;;  %2217 = vrot.lane.b32.xlu1 %v10889_v23, %s9837_s16  ;;  %v11174_v23 = vcombine.low %v10876_v7, %v9686_v36  ;;  %v2364_v7 = vsel %vm2362_vm8, %v2268_v51, %v1782_v39 }
 0x11f   :  { %18821 = vst [vmem:[#allocation102_spill] sm:$0xff] %v11158_v0  ;;  %v2429_v24 = vsel %vm2427_vm9, %v2364_v7, %v1852_v37 }
 0x120   :  { %2149 = vrot.lane.b32.xlu0 %v10143_v32, %s9836_s1  ;;  %v1922_v52 = vpop.permute.xlu1 %1921 }
 0x121   :  { %v2494_v15 = vsel %vm2492_vm10, %v2429_v24, %v1922_v52  ;;  %v9689_v24 = vld [vmem:[%s18314_s0 + $0x9c] sm:$0xf] }
 0x122   :  { %v1854_v3 = vpop.permute.xlu0 %1853  ;;  %1871 = vrot.lane.b32.xlu1 %v11150_v11, %s9832_s29  ;;  %v8881_v52 = vrot.slane %v9689_v24, 9 }
 0x124   :  { %2219 = vrot.lane.b32.xlu0 %v10883_v54, %s9837_s16  ;;  %v1992_v14 = vpop.permute.xlu1 %1991 }
 0x125   :  { %v2559_v51 = vsel %vm2557_vm11, %v2494_v15, %v1992_v14 }
 0x126   :  { %v1924_v63 = vpop.permute.xlu0 %1923  ;;  %1941 = vrot.lane.b32.xlu1 %v10143_v32, %s9833_s9  ;;  %v9687_v32 = vld [vmem:[%s18314_s0 + $0xa0] sm:$0xf] }
 0x127   :  { %v1098_v36 = vrot.slane %v9687_v32, 5  ;;  %v11211_v10 = vcombine.low %v9689_v24, %v9687_v32 }
 0x128   :  { %1873 = vrot.lane.b32.xlu0 %v11174_v23, %s9832_s29  ;;  %v2062_v5 = vpop.permute.xlu1 %2061 }
 0x129   :  { %v2624_v37 = vsel %vm2622_vm12, %v2559_v51, %v2062_v5  ;;  %v1100_v7 = vrot.slane %v1098_v36, 4 }
 0x12a   :  { %v1994_v38 = vpop.permute.xlu0 %1993  ;;  %2011 = vrot.lane.b32.xlu1 %v10883_v54, %s9834_s12  ;;  %v9688_v54 = vld [vmem:[%s18314_s0 + $0xa4] sm:$0x1] }
 0x12b   :  { %v1101_v39 = vrot.slane %v9688_v54, 5  ;;  %v2271_v54 = vsel %vm2265_vm7, %v10901_v26, %v10924_v55  ;;  %v1099_v55 = vsel %vm10594_vm5, %v8881_v52, %v1098_v36  ;;  %v9690_v36 = vld [vmem:[%s18314_s0 + $0xac] sm:$0xf]  ;;  %v9692_v52 = vld [vmem:[%s18314_s0 + $0xa8] sm:$0xf] }
 0x12c   :  { %1943 = vrot.lane.b32.xlu0 %v18822_v27, %s9833_s9  ;;  %v2132_v21 = vpop.permute.xlu1 %2131  ;;  %v2366_v5 = vsel %vm2362_vm8, %v2271_v54, %v11104_v29 }
 0x12d   :  { %v2689_v14 = vsel %vm2687_vm13, %v2624_v37, %v2132_v21  ;;  %v2431_v34 = vsel %vm2427_vm9, %v2366_v5, %v1854_v3  ;;  %v1102_v29 = vsel %vm10594_vm5, %v1100_v7, %v1101_v39  ;;  %v18823_v39 = vld [vmem:[#allocation28_spill] sm:$0xff]  ;;  %v8882_v7 = vrot.slane %v9692_v52, 9 }
 0x12e   :  { %v2064_v49 = vpop.permute.xlu0 %2063  ;;  %2081 = vrot.lane.b32.xlu1 %v11174_v23, %s9835_s15  ;;  %v2496_v26 = vsel %vm2492_vm10, %v2431_v34, %v1924_v63  ;;  %v8981_v34 = vcombine.low %v1099_v55, %v1102_v29  ;;  %v11257_v29 = vld [vmem:[%s18314_s0 + $0xc0] sm:$0xf] }
 0x12f   :  { %v2561_v21 = vsel %vm2557_vm11, %v2496_v26, %v1994_v38  ;;  %v1105_v38 = vrot.slane %v9690_v36, 5 }
 0x130   :  { %2013 = vrot.lane.b32.xlu0 %v10905_v50, %s9834_s12  ;;  %v2202_v15 = vpop.permute.xlu1 %2201  ;;  %v2626_v32 = vsel %vm2622_vm12, %v2561_v21, %v2064_v49  ;;  %v2274_v21 = vsel %vm2265_vm7, %v10920_v35, %v10891_v58 }
 0x131   :  { %v2754_v51 = vsel %vm18521_vm14, %v2689_v14, %v2202_v15  ;;  %v1107_v54 = vrot.slane %v1105_v38, 4  ;;  %v11243_v14 = vcombine.low %v9692_v52, %v9690_v36  ;;  %v2368_v36 = vsel %vm2362_vm8, %v2274_v21, %v11112_v19 }
 0x132   :  { %v2134_v9 = vpop.permute.xlu0 %2133  ;;  %2151 = vrot.lane.b32.xlu1 %v18822_v27, %s9836_s1  ;;  %9430 = vmatprep.mubr.msk.bf16.mxu0 %vm18500_vm15, %v2754_v51  ;;  %v1106_v51 = vsel %vm10594_vm5, %v8882_v7, %v1105_v38  ;;  %v9693_v38 = vld [vmem:[%s18314_s0 + $0xb8] sm:$0xf]  ;;  %v1233_v52 = vshll.u32 %v11257_v29, 16 }
 0x133   :  { %v2691_v27 = vsel %vm2687_vm13, %v2626_v32, %v2134_v9 }
 0x134   :  { %2083 = vrot.lane.b32.xlu0 %v11211_v10, %s9835_s15  ;;  %v1856_v3 = vpop.permute.xlu1 %1855  ;;  %v1235_v42 = vrot.slane %v1233_v52, 5 }
 0x135   :  { %v2433_v58 = vsel %vm2427_vm9, %v2368_v36, %v1856_v3  ;;  %v9695_v36 = vld [vmem:[%s18314_s0 + $0xb4] sm:$0xf] }
 0x136   :  { %v2204_v37 = vpop.permute.xlu0 %2203  ;;  %2221 = vrot.lane.b32.xlu1 %v10905_v50, %s9837_s16  ;;  %v9691_v50 = vld [vmem:[%s18314_s0 + $0xb0] sm:$0x1]  ;;  %v11297_v57 = vcombine.low %v9695_v36, %v9693_v38 }
 0x137   :  { %v2756_v63 = vsel %vm18521_vm14, %v2691_v27, %v2204_v37  ;;  %v1108_v9 = vrot.slane %v9691_v50, 5  ;;  %v18824_v27 = vld [vmem:[#allocation37_spill] sm:$0xff]  ;;  %v1112_v50 = vrot.slane %v9693_v38, 5 }
 0x138   :  { %2153 = vrot.lane.b32.xlu0 %v18823_v39, %s9836_s1  ;;  %9431 = vmatmul.mubr.msk.bf16.vlgmr.msra.gmra.mrb[0].mxu0 %vm18500_vm15, %v2756_v63  ;;  %v1926_v49 = vpop.permute.xlu1 %1925  ;;  %v11269_v63 = vld [vmem:[%s18314_s0 + $0xc4] sm:$0xf] }
 0x139   :  { %v1109_v26 = vsel %vm10594_vm5, %v1107_v54, %v1108_v9  ;;  %v1230_v9 = vshrl.u32 %v11257_v29, 16  ;;  %v2498_v7 = vsel %vm2492_vm10, %v2433_v58, %v1926_v49  ;;  %v1243_v54 = vshrl.u32 %v11269_v63, 16 }
 0x13a   :  { %v1858_v24 = vpop.permute.xlu0 %1857  ;;  %1807 = vrot.lane.b32.xlu1 %v8981_v34, %s9831_s19  ;;  %v11264_v37 = vcombine.low %v1106_v51, %v1109_v26  ;;  %v1239_v19 = vshll.u32 %v11269_v63, 16  ;;  %v9694_v51 = vld [vmem:[%s18314_s0 + $0xbc] sm:$0x1]  ;;  %v8883_v58 = vrot.slane %v9695_v36, 9  ;;  %v1114_v8 = vrot.slane %v1112_v50, 4 }
 0x13b   :  { %v1115_v26 = vrot.slane %v9694_v51, 5  ;;  %v1232_v51 = vrot.slane %v1230_v9, 4 }
 0x13c   :  { %2223 = vrot.lane.b32.xlu0 %v8981_v34, %s9837_s16  ;;  %v1996_v15 = vpop.permute.xlu1 %1995 }
 0x13d   :  { %v2563_v3 = vsel %vm2557_vm11, %v2498_v7, %v1996_v15  ;;  %v1236_v52 = vor.u32 %v1235_v42, %v1232_v51  ;;  %v11334_v42 = vld [vmem:[%s18314_s0 + $0xd0] sm:$0xf] }
 0x13e   :  { %v1928_v5 = vpop.permute.xlu0 %1927  ;;  %1877 = vrot.lane.b32.xlu1 %v11243_v14, %s9832_s29 }
 0x140   :  { %1875 = vrot.lane.b32.xlu0 %v11211_v10, %s9832_s29  ;;  %v2066_v55 = vpop.permute.xlu1 %2065 }
 0x141   :  { %v2628_v49 = vsel %vm2622_vm12, %v2563_v3, %v2066_v55  ;;  %v1241_v55 = vrot.slane %v1239_v19, 5  ;;  %v1245_v3 = vrot.slane %v1243_v54, 4 }
 0x142   :  { %v1998_v32 = vpop.permute.xlu0 %1997  ;;  %1947 = vrot.lane.b32.xlu1 %v18824_v27, %s9833_s9 }
 0x143   :  { %v1246_v19 = vor.u32 %v1245_v3, %v1241_v55  ;;  %v11350_v3 = vcombine.low %v11257_v29, %v11269_v63 }
 0x144   :  { %1945 = vrot.lane.b32.xlu0 %v18823_v39, %s9833_s9  ;;  %v2136_v35 = vpop.permute.xlu1 %2135  ;;  %v2277_v39 = vsel %vm2265_vm7, %v10952_v12, %v10911_v33 }
 0x145   :  { %v2693_v15 = vsel %vm2687_vm13, %v2628_v49, %v2136_v35  ;;  %v2370_v33 = vsel %vm2362_vm8, %v2277_v39, %v11110_v43  ;;  %v1113_v43 = vsel %vm10594_vm5, %v8883_v58, %v1112_v50  ;;  %v1116_v35 = vsel %vm10594_vm5, %v1114_v8, %v1115_v26 }
 0x146   :  { %v2068_v21 = vpop.permute.xlu0 %2067  ;;  %2017 = vrot.lane.b32.xlu1 %v11264_v37, %s9834_s12  ;;  %v2435_v28 = vsel %vm2427_vm9, %v2370_v33, %v1858_v24  ;;  %v11323_v50 = vcombine.low %v1113_v43, %v1116_v35  ;;  %v1237_v26 = vrot.slane %v1236_v52, 4  ;;  %v1349_v58 = vrot.slane %v11269_v63, 5 }
 0x147   :  { %v2500_v38 = vsel %vm2492_vm10, %v2435_v28, %v1928_v5  ;;  %v18825_v5 = vld [vmem:[#allocation34_spill] sm:$0xff]  ;;  %v1375_v33 = vshrl.u32 %v11334_v42, 16 }
 0x148   :  { %2015 = vrot.lane.b32.xlu0 %v8981_v34, %s9834_s12  ;;  %v2206_v7 = vpop.permute.xlu1 %2205  ;;  %v77_v34 = vld [vmem:[%s18314_s0 + $0xc8] sm:$0x1]  ;;  %v2565_v24 = vsel %vm2557_vm11, %v2500_v38, %v1998_v32  ;;  %v11329_v32 = vld [vmem:[%s18314_s0 + $0xcc] sm:$0xf]  ;;  %v11354_v43 = vsel %vm9905_vm2, %v1237_v26, %v1241_v55  ;;  %v1351_v52 = vrot.slane %v1349_v58, 4 }
 0x149   :  { %v2758_v12 = vsel %vm18521_vm14, %v2693_v15, %v2206_v7  ;;  %v2630_v54 = vsel %vm2622_vm12, %v2565_v24, %v2068_v21  ;;  %v1249_v39 = vshll.u32 %v77_v34, 16  ;;  %v1247_v21 = vrot.slane %v1246_v19, 4  ;;  %18827 = vst [vmem:[#allocation31_spill] sm:$0xff] %v11354_v43  ;;  %v80_v55 = vld [vmem:[%s18314_s0 + $0xd4] sm:$0x1] }
 0x14a   :  { %v2138_v0 = vpop.permute.xlu0 %2137  ;;  %2087 = vrot.lane.b32.xlu1 %v11297_v57, %s9835_s15  ;;  %9434 = vmatprep.mubr.msk.bf16.mxu0 %vm18500_vm15, %v2758_v12  ;;  %v1362_v7 = vshrl.u32 %v11329_v32, 16  ;;  %v1365_v51 = vshll.u32 %v11329_v32, 16  ;;  %v8900_v24 = vrot.slane %v11257_v29, 9  ;;  %v2280_v29 = vsel %vm2265_vm7, %v10976_v56, %v10940_v53 }
 0x14b   :  { %v2695_v49 = vsel %vm2687_vm13, %v2630_v54, %v2138_v0  ;;  %v1251_v36 = vrot.slane %v1249_v39, 5  ;;  %v1352_v54 = vrot.slane %v77_v34, 5  ;;  %v2372_v53 = vsel %vm2362_vm8, %v2280_v29, %v11124_v31 }
 0x14c   :  { %2085 = vrot.lane.b32.xlu0 %v11243_v14, %s9835_s15  ;;  %v1860_v9 = vpop.permute.xlu1 %1859  ;;  %v1364_v39 = vrot.slane %v1362_v7, 4  ;;  %v1350_v26 = vsel %vm10594_vm5, %v8900_v24, %v1349_v58 }
 0x14d   :  { %v11358_v35 = vsel %vm9905_vm2, %v1247_v21, %v1251_v36  ;;  %v1353_v36 = vsel %vm10594_vm5, %v1351_v52, %v1352_v54  ;;  %v2437_v56 = vsel %vm2427_vm9, %v2372_v53, %v1860_v9  ;;  %v1417_v9 = vrot.slane %v11334_v42, 5 }
 0x14e   :  { %v2208_v28 = vpop.permute.xlu0 %2207  ;;  %2157 = vrot.lane.b32.xlu1 %v18825_v5, %s9836_s1  ;;  %18828 = vst [vmem:[#allocation28_spill] sm:$0xff] %v11358_v35  ;;  %v11373_v34 = vcombine.low %v11354_v43, %v11358_v35 }
 0x14f   :  { %v2760_v8 = vsel %vm18521_vm14, %v2695_v49, %v2208_v28  ;;  %v1367_v49 = vrot.slane %v1365_v51, 5  ;;  %v1377_v28 = vrot.slane %v1375_v33, 4  ;;  %v1381_v51 = vshll.u32 %v80_v55, 16 }
 0x150   :  { %2155 = vrot.lane.b32.xlu0 %v18824_v27, %s9836_s1  ;;  %9435 = vmatmul.mubr.msk.bf16.gmra.mrb[4].mxu0 %vm18500_vm15, %v2760_v8  ;;  %v1930_v0 = vpop.permute.xlu1 %1929  ;;  %v1371_v27 = vshll.u32 %v11334_v42, 16 }
 0x151   :  { %v2502_v58 = vsel %vm2492_vm10, %v2437_v56, %v1930_v0 }
 0x152   :  { %v1862_v15 = vpop.permute.xlu0 %1861  ;;  %2227 = vrot.lane.b32.xlu1 %v11323_v50, %s9837_s16  ;;  %v1373_v63 = vrot.slane %v1371_v27, 5  ;;  %v11387_v27 = vcombine.low %v1350_v26, %v1353_v36 }
 0x154   :  { %2225 = vrot.lane.b32.xlu0 %v11264_v37, %s9837_s16  ;;  %v2000_v12 = vpop.permute.xlu1 %1999  ;;  %v1378_v7 = vor.u32 %v1377_v28, %v1373_v63 }
 0x155   :  { %v2567_v24 = vsel %vm2557_vm11, %v2502_v58, %v2000_v12 }
 0x156   :  { %v1932_v19 = vpop.permute.xlu0 %1931  ;;  %1811 = vrot.lane.b32.xlu1 %v11323_v50, %s9831_s19  ;;  %v1379_v54 = vrot.slane %v1378_v7, 4 }
 0x158   :  { %1809 = vrot.lane.b32.xlu0 %v11264_v37, %s9831_s19  ;;  %v2070_v8 = vpop.permute.xlu1 %2069  ;;  %v1368_v37 = vor.u32 %v1367_v49, %v1364_v39  ;;  %v1383_v39 = vrot.slane %v1381_v51, 5  ;;  %v2283_v49 = vsel %vm2265_vm7, %v11000_v16, %v10931_v1 }
 0x159   :  { %v2632_v31 = vsel %vm2622_vm12, %v2567_v24, %v2070_v8  ;;  %v2374_v28 = vsel %vm2362_vm8, %v2283_v49, %v11118_v62  ;;  %v9006_v8 = vcombine.low %v11329_v32, %v11334_v42  ;;  %v8902_v62 = vrot.slane %v11329_v32, 9  ;;  %v11425_v32 = vld [vmem:[%s18314_s0 + $0xdc] sm:$0xf] }
 0x15a   :  { %v2002_v21 = vpop.permute.xlu0 %2001  ;;  %1881 = vrot.lane.b32.xlu1 %v11350_v3, %s9832_s29  ;;  %v1369_v52 = vrot.slane %v1368_v37, 4  ;;  %v2439_v26 = vsel %vm2427_vm9, %v2374_v28, %v1862_v15  ;;  %v1384_v16 = vsel %vm9905_vm2, %v1379_v54, %v1383_v39  ;;  %v1419_v37 = vrot.slane %v1417_v9, 4  ;;  %v9696_v15 = vld [vmem:[%s18314_s0 + $0xe8] sm:$0xf] }
 0x15b   :  { %v1420_v42 = vrot.slane %v80_v55, 5  ;;  %v1126_v7 = vrot.slane %v9696_v15, 5  ;;  %v9698_v55 = vld [vmem:[%s18314_s0 + $0xec] sm:$0x1] }
 0x15c   :  { %1879 = vrot.lane.b32.xlu0 %v11297_v57, %s9832_s29  ;;  %v2140_v33 = vpop.permute.xlu1 %2139  ;;  %v1374_v1 = vsel %vm9905_vm2, %v1369_v52, %v1373_v63  ;;  %v1129_v56 = vrot.slane %v9698_v55, 5  ;;  %v9699_v52 = vld [vmem:[%s18314_s0 + $0xe4] sm:$0xf] }
 0x15d   :  { %v2697_v0 = vsel %vm2687_vm13, %v2632_v31, %v2140_v33  ;;  %v1421_v24 = vsel %vm10594_vm5, %v1419_v37, %v1420_v42  ;;  %v8885_v54 = vrot.slane %v9699_v52, 9  ;;  %v1128_v39 = vrot.slane %v1126_v7, 4  ;;  %v9702_v37 = vld [vmem:[%s18314_s0 + $0xf4] sm:$0xf] }
 0x15e   :  { %v2072_v35 = vpop.permute.xlu0 %2071  ;;  %1951 = vrot.lane.b32.xlu1 %v11373_v34, %s9833_s9  ;;  %v1133_v42 = vrot.slane %v9702_v37, 5 }
 0x160   :  { %1949 = vrot.lane.b32.xlu0 %v18825_v5, %s9833_s9  ;;  %v2210_v12 = vpop.permute.xlu1 %2209  ;;  %v2504_v5 = vsel %vm2492_vm10, %v2439_v26, %v1932_v19  ;;  %v1119_v19 = vrot.slane %v11425_v32, 5  ;;  %v1130_v26 = vsel %vm10594_vm5, %v1128_v39, %v1129_v56 }
 0x161   :  { %v2762_v29 = vsel %vm18521_vm14, %v2697_v0, %v2210_v12  ;;  %v2569_v51 = vsel %vm2557_vm11, %v2504_v5, %v2002_v21  ;;  %v11450_v0 = vld [vmem:[%s18314_s0 + $0xd8] sm:$0xf] }
 0x162   :  { %v2142_v36 = vpop.permute.xlu0 %2141  ;;  %2021 = vrot.lane.b32.xlu1 %v11387_v27, %s9834_s12  ;;  %9438 = vmatprep.mubr.msk.bf16.mxu0 %vm18500_vm15, %v2762_v29  ;;  %v2634_v53 = vsel %vm2622_vm12, %v2569_v51, %v2072_v35  ;;  %v1418_v35 = vsel %vm10594_vm5, %v8902_v62, %v1417_v9  ;;  %v9700_v9 = vld [vmem:[%s18314_s0 + $0xe0] sm:$0x1]  ;;  %v8884_v12 = vrot.slane %v11450_v0, 9  ;;  %v1121_v28 = vrot.slane %v1119_v19, 4 }
 0x163   :  { %v2699_v21 = vsel %vm2687_vm13, %v2634_v53, %v2142_v36  ;;  %v1122_v49 = vrot.slane %v9700_v9, 5  ;;  %v2286_v51 = vsel %vm2265_vm7, %v11024_v17, %v10956_v22 }
 0x164   :  { %2019 = vrot.lane.b32.xlu0 %v11323_v50, %s9834_s12  ;;  %v1864_v63 = vpop.permute.xlu1 %1863  ;;  %v9008_v50 = vcombine.low %v1374_v1, %v1384_v16  ;;  %v1120_v1 = vsel %vm10594_vm5, %v8884_v12, %v1119_v19  ;;  %v9703_v19 = vld [vmem:[%s18314_s0 + $0xf8] sm:$0x1]  ;;  %v2376_v56 = vsel %vm2362_vm8, %v2286_v51, %v11132_v59 }
 0x165   :  { %v1123_v16 = vsel %vm10594_vm5, %v1121_v28, %v1122_v49  ;;  %v1136_v55 = vrot.slane %v9703_v19, 5  ;;  %v2441_v22 = vsel %vm2427_vm9, %v2376_v56, %v1864_v63 }
 0x166   :  { %v2212_v33 = vpop.permute.xlu0 %2211  ;;  %2091 = vrot.lane.b32.xlu1 %v9006_v8, %s9835_s15  ;;  %v1127_v8 = vsel %vm10594_vm5, %v8885_v54, %v1126_v7  ;;  %v8984_v7 = vcombine.low %v1120_v1, %v1123_v16 }
 0x167   :  { %v2764_v58 = vsel %vm18521_vm14, %v2699_v21, %v2212_v33  ;;  %v8985_v5 = vcombine.low %v1127_v8, %v1130_v26  ;;  %v1135_v33 = vrot.slane %v1133_v42, 4  ;;  %v9705_v8 = vld [vmem:[%s18314_s0 + $0x100] sm:$0xf] }
 0x168   :  { %2089 = vrot.lane.b32.xlu0 %v11350_v3, %s9835_s15  ;;  %9439 = vmatmul.mubr.msk.bf16.gmra.mrb[8].mxu0 %vm18500_vm15, %v2764_v58  ;;  %v1934_v31 = vpop.permute.xlu1 %1933  ;;  %v9010_v3 = vcombine.low %v1418_v35, %v1421_v24  ;;  %v11487_v58 = vcombine.low %v9699_v52, %v9696_v15  ;;  %v1140_v26 = vrot.slane %v9705_v8, 5 }
 0x169   :  { %v2506_v35 = vsel %vm2492_vm10, %v2441_v22, %v1934_v31  ;;  %v1137_v63 = vsel %vm10594_vm5, %v1135_v33, %v1136_v55  ;;  %v2289_v31 = vsel %vm2265_vm7, %v11048_v2, %v10946_v41 }
 0x16a   :  { %v1866_v29 = vpop.permute.xlu0 %1865  ;;  %2161 = vrot.lane.b32.xlu1 %v9008_v50, %s9836_s1  ;;  %v2378_v9 = vsel %vm2362_vm8, %v2289_v31, %v11130_v18 }
 0x16b   :  { %v2443_v12 = vsel %vm2427_vm9, %v2378_v9, %v1866_v29 }
 0x16c   :  { %2159 = vrot.lane.b32.xlu0 %v11373_v34, %s9836_s1  ;;  %v2004_v36 = vpop.permute.xlu1 %2003 }
 0x16d   :  { %v2571_v24 = vsel %vm2557_vm11, %v2506_v35, %v2004_v36  ;;  %v18830_v36 = vld [vmem:[#allocation40_spill] sm:$0xff] }
 0x16e   :  { %v1936_v62 = vpop.permute.xlu0 %1935  ;;  %2231 = vrot.lane.b32.xlu1 %v9010_v3, %s9837_s16  ;;  %v18829_v3 = vld [vmem:[#allocation46_spill] sm:$0xff] }
 0x16f   :  { %v2508_v2 = vsel %vm2492_vm10, %v2443_v12, %v1936_v62  ;;  %v9706_v62 = vld [vmem:[%s18314_s0 + $0x104] sm:$0x1]  ;;  %v3797_v12 = vld [vmem:[#allocation2 + $0x18] sm:$0x1] }
 0x170   :  { %2229 = vrot.lane.b32.xlu0 %v11387_v27, %s9837_s16  ;;  %v2074_v34 = vpop.permute.xlu1 %2073  ;;  %v9704_v27 = vld [vmem:[%s18314_s0 + $0xf0] sm:$0xf] }
 0x171   :  { %v8886_v21 = vrot.slane %v9704_v27, 9  ;;  %v11482_v50 = vcombine.low %v9704_v27, %v9702_v37  ;;  %v2636_v54 = vsel %vm2622_vm12, %v2571_v24, %v2074_v34  ;;  %v2292_v24 = vsel %vm2265_vm7, %v11072_v13, %v10966_v25  ;;  %v9709_v25 = vld [vmem:[%s18314_s0 + $0x110] sm:$0x1] }
 0x172   :  { %v2006_v53 = vpop.permute.xlu0 %2005  ;;  %1815 = vrot.lane.b32.xlu1 %v8985_v5, %s9831_s19  ;;  %v1150_v13 = vrot.slane %v9709_v25, 5  ;;  %v9712_v25 = vld [vmem:[%s18314_s0 + $0x11c] sm:$0x1] }
 0x173   :  { %v1134_v39 = vsel %vm10594_vm5, %v8886_v21, %v1133_v42  ;;  %v2573_v18 = vsel %vm2557_vm11, %v2508_v2, %v2006_v53  ;;  %v1143_v42 = vrot.slane %v9706_v62, 5  ;;  %v1142_v53 = vrot.slane %v1140_v26, 4 }
 0x174   :  { %1813 = vrot.lane.b32.xlu0 %v8984_v7, %s9831_s19  ;;  %v2144_v17 = vpop.permute.xlu1 %2143  ;;  %v8986_v41 = vcombine.low %v1134_v39, %v1137_v63  ;;  %v9707_v7 = vld [vmem:[%s18314_s0 + $0xfc] sm:$0xf]  ;;  %v9708_v39 = vld [vmem:[%s18314_s0 + $0x10c] sm:$0xf] }
 0x175   :  { %v2701_v15 = vsel %vm2687_vm13, %v2636_v54, %v2144_v17  ;;  %v8887_v51 = vrot.slane %v9707_v7, 9  ;;  %v11527_v19 = vcombine.low %v9707_v7, %v9705_v8  ;;  %v1144_v21 = vsel %vm10594_vm5, %v1142_v53, %v1143_v42 }
 0x176   :  { %v2076_v59 = vpop.permute.xlu0 %2075  ;;  %1885 = vrot.lane.b32.xlu1 %v11482_v50, %s9832_s29  ;;  %v2380_v54 = vsel %vm2362_vm8, %v2292_v24, %v11140_v6  ;;  %v1147_v63 = vrot.slane %v9708_v39, 5  ;;  %v2295_v6 = vsel %vm2265_vm7, %v11096_v44, %v10960_v60  ;;  %v18832_v60 = vmov 0  ;;  %v3794_v44 = vld [vmem:[#allocation2 + $0xc] sm:$0x1]  ;;  %v18838_v24 = vld [vmem:[#allocation52_spill] sm:$0xff] }
 0x177   :  { %v2638_v1 = vsel %vm2622_vm12, %v2573_v18, %v2076_v59  ;;  %v1141_v27 = vsel %vm10594_vm5, %v8887_v51, %v1140_v26  ;;  %v18833_v60 = vsel %vm11573_vm3, 4294967295, %v18832_v60  ;;  %v18835_v42 = vmov 0 }
 0x178   :  { %1883 = vrot.lane.b32.xlu0 %v11487_v58, %s9832_s29  ;;  %v2214_v52 = vpop.permute.xlu1 %2213  ;;  %v11541_v17 = vcombine.low %v1141_v27, %v1144_v21  ;;  %v1149_v8 = vrot.slane %v1147_v63, 4  ;;  %18834 = vst [vmem:[#allocation37_spill] sm:$0xff] %v18833_v60  ;;  %v18836_v42 = vsel %vm11590_vm6, 4294967295, %v18835_v42  ;;  %v3904_v27 = vld [vmem:[#allocation2 + $0x14] sm:$0x1] }
 0x179   :  { %v2766_v49 = vsel %vm18521_vm14, %v2701_v15, %v2214_v52  ;;  %18837 = vst [vmem:[#allocation34_spill] sm:$0xff] %v18836_v42 }
 0x17a   :  { %v2146_v28 = vpop.permute.xlu0 %2145  ;;  %1955 = vrot.lane.b32.xlu1 %v18829_v3, %s9833_s9  ;;  %9442 = vmatprep.mubr.msk.bf16.mxu0 %vm18500_vm15, %v2766_v49  ;;  %v1151_v53 = vsel %vm10594_vm5, %v1149_v8, %v1150_v13  ;;  %v1157_v13 = vrot.slane %v9712_v25, 5  ;;  %v2298_v8 = vsel %vm2265_vm7, %v11122_v61, %v10980_v40  ;;  %v3803_v61 = vld [vmem:[#allocation2 + $0x30] sm:$0x1]  ;;  %v3910_v25 = vld [vmem:[#allocation2 + $0x2c] sm:$0x1] }
 0x17b   :  { %v2703_v16 = vsel %vm2687_vm13, %v2638_v1, %v2146_v28  ;;  %v3795_v1 = vsel %vm11573_vm3, 0, %v3794_v44  ;;  %v18839_v44 = vld [vmem:[#allocation49_spill] sm:$0xff] }
 0x17c   :  { %1953 = vrot.lane.b32.xlu0 %v18830_v36, %s9833_s9  ;;  %v1868_v29 = vpop.permute.xlu1 %1867  ;;  %3796 = vst [vmem:[#allocation2 + $0xc] sm:$0x1] %v3795_v1 }
 0x17d   :  { %v2445_v31 = vsel %vm2427_vm9, %v2380_v54, %v1868_v29  ;;  %v3798_v29 = vsel %vm11573_vm3, 0, %v3797_v12 }
 0x17e   :  { %v2216_v37 = vpop.permute.xlu0 %2215  ;;  %2025 = vrot.lane.b32.xlu1 %v8986_v41, %s9834_s12  ;;  %3799 = vst [vmem:[#allocation2 + $0x18] sm:$0x1] %v3798_v29 }
 0x17f   :  { %v2768_v34 = vsel %vm18521_vm14, %v2703_v16, %v2216_v37  ;;  %v3907_v16 = vld [vmem:[#allocation2 + $0x20] sm:$0x1]  ;;  %v2382_v37 = vsel %vm2362_vm8, %v2295_v6, %v11138_v30 }
 0x180   :  { %2023 = vrot.lane.b32.xlu0 %v8985_v5, %s9834_s12  ;;  %9443 = vmatmul.mubr.msk.bf16.gmra.mrb[12].mxu0 %vm18500_vm15, %v2768_v34  ;;  %v1938_v55 = vpop.permute.xlu1 %1937  ;;  %v18831_v5 = vld [vmem:[#allocation43_spill] sm:$0xff]  ;;  %v3908_v30 = vsel %vm11590_vm6, 0, %v3907_v16 }
 0x181   :  { %v2510_v52 = vsel %vm2492_vm10, %v2445_v31, %v1938_v55  ;;  %3909 = vst [vmem:[#allocation2 + $0x20] sm:$0x1] %v3908_v30  ;;  %v2301_v30 = vsel %vm2265_vm7, %v11150_v11, %v10970_v45 }
 0x182   :  { %v1870_v56 = vpop.permute.xlu0 %1869  ;;  %2095 = vrot.lane.b32.xlu1 %v11527_v19, %s9835_s15 }
 0x184   :  { %2093 = vrot.lane.b32.xlu0 %v11482_v50, %s9835_s15  ;;  %v2008_v33 = vpop.permute.xlu1 %2007 }
 0x185   :  { %v2575_v9 = vsel %vm2557_vm11, %v2510_v52, %v2008_v33  ;;  %v3905_v33 = vsel %vm11590_vm6, 0, %v3904_v27  ;;  %v9713_v52 = vld [vmem:[%s18314_s0 + $0x114] sm:$0xf] }
 0x186   :  { %v1940_v22 = vpop.permute.xlu0 %1939  ;;  %2165 = vrot.lane.b32.xlu1 %v18831_v5, %s9836_s1  ;;  %3906 = vst [vmem:[#allocation2 + $0x14] sm:$0x1] %v3905_v33  ;;  %v8889_v6 = vrot.slane %v9713_v52, 9 }
 0x188   :  { %2163 = vrot.lane.b32.xlu0 %v18829_v3, %s9836_s1  ;;  %v2078_v35 = vpop.permute.xlu1 %2077  ;;  %v9710_v3 = vld [vmem:[%s18314_s0 + $0x108] sm:$0xf] }
 0x189   :  { %v2640_v28 = vsel %vm2622_vm12, %v2575_v9, %v2078_v35  ;;  %v8888_v2 = vrot.slane %v9710_v3, 9  ;;  %v11577_v26 = vcombine.low %v9710_v3, %v9708_v39  ;;  %v9711_v39 = vld [vmem:[%s18314_s0 + $0x118] sm:$0xf] }
 0x18a   :  { %v2010_v59 = vpop.permute.xlu0 %2009  ;;  %2235 = vrot.lane.b32.xlu1 %v11541_v17, %s9837_s16 }
 0x18b   :  { %v1148_v51 = vsel %vm10594_vm5, %v8888_v2, %v1147_v63  ;;  %v1154_v63 = vrot.slane %v9711_v39, 5 }
 0x18c   :  { %2233 = vrot.lane.b32.xlu0 %v8986_v41, %s9837_s16  ;;  %v2148_v15 = vpop.permute.xlu1 %2147  ;;  %v11614_v54 = vcombine.low %v1148_v51, %v1151_v53  ;;  %v3800_v53 = vld [vmem:[#allocation2 + $0x24] sm:$0x1] }
 0x18d   :  { %v2705_v18 = vsel %vm2687_vm13, %v2640_v28, %v2148_v15  ;;  %v1156_v9 = vrot.slane %v1154_v63, 4  ;;  %v1155_v28 = vsel %vm10594_vm5, %v8889_v6, %v1154_v63 }
 0x18e   :  { %v2080_v49 = vpop.permute.xlu0 %2079  ;;  %1819 = vrot.lane.b32.xlu1 %v11541_v17, %s9831_s19 }
 0x18f   :  { %v1158_v3 = vsel %vm10594_vm5, %v1156_v9, %v1157_v13 }
 0x190   :  { %1817 = vrot.lane.b32.xlu0 %v8986_v41, %s9831_s19  ;;  %v2218_v36 = vpop.permute.xlu1 %2217  ;;  %v2447_v41 = vsel %vm2427_vm9, %v2382_v37, %v1870_v56 }
 0x191   :  { %v2770_v62 = vsel %vm18521_vm14, %v2705_v18, %v2218_v36  ;;  %v2512_v7 = vsel %vm2492_vm10, %v2447_v41, %v1940_v22  ;;  %v11648_v18 = vcombine.low %v1155_v28, %v1158_v3  ;;  %v2384_v36 = vsel %vm2362_vm8, %v2298_v8, %v11152_v48  ;;  %v9714_v48 = vld [vmem:[%s18314_s0 + $0x124] sm:$0xf] }
 0x192   :  { %v2150_v34 = vpop.permute.xlu0 %2149  ;;  %1889 = vrot.lane.b32.xlu1 %v11577_v26, %s9832_s29  ;;  %9446 = vmatprep.mubr.msk.bf16.mxu0 %vm18500_vm15, %v2770_v62  ;;  %v2577_v55 = vsel %vm2557_vm11, %v2512_v7, %v2010_v59  ;;  %v1161_v41 = vrot.slane %v9714_v48, 5 }
 0x193   :  { %v2642_v21 = vsel %vm2622_vm12, %v2577_v55, %v2080_v49  ;;  %v11631_v49 = vcombine.low %v9713_v52, %v9711_v39  ;;  %v3913_v55 = vld [vmem:[#allocation2 + $0x38] sm:$0x1]  ;;  %v3911_v52 = vsel %vm11590_vm6, 0, %v3910_v25 }
 0x194   :  { %1887 = vrot.lane.b32.xlu0 %v11527_v19, %s9832_s29  ;;  %v1872_v56 = vpop.permute.xlu1 %1871  ;;  %v2707_v22 = vsel %vm2687_vm13, %v2642_v21, %v2150_v34  ;;  %v3804_v34 = vsel %vm11573_vm3, 0, %v3803_v61  ;;  %v3801_v21 = vsel %vm11573_vm3, 0, %v3800_v53  ;;  %v3914_v45 = vsel %vm11590_vm6, 0, %v3913_v55  ;;  %3912 = vst [vmem:[#allocation2 + $0x2c] sm:$0x1] %v3911_v52  ;;  %v18841_v53 = vld [vmem:[#allocation55_spill] sm:$0xff] }
 0x195   :  { %v2449_v29 = vsel %vm2427_vm9, %v2384_v36, %v1872_v56  ;;  %3805 = vst [vmem:[#allocation2 + $0x30] sm:$0x1] %v3804_v34  ;;  %v2386_v56 = vsel %vm2362_vm8, %v2301_v30, %v11146_v47  ;;  %3802 = vst [vmem:[#allocation2 + $0x24] sm:$0x1] %v3801_v21  ;;  %v9715_v47 = vld [vmem:[%s18314_s0 + $0x128] sm:$0x1]  ;;  %v2304_v21 = vsel %vm2265_vm7, %v11174_v23, %v10990_v4 }
 0x196   :  { %v2220_v35 = vpop.permute.xlu0 %2219  ;;  %1959 = vrot.lane.b32.xlu1 %v18838_v24, %s9833_s9  ;;  %3915 = vst [vmem:[#allocation2 + $0x38] sm:$0x1] %v3914_v45  ;;  %v1163_v39 = vrot.slane %v1161_v41, 4  ;;  %v3809_v55 = vld [vmem:[#allocation2 + $0x48] sm:$0x1] }
 0x197   :  { %v2772_v59 = vsel %vm18521_vm14, %v2707_v22, %v2220_v35  ;;  %v1164_v22 = vrot.slane %v9715_v47, 5  ;;  %v3919_v47 = vld [vmem:[#allocation2 + $0x50] sm:$0x1] }
 0x198   :  { %1957 = vrot.lane.b32.xlu0 %v18831_v5, %s9833_s9  ;;  %9447 = vmatmul.mubr.msk.bf16.gmra.mrb[16].mxu0 %vm18500_vm15, %v2772_v59  ;;  %v1942_v31 = vpop.permute.xlu1 %1941  ;;  %v3920_v4 = vsel %vm11590_vm6, 0, %v3919_v47 }
 0x199   :  { %v2514_v16 = vsel %vm2492_vm10, %v2449_v29, %v1942_v31  ;;  %3921 = vst [vmem:[#allocation2 + $0x50] sm:$0x1] %v3920_v4 }
 0x19a   :  { %v1874_v15 = vpop.permute.xlu0 %1873  ;;  %2029 = vrot.lane.b32.xlu1 %v11614_v54, %s9834_s12 }
 0x19b   :  { %v2451_v11 = vsel %vm2427_vm9, %v2386_v56, %v1874_v15  ;;  %v2307_v56 = vsel %vm2265_vm7, %v11211_v10, %v10984_v20 }
 0x19c   :  { %2027 = vrot.lane.b32.xlu0 %v11541_v17, %s9834_s12  ;;  %v2012_v5 = vpop.permute.xlu1 %2011 }
 0x19d   :  { %v2579_v37 = vsel %vm2557_vm11, %v2514_v16, %v2012_v5  ;;  %v9718_v16 = vld [vmem:[%s18314_s0 + $0x134] sm:$0x1] }
 0x19e   :  { %v1944_v12 = vpop.permute.xlu0 %1943  ;;  %2099 = vrot.lane.b32.xlu1 %v11631_v49, %s9835_s15 }
 0x19f   :  { %v2516_v35 = vsel %vm2492_vm10, %v2451_v11, %v1944_v12 }
 0x1a0   :  { %2097 = vrot.lane.b32.xlu0 %v11577_v26, %s9835_s15  ;;  %v2082_v2 = vpop.permute.xlu1 %2081 }
 0x1a1   :  { %v2644_v62 = vsel %vm2622_vm12, %v2579_v37, %v2082_v2  ;;  %v18840_v2 = vld [vmem:[#allocation58_spill] sm:$0xff]  ;;  %v1171_v37 = vrot.slane %v9718_v16, 5 }
 0x1a2   :  { %v2014_v17 = vpop.permute.xlu0 %2013  ;;  %2169 = vrot.lane.b32.xlu1 %v18839_v44, %s9836_s1 }
 0x1a3   :  { %v2581_v31 = vsel %vm2557_vm11, %v2516_v35, %v2014_v17  ;;  %v9717_v17 = vld [vmem:[%s18314_s0 + $0x130] sm:$0xf] }
 0x1a4   :  { %2167 = vrot.lane.b32.xlu0 %v18838_v24, %s9836_s1  ;;  %v2152_v1 = vpop.permute.xlu1 %2151  ;;  %v9716_v24 = vld [vmem:[%s18314_s0 + $0x120] sm:$0xf]  ;;  %v1168_v36 = vrot.slane %v9717_v17, 5 }
 0x1a5   :  { %v2709_v7 = vsel %vm2687_vm13, %v2644_v62, %v2152_v1  ;;  %v8890_v59 = vrot.slane %v9716_v24, 9  ;;  %v11689_v63 = vcombine.low %v9716_v24, %v9714_v48 }
 0x1a6   :  { %v2084_v40 = vpop.permute.xlu0 %2083  ;;  %2239 = vrot.lane.b32.xlu1 %v11648_v18, %s9837_s16  ;;  %v1170_v62 = vrot.slane %v1168_v36, 4 }
 0x1a7   :  { %v2646_v13 = vsel %vm2622_vm12, %v2581_v31, %v2084_v40  ;;  %v1162_v12 = vsel %vm10594_vm5, %v8890_v59, %v1161_v41  ;;  %v9719_v40 = vld [vmem:[%s18314_s0 + $0x12c] sm:$0xf] }
 0x1a8   :  { %2237 = vrot.lane.b32.xlu0 %v11614_v54, %s9837_s16  ;;  %v2222_v51 = vpop.permute.xlu1 %2221  ;;  %v8891_v61 = vrot.slane %v9719_v40, 9  ;;  %v11725_v48 = vcombine.low %v9719_v40, %v9717_v17  ;;  %v1172_v30 = vsel %vm10594_vm5, %v1170_v62, %v1171_v37  ;;  %v9721_v17 = vld [vmem:[%s18314_s0 + $0x140] sm:$0x1] }
 0x1a9   :  { %v2774_v27 = vsel %vm18521_vm14, %v2709_v7, %v2222_v51 }
 0x1aa   :  { %v2154_v33 = vpop.permute.xlu0 %2153  ;;  %1823 = vrot.lane.b32.xlu1 %v11648_v18, %s9831_s19  ;;  %9450 = vmatprep.mubr.msk.bf16.mxu0 %vm18500_vm15, %v2774_v27  ;;  %v1169_v34 = vsel %vm10594_vm5, %v8891_v61, %v1168_v36  ;;  %v3810_v27 = vsel %vm11573_vm3, 0, %v3809_v55  ;;  %v1178_v36 = vrot.slane %v9721_v17, 5 }
 0x1ab   :  { %v2711_v6 = vsel %vm2687_vm13, %v2646_v13, %v2154_v33  ;;  %3811 = vst [vmem:[#allocation2 + $0x48] sm:$0x1] %v3810_v27  ;;  %v3806_v33 = vld [vmem:[#allocation2 + $0x3c] sm:$0x1] }
 0x1ac   :  { %1821 = vrot.lane.b32.xlu0 %v11614_v54, %s9831_s19  ;;  %v1808_v15 = vpop.permute.xlu1 %1807  ;;  %v1165_v54 = vsel %vm10594_vm5, %v1163_v39, %v1164_v22  ;;  %v18842_v22 = vld [vmem:[#allocation102_spill] sm:$0xff]  ;;  %v3807_v10 = vsel %vm11573_vm3, 0, %v3806_v33 }
 0x1ad   :  { %v11710_v8 = vcombine.low %v1162_v12, %v1165_v54  ;;  %v2390_v45 = vsel %vm2362_vm8, %v2307_v56, %v1808_v15  ;;  %v2388_v35 = vsel %vm2362_vm8, %v2304_v21, %v18842_v22  ;;  %3808 = vst [vmem:[#allocation2 + $0x3c] sm:$0x1] %v3807_v10  ;;  %v9720_v15 = vld [vmem:[%s18314_s0 + $0x13c] sm:$0xf]  ;;  %v9724_v21 = vld [vmem:[%s18314_s0 + $0x14c] sm:$0x1] }
 0x1ae   :  { %v2224_v9 = vpop.permute.xlu0 %2223  ;;  %1893 = vrot.lane.b32.xlu1 %v11689_v63, %s9832_s29  ;;  %v1175_v25 = vrot.slane %v9720_v15, 5 }
 0x1af   :  { %v2776_v5 = vsel %vm18521_vm14, %v2711_v6, %v2224_v9  ;;  %v3916_v9 = vld [vmem:[#allocation2 + $0x44] sm:$0x1] }
 0x1b0   :  { %1891 = vrot.lane.b32.xlu0 %v11631_v49, %s9832_s29  ;;  %9451 = vmatmul.mubr.msk.bf16.gmra.mrb[20].mxu0 %vm18500_vm15, %v2776_v5  ;;  %v1878_v28 = vpop.permute.xlu1 %1877  ;;  %v3917_v54 = vsel %vm11590_vm6, 0, %v3916_v9  ;;  %v1177_v37 = vrot.slane %v1175_v25, 4  ;;  %v18846_v9 = vld [vmem:[#allocation85_spill] sm:$0xff] }
 0x1b1   :  { %v2455_v20 = vsel %vm2427_vm9, %v2390_v45, %v1878_v28  ;;  %3918 = vst [vmem:[#allocation2 + $0x44] sm:$0x1] %v3917_v54  ;;  %v1185_v45 = vrot.slane %v9724_v21, 5  ;;  %v9728_v21 = vld [vmem:[%s18314_s0 + $0x150] sm:$0xf] }
 0x1b2   :  { %v1876_v3 = vpop.permute.xlu0 %1875  ;;  %1963 = vrot.lane.b32.xlu1 %v18840_v2, %s9833_s9 }
 0x1b3   :  { %v2453_v23 = vsel %vm2427_vm9, %v2388_v35, %v1876_v3 }
 0x1b4   :  { %1961 = vrot.lane.b32.xlu0 %v18839_v44, %s9833_s9  ;;  %v1948_v29 = vpop.permute.xlu1 %1947 }
 0x1b5   :  { %v2520_v24 = vsel %vm2492_vm10, %v2455_v20, %v1948_v29  ;;  %v3815_v20 = vld [vmem:[#allocation2 + $0x60] sm:$0x1] }
 0x1b6   :  { %v1946_v1 = vpop.permute.xlu0 %1945  ;;  %2033 = vrot.lane.b32.xlu1 %v11710_v8, %s9834_s12 }
 0x1b7   :  { %v2518_v39 = vsel %vm2492_vm10, %v2453_v23, %v1946_v1  ;;  %v9722_v1 = vld [vmem:[%s18314_s0 + $0x138] sm:$0xf]  ;;  %v3816_v23 = vsel %vm11573_vm3, 0, %v3815_v20 }
 0x1b8   :  { %2031 = vrot.lane.b32.xlu0 %v11648_v18, %s9834_s12  ;;  %v2018_v44 = vpop.permute.xlu1 %2017  ;;  %v11739_v18 = vcombine.low %v1169_v34, %v1172_v30  ;;  %v8892_v16 = vrot.slane %v9722_v1, 9  ;;  %v11787_v40 = vcombine.low %v9722_v1, %v9720_v15  ;;  %v18843_v30 = vld [vmem:[#allocation64_spill] sm:$0xff]  ;;  %3817 = vst [vmem:[#allocation2 + $0x60] sm:$0x1] %v3816_v23 }
 0x1b9   :  { %v2585_v31 = vsel %vm2557_vm11, %v2520_v24, %v2018_v44 }
 0x1ba   :  { %v2016_v41 = vpop.permute.xlu0 %2015  ;;  %2103 = vrot.lane.b32.xlu1 %v11725_v48, %s9835_s15  ;;  %v1176_v44 = vsel %vm10594_vm5, %v8892_v16, %v1175_v25  ;;  %v18844_v25 = vld [vmem:[#allocation61_spill] sm:$0xff]  ;;  %v9726_v16 = vld [vmem:[%s18314_s0 + $0x154] sm:$0xf] }
 0x1bb   :  { %v2583_v13 = vsel %vm2557_vm11, %v2518_v39, %v2016_v41  ;;  %v1179_v41 = vsel %vm10594_vm5, %v1177_v37, %v1178_v36  ;;  %v1189_v37 = vrot.slane %v9726_v16, 5 }
 0x1bc   :  { %2101 = vrot.lane.b32.xlu0 %v11689_v63, %s9835_s15  ;;  %v2088_v7 = vpop.permute.xlu1 %2087 }
 0x1bd   :  { %v2650_v52 = vsel %vm2622_vm12, %v2585_v31, %v2088_v7  ;;  %v11803_v7 = vcombine.low %v1176_v44, %v1179_v41 }
 0x1be   :  { %v2086_v51 = vpop.permute.xlu0 %2085  ;;  %2173 = vrot.lane.b32.xlu1 %v18841_v53, %s9836_s1 }
 0x1bf   :  { %v2648_v5 = vsel %vm2622_vm12, %v2583_v13, %v2086_v51  ;;  %v9723_v51 = vld [vmem:[%s18314_s0 + $0x148] sm:$0xf] }
 0x1c0   :  { %2171 = vrot.lane.b32.xlu0 %v18840_v2, %s9836_s1  ;;  %v2158_v11 = vpop.permute.xlu1 %2157  ;;  %v1182_v55 = vrot.slane %v9723_v51, 5 }
 0x1c1   :  { %v2715_v12 = vsel %vm2687_vm13, %v2650_v52, %v2158_v11  ;;  %v9725_v11 = vld [vmem:[%s18314_s0 + $0x144] sm:$0xf]  ;;  %v18845_v52 = vld [vmem:[#allocation84_spill] sm:$0xff] }
 0x1c2   :  { %v2156_v59 = vpop.permute.xlu0 %2155  ;;  %2243 = vrot.lane.b32.xlu1 %v11739_v18, %s9837_s16  ;;  %v8893_v33 = vrot.slane %v9725_v11, 9  ;;  %v1184_v47 = vrot.slane %v1182_v55, 4  ;;  %v11818_v22 = vcombine.low %v9725_v11, %v9723_v51  ;;  %v1191_v11 = vrot.slane %v1189_v37, 4 }
 0x1c3   :  { %v2713_v28 = vsel %vm2687_vm13, %v2648_v5, %v2156_v59  ;;  %v3925_v59 = vld [vmem:[#allocation2 + $0x68] sm:$0x1]  ;;  %v2310_v5 = vsel %vm2265_vm7, %v11243_v14, %v18846_v9 }
 0x1c4   :  { %2241 = vrot.lane.b32.xlu0 %v11710_v8, %s9837_s16  ;;  %v2228_v6 = vpop.permute.xlu1 %2227  ;;  %v1183_v10 = vsel %vm10594_vm5, %v8893_v33, %v1182_v55  ;;  %v1186_v4 = vsel %vm10594_vm5, %v1184_v47, %v1185_v45  ;;  %v3926_v31 = vsel %vm11590_vm6, 0, %v3925_v59  ;;  %v9727_v55 = vld [vmem:[%s18314_s0 + $0x158] sm:$0x1]  ;;  %v8894_v45 = vrot.slane %v9728_v21, 9 }
 0x1c5   :  { %v2780_v3 = vsel %vm18521_vm14, %v2715_v12, %v2228_v6  ;;  %v11838_v13 = vcombine.low %v1183_v10, %v1186_v4  ;;  %3927 = vst [vmem:[#allocation2 + $0x68] sm:$0x1] %v3926_v31  ;;  %v2313_v6 = vsel %vm2265_vm7, %v11297_v57, %v18845_v52  ;;  %v11879_v33 = vcombine.low %v9728_v21, %v9726_v16  ;;  %v18847_v4 = vld [vmem:[#allocation70_spill] sm:$0xff]  ;;  %v3821_v31 = vld [vmem:[#allocation2 + $0x78] sm:$0x1] }
 0x1c6   :  { %v2226_v2 = vpop.permute.xlu0 %2225  ;;  %1827 = vrot.lane.b32.xlu1 %v11739_v18, %s9831_s19 }
 0x1c7   :  { %v2778_v29 = vsel %vm18521_vm14, %v2713_v28, %v2226_v2  ;;  %v3922_v28 = vld [vmem:[#allocation2 + $0x5c] sm:$0x1] }
 0x1c8   :  { %1825 = vrot.lane.b32.xlu0 %v11710_v8, %s9831_s19  ;;  %9454 = vmatprep.mubr.msk.bf16.mxu0 %vm18500_vm15, %v2778_v29  ;;  %v1812_v61 = vpop.permute.xlu1 %1811  ;;  %v3923_v17 = vsel %vm11590_vm6, 0, %v3922_v28  ;;  %v3818_v28 = vld [vmem:[#allocation2 + $0x6c] sm:$0x1] }
 0x1c9   :  { %9455 = vmatmul.mubr.msk.bf16.gmra.mrb[24].mxu0 %vm18500_vm15, %v2780_v3  ;;  %v2394_v12 = vsel %vm2362_vm8, %v2313_v6, %v1812_v61  ;;  %3924 = vst [vmem:[#allocation2 + $0x5c] sm:$0x1] %v3923_v17  ;;  %v9731_v6 = vld [vmem:[%s18314_s0 + $0x15c] sm:$0xf] }
 0x1ca   :  { %v1810_v62 = vpop.permute.xlu0 %1809  ;;  %1897 = vrot.lane.b32.xlu1 %v11787_v40, %s9832_s29  ;;  %v8895_v9 = vrot.slane %v9731_v6, 9 }
 0x1cb   :  { %v2392_v3 = vsel %vm2362_vm8, %v2310_v5, %v1810_v62 }
 0x1cc   :  { %1895 = vrot.lane.b32.xlu0 %v11725_v48, %s9832_s29  ;;  %v1882_v34 = vpop.permute.xlu1 %1881 }
 0x1cd   :  { %v2459_v2 = vsel %vm2427_vm9, %v2394_v12, %v1882_v34 }
 0x1ce   :  { %v1880_v8 = vpop.permute.xlu0 %1879  ;;  %1967 = vrot.lane.b32.xlu1 %v18843_v30, %s9833_s9 }
 0x1cf   :  { %v2457_v57 = vsel %vm2427_vm9, %v2392_v3, %v1880_v8  ;;  %v3931_v3 = vld [vmem:[#allocation2 + $0x80] sm:$0x1] }
 0x1d0   :  { %1965 = vrot.lane.b32.xlu0 %v18841_v53, %s9833_s9  ;;  %v1952_v56 = vpop.permute.xlu1 %1951  ;;  %v3932_v17 = vsel %vm11590_vm6, 0, %v3931_v3  ;;  %v18851_v3 = vld [vmem:[#allocation76_spill] sm:$0xff] }
 0x1d1   :  { %v2524_v36 = vsel %vm2492_vm10, %v2459_v2, %v1952_v56  ;;  %v1192_v56 = vrot.slane %v9727_v55, 5  ;;  %v3819_v2 = vsel %vm11573_vm3, 0, %v3818_v28  ;;  %3933 = vst [vmem:[#allocation2 + $0x80] sm:$0x1] %v3932_v17  ;;  %v9735_v17 = vld [vmem:[%s18314_s0 + $0x178] sm:$0xf] }
 0x1d2   :  { %v1950_v27 = vpop.permute.xlu0 %1949  ;;  %2037 = vrot.lane.b32.xlu1 %v11803_v7, %s9834_s12  ;;  %3820 = vst [vmem:[#allocation2 + $0x6c] sm:$0x1] %v3819_v2 }
 0x1d3   :  { %v2522_v14 = vsel %vm2492_vm10, %v2457_v57, %v1950_v27  ;;  %v1193_v20 = vsel %vm10594_vm5, %v1191_v11, %v1192_v56 }
 0x1d4   :  { %2035 = vrot.lane.b32.xlu0 %v11739_v18, %s9834_s12  ;;  %v2022_v53 = vpop.permute.xlu1 %2021  ;;  %v3812_v18 = vld [vmem:[#allocation2 + $0x54] sm:$0x1] }
 0x1d5   :  { %v3813_v39 = vsel %vm11573_vm3, 0, %v3812_v18  ;;  %v2589_v1 = vsel %vm2557_vm11, %v2524_v36, %v2022_v53 }
 0x1d6   :  { %v2020_v35 = vpop.permute.xlu0 %2019  ;;  %2107 = vrot.lane.b32.xlu1 %v11818_v22, %s9835_s15  ;;  %3814 = vst [vmem:[#allocation2 + $0x54] sm:$0x1] %v3813_v39 }
 0x1d7   :  { %v2587_v61 = vsel %vm2557_vm11, %v2522_v14, %v2020_v35  ;;  %v1190_v35 = vsel %vm10594_vm5, %v8894_v45, %v1189_v37  ;;  %v9732_v45 = vld [vmem:[%s18314_s0 + $0x16c] sm:$0xf] }
 0x1d8   :  { %2105 = vrot.lane.b32.xlu0 %v11787_v40, %s9835_s15  ;;  %v2092_v24 = vpop.permute.xlu1 %2091  ;;  %v11895_v23 = vcombine.low %v1190_v35, %v1193_v20  ;;  %v1203_v11 = vrot.slane %v9732_v45, 5 }
 0x1d9   :  { %v2654_v62 = vsel %vm2622_vm12, %v2589_v1, %v2092_v24  ;;  %v9729_v24 = vld [vmem:[%s18314_s0 + $0x160] sm:$0xf]  ;;  %v3928_v1 = vld [vmem:[#allocation2 + $0x74] sm:$0x1] }
 0x1da   :  { %v2090_v15 = vpop.permute.xlu0 %2089  ;;  %2177 = vrot.lane.b32.xlu1 %v18844_v25, %s9836_s1  ;;  %v1196_v18 = vrot.slane %v9729_v24, 5  ;;  %v11912_v12 = vcombine.low %v9731_v6, %v9729_v24  ;;  %v3929_v16 = vsel %vm11590_vm6, 0, %v3928_v1  ;;  %v3937_v1 = vld [vmem:[#allocation2 + $0x98] sm:$0x1] }
 0x1db   :  { %v2652_v41 = vsel %vm2622_vm12, %v2587_v61, %v2090_v15  ;;  %v9730_v15 = vld [vmem:[%s18314_s0 + $0x164] sm:$0x1]  ;;  %v18848_v61 = vld [vmem:[#allocation67_spill] sm:$0xff]  ;;  %3930 = vst [vmem:[#allocation2 + $0x74] sm:$0x1] %v3929_v16 }
 0x1dc   :  { %2175 = vrot.lane.b32.xlu0 %v18843_v30, %s9836_s1  ;;  %v2162_v54 = vpop.permute.xlu1 %2161  ;;  %v1199_v52 = vrot.slane %v9730_v15, 5  ;;  %v1198_v5 = vrot.slane %v1196_v18, 4  ;;  %v1197_v36 = vsel %vm10594_vm5, %v8895_v9, %v1196_v18  ;;  %v9733_v18 = vld [vmem:[%s18314_s0 + $0x170] sm:$0x1] }
 0x1dd   :  { %v2719_v34 = vsel %vm2687_vm13, %v2654_v62, %v2162_v54 }
 0x1de   :  { %v2160_v29 = vpop.permute.xlu0 %2159  ;;  %2247 = vrot.lane.b32.xlu1 %v11838_v13, %s9837_s16 }
 0x1df   :  { %v2717_v8 = vsel %vm2687_vm13, %v2652_v41, %v2160_v29  ;;  %v8920_v29 = vcombine.low %v11450_v0, %v11425_v32  ;;  %v18850_v32 = vld [vmem:[#allocation87_spill] sm:$0xff] }
 0x1e0   :  { %2245 = vrot.lane.b32.xlu0 %v11803_v7, %s9837_s16  ;;  %v2232_v44 = vpop.permute.xlu1 %2231 }
 0x1e1   :  { %v2784_v30 = vsel %vm18521_vm14, %v2719_v34, %v2232_v44  ;;  %v18849_v44 = vld [vmem:[#allocation86_spill] sm:$0xff]  ;;  %v2316_v0 = vsel %vm2265_vm7, %v8920_v29, %v18850_v32 }
 0x1e2   :  { %v2230_v51 = vpop.permute.xlu0 %2229  ;;  %1831 = vrot.lane.b32.xlu1 %v11838_v13, %s9831_s19  ;;  %v2319_v41 = vsel %vm2265_vm7, %v11487_v58, %v18849_v44  ;;  %v9736_v44 = vld [vmem:[%s18314_s0 + $0x17c] sm:$0x1] }
 0x1e3   :  { %v2782_v27 = vsel %vm18521_vm14, %v2717_v8, %v2230_v51 }
 0x1e4   :  { %1829 = vrot.lane.b32.xlu0 %v11803_v7, %s9831_s19  ;;  %9458 = vmatprep.mubr.msk.bf16.mxu0 %vm18500_vm15, %v2782_v27  ;;  %v1816_v47 = vpop.permute.xlu1 %1815 }
 0x1e5   :  { %9459 = vmatmul.mubr.msk.bf16.gmra.mrb[28].mxu0 %vm18500_vm15, %v2784_v30  ;;  %v2398_v34 = vsel %vm2362_vm8, %v2319_v41, %v1816_v47  ;;  %v1213_v41 = vrot.slane %v9736_v44, 5 }
 0x1e6   :  { %v1814_v53 = vpop.permute.xlu0 %1813  ;;  %1901 = vrot.lane.b32.xlu1 %v11879_v33, %s9832_s29 }
 0x1e7   :  { %v2396_v30 = vsel %vm2362_vm8, %v2316_v0, %v1814_v53 }
 0x1e8   :  { %1899 = vrot.lane.b32.xlu0 %v11818_v22, %s9832_s29  ;;  %v1886_v10 = vpop.permute.xlu1 %1885 }
 0x1e9   :  { %v2463_v51 = vsel %vm2427_vm9, %v2398_v34, %v1886_v10 }
 0x1ea   :  { %v1884_v7 = vpop.permute.xlu0 %1883  ;;  %1971 = vrot.lane.b32.xlu1 %v18847_v4, %s9833_s9 }
 0x1eb   :  { %v2461_v55 = vsel %vm2427_vm9, %v2396_v30, %v1884_v7 }
 0x1ec   :  { %1969 = vrot.lane.b32.xlu0 %v18844_v25, %s9833_s9  ;;  %v1956_v59 = vpop.permute.xlu1 %1955  ;;  %v3822_v25 = vsel %vm11573_vm3, 0, %v3821_v31  ;;  %v9734_v31 = vld [vmem:[%s18314_s0 + $0x168] sm:$0xf] }
 0x1ed   :  { %3823 = vst [vmem:[#allocation2 + $0x78] sm:$0x1] %v3822_v25  ;;  %v2528_v56 = vsel %vm2492_vm10, %v2463_v51, %v1956_v59  ;;  %v1206_v59 = vrot.slane %v9733_v18, 5  ;;  %v8896_v15 = vrot.slane %v9734_v31, 9  ;;  %v11972_v6 = vcombine.low %v9734_v31, %v9732_v45 }
 0x1ee   :  { %v1954_v39 = vpop.permute.xlu0 %1953  ;;  %2041 = vrot.lane.b32.xlu1 %v11895_v23, %s9834_s12 }
 0x1ef   :  { %v2526_v58 = vsel %vm2492_vm10, %v2461_v55, %v1954_v39  ;;  %v1204_v25 = vsel %vm10594_vm5, %v8896_v15, %v1203_v11 }
 0x1f0   :  { %2039 = vrot.lane.b32.xlu0 %v11838_v13, %s9834_s12  ;;  %v2026_v54 = vpop.permute.xlu1 %2025  ;;  %v1200_v13 = vsel %vm10594_vm5, %v1198_v5, %v1199_v52  ;;  %v1205_v52 = vrot.slane %v1203_v11, 4 }
 0x1f1   :  { %v11934_v62 = vcombine.low %v1197_v36, %v1200_v13  ;;  %v2593_v21 = vsel %vm2557_vm11, %v2528_v56, %v2026_v54  ;;  %v3827_v36 = vld [vmem:[#allocation2 + $0x90] sm:$0x1]  ;;  %v3934_v56 = vld [vmem:[#allocation2 + $0x8c] sm:$0x1] }
 0x1f2   :  { %v2024_v57 = vpop.permute.xlu0 %2023  ;;  %2111 = vrot.lane.b32.xlu1 %v11912_v12, %s9835_s15  ;;  %v1207_v54 = vsel %vm10594_vm5, %v1205_v52, %v1206_v59  ;;  %v3828_v13 = vsel %vm11573_vm3, 0, %v3827_v36 }
 0x1f3   :  { %v2591_v47 = vsel %vm2557_vm11, %v2526_v58, %v2024_v57  ;;  %v11996_v2 = vcombine.low %v1204_v25, %v1207_v54  ;;  %v1210_v57 = vrot.slane %v9735_v17, 5  ;;  %3829 = vst [vmem:[#allocation2 + $0x90] sm:$0x1] %v3828_v13  ;;  %v18852_v25 = vld [vmem:[#allocation73_spill] sm:$0xff] }
 0x1f4   :  { %2109 = vrot.lane.b32.xlu0 %v11879_v33, %s9835_s15  ;;  %v2096_v14 = vpop.permute.xlu1 %2095 }
 0x1f5   :  { %v2658_v53 = vsel %vm2622_vm12, %v2593_v21, %v2096_v14  ;;  %v3824_v14 = vld [vmem:[#allocation2 + $0x84] sm:$0x1]  ;;  %v1212_v34 = vrot.slane %v1210_v57, 4  ;;  %v3935_v21 = vsel %vm11590_vm6, 0, %v3934_v56 }
 0x1f6   :  { %v2094_v37 = vpop.permute.xlu0 %2093  ;;  %2181 = vrot.lane.b32.xlu1 %v18848_v61, %s9836_s1  ;;  %v3825_v16 = vsel %vm11573_vm3, 0, %v3824_v14  ;;  %3936 = vst [vmem:[#allocation2 + $0x8c] sm:$0x1] %v3935_v21  ;;  %v18854_v14 = vld [vmem:[#allocation89_spill] sm:$0xff] }
 0x1f7   :  { %v2656_v20 = vsel %vm2622_vm12, %v2591_v47, %v2094_v37  ;;  %v3938_v37 = vsel %vm11590_vm6, 0, %v3937_v1  ;;  %3826 = vst [vmem:[#allocation2 + $0x84] sm:$0x1] %v3825_v16  ;;  %v2322_v1 = vsel %vm2265_vm7, %v11482_v50, %v18854_v14  ;;  %v18855_v14 = vld [vmem:[#allocation83_spill] sm:$0xff] }
 0x1f8   :  { %2179 = vrot.lane.b32.xlu0 %v18847_v4, %s9836_s1  ;;  %v2166_v8 = vpop.permute.xlu1 %2165  ;;  %3939 = vst [vmem:[#allocation2 + $0x98] sm:$0x1] %v3938_v37 }
 0x1f9   :  { %v2723_v10 = vsel %vm2687_vm13, %v2658_v53, %v2166_v8 }
 0x1fa   :  { %v2164_v27 = vpop.permute.xlu0 %2163  ;;  %2251 = vrot.lane.b32.xlu1 %v11934_v62, %s9837_s16 }
 0x1fb   :  { %v2721_v7 = vsel %vm2687_vm13, %v2656_v20, %v2164_v27 }
 0x1fc   :  { %2249 = vrot.lane.b32.xlu0 %v11895_v23, %s9837_s16  ;;  %v2236_v35 = vpop.permute.xlu1 %2235 }
 0x1fd   :  { %v2788_v4 = vsel %vm18521_vm14, %v2723_v10, %v2236_v35 }
 0x1fe   :  { %v2234_v24 = vpop.permute.xlu0 %2233  ;;  %1835 = vrot.lane.b32.xlu1 %v11934_v62, %s9831_s19 }
 0x1ff   :  { %v2786_v39 = vsel %vm18521_vm14, %v2721_v7, %v2234_v24 }
 0x200   :  { %1833 = vrot.lane.b32.xlu0 %v11895_v23, %s9831_s19  ;;  %9462 = vmatprep.mubr.msk.bf16.mxu0 %vm18500_vm15, %v2786_v39  ;;  %v11977_v9 = vpop.permute.xlu1 %1819 }
 0x201   :  { %9463 = vmatmul.mubr.msk.bf16.gmra.mrb[32].mxu0 %vm18500_vm15, %v2788_v4 }
 0x202   :  { %v11980_v5 = vpop.permute.xlu0 %1817  ;;  %1905 = vrot.lane.b32.xlu1 %v11972_v6, %s9832_s29 }
 0x204   :  { %1903 = vrot.lane.b32.xlu0 %v11912_v12, %s9832_s29  ;;  %v11990_v23 = vpop.permute.xlu1 %1889 }
 0x206   :  { %v11992_v28 = vpop.permute.xlu0 %1887  ;;  %1975 = vrot.lane.b32.xlu1 %v18851_v3, %s9833_s9 }
 0x208   :  { %1973 = vrot.lane.b32.xlu0 %v18848_v61, %s9833_s9  ;;  %v1960_v29 = vpop.permute.xlu1 %1959  ;;  %v9737_v61 = vld [vmem:[%s18314_s0 + $0x174] sm:$0xf] }
 0x209   :  { %v8897_v0 = vrot.slane %v9737_v61, 9  ;;  %v12019_v30 = vcombine.low %v9737_v61, %v9735_v17  ;;  %v18853_v17 = vld [vmem:[#allocation88_spill] sm:$0xff] }
 0x20a   :  { %v1958_v32 = vpop.permute.xlu0 %1957  ;;  %2045 = vrot.lane.b32.xlu1 %v11996_v2, %s9834_s12 }
 0x20b   :  { %v12017_v8 = vpop.f32.mrb[0].mxu0  ;;  %v1211_v47 = vsel %vm10594_vm5, %v8897_v0, %v1210_v57  ;;  %v2325_v57 = vsel %vm2265_vm7, %v11527_v19, %v18853_v17  ;;  %v2400_v19 = vsel %vm2362_vm8, %v2322_v1, %v11980_v5  ;;  %v12133_v17 = vld [vmem:[%s18314_s0 + $0x198] sm:$0xf] }
 0x20c   :  { %v12021_v51 = vpop.f32.mrb[1].mxu0  ;;  %2043 = vrot.lane.b32.xlu0 %v11934_v62, %s9834_s12  ;;  %v2030_v55 = vpop.permute.xlu1 %2029  ;;  %v1214_v62 = vsel %vm10594_vm5, %v1212_v34, %v1213_v41  ;;  %v3333_v53 = vmul.f32 %v12017_v8, %v12017_v8  ;;  %v3200_v24 = vsel %vm2265_vm7, %v12017_v8, 0.0  ;;  %v2402_v16 = vsel %vm2362_vm8, %v2325_v57, %v11977_v9  ;;  %v3830_v57 = vld [vmem:[#allocation2 + $0x9c] sm:$0x1] }
 0x20d   :  { %v3331_v27 = vmul.f32 %v12021_v51, %v12021_v51  ;;  %v12027_v58 = vpop.f32.mrb[2].mxu0  ;;  %v3197_v35 = vsel %vm2265_vm7, %v12021_v51, 0.0  ;;  %v12057_v54 = vcombine.low %v1211_v47, %v1214_v62  ;;  %v2467_v61 = vsel %vm2427_vm9, %v2402_v16, %v11990_v23  ;;  %v9738_v23 = vld [vmem:[%s18314_s0 + $0x184] sm:$0xf]  ;;  %v9741_v16 = vld [vmem:[%s18314_s0 + $0x190] sm:$0xf] }
 0x20e   :  { %v12031_v45 = vpop.f32.mrb[3].mxu0  ;;  %v2028_v11 = vpop.permute.xlu0 %2027  ;;  %2115 = vrot.lane.b32.xlu1 %v12019_v30, %s9835_s15  ;;  %v3334_v59 = vmul.f32 %v12027_v58, %v12027_v58  ;;  %v3398_v36 = vsel %vm2265_vm7, %v3333_v53, 0.0  ;;  %v3202_v13 = vsel %vm2265_vm7, %v12027_v58, 0.0  ;;  %v2465_v50 = vsel %vm2427_vm9, %v2400_v19, %v11992_v28 }
 0x20f   :  { %v3198_v20 = vsel %vm2265_vm7, %v12031_v45, 0.0  ;;  %v3332_v10 = vmul.f32 %v12031_v45, %v12031_v45  ;;  %v3395_v18 = vsel %vm2265_vm7, %v3331_v27, 0.0  ;;  %v2532_v9 = vsel %vm2492_vm10, %v2467_v61, %v1960_v29 }
 0x210   :  { %v3199_v7 = vadd.f32 %v3198_v20, %v3197_v35  ;;  %2113 = vrot.lane.b32.xlu0 %v11972_v6, %s9835_s15  ;;  %v2100_v4 = vpop.permute.xlu1 %2099  ;;  %v3400_v0 = vsel %vm2265_vm7, %v3334_v59, 0.0  ;;  %v2530_v56 = vsel %vm2492_vm10, %v2465_v50, %v1958_v32  ;;  %v2597_v5 = vsel %vm2557_vm11, %v2532_v9, %v2030_v55  ;;  %v9742_v50 = vld [vmem:[%s18314_s0 + $0x194] sm:$0x1] }
 0x211   :  { %v3396_v39 = vsel %vm2265_vm7, %v3332_v10, 0.0  ;;  %v1217_v27 = vrot.slane %v9738_v23, 5  ;;  %v2595_v21 = vsel %vm2557_vm11, %v2530_v56, %v2028_v11  ;;  %v2662_v28 = vsel %vm2622_vm12, %v2597_v5, %v2100_v4  ;;  %v9739_v11 = vld [vmem:[%s18314_s0 + $0x188] sm:$0x1]  ;;  %v9740_v10 = vld [vmem:[%s18314_s0 + $0x180] sm:$0xf] }
 0x212   :  { %v3201_v31 = vadd.f32 %v3200_v24, %v3199_v7  ;;  %v3397_v15 = vadd.f32 %v3396_v39, %v3395_v18  ;;  %v2098_v52 = vpop.permute.xlu0 %2097  ;;  %2185 = vrot.lane.b32.xlu1 %v18852_v25, %s9836_s1  ;;  %v1220_v35 = vrot.slane %v9739_v11, 5  ;;  %v8898_v7 = vrot.slane %v9740_v10, 9 }
 0x213   :  { %v2660_v47 = vsel %vm2622_vm12, %v2595_v21, %v2098_v52  ;;  %v1219_v4 = vrot.slane %v1217_v27, 4  ;;  %v12108_v24 = vcombine.low %v9740_v10, %v9738_v23  ;;  %v1227_v9 = vrot.slane %v9742_v50, 5 }
 0x214   :  { %v3399_v37 = vadd.f32 %v3398_v36, %v3397_v15  ;;  %2183 = vrot.lane.b32.xlu0 %v18851_v3, %s9836_s1  ;;  %v2170_v44 = vpop.permute.xlu1 %2169  ;;  %v12072_v41 = vadd.f32 %v3202_v13, %v3201_v31  ;;  %v1218_v39 = vsel %vm10594_vm5, %v8898_v7, %v1217_v27  ;;  %v3833_v15 = vld [vmem:[#allocation2 + $0xa8] sm:$0x1]  ;;  %v3943_v36 = vld [vmem:[#allocation2 + $0xb0] sm:$0x1]  ;;  %v1254_v27 = vshrl.u32 %v12133_v17, 16 }
 0x215   :  { %v2727_v62 = vsel %vm2687_vm13, %v2662_v28, %v2170_v44  ;;  %v1221_v31 = vsel %vm10594_vm5, %v1219_v4, %v1220_v35  ;;  %v3834_v52 = vsel %vm11573_vm3, 0, %v3833_v15  ;;  %v3831_v44 = vsel %vm11573_vm3, 0, %v3830_v57 }
 0x216   :  { %v2168_v34 = vpop.permute.xlu0 %2167  ;;  %2255 = vrot.lane.b32.xlu1 %v12057_v54, %s9837_s16  ;;  %v12084_v3 = vadd.f32 %v3400_v0, %v3399_v37  ;;  %3835 = vst [vmem:[#allocation2 + $0xa8] sm:$0x1] %v3834_v52  ;;  %v12139_v1 = vcombine.low %v1218_v39, %v1221_v31  ;;  %v1224_v37 = vrot.slane %v9741_v16, 5  ;;  %v3944_v19 = vsel %vm11590_vm6, 0, %v3943_v36  ;;  %v12153_v0 = vld [vmem:[%s18314_s0 + $0x19c] sm:$0xf] }
 0x217   :  { %v2725_v32 = vsel %vm2687_vm13, %v2660_v47, %v2168_v34  ;;  %3832 = vst [vmem:[#allocation2 + $0x9c] sm:$0x1] %v3831_v44  ;;  %3945 = vst [vmem:[#allocation2 + $0xb0] sm:$0x1] %v3944_v19  ;;  %v9743_v34 = vld [vmem:[%s18314_s0 + $0x18c] sm:$0xf] }
 0x218   :  { %2253 = vrot.lane.b32.xlu0 %v11996_v2, %s9837_s16  ;;  %v2240_v29 = vpop.permute.xlu1 %2239  ;;  %v12161_v56 = vcombine.low %v9743_v34, %v9741_v16  ;;  %v8899_v47 = vrot.slane %v9743_v34, 9  ;;  %v1226_v11 = vrot.slane %v1224_v37, 4  ;;  %v1267_v35 = vshrl.u32 %v12153_v0, 16 }
 0x219   :  { %v2792_v55 = vsel %vm18521_vm14, %v2727_v62, %v2240_v29  ;;  %v1257_v62 = vshll.u32 %v12133_v17, 16  ;;  %v1256_v52 = vrot.slane %v1254_v27, 4 }
 0x21a   :  { %v2238_v53 = vpop.permute.xlu0 %2237  ;;  %1839 = vrot.lane.b32.xlu1 %v12057_v54, %s9831_s19  ;;  %v1228_v27 = vsel %vm10594_vm5, %v1226_v11, %v1227_v9  ;;  %v12224_v9 = vld [vmem:[%s18314_s0 + $0x1a0] sm:$0x1] }
 0x21b   :  { %v2790_v20 = vsel %vm18521_vm14, %v2725_v32, %v2238_v53  ;;  %v3940_v32 = vld [vmem:[#allocation2 + $0xa4] sm:$0x1]  ;;  %v1259_v19 = vrot.slane %v1257_v62, 5  ;;  %v1269_v62 = vrot.slane %v1267_v35, 4 }
 0x21c   :  { %1837 = vrot.lane.b32.xlu0 %v11996_v2, %s9831_s19  ;;  %9466 = vmatprep.mubr.msk.bf16.mxu0 %vm18500_vm15, %v2790_v20  ;;  %v12113_v18 = vpop.permute.xlu1 %1823  ;;  %v1263_v20 = vshll.u32 %v12153_v0, 16  ;;  %v3941_v57 = vsel %vm11590_vm6, 0, %v3940_v32 }
 0x21d   :  { %9467 = vmatmul.mubr.msk.bf16.gmra.mrb[36].mxu0 %vm18500_vm15, %v2792_v55  ;;  %3942 = vst [vmem:[#allocation2 + $0xa4] sm:$0x1] %v3941_v57  ;;  %v1260_v35 = vor.u32 %v1259_v19, %v1256_v52 }
 0x21e   :  { %v12116_v59 = vpop.permute.xlu0 %1821  ;;  %1909 = vrot.lane.b32.xlu1 %v12108_v24, %s9832_s29  ;;  %v1265_v32 = vrot.slane %v1263_v20, 5  ;;  %v12230_v20 = vld [vmem:[%s18314_s0 + $0x1a8] sm:$0xf] }
 0x220   :  { %1907 = vrot.lane.b32.xlu0 %v12019_v30, %s9832_s29  ;;  %v12126_v2 = vpop.permute.xlu1 %1893  ;;  %v1270_v19 = vor.u32 %v1269_v62, %v1265_v32  ;;  %v1261_v62 = vrot.slane %v1260_v35, 4 }
 0x222   :  { %v12135_v13 = vpop.permute.xlu0 %1891  ;;  %1979 = vrot.lane.b32.xlu1 %v18855_v14, %s9833_s9  ;;  %v1271_v35 = vrot.slane %v1270_v19, 4 }
 0x223   :  { %v12148_v61 = vpop.f32.mrb[4].mxu0 }
 0x224   :  { %v12163_v5 = vpop.f32.mrb[5].mxu0  ;;  %1977 = vrot.lane.b32.xlu0 %v18852_v25, %s9833_s9  ;;  %v12167_v23 = vpop.permute.xlu1 %1963  ;;  %v3337_v10 = vmul.f32 %v12148_v61, %v12148_v61  ;;  %v3208_v36 = vsel %vm2265_vm7, %v12148_v61, 0.0 }
 0x225   :  { %v3204_v21 = vsel %vm2265_vm7, %v12163_v5, 0.0  ;;  %v3335_v28 = vmul.f32 %v12163_v5, %v12163_v5  ;;  %v12174_v29 = vpop.f32.mrb[6].mxu0 }
 0x226   :  { %v3205_v55 = vadd.f32 %v3204_v21, %v12072_v41  ;;  %v12178_v53 = vpop.f32.mrb[7].mxu0  ;;  %v12180_v25 = vpop.permute.xlu0 %1961  ;;  %2049 = vrot.lane.b32.xlu1 %v12139_v1, %s9834_s12  ;;  %v3338_v16 = vmul.f32 %v12174_v29, %v12174_v29  ;;  %v3406_v21 = vsel %vm2265_vm7, %v3337_v10, 0.0 }
 0x227   :  { %v3402_v7 = vsel %vm2265_vm7, %v3335_v28, 0.0  ;;  %v3206_v41 = vsel %vm2265_vm7, %v12178_v53, 0.0  ;;  %v3336_v4 = vmul.f32 %v12178_v53, %v12178_v53  ;;  %v3210_v28 = vsel %vm2265_vm7, %v12174_v29, 0.0 }
 0x228   :  { %v3403_v39 = vadd.f32 %v3402_v7, %v12084_v3  ;;  %v3207_v31 = vadd.f32 %v3206_v41, %v3205_v55  ;;  %2047 = vrot.lane.b32.xlu0 %v12057_v54, %s9834_s12  ;;  %v2034_v15 = vpop.permute.xlu1 %2033  ;;  %v1225_v54 = vsel %vm10594_vm5, %v8899_v47, %v1224_v37  ;;  %v12215_v55 = vld [vmem:[%s18314_s0 + $0x1a4] sm:$0xf]  ;;  %v3408_v11 = vsel %vm2265_vm7, %v3338_v16, 0.0  ;;  %v18856_v41 = vld [vmem:[#allocation79_spill] sm:$0xff] }
 0x229   :  { %v3404_v44 = vsel %vm2265_vm7, %v3336_v4, 0.0  ;;  %v12234_v4 = vcombine.low %v1225_v54, %v1228_v27  ;;  %v1389_v57 = vshll.u32 %v12215_v55, 16  ;;  %v18858_v16 = vld [vmem:[#allocation91_spill] sm:$0xff]  ;;  %v12253_v27 = vcombine.low %v12133_v17, %v12153_v0 }
 0x22a   :  { %v3209_v3 = vadd.f32 %v3208_v36, %v3207_v31  ;;  %v3405_v50 = vadd.f32 %v3404_v44, %v3403_v39  ;;  %v2032_v34 = vpop.permute.xlu0 %2031  ;;  %2119 = vrot.lane.b32.xlu1 %v12161_v56, %s9835_s15  ;;  %v1386_v31 = vshrl.u32 %v12215_v55, 16  ;;  %v18857_v36 = vld [vmem:[#allocation90_spill] sm:$0xff]  ;;  %v2328_v44 = vsel %vm2265_vm7, %v11577_v26, %v18858_v16 }
 0x22b   :  { %v2331_v52 = vsel %vm2265_vm7, %v11631_v49, %v18857_v36  ;;  %v1399_v49 = vshrl.u32 %v12230_v20, 16  ;;  %v2404_v26 = vsel %vm2362_vm8, %v2328_v44, %v12116_v59 }
 0x22c   :  { %v3407_v7 = vadd.f32 %v3406_v21, %v3405_v50  ;;  %2117 = vrot.lane.b32.xlu0 %v12108_v24, %s9835_s15  ;;  %v2104_v37 = vpop.permute.xlu1 %2103  ;;  %v12219_v47 = vadd.f32 %v3210_v28, %v3209_v3  ;;  %v1273_v3 = vshll.u32 %v12224_v9, 16  ;;  %v2406_v50 = vsel %vm2362_vm8, %v2331_v52, %v12113_v18 }
 0x22d   :  { %v1395_v21 = vshll.u32 %v12230_v20, 16  ;;  %v2471_v28 = vsel %vm2427_vm9, %v2406_v50, %v12126_v2  ;;  %v1356_v18 = vrot.slane %v12153_v0, 5  ;;  %v1388_v36 = vrot.slane %v1386_v31, 4 }
 0x22e   :  { %v2102_v10 = vpop.permute.xlu0 %2101  ;;  %2189 = vrot.lane.b32.xlu1 %v18856_v41, %s9836_s1  ;;  %v12236_v39 = vadd.f32 %v3408_v11, %v3407_v7  ;;  %v2536_v7 = vsel %vm2492_vm10, %v2471_v28, %v12167_v23  ;;  %v1391_v52 = vrot.slane %v1389_v57, 5  ;;  %v1275_v16 = vrot.slane %v1273_v3, 5 }
 0x22f   :  { %v2601_v2 = vsel %vm2557_vm11, %v2536_v7, %v2034_v15  ;;  %v12275_v44 = vrot.slane %v1395_v21, 5  ;;  %v1401_v50 = vrot.slane %v1399_v49, 4  ;;  %v1358_v15 = vrot.slane %v1356_v18, 4 }
 0x230   :  { %2187 = vrot.lane.b32.xlu0 %v18855_v14, %s9836_s1  ;;  %v2174_v54 = vpop.permute.xlu1 %2173  ;;  %v2469_v14 = vsel %vm2427_vm9, %v2404_v26, %v12135_v13  ;;  %v2666_v13 = vsel %vm2622_vm12, %v2601_v2, %v2104_v37  ;;  %v1392_v49 = vor.u32 %v1391_v52, %v1388_v36  ;;  %v12297_v21 = vsel %vm9905_vm2, %v1271_v35, %v1275_v16  ;;  %v3839_v36 = vld [vmem:[#allocation2 + $0xc0] sm:$0x1] }
 0x231   :  { %v2534_v59 = vsel %vm2492_vm10, %v2469_v14, %v12180_v25  ;;  %v2731_v57 = vsel %vm2687_vm13, %v2666_v13, %v2174_v54  ;;  %v8901_v25 = vrot.slane %v12133_v17, 9  ;;  %v12293_v17 = vsel %vm9905_vm2, %v1261_v62, %v1265_v32  ;;  %18860 = vst [vmem:[#allocation40_spill] sm:$0xff] %v12297_v21 }
 0x232   :  { %v2172_v11 = vpop.permute.xlu0 %2171  ;;  %2259 = vrot.lane.b32.xlu1 %v12234_v4, %s9837_s16  ;;  %v2599_v0 = vsel %vm2557_vm11, %v2534_v59, %v2032_v34  ;;  %v12283_v34 = vld [vmem:[%s18314_s0 + $0x1ac] sm:$0x1]  ;;  %18859 = vst [vmem:[#allocation46_spill] sm:$0xff] %v12293_v17  ;;  %v12313_v32 = vcombine.low %v12293_v17, %v12297_v21  ;;  %v1393_v7 = vrot.slane %v1392_v49, 4  ;;  %v3840_v16 = vsel %vm11573_vm3, 0, %v3839_v36 }
 0x233   :  { %v2664_v31 = vsel %vm2622_vm12, %v2599_v0, %v2102_v10  ;;  %v1359_v10 = vrot.slane %v12224_v9, 5  ;;  %v1402_v9 = vor.u32 %v1401_v50, %v12275_v44  ;;  %v1405_v28 = vshll.u32 %v12283_v34, 16  ;;  %3841 = vst [vmem:[#allocation2 + $0xc0] sm:$0x1] %v3840_v16  ;;  %v3836_v50 = vld [vmem:[#allocation2 + $0xb4] sm:$0x1] }
 0x234   :  { %2257 = vrot.lane.b32.xlu0 %v12139_v1, %s9837_s16  ;;  %v2244_v23 = vpop.permute.xlu1 %2243  ;;  %v2729_v37 = vsel %vm2687_vm13, %v2664_v31, %v2172_v11 }
 0x235   :  { %v2796_v19 = vsel %vm18521_vm14, %v2731_v57, %v2244_v23  ;;  %v1360_v62 = vsel %vm10594_vm5, %v1358_v15, %v1359_v10  ;;  %v1403_v2 = vrot.slane %v1402_v9, 4  ;;  %v1407_v35 = vrot.slane %v1405_v28, 5 }
 0x236   :  { %v2242_v3 = vpop.permute.xlu0 %2241  ;;  %1843 = vrot.lane.b32.xlu1 %v12234_v4, %s9831_s19  ;;  %v9007_v15 = vcombine.low %v12215_v55, %v12230_v20 }
 0x237   :  { %v2794_v54 = vsel %vm18521_vm14, %v2729_v37, %v2242_v3  ;;  %v1398_v37 = vsel %vm9905_vm2, %v1393_v7, %v12275_v44  ;;  %v3949_v3 = vld [vmem:[#allocation2 + $0xc8] sm:$0x1] }
 0x238   :  { %1841 = vrot.lane.b32.xlu0 %v12139_v1, %s9831_s19  ;;  %9470 = vmatprep.mubr.msk.bf16.mxu0 %vm18500_vm15, %v2794_v54  ;;  %v12302_v26 = vpop.permute.xlu1 %1827  ;;  %v1357_v1 = vsel %vm10594_vm5, %v8901_v25, %v1356_v18 }
 0x239   :  { %9471 = vmatmul.mubr.msk.bf16.gmra.mrb[40].mxu0 %vm18500_vm15, %v2796_v19  ;;  %v12335_v23 = vcombine.low %v1357_v1, %v1360_v62  ;;  %v1424_v19 = vrot.slane %v12230_v20, 5  ;;  %v1408_v20 = vsel %vm9905_vm2, %v1403_v2, %v1407_v35  ;;  %v3837_v1 = vsel %vm11573_vm3, 0, %v3836_v50 }
 0x23a   :  { %v12307_v14 = vpop.permute.xlu0 %1825  ;;  %1913 = vrot.lane.b32.xlu1 %v12253_v27, %s9832_s29  ;;  %3838 = vst [vmem:[#allocation2 + $0xb4] sm:$0x1] %v3837_v1  ;;  %v8903_v2 = vrot.slane %v12215_v55, 9  ;;  %v9009_v1 = vcombine.low %v1398_v37, %v1408_v20  ;;  %v18862_v37 = vld [vmem:[#allocation93_spill] sm:$0xff] }
 0x23b   :  { %v12319_v11 = vpop.f32.mrb[8].mxu0  ;;  %v2334_v20 = vsel %vm2265_vm7, %v11689_v63, %v18862_v37 }
 0x23c   :  { %v12321_v52 = vpop.f32.mrb[9].mxu0  ;;  %1911 = vrot.lane.b32.xlu0 %v12161_v56, %s9832_s29  ;;  %v12325_v59 = vpop.permute.xlu1 %1897  ;;  %v3341_v10 = vmul.f32 %v12319_v11, %v12319_v11  ;;  %v3216_v62 = vsel %vm2265_vm7, %v12319_v11, 0.0 }
 0x23d   :  { %v3212_v18 = vsel %vm2265_vm7, %v12321_v52, 0.0  ;;  %v3339_v0 = vmul.f32 %v12321_v52, %v12321_v52  ;;  %v12333_v13 = vpop.f32.mrb[10].mxu0 }
 0x23e   :  { %v3213_v31 = vadd.f32 %v3212_v18, %v12219_v47  ;;  %v12338_v57 = vpop.f32.mrb[11].mxu0  ;;  %v1896_v25 = vpop.permute.xlu0 %1895  ;;  %1983 = vrot.lane.b32.xlu1 %v12313_v32, %s9833_s9  ;;  %v3342_v7 = vmul.f32 %v12333_v13, %v12333_v13  ;;  %v3414_v50 = vsel %vm2265_vm7, %v3341_v10, 0.0 }
 0x23f   :  { %v3410_v47 = vsel %vm2265_vm7, %v3339_v0, 0.0  ;;  %v3214_v49 = vsel %vm2265_vm7, %v12338_v57, 0.0  ;;  %v3340_v54 = vmul.f32 %v12338_v57, %v12338_v57 }
 0x240   :  { %v3411_v9 = vadd.f32 %v3410_v47, %v12236_v39  ;;  %v3215_v28 = vadd.f32 %v3214_v49, %v3213_v31  ;;  %1981 = vrot.lane.b32.xlu0 %v18856_v41, %s9833_s9  ;;  %v1968_v44 = vpop.permute.xlu1 %1967  ;;  %v3950_v39 = vsel %vm11590_vm6, 0, %v3949_v3  ;;  %v3946_v41 = vld [vmem:[#allocation2 + $0xbc] sm:$0x1]  ;;  %v3218_v31 = vsel %vm2265_vm7, %v12333_v13, 0.0 }
 0x241   :  { %v3412_v36 = vsel %vm2265_vm7, %v3340_v54, 0.0  ;;  %3951 = vst [vmem:[#allocation2 + $0xc8] sm:$0x1] %v3950_v39  ;;  %v3947_v35 = vsel %vm11590_vm6, 0, %v3946_v41  ;;  %v1426_v47 = vrot.slane %v1424_v19, 4  ;;  %v1427_v3 = vrot.slane %v12283_v34, 5 }
 0x242   :  { %v3217_v16 = vadd.f32 %v3216_v62, %v3215_v28  ;;  %v3413_v18 = vadd.f32 %v3412_v36, %v3411_v9  ;;  %v1966_v0 = vpop.permute.xlu0 %1965  ;;  %2053 = vrot.lane.b32.xlu1 %v12335_v23, %s9834_s12  ;;  %3948 = vst [vmem:[#allocation2 + $0xbc] sm:$0x1] %v3947_v35  ;;  %v3416_v55 = vsel %vm2265_vm7, %v3342_v7, 0.0  ;;  %v1425_v62 = vsel %vm10594_vm5, %v8903_v2, %v1424_v19  ;;  %v18861_v7 = vld [vmem:[#allocation92_spill] sm:$0xff] }
 0x243   :  { %v1428_v34 = vsel %vm10594_vm5, %v1426_v47, %v1427_v3  ;;  %v2408_v41 = vsel %vm2362_vm8, %v2334_v20, %v12307_v14 }
 0x244   :  { %v3415_v49 = vadd.f32 %v3414_v50, %v3413_v18  ;;  %2051 = vrot.lane.b32.xlu0 %v12234_v4, %s9834_s12  ;;  %v2038_v54 = vpop.permute.xlu1 %2037  ;;  %v3219_v9 = vadd.f32 %v3218_v31, %v3217_v16  ;;  %v9011_v39 = vcombine.low %v1425_v62, %v1428_v34  ;;  %v2473_v18 = vsel %vm2427_vm9, %v2408_v41, %v1896_v25 }
 0x245   :  { %v2538_v63 = vsel %vm2492_vm10, %v2473_v18, %v1966_v0  ;;  %v3961_v18 = vld [vmem:[#allocation2 + $0xf8] sm:$0x1] }
 0x246   :  { %v2036_v28 = vpop.permute.xlu0 %2035  ;;  %2123 = vrot.lane.b32.xlu1 %v9007_v15, %s9835_s15  ;;  %v3417_v10 = vadd.f32 %v3416_v55, %v3415_v49  ;;  %v2337_v15 = vsel %vm2265_vm7, %v11725_v48, %v18861_v7  ;;  %v3851_v7 = vld [vmem:[#allocation2 + $0xf0] sm:$0x1] }
 0x247   :  { %v2410_v19 = vsel %vm2362_vm8, %v2337_v15, %v12302_v26 }
 0x248   :  { %2121 = vrot.lane.b32.xlu0 %v12253_v27, %s9835_s15  ;;  %v2108_v36 = vpop.permute.xlu1 %2107  ;;  %v2475_v16 = vsel %vm2427_vm9, %v2410_v19, %v12325_v59 }
 0x249   :  { %v2540_v48 = vsel %vm2492_vm10, %v2475_v16, %v1968_v44  ;;  %v3848_v16 = vld [vmem:[#allocation2 + $0xe4] sm:$0x1] }
 0x24a   :  { %v2106_v4 = vpop.permute.xlu0 %2105  ;;  %2193 = vrot.lane.b32.xlu1 %v9009_v1, %s9836_s1  ;;  %v2605_v26 = vsel %vm2557_vm11, %v2540_v48, %v2038_v54 }
 0x24b   :  { %v2670_v35 = vsel %vm2622_vm12, %v2605_v26, %v2108_v36  ;;  %v3962_v26 = vsel %vm11590_vm6, 0, %v3961_v18 }
 0x24c   :  { %2191 = vrot.lane.b32.xlu0 %v12313_v32, %s9836_s1  ;;  %v2178_v27 = vpop.permute.xlu1 %2177  ;;  %v2603_v32 = vsel %vm2557_vm11, %v2538_v63, %v2036_v28  ;;  %3963 = vst [vmem:[#allocation2 + $0xf8] sm:$0x1] %v3962_v26 }
 0x24d   :  { %v2668_v59 = vsel %vm2622_vm12, %v2603_v32, %v2106_v4  ;;  %v2735_v25 = vsel %vm2687_vm13, %v2670_v35, %v2178_v27 }
 0x24e   :  { %v2176_v2 = vpop.permute.xlu0 %2175  ;;  %2263 = vrot.lane.b32.xlu1 %v9011_v39, %s9837_s16 }
 0x24f   :  { %v2733_v44 = vsel %vm2687_vm13, %v2668_v59, %v2176_v2 }
 0x250   :  { %2261 = vrot.lane.b32.xlu0 %v12335_v23, %s9837_s16  ;;  %v2248_v14 = vpop.permute.xlu1 %2247 }
 0x251   :  { %v2800_v50 = vsel %vm18521_vm14, %v2735_v25, %v2248_v14 }
 0x252   :  { %v2246_v31 = vpop.permute.xlu0 %2245 }
 0x253   :  { %v2798_v0 = vsel %vm18521_vm14, %v2733_v44, %v2246_v31  ;;  %v12417_v47 = vpop.f32.mrb[12].mxu0 }
 0x254   :  { %v12419_v3 = vpop.f32.mrb[13].mxu0  ;;  %9474 = vmatprep.mubr.msk.bf16.mxu0 %vm18500_vm15, %v2798_v0  ;;  %v1832_v49 = vpop.permute.xlu1 %1831  ;;  %v3345_v34 = vmul.f32 %v12417_v47, %v12417_v47  ;;  %v3224_v19 = vsel %vm2265_vm7, %v12417_v47, 0.0 }
 0x255   :  { %v3220_v23 = vsel %vm2265_vm7, %v12419_v3, 0.0  ;;  %v3343_v54 = vmul.f32 %v12419_v3, %v12419_v3  ;;  %v12426_v55 = vpop.f32.mrb[14].mxu0  ;;  %9475 = vmatmul.mubr.msk.bf16.gmra.mrb[44].mxu0 %vm18500_vm15, %v2800_v50  ;;  %v3958_v50 = vld [vmem:[#allocation2 + $0xec] sm:$0x1] }
 0x256   :  { %v3221_v28 = vadd.f32 %v3220_v23, %v3219_v9  ;;  %v12429_v1 = vpop.f32.mrb[15].mxu0  ;;  %v1830_v62 = vpop.permute.xlu0 %1829  ;;  %v3852_v9 = vsel %vm11573_vm3, 0, %v3851_v7  ;;  %v3346_v27 = vmul.f32 %v12426_v55, %v12426_v55  ;;  %v3422_v32 = vsel %vm2265_vm7, %v3345_v34, 0.0  ;;  %v18864_v7 = vld [vmem:[#allocation95_spill] sm:$0xff] }
 0x257   :  { %v3418_v36 = vsel %vm2265_vm7, %v3343_v54, 0.0  ;;  %v3222_v4 = vsel %vm2265_vm7, %v12429_v1, 0.0  ;;  %v3344_v39 = vmul.f32 %v12429_v1, %v12429_v1  ;;  %3853 = vst [vmem:[#allocation2 + $0xf0] sm:$0x1] %v3852_v9  ;;  %v3226_v35 = vsel %vm2265_vm7, %v12426_v55, 0.0 }
 0x258   :  { %v3419_v15 = vadd.f32 %v3418_v36, %v3417_v10  ;;  %v3223_v37 = vadd.f32 %v3222_v4, %v3221_v28  ;;  %v1902_v20 = vpop.permute.xlu1 %1901  ;;  %v3849_v10 = vsel %vm11573_vm3, 0, %v3848_v16  ;;  %v3424_v44 = vsel %vm2265_vm7, %v3346_v27, 0.0  ;;  %v18863_v4 = vld [vmem:[#allocation94_spill] sm:$0xff] }
 0x259   :  { %v3420_v41 = vsel %vm2265_vm7, %v3344_v39, 0.0  ;;  %3850 = vst [vmem:[#allocation2 + $0xe4] sm:$0x1] %v3849_v10  ;;  %v3959_v23 = vsel %vm11590_vm6, 0, %v3958_v50  ;;  %v2343_v39 = vsel %vm2265_vm7, %v11818_v22, %v18863_v4 }
 0x25a   :  { %v3225_v48 = vadd.f32 %v3224_v19, %v3223_v37  ;;  %v3421_v2 = vadd.f32 %v3420_v41, %v3419_v15  ;;  %v1900_v63 = vpop.permute.xlu0 %1899  ;;  %3960 = vst [vmem:[#allocation2 + $0xec] sm:$0x1] %v3959_v23  ;;  %v2340_v15 = vsel %vm2265_vm7, %v11787_v40, %v18864_v7  ;;  %v2414_v37 = vsel %vm2362_vm8, %v2343_v39, %v1832_v49 }
 0x25b   :  { %v2412_v19 = vsel %vm2362_vm8, %v2340_v15, %v1830_v62  ;;  %v2479_v27 = vsel %vm2427_vm9, %v2414_v37, %v1902_v20 }
 0x25c   :  { %v3423_v14 = vadd.f32 %v3422_v32, %v3421_v2  ;;  %v1972_v59 = vpop.permute.xlu1 %1971  ;;  %v3227_v25 = vadd.f32 %v3226_v35, %v3225_v48  ;;  %v2477_v41 = vsel %vm2427_vm9, %v2412_v19, %v1900_v63 }
 0x25d   :  { %v2544_v16 = vsel %vm2492_vm10, %v2479_v27, %v1972_v59 }
 0x25e   :  { %v1970_v31 = vpop.permute.xlu0 %1969  ;;  %v3425_v0 = vadd.f32 %v3424_v44, %v3423_v14 }
 0x25f   :  { %v2542_v48 = vsel %vm2492_vm10, %v2477_v41, %v1970_v31 }
 0x260   :  { %v2042_v54 = vpop.permute.xlu1 %2041 }
 0x261   :  { %v2609_v22 = vsel %vm2557_vm11, %v2544_v16, %v2042_v54  ;;  %v3857_v16 = vld [vmem:[#allocation2 + $0x108] sm:$0x1] }
 0x262   :  { %v2040_v28 = vpop.permute.xlu0 %2039 }
 0x263   :  { %v2607_v40 = vsel %vm2557_vm11, %v2542_v48, %v2040_v28 }
 0x264   :  { %v2112_v34 = vpop.permute.xlu1 %2111 }
 0x265   :  { %v2674_v49 = vsel %vm2622_vm12, %v2609_v22, %v2112_v34 }
 0x266   :  { %v2110_v36 = vpop.permute.xlu0 %2109 }
 0x267   :  { %v2672_v20 = vsel %vm2622_vm12, %v2607_v40, %v2110_v36  ;;  %v3858_v40 = vsel %vm11573_vm3, 0, %v3857_v16 }
 0x268   :  { %v2182_v9 = vpop.permute.xlu1 %2181  ;;  %3859 = vst [vmem:[#allocation2 + $0x108] sm:$0x1] %v3858_v40 }
 0x269   :  { %v2739_v63 = vsel %vm2687_vm13, %v2674_v49, %v2182_v9 }
 0x26a   :  { %v2180_v18 = vpop.permute.xlu0 %2179 }
 0x26b   :  { %v12468_v2 = vpop.f32.mrb[16].mxu0  ;;  %v2737_v14 = vsel %vm2687_vm13, %v2672_v20, %v2180_v18  ;;  %v3967_v20 = vld [vmem:[#allocation2 + $0x110] sm:$0x1] }
 0x26c   :  { %v12472_v10 = vpop.f32.mrb[17].mxu0  ;;  %v2252_v62 = vpop.permute.xlu1 %2251  ;;  %v3349_v59 = vmul.f32 %v12468_v2, %v12468_v2  ;;  %v3232_v7 = vsel %vm2265_vm7, %v12468_v2, 0.0 }
 0x26d   :  { %v3228_v26 = vsel %vm2265_vm7, %v12472_v10, 0.0  ;;  %v3347_v32 = vmul.f32 %v12472_v10, %v12472_v10  ;;  %v12480_v35 = vpop.f32.mrb[18].mxu0  ;;  %v2804_v50 = vsel %vm18521_vm14, %v2739_v63, %v2252_v62  ;;  %v3854_v62 = vld [vmem:[#allocation2 + $0xfc] sm:$0x1] }
 0x26e   :  { %v3229_v44 = vadd.f32 %v3228_v26, %v3227_v25  ;;  %v12486_v31 = vpop.f32.mrb[19].mxu0  ;;  %v2250_v23 = vpop.permute.xlu0 %2249  ;;  %v3350_v15 = vmul.f32 %v12480_v35, %v12480_v35  ;;  %v3430_v41 = vsel %vm2265_vm7, %v3349_v59, 0.0 }
 0x26f   :  { %v3426_v54 = vsel %vm2265_vm7, %v3347_v32, 0.0  ;;  %v3230_v28 = vsel %vm2265_vm7, %v12486_v31, 0.0  ;;  %v3348_v34 = vmul.f32 %v12486_v31, %v12486_v31  ;;  %v2802_v36 = vsel %vm18521_vm14, %v2737_v14, %v2250_v23 }
 0x270   :  { %v3427_v4 = vadd.f32 %v3426_v54, %v3425_v0  ;;  %v3231_v39 = vadd.f32 %v3230_v28, %v3229_v44  ;;  %9478 = vmatprep.mubr.msk.bf16.mxu0 %vm18500_vm15, %v2802_v36  ;;  %v1836_v25 = vpop.permute.xlu1 %1835  ;;  %v3234_v0 = vsel %vm2265_vm7, %v12480_v35, 0.0  ;;  %v3432_v49 = vsel %vm2265_vm7, %v3350_v15, 0.0  ;;  %v3964_v44 = vld [vmem:[#allocation2 + $0x104] sm:$0x1]  ;;  %v18865_v36 = vld [vmem:[#allocation96_spill] sm:$0xff] }
 0x271   :  { %v3428_v37 = vsel %vm2265_vm7, %v3348_v34, 0.0  ;;  %9479 = vmatmul.mubr.msk.bf16.gmra.mrb[48].mxu0 %vm18500_vm15, %v2804_v50  ;;  %v3855_v32 = vsel %vm11573_vm3, 0, %v3854_v62  ;;  %v3968_v14 = vsel %vm11590_vm6, 0, %v3967_v20  ;;  %v3965_v23 = vsel %vm11590_vm6, 0, %v3964_v44 }
 0x272   :  { %v3233_v9 = vadd.f32 %v3232_v7, %v3231_v39  ;;  %v3429_v19 = vadd.f32 %v3428_v37, %v3427_v4  ;;  %v1834_v27 = vpop.permute.xlu0 %1833  ;;  %3856 = vst [vmem:[#allocation2 + $0xfc] sm:$0x1] %v3855_v32  ;;  %3969 = vst [vmem:[#allocation2 + $0x110] sm:$0x1] %v3968_v14  ;;  %v2349_v4 = vsel %vm2265_vm7, %v11912_v12, %v18865_v36  ;;  %v18866_v39 = vld [vmem:[#allocation97_spill] sm:$0xff] }
 0x273   :  { %3966 = vst [vmem:[#allocation2 + $0x104] sm:$0x1] %v3965_v23  ;;  %v2346_v7 = vsel %vm2265_vm7, %v11879_v33, %v18866_v39  ;;  %v2418_v37 = vsel %vm2362_vm8, %v2349_v4, %v1836_v25 }
 0x274   :  { %v3431_v18 = vadd.f32 %v3430_v41, %v3429_v19  ;;  %v1906_v48 = vpop.permute.xlu1 %1905  ;;  %v3235_v22 = vadd.f32 %v3234_v0, %v3233_v9  ;;  %v2416_v9 = vsel %vm2362_vm8, %v2346_v7, %v1834_v27 }
 0x275   :  { %v2483_v41 = vsel %vm2427_vm9, %v2418_v37, %v1906_v48 }
 0x276   :  { %v1904_v63 = vpop.permute.xlu0 %1903  ;;  %v3433_v26 = vadd.f32 %v3432_v49, %v3431_v18 }
 0x277   :  { %v2481_v0 = vsel %vm2427_vm9, %v2416_v9, %v1904_v63 }
 0x278   :  { %v1976_v59 = vpop.permute.xlu1 %1975 }
 0x279   :  { %v2548_v12 = vsel %vm2492_vm10, %v2483_v41, %v1976_v59 }
 0x27a   :  { %v1974_v50 = vpop.permute.xlu0 %1973 }
 0x27b   :  { %v2546_v40 = vsel %vm2492_vm10, %v2481_v0, %v1974_v50 }
 0x27c   :  { %v2046_v54 = vpop.permute.xlu1 %2045 }
 0x27d   :  { %v2613_v49 = vsel %vm2557_vm11, %v2548_v12, %v2046_v54 }
 0x27e   :  { %v2044_v28 = vpop.permute.xlu0 %2043 }
 0x27f   :  { %v2611_v48 = vsel %vm2557_vm11, %v2546_v40, %v2044_v28 }
 0x280   :  { %v2116_v34 = vpop.permute.xlu1 %2115 }
 0x281   :  { %v2678_v50 = vsel %vm2622_vm12, %v2613_v49, %v2116_v34 }
 0x282   :  { %v2114_v15 = vpop.permute.xlu0 %2113 }
 0x283   :  { %v12521_v19 = vpop.f32.mrb[20].mxu0  ;;  %v2676_v23 = vsel %vm2622_vm12, %v2611_v48, %v2114_v15 }
 0x284   :  { %v12525_v16 = vpop.f32.mrb[21].mxu0  ;;  %v2186_v18 = vpop.permute.xlu1 %2185  ;;  %v3353_v32 = vmul.f32 %v12521_v19, %v12521_v19  ;;  %v3240_v36 = vsel %vm2265_vm7, %v12521_v19, 0.0 }
 0x285   :  { %v3236_v33 = vsel %vm2265_vm7, %v12525_v16, 0.0  ;;  %v3351_v25 = vmul.f32 %v12525_v16, %v12525_v16  ;;  %v12533_v27 = vpop.f32.mrb[22].mxu0  ;;  %v2743_v39 = vsel %vm2687_vm13, %v2678_v50, %v2186_v18 }
 0x286   :  { %v3237_v62 = vadd.f32 %v3236_v33, %v3235_v22  ;;  %v12537_v20 = vpop.f32.mrb[23].mxu0  ;;  %v2184_v63 = vpop.permute.xlu0 %2183  ;;  %v3354_v4 = vmul.f32 %v12533_v27, %v12533_v27  ;;  %v3242_v0 = vsel %vm2265_vm7, %v12533_v27, 0.0 }
 0x287   :  { %v3434_v14 = vsel %vm2265_vm7, %v3351_v25, 0.0  ;;  %v3238_v59 = vsel %vm2265_vm7, %v12537_v20, 0.0  ;;  %v3352_v44 = vmul.f32 %v12537_v20, %v12537_v20  ;;  %v2741_v41 = vsel %vm2687_vm13, %v2676_v23, %v2184_v63 }
 0x288   :  { %v3435_v54 = vadd.f32 %v3434_v14, %v3433_v26  ;;  %v3239_v22 = vadd.f32 %v3238_v59, %v3237_v62  ;;  %v2256_v28 = vpop.permute.xlu1 %2255  ;;  %v3438_v26 = vsel %vm2265_vm7, %v3353_v32, 0.0  ;;  %v3440_v25 = vsel %vm2265_vm7, %v3354_v4, 0.0  ;;  %v3863_v62 = vld [vmem:[#allocation2 + $0x120] sm:$0x1]  ;;  %v3860_v14 = vld [vmem:[#allocation2 + $0x114] sm:$0x1] }
 0x289   :  { %v3436_v7 = vsel %vm2265_vm7, %v3352_v44, 0.0  ;;  %v2808_v34 = vsel %vm18521_vm14, %v2743_v39, %v2256_v28  ;;  %v3864_v32 = vsel %vm11573_vm3, 0, %v3863_v62  ;;  %v3973_v59 = vld [vmem:[#allocation2 + $0x128] sm:$0x1]  ;;  %v3861_v50 = vsel %vm11573_vm3, 0, %v3860_v14 }
 0x28a   :  { %v3241_v37 = vadd.f32 %v3240_v36, %v3239_v22  ;;  %v3437_v9 = vadd.f32 %v3436_v7, %v3435_v54  ;;  %v2254_v15 = vpop.permute.xlu0 %2253  ;;  %3865 = vst [vmem:[#allocation2 + $0x120] sm:$0x1] %v3864_v32  ;;  %v3974_v23 = vsel %vm11590_vm6, 0, %v3973_v59  ;;  %3862 = vst [vmem:[#allocation2 + $0x114] sm:$0x1] %v3861_v50 }
 0x28b   :  { %v2806_v12 = vsel %vm18521_vm14, %v2741_v41, %v2254_v15  ;;  %3975 = vst [vmem:[#allocation2 + $0x128] sm:$0x1] %v3974_v23  ;;  %v3970_v22 = vld [vmem:[#allocation2 + $0x11c] sm:$0x1]  ;;  %v18867_v41 = vld [vmem:[#allocation98_spill] sm:$0xff]  ;;  %v18868_v15 = vld [vmem:[#allocation99_spill] sm:$0xff] }
 0x28c   :  { %v3439_v40 = vadd.f32 %v3438_v26, %v3437_v9  ;;  %9482 = vmatprep.mubr.msk.bf16.mxu0 %vm18500_vm15, %v2806_v12  ;;  %v1840_v18 = vpop.permute.xlu1 %1839  ;;  %v3243_v33 = vadd.f32 %v3242_v0, %v3241_v37  ;;  %v3971_v36 = vsel %vm11590_vm6, 0, %v3970_v22  ;;  %v2352_v26 = vsel %vm2265_vm7, %v11972_v6, %v18868_v15 }
 0x28d   :  { %9483 = vmatmul.mubr.msk.bf16.gmra.mrb[52].mxu0 %vm18500_vm15, %v2808_v34  ;;  %3972 = vst [vmem:[#allocation2 + $0x11c] sm:$0x1] %v3971_v36  ;;  %v2355_v34 = vsel %vm2265_vm7, %v12019_v30, %v18867_v41 }
 0x28e   :  { %v1838_v49 = vpop.permute.xlu0 %1837  ;;  %v3441_v48 = vadd.f32 %v3440_v25, %v3439_v40  ;;  %v2422_v62 = vsel %vm2362_vm8, %v2355_v34, %v1840_v18 }
 0x28f   :  { %v2420_v32 = vsel %vm2362_vm8, %v2352_v26, %v1838_v49 }
 0x290   :  { %v1910_v63 = vpop.permute.xlu1 %1909 }
 0x291   :  { %v2487_v36 = vsel %vm2427_vm9, %v2422_v62, %v1910_v63 }
 0x292   :  { %v1908_v44 = vpop.permute.xlu0 %1907 }
 0x293   :  { %v2485_v18 = vsel %vm2427_vm9, %v2420_v32, %v1908_v44 }
 0x294   :  { %v1980_v54 = vpop.permute.xlu1 %1979 }
 0x295   :  { %v2552_v41 = vsel %vm2492_vm10, %v2487_v36, %v1980_v54 }
 0x296   :  { %v1978_v28 = vpop.permute.xlu0 %1977 }
 0x298   :  { %v2050_v4 = vpop.permute.xlu1 %2049 }
 0x299   :  { %v2617_v21 = vsel %vm2557_vm11, %v2552_v41, %v2050_v4  ;;  %v3866_v41 = vld [vmem:[#allocation2 + $0x12c] sm:$0x1] }
 0x29a   :  { %v2048_v39 = vpop.permute.xlu0 %2047 }
 0x29c   :  { %v12571_v7 = vpop.f32.mrb[24].mxu0  ;;  %v2120_v37 = vpop.permute.xlu1 %2119 }
 0x29d   :  { %v12573_v9 = vpop.f32.mrb[25].mxu0  ;;  %v3357_v30 = vmul.f32 %v12571_v7, %v12571_v7  ;;  %v3248_v34 = vsel %vm2265_vm7, %v12571_v7, 0.0  ;;  %v2682_v54 = vsel %vm2622_vm12, %v2617_v21, %v2120_v37 }
 0x29e   :  { %v3244_v0 = vsel %vm2265_vm7, %v12573_v9, 0.0  ;;  %v3355_v12 = vmul.f32 %v12573_v9, %v12573_v9  ;;  %v12585_v40 = vpop.f32.mrb[26].mxu0  ;;  %v2118_v25 = vpop.permute.xlu0 %2117 }
 0x29f   :  { %v3245_v14 = vadd.f32 %v3244_v0, %v3243_v33  ;;  %v12589_v59 = vpop.f32.mrb[27].mxu0  ;;  %v3358_v15 = vmul.f32 %v12585_v40, %v12585_v40  ;;  %v3446_v44 = vsel %vm2265_vm7, %v3357_v30, 0.0  ;;  %v3250_v32 = vsel %vm2265_vm7, %v12585_v40, 0.0 }
 0x2a0   :  { %v3442_v6 = vsel %vm2265_vm7, %v3355_v12, 0.0  ;;  %v3246_v50 = vsel %vm2265_vm7, %v12589_v59, 0.0  ;;  %v3356_v23 = vmul.f32 %v12589_v59, %v12589_v59  ;;  %v2190_v22 = vpop.permute.xlu1 %2189  ;;  %v2550_v12 = vsel %vm2492_vm10, %v2485_v18, %v1978_v28 }
 0x2a1   :  { %v3443_v49 = vadd.f32 %v3442_v6, %v3441_v48  ;;  %v3247_v33 = vadd.f32 %v3246_v50, %v3245_v14  ;;  %v2615_v48 = vsel %vm2557_vm11, %v2550_v12, %v2048_v39  ;;  %v3448_v4 = vsel %vm2265_vm7, %v3358_v15, 0.0 }
 0x2a2   :  { %v3444_v26 = vsel %vm2265_vm7, %v3356_v23, 0.0  ;;  %v2188_v0 = vpop.permute.xlu0 %2187  ;;  %v2680_v6 = vsel %vm2622_vm12, %v2615_v48, %v2118_v25  ;;  %v2747_v23 = vsel %vm2687_vm13, %v2682_v54, %v2190_v22 }
 0x2a3   :  { %v3249_v63 = vadd.f32 %v3248_v34, %v3247_v33  ;;  %v3445_v62 = vadd.f32 %v3444_v26, %v3443_v49  ;;  %v2745_v36 = vsel %vm2687_vm13, %v2680_v6, %v2188_v0  ;;  %v3869_v49 = vld [vmem:[#allocation2 + $0x138] sm:$0x1]  ;;  %v3979_v34 = vld [vmem:[#allocation2 + $0x140] sm:$0x1]  ;;  %v3867_v26 = vsel %vm11573_vm3, 0, %v3866_v41 }
 0x2a4   :  { %v2260_v14 = vpop.permute.xlu1 %2259  ;;  %v3870_v22 = vsel %vm11573_vm3, 0, %v3869_v49  ;;  %v3980_v0 = vsel %vm11590_vm6, 0, %v3979_v34  ;;  %3868 = vst [vmem:[#allocation2 + $0x12c] sm:$0x1] %v3867_v26 }
 0x2a5   :  { %v3447_v50 = vadd.f32 %v3446_v44, %v3445_v62  ;;  %v3251_v28 = vadd.f32 %v3250_v32, %v3249_v63  ;;  %v2812_v39 = vsel %vm18521_vm14, %v2747_v23, %v2260_v14  ;;  %3871 = vst [vmem:[#allocation2 + $0x138] sm:$0x1] %v3870_v22  ;;  %3981 = vst [vmem:[#allocation2 + $0x140] sm:$0x1] %v3980_v0  ;;  %v3976_v63 = vld [vmem:[#allocation2 + $0x134] sm:$0x1] }
 0x2a6   :  { %v2258_v18 = vpop.permute.xlu0 %2257  ;;  %v3977_v48 = vsel %vm11590_vm6, 0, %v3976_v63 }
 0x2a7   :  { %v2810_v30 = vsel %vm18521_vm14, %v2745_v36, %v2258_v18  ;;  %v3449_v21 = vadd.f32 %v3448_v4, %v3447_v50  ;;  %3978 = vst [vmem:[#allocation2 + $0x134] sm:$0x1] %v3977_v48  ;;  %v18869_v50 = vld [vmem:[#allocation100_spill] sm:$0xff]  ;;  %v18870_v4 = vld [vmem:[#allocation101_spill] sm:$0xff] }
 0x2a8   :  { %9486 = vmatprep.mubr.msk.bf16.mxu0 %vm18500_vm15, %v2810_v30  ;;  %v1844_v37 = vpop.permute.xlu1 %1843  ;;  %v2361_v23 = vsel %vm2265_vm7, %v12161_v56, %v18869_v50  ;;  %v2358_v36 = vsel %vm2265_vm7, %v12108_v24, %v18870_v4 }
 0x2a9   :  { %9487 = vmatmul.mubr.msk.bf16.gmra.mrb[56].mxu0 %vm18500_vm15, %v2812_v39  ;;  %v2426_v22 = vsel %vm2362_vm8, %v2361_v23, %v1844_v37 }
 0x2aa   :  { %v1842_v25 = vpop.permute.xlu0 %1841 }
 0x2ab   :  { %v2424_v41 = vsel %vm2362_vm8, %v2358_v36, %v1842_v25 }
 0x2ac   :  { %v1914_v33 = vpop.permute.xlu1 %1913 }
 0x2ad   :  { %v2491_v50 = vsel %vm2427_vm9, %v2426_v22, %v1914_v33 }
 0x2ae   :  { %v1912_v15 = vpop.permute.xlu0 %1911 }
 0x2af   :  { %v2489_v37 = vsel %vm2427_vm9, %v2424_v41, %v1912_v15 }
 0x2b0   :  { %v1984_v12 = vpop.permute.xlu1 %1983 }
 0x2b1   :  { %v2556_v23 = vsel %vm2492_vm10, %v2491_v50, %v1984_v12 }
 0x2b2   :  { %v1982_v62 = vpop.permute.xlu0 %1981 }
 0x2b3   :  { %v2554_v17 = vsel %vm2492_vm10, %v2489_v37, %v1982_v62  ;;  %v3985_v37 = vld [vmem:[#allocation2 + $0x158] sm:$0x1] }
 0x2b4   :  { %v2054_v44 = vpop.permute.xlu1 %2053 }
 0x2b5   :  { %v2621_v43 = vsel %vm2557_vm11, %v2556_v23, %v2054_v44  ;;  %v3982_v23 = vld [vmem:[#allocation2 + $0x14c] sm:$0x1] }
 0x2b6   :  { %v2052_v54 = vpop.permute.xlu0 %2051 }
 0x2b8   :  { %v12629_v32 = vpop.f32.mrb[28].mxu0  ;;  %v2124_v14 = vpop.permute.xlu1 %2123 }
 0x2b9   :  { %v12631_v6 = vpop.f32.mrb[29].mxu0  ;;  %v3361_v56 = vmul.f32 %v12629_v32, %v12629_v32  ;;  %v3256_v4 = vsel %vm2265_vm7, %v12629_v32, 0.0  ;;  %v2686_v12 = vsel %vm2622_vm12, %v2621_v43, %v2124_v14  ;;  %v3875_v14 = vld [vmem:[#allocation2 + $0x150] sm:$0x1] }
 0x2ba   :  { %v3252_v39 = vsel %vm2265_vm7, %v12631_v6, 0.0  ;;  %v3359_v18 = vmul.f32 %v12631_v6, %v12631_v6  ;;  %v12643_v30 = vpop.f32.mrb[30].mxu0  ;;  %v2122_v49 = vpop.permute.xlu0 %2121 }
 0x2bb   :  { %v3253_v34 = vadd.f32 %v3252_v39, %v3251_v28  ;;  %v12647_v26 = vpop.f32.mrb[31].mxu0  ;;  %v3362_v36 = vmul.f32 %v12643_v30, %v12643_v30  ;;  %v3454_v15 = vsel %vm2265_vm7, %v3361_v56, 0.0  ;;  %v3258_v41 = vsel %vm2265_vm7, %v12643_v30, 0.0 }
 0x2bc   :  { %v3450_v24 = vsel %vm2265_vm7, %v3359_v18, 0.0  ;;  %v3254_v0 = vsel %vm2265_vm7, %v12647_v26, 0.0  ;;  %v3360_v63 = vmul.f32 %v12647_v26, %v12647_v26  ;;  %v2194_v48 = vpop.permute.xlu1 %2193 }
 0x2bd   :  { %v3451_v25 = vadd.f32 %v3450_v24, %v3449_v21  ;;  %v3255_v28 = vadd.f32 %v3254_v0, %v3253_v34  ;;  %v2619_v21 = vsel %vm2557_vm11, %v2554_v17, %v2052_v54  ;;  %v3456_v44 = vsel %vm2265_vm7, %v3362_v36, 0.0 }
 0x2be   :  { %v3452_v39 = vsel %vm2265_vm7, %v3360_v63, 0.0  ;;  %v2192_v18 = vpop.permute.xlu0 %2191  ;;  %v2684_v24 = vsel %vm2622_vm12, %v2619_v21, %v2122_v49  ;;  %v2751_v63 = vsel %vm2687_vm13, %v2686_v12, %v2194_v48  ;;  %v3876_v49 = vsel %vm11573_vm3, 0, %v3875_v14  ;;  %v3872_v48 = vld [vmem:[#allocation2 + $0x144] sm:$0x1] }
 0x2bf   :  { %v3257_v33 = vadd.f32 %v3256_v4, %v3255_v28  ;;  %v3453_v22 = vadd.f32 %v3452_v39, %v3451_v25  ;;  %v2749_v50 = vsel %vm2687_vm13, %v2684_v24, %v2192_v18  ;;  %3877 = vst [vmem:[#allocation2 + $0x150] sm:$0x1] %v3876_v49  ;;  %v3873_v25 = vsel %vm11573_vm3, 0, %v3872_v48 }
 0x2c0   :  { %v2264_v34 = vpop.permute.xlu1 %2263  ;;  %v3986_v28 = vsel %vm11590_vm6, 0, %v3985_v37  ;;  %3874 = vst [vmem:[#allocation2 + $0x144] sm:$0x1] %v3873_v25  ;;  %v3983_v4 = vsel %vm11590_vm6, 0, %v3982_v23  ;;  %v3881_v25 = vld [vmem:[#allocation2 + $0x168] sm:$0x1] }
 0x2c1   :  { %v3455_v0 = vadd.f32 %v3454_v15, %v3453_v22  ;;  %v3259_v62 = vadd.f32 %v3258_v41, %v3257_v33  ;;  %v2816_v17 = vsel %vm18521_vm14, %v2751_v63, %v2264_v34  ;;  %3987 = vst [vmem:[#allocation2 + $0x158] sm:$0x1] %v3986_v28  ;;  %3984 = vst [vmem:[#allocation2 + $0x14c] sm:$0x1] %v3983_v4  ;;  %v3882_v28 = vsel %vm11573_vm3, 0, %v3881_v25 }
 0x2c2   :  { %v2262_v54 = vpop.permute.xlu0 %2261  ;;  %3883 = vst [vmem:[#allocation2 + $0x168] sm:$0x1] %v3882_v28  ;;  %v3878_v23 = vld [vmem:[#allocation2 + $0x15c] sm:$0x1]  ;;  %v3991_v4 = vld [vmem:[#allocation2 + $0x170] sm:$0x1] }
 0x2c3   :  { %v2814_v56 = vsel %vm18521_vm14, %v2749_v50, %v2262_v54  ;;  %v3457_v43 = vadd.f32 %v3456_v44, %v3455_v0 }
 0x2c4   :  { %9490 = vmatprep.mubr.msk.bf16.mxu0 %vm18500_vm15, %v2814_v56 }
 0x2c5   :  { %9491 = vmatmul.mubr.msk.bf16.gmra.mrb[60].mxu0 %vm18500_vm15, %v2816_v17  ;;  %vm3773_vm15 = vcmask 27648  }
 0x2d4   :  { %v12687_v36 = vpop.f32.mrb[32].mxu0 }
 0x2d5   :  { %v12689_v39 = vpop.f32.mrb[33].mxu0  ;;  %v3365_v12 = vmul.f32 %v12687_v36, %v12687_v36  ;;  %v3264_v44 = vsel %vm2265_vm7, %v12687_v36, 0.0 }
 0x2d6   :  { %v3260_v18 = vsel %vm2265_vm7, %v12689_v39, 0.0  ;;  %v3363_v33 = vmul.f32 %v12689_v39, %v12689_v39  ;;  %v12695_v22 = vpop.f32.mrb[34].mxu0 }
 0x2d7   :  { %v3261_v21 = vadd.f32 %v3260_v18, %v3259_v62  ;;  %v12697_v15 = vpop.f32.mrb[35].mxu0  ;;  %v3366_v62 = vmul.f32 %v12695_v22, %v12695_v22  ;;  %v3462_v56 = vsel %vm2265_vm7, %v3365_v12, 0.0  ;;  %v3266_v14 = vsel %vm2265_vm7, %v12695_v22, 0.0 }
 0x2d8   :  { %v3458_v41 = vsel %vm2265_vm7, %v3363_v33, 0.0  ;;  %v3262_v34 = vsel %vm2265_vm7, %v12697_v15, 0.0  ;;  %v3364_v24 = vmul.f32 %v12697_v15, %v12697_v15  ;;  %v3879_v18 = vsel %vm11573_vm3, 0, %v3878_v23 }
 0x2d9   :  { %v3459_v0 = vadd.f32 %v3458_v41, %v3457_v43  ;;  %v3263_v63 = vadd.f32 %v3262_v34, %v3261_v21  ;;  %v3464_v43 = vsel %vm2265_vm7, %v3366_v62, 0.0  ;;  %v3992_v33 = vsel %vm11590_vm6, 0, %v3991_v4  ;;  %3880 = vst [vmem:[#allocation2 + $0x15c] sm:$0x1] %v3879_v18  ;;  %v3988_v21 = vld [vmem:[#allocation2 + $0x164] sm:$0x1] }
 0x2da   :  { %v3460_v50 = vsel %vm2265_vm7, %v3364_v24, 0.0  ;;  %3993 = vst [vmem:[#allocation2 + $0x170] sm:$0x1] %v3992_v33  ;;  %v3989_v12 = vsel %vm11590_vm6, 0, %v3988_v21 }
 0x2db   :  { %v3265_v17 = vadd.f32 %v3264_v44, %v3263_v63  ;;  %v3461_v54 = vadd.f32 %v3460_v50, %v3459_v0  ;;  %3990 = vst [vmem:[#allocation2 + $0x164] sm:$0x1] %v3989_v12 }
 0x2dd   :  { %v3463_v49 = vadd.f32 %v3462_v56, %v3461_v54  ;;  %v3267_v48 = vadd.f32 %v3266_v14, %v3265_v17 }
 0x2df   :  { %v3465_v37 = vadd.f32 %v3464_v43, %v3463_v49 }
 0x2f0   :  { %v12723_v41 = vpop.f32.mrb[36].mxu0 }
 0x2f1   :  { %18871 = vst [vmem:[#allocation43_spill] sm:$0xff] %v12723_v41  ;;  %v12725_v34 = vpop.f32.mrb[37].mxu0  ;;  %v3369_v50 = vmul.f32 %v12723_v41, %v12723_v41  ;;  %v3272_v43 = vsel %vm2265_vm7, %v12723_v41, 0.0 }
 0x2f2   :  { %18872 = vst [vmem:[#allocation52_spill] sm:$0xff] %v12725_v34  ;;  %v3268_v24 = vsel %vm2265_vm7, %v12725_v34, 0.0  ;;  %v3367_v0 = vmul.f32 %v12725_v34, %v12725_v34  ;;  %v12731_v63 = vpop.f32.mrb[38].mxu0 }
 0x2f3   :  { %18873 = vst [vmem:[#allocation49_spill] sm:$0xff] %v12731_v63  ;;  %v3269_v44 = vadd.f32 %v3268_v24, %v3267_v48  ;;  %v12733_v62 = vpop.f32.mrb[39].mxu0  ;;  %v3370_v48 = vmul.f32 %v12731_v63, %v12731_v63  ;;  %v3470_v4 = vsel %vm2265_vm7, %v3369_v50, 0.0  ;;  %v3274_v18 = vsel %vm2265_vm7, %v12731_v63, 0.0  ;;  %v3887_v24 = vld [vmem:[#allocation2 + $0x180] sm:$0x1] }
 0x2f4   :  { %18874 = vst [vmem:[#allocation58_spill] sm:$0xff] %v12733_v62  ;;  %v3466_v17 = vsel %vm2265_vm7, %v3367_v0, 0.0  ;;  %v3270_v54 = vsel %vm2265_vm7, %v12733_v62, 0.0  ;;  %v3368_v56 = vmul.f32 %v12733_v62, %v12733_v62  ;;  %v3888_v0 = vsel %vm11573_vm3, 0, %v3887_v24 }
 0x2f5   :  { %v3467_v14 = vadd.f32 %v3466_v17, %v3465_v37  ;;  %v3271_v49 = vadd.f32 %v3270_v54, %v3269_v44  ;;  %v3472_v37 = vsel %vm2265_vm7, %v3370_v48, 0.0  ;;  %3889 = vst [vmem:[#allocation2 + $0x180] sm:$0x1] %v3888_v0  ;;  %v3884_v44 = vld [vmem:[#allocation2 + $0x174] sm:$0x1] }
 0x2f6   :  { %v3468_v25 = vsel %vm2265_vm7, %v3368_v56, 0.0  ;;  %v3997_v17 = vld [vmem:[#allocation2 + $0x188] sm:$0x1]  ;;  %v3885_v54 = vsel %vm11573_vm3, 0, %v3884_v44  ;;  %v3994_v56 = vld [vmem:[#allocation2 + $0x17c] sm:$0x1] }
 0x2f7   :  { %v3273_v28 = vadd.f32 %v3272_v43, %v3271_v49  ;;  %v3469_v23 = vadd.f32 %v3468_v25, %v3467_v14  ;;  %v3998_v50 = vsel %vm11590_vm6, 0, %v3997_v17  ;;  %3886 = vst [vmem:[#allocation2 + $0x174] sm:$0x1] %v3885_v54  ;;  %v3995_v14 = vsel %vm11590_vm6, 0, %v3994_v56 }
 0x2f8   :  { %3999 = vst [vmem:[#allocation2 + $0x188] sm:$0x1] %v3998_v50  ;;  %3996 = vst [vmem:[#allocation2 + $0x17c] sm:$0x1] %v3995_v14 }
 0x2f9   :  { %v3471_v33 = vadd.f32 %v3470_v4, %v3469_v23  ;;  %v3275_v21 = vadd.f32 %v3274_v18, %v3273_v28 }
 0x2fb   :  { %v3473_v12 = vadd.f32 %v3472_v37, %v3471_v33 }
 0x30c   :  { %v12759_v49 = vpop.f32.mrb[40].mxu0 }
 0x30d   :  { %18875 = vst [vmem:[#allocation55_spill] sm:$0xff] %v12759_v49  ;;  %v12761_v43 = vpop.f32.mrb[41].mxu0  ;;  %v3373_v18 = vmul.f32 %v12759_v49, %v12759_v49  ;;  %v3280_v17 = vsel %vm2265_vm7, %v12759_v49, 0.0  ;;  %v3890_v49 = vld [vmem:[#allocation2 + $0x18c] sm:$0x1] }
 0x30e   :  { %18876 = vst [vmem:[#allocation102_spill] sm:$0xff] %v12761_v43  ;;  %v3276_v48 = vsel %vm2265_vm7, %v12761_v43, 0.0  ;;  %v3371_v25 = vmul.f32 %v12761_v43, %v12761_v43  ;;  %v12767_v28 = vpop.f32.mrb[42].mxu0 }
 0x30f   :  { %18877 = vst [vmem:[#allocation64_spill] sm:$0xff] %v12767_v28  ;;  %v3277_v23 = vadd.f32 %v3276_v48, %v3275_v21  ;;  %v12769_v4 = vpop.f32.mrb[43].mxu0  ;;  %v3374_v21 = vmul.f32 %v12767_v28, %v12767_v28  ;;  %v3478_v14 = vsel %vm2265_vm7, %v3373_v18, 0.0  ;;  %v3282_v48 = vsel %vm2265_vm7, %v12767_v28, 0.0 }
 0x310   :  { %18878 = vst [vmem:[#allocation61_spill] sm:$0xff] %v12769_v4  ;;  %v3474_v33 = vsel %vm2265_vm7, %v3371_v25, 0.0  ;;  %v3278_v37 = vsel %vm2265_vm7, %v12769_v4, 0.0  ;;  %v3372_v24 = vmul.f32 %v12769_v4, %v12769_v4  ;;  %v4003_v4 = vld [vmem:[#allocation2 + $0x1a0] sm:$0x1] }
 0x311   :  { %v3475_v0 = vadd.f32 %v3474_v33, %v3473_v12  ;;  %v3279_v44 = vadd.f32 %v3278_v37, %v3277_v23  ;;  %v3480_v12 = vsel %vm2265_vm7, %v3374_v21, 0.0  ;;  %v3893_v33 = vld [vmem:[#allocation2 + $0x198] sm:$0x1]  ;;  %v4004_v18 = vsel %vm11590_vm6, 0, %v4003_v4 }
 0x312   :  { %v3476_v54 = vsel %vm2265_vm7, %v3372_v24, 0.0  ;;  %v3894_v37 = vsel %vm11573_vm3, 0, %v3893_v33  ;;  %v3891_v24 = vsel %vm11573_vm3, 0, %v3890_v49  ;;  %4005 = vst [vmem:[#allocation2 + $0x1a0] sm:$0x1] %v4004_v18 }
 0x313   :  { %v3281_v50 = vadd.f32 %v3280_v17, %v3279_v44  ;;  %v3477_v56 = vadd.f32 %v3476_v54, %v3475_v0  ;;  %3895 = vst [vmem:[#allocation2 + $0x198] sm:$0x1] %v3894_v37  ;;  %3892 = vst [vmem:[#allocation2 + $0x18c] sm:$0x1] %v3891_v24 }
 0x315   :  { %v3479_v25 = vadd.f32 %v3478_v14, %v3477_v56  ;;  %v3283_v46 = vadd.f32 %v3282_v48, %v3281_v50 }
 0x317   :  { %v3481_v23 = vadd.f32 %v3480_v12, %v3479_v25 }
 0x328   :  { %v12793_v0 = vpop.f32.mrb[44].mxu0 }
 0x329   :  { %18879 = vst [vmem:[#allocation84_spill] sm:$0xff] %v12793_v0  ;;  %v12795_v44 = vpop.f32.mrb[45].mxu0  ;;  %v3377_v49 = vmul.f32 %v12793_v0, %v12793_v0  ;;  %v3288_v33 = vsel %vm2265_vm7, %v12793_v0, 0.0 }
 0x32a   :  { %18880 = vst [vmem:[#allocation85_spill] sm:$0xff] %v12795_v44  ;;  %v3284_v17 = vsel %vm2265_vm7, %v12795_v44, 0.0  ;;  %v3375_v21 = vmul.f32 %v12795_v44, %v12795_v44  ;;  %v12801_v54 = vpop.f32.mrb[46].mxu0 }
 0x32b   :  { %18881 = vst [vmem:[#allocation70_spill] sm:$0xff] %v12801_v54  ;;  %v3285_v50 = vadd.f32 %v3284_v17, %v3283_v46  ;;  %v12803_v56 = vpop.f32.mrb[47].mxu0  ;;  %v3378_v46 = vmul.f32 %v12801_v54, %v12801_v54  ;;  %v3486_v17 = vsel %vm2265_vm7, %v3377_v49, 0.0 }
 0x32c   :  { %18882 = vst [vmem:[#allocation67_spill] sm:$0xff] %v12803_v56  ;;  %v3482_v4 = vsel %vm2265_vm7, %v3375_v21, 0.0  ;;  %v3286_v14 = vsel %vm2265_vm7, %v12803_v56, 0.0  ;;  %v3376_v48 = vmul.f32 %v12803_v56, %v12803_v56  ;;  %v3290_v21 = vsel %vm2265_vm7, %v12801_v54, 0.0 }
 0x32d   :  { %v3483_v25 = vadd.f32 %v3482_v4, %v3481_v23  ;;  %v3287_v12 = vadd.f32 %v3286_v14, %v3285_v50  ;;  %v3488_v23 = vsel %vm2265_vm7, %v3378_v46, 0.0 }
 0x32e   :  { %v3484_v37 = vsel %vm2265_vm7, %v3376_v48, 0.0 }
 0x32f   :  { %v3289_v24 = vadd.f32 %v3288_v33, %v3287_v12  ;;  %v3485_v18 = vadd.f32 %v3484_v37, %v3483_v25 }
 0x331   :  { %v3487_v44 = vadd.f32 %v3486_v17, %v3485_v18  ;;  %v3291_v28 = vadd.f32 %v3290_v21, %v3289_v24 }
 0x333   :  { %v3489_v50 = vadd.f32 %v3488_v23, %v3487_v44 }
 0x344   :  { %v12821_v4 = vpop.f32.mrb[48].mxu0 }
 0x345   :  { %18883 = vst [vmem:[#allocation86_spill] sm:$0xff] %v12821_v4  ;;  %v12823_v14 = vpop.f32.mrb[49].mxu0  ;;  %v3381_v33 = vmul.f32 %v12821_v4, %v12821_v4  ;;  %v3296_v17 = vsel %vm2265_vm7, %v12821_v4, 0.0  ;;  %v9838_v4 = vmov 0  }
 0x346   :  { %18884 = vst [vmem:[#allocation87_spill] sm:$0xff] %v12823_v14  ;;  %v3292_v0 = vsel %vm2265_vm7, %v12823_v14, 0.0  ;;  %v3379_v48 = vmul.f32 %v12823_v14, %v12823_v14  ;;  %v12829_v25 = vpop.f32.mrb[50].mxu0  ;;  %3774 = vst.msk [vmem:[#allocation2] sm:$0xf] %vm3773_vm15, %v9838_v4 }
 0x347   :  { %18885 = vst [vmem:[#allocation76_spill] sm:$0xff] %v12829_v25  ;;  %v3293_v49 = vadd.f32 %v3292_v0, %v3291_v28  ;;  %v12831_v12 = vpop.f32.mrb[51].mxu0  ;;  %v3382_v28 = vmul.f32 %v12829_v25, %v12829_v25  ;;  %v3298_v14 = vsel %vm2265_vm7, %v12829_v25, 0.0  ;;  %3775 = vst.msk [vmem:[#allocation2 + $0x4] sm:$0xf] %vm3773_vm15, %v9838_v4 }
 0x348   :  { %18886 = vst [vmem:[#allocation73_spill] sm:$0xff] %v12831_v12  ;;  %v3490_v44 = vsel %vm2265_vm7, %v3379_v48, 0.0  ;;  %v3294_v46 = vsel %vm2265_vm7, %v12831_v12, 0.0  ;;  %v3380_v37 = vmul.f32 %v12831_v12, %v12831_v12  ;;  %v3494_v48 = vsel %vm2265_vm7, %v3381_v33, 0.0  ;;  %3777 = vst.msk [vmem:[#allocation2 + $0x8] sm:$0x1] %vm3776_vm0, %v9838_v4 }
 0x349   :  { %v3491_v24 = vadd.f32 %v3490_v44, %v3489_v50  ;;  %v3295_v18 = vadd.f32 %v3294_v46, %v3293_v49  ;;  %v3496_v50 = vsel %vm2265_vm7, %v3382_v28, 0.0  ;;  %v4000_v49 = vld [vmem:[#allocation2 + $0x194] sm:$0x1]  ;;  %3778 = vst.msk [vmem:[#allocation2 + $0xd8] sm:$0xf] %vm3773_vm15, %v9838_v4 }
 0x34a   :  { %v3492_v0 = vsel %vm2265_vm7, %v3380_v37, 0.0  ;;  %v4001_v46 = vsel %vm11590_vm6, 0, %v4000_v49  ;;  %3779 = vst.msk [vmem:[#allocation2 + $0xdc] sm:$0xf] %vm3773_vm15, %v9838_v4  ;;  %3782 = vst.msk [vmem:[#allocation2 + $0xcc] sm:$0xf] %vm3773_vm15, %v9838_v4 }
 0x34b   :  { %v3297_v21 = vadd.f32 %v3296_v17, %v3295_v18  ;;  %v3493_v23 = vadd.f32 %v3492_v0, %v3491_v24  ;;  %4002 = vst [vmem:[#allocation2 + $0x194] sm:$0x1] %v4001_v46  ;;  %3780 = vst.msk [vmem:[#allocation2 + $0xe0] sm:$0x1] %vm3776_vm0, %v9838_v4 }
 0x34c   :  { %3783 = vst.msk [vmem:[#allocation2 + $0xd0] sm:$0xf] %vm3773_vm15, %v9838_v4  ;;  %3785 = vst.msk [vmem:[#allocation2 + $0x1a4] sm:$0xf] %vm3773_vm15, %v9838_v4 }
 0x34d   :  { %v3495_v54 = vadd.f32 %v3494_v48, %v3493_v23  ;;  %v3299_v56 = vadd.f32 %v3298_v14, %v3297_v21  ;;  %3784 = vst.msk [vmem:[#allocation2 + $0xd4] sm:$0x1] %vm3776_vm0, %v9838_v4  ;;  %3787 = vst.msk [vmem:[#allocation2 + $0x1ac] sm:$0x1] %vm3776_vm0, %v9838_v4  ;;  %v3791_v0 = vld [vmem:[#allocation2] sm:$0x1] }
 0x34e   :  { %3786 = vst.msk [vmem:[#allocation2 + $0x1a8] sm:$0xf] %vm3773_vm15, %v9838_v4  ;;  %v3792_v48 = vsel %vm11573_vm3, 0, %v3791_v0  ;;  %vm4169_vm0 = vsmask.f32 4368 }
 0x34f   :  { %v3497_v44 = vadd.f32 %v3496_v50, %v3495_v54  ;;  %v3901_v50 = vld [vmem:[#allocation2 + $0x8] sm:$0x1]  ;;  %3793 = vst [vmem:[#allocation2] sm:$0x1] %v3792_v48  ;;  %vm13128_vm14 = vmor %vm3789_vm1, %vm4169_vm0 }
 0x350   :  { %vm13542_vm1 = vmand %vm3773_vm15, %vm3899_vm4  ;;  %vm19523_vm4 = vcmask 261120  }
 0x351   :  { %vm19524_vm0 = vmmov %vm19523_vm4 }
 0x356   :  { %v5038_v62 = vld [vmem:[#allocation2] sm:$0xf] }
 0x357   :  { %v5147_v34 = vshrl.u32 %v5038_v62, 16 }
 0x360   :  { %v12863_v54 = vpop.f32.mrb[52].mxu0 }
 0x361   :  { %18887 = vst [vmem:[#allocation88_spill] sm:$0xff] %v12863_v54  ;;  %v12865_v14 = vpop.f32.mrb[53].mxu0  ;;  %v3385_v18 = vmul.f32 %v12863_v54, %v12863_v54  ;;  %v3304_v49 = vsel %vm2265_vm7, %v12863_v54, 0.0 }
 0x362   :  { %18888 = vst [vmem:[#allocation89_spill] sm:$0xff] %v12865_v14  ;;  %v3300_v33 = vsel %vm2265_vm7, %v12865_v14, 0.0  ;;  %v3383_v37 = vmul.f32 %v12865_v14, %v12865_v14  ;;  %v12871_v24 = vpop.f32.mrb[54].mxu0 }
 0x363   :  { %v3301_v17 = vadd.f32 %v3300_v33, %v3299_v56  ;;  %v12875_v28 = vpop.f32.mrb[55].mxu0  ;;  %v3902_v33 = vsel %vm11590_vm6, 0, %v3901_v50  ;;  %v3386_v14 = vmul.f32 %v12871_v24, %v12871_v24  ;;  %v3502_v63 = vsel %vm2265_vm7, %v3385_v18, 0.0 }
 0x364   :  { %18889 = vst [vmem:[#allocation83_spill] sm:$0xff] %v12875_v28  ;;  %v3498_v4 = vsel %vm2265_vm7, %v3383_v37, 0.0  ;;  %v3302_v21 = vsel %vm2265_vm7, %v12875_v28, 0.0  ;;  %v3384_v23 = vmul.f32 %v12875_v28, %v12875_v28  ;;  %v5039_v37 = vld [vmem:[#allocation2 + $0x4] sm:$0xf] }
 0x365   :  { %v3499_v46 = vadd.f32 %v3498_v4, %v3497_v44  ;;  %v3303_v56 = vadd.f32 %v3302_v21, %v3301_v17  ;;  %3903 = vst [vmem:[#allocation2 + $0x8] sm:$0x1] %v3902_v33  ;;  %v5156_v28 = vshll.u32 %v5039_v37, 16  ;;  %v5160_v12 = vshrl.u32 %v5039_v37, 16 }
 0x366   :  { %v3500_v25 = vsel %vm2265_vm7, %v3384_v23, 0.0  ;;  %v3306_v44 = vsel %vm2265_vm7, %v12871_v24, 0.0  ;;  %v3504_v50 = vsel %vm2265_vm7, %v3386_v14, 0.0  ;;  %v3845_v23 = vld [vmem:[#allocation2 + $0xd8] sm:$0x1]  ;;  %v5150_v37 = vshll.u32 %v5038_v62, 16 }
 0x367   :  { %v3305_v0 = vadd.f32 %v3304_v49, %v3303_v56  ;;  %v3501_v43 = vadd.f32 %v3500_v25, %v3499_v46  ;;  %v5158_v17 = vrot.slane %v5156_v28, 5  ;;  %v5162_v4 = vrot.slane %v5160_v12, 4  ;;  %v3955_v46 = vld [vmem:[#allocation2 + $0xe0] sm:$0x1]  ;;  %v5093_v28 = vld [vmem:[#allocation2 + $0xdc] sm:$0xf] }
 0x368   :  { %v3846_v25 = vsel %vm11573_vm3, 0, %v3845_v23  ;;  %v5149_v12 = vrot.slane %v5147_v34, 4  ;;  %v5540_v14 = vshll.u32 %v5093_v28, 16  ;;  %v18923_v60 = vld [vmem:[#allocation88_spill] sm:$0xff] }
 0x369   :  { %v3503_v21 = vadd.f32 %v3502_v63, %v3501_v43  ;;  %v3307_v48 = vadd.f32 %v3306_v44, %v3305_v0  ;;  %v5163_v54 = vor.u32 %v5162_v4, %v5158_v17  ;;  %3847 = vst [vmem:[#allocation2 + $0xd8] sm:$0x1] %v3846_v25  ;;  %v5152_v63 = vrot.slane %v5150_v37, 5 }
 0x36a   :  { %v3956_v43 = vsel %vm11590_vm6, 0, %v3955_v46  ;;  %v5544_v0 = vshrl.u32 %v5093_v28, 16  ;;  %v5542_v4 = vrot.slane %v5540_v14, 5 }
 0x36b   :  { %v3505_v41 = vadd.f32 %v3504_v50, %v3503_v21  ;;  %v5164_v18 = vrot.slane %v5163_v54, 4  ;;  %3957 = vst [vmem:[#allocation2 + $0xe0] sm:$0x1] %v3956_v43  ;;  %v5153_v44 = vor.u32 %v5152_v63, %v5149_v12 }
 0x36c   :  { %v5040_v33 = vld [vmem:[#allocation2 + $0x8] sm:$0x1]  ;;  %v5546_v62 = vrot.slane %v5544_v0, 4 }
 0x36d   :  { %v5166_v49 = vshll.u32 %v5040_v33, 16  ;;  %v5154_v21 = vrot.slane %v5153_v44, 4 }
 0x36e   :  { %v5547_v34 = vor.u32 %v5546_v62, %v5542_v4 }
 0x36f   :  { %v5168_v56 = vrot.slane %v5166_v49, 5  ;;  %v5159_v50 = vsel %vm9905_vm2, %v5154_v21, %v5158_v17 }
 0x370   :  { %v5092_v23 = vld [vmem:[#allocation2 + $0xd8] sm:$0xf]  ;;  %v5548_v63 = vrot.slane %v5547_v34, 4 }
 0x371   :  { %v5169_v54 = vsel %vm9905_vm2, %v5164_v18, %v5168_v56  ;;  %v5531_v37 = vshrl.u32 %v5092_v23, 16  ;;  %v5534_v25 = vshll.u32 %v5092_v23, 16 }
 0x372   :  { %v9179_v33 = vcombine.low %v5159_v50, %v5169_v54  ;;  %v5094_v46 = vld [vmem:[#allocation2 + $0xe0] sm:$0x1] }
 0x373   :  { %v5533_v49 = vrot.slane %v5531_v37, 4  ;;  %v5536_v28 = vrot.slane %v5534_v25, 5  ;;  %v5550_v12 = vshll.u32 %v5094_v46, 16 }
 0x374   :  { %6562 = vrot.lane.b32.xlu0 %v9179_v33, %s9830_s23 }
 0x375   :  { %v5537_v43 = vor.u32 %v5536_v28, %v5533_v49  ;;  %v5552_v14 = vrot.slane %v5550_v12, 5 }
 0x377   :  { %v5538_v18 = vrot.slane %v5537_v43, 4  ;;  %v5553_v17 = vsel %vm9905_vm2, %v5548_v63, %v5552_v14 }
 0x379   :  { %v5543_v54 = vsel %vm9905_vm2, %v5538_v18, %v5542_v4 }
 0x37a   :  { %v9195_v46 = vcombine.low %v5543_v54, %v5553_v17 }
 0x37c   :  { %v12904_v0 = vpop.f32.mrb[56].mxu0  ;;  %6594 = vrot.lane.b32.xlu0 %v9195_v46, %s9830_s23 }
 0x37d   :  { %18890 = vst [vmem:[#allocation79_spill] sm:$0xff] %v12904_v0  ;;  %v12906_v56 = vpop.f32.mrb[57].mxu0  ;;  %v3389_v50 = vmul.f32 %v12904_v0, %v12904_v0  ;;  %v3312_v4 = vsel %vm2265_vm7, %v12904_v0, 0.0 }
 0x37e   :  { %18891 = vst [vmem:[#allocation90_spill] sm:$0xff] %v12906_v56  ;;  %v3308_v44 = vsel %vm2265_vm7, %v12906_v56, 0.0  ;;  %v3387_v62 = vmul.f32 %v12906_v56, %v12906_v56  ;;  %v12914_v21 = vpop.f32.mrb[58].mxu0 }
 0x37f   :  { %18892 = vst [vmem:[#allocation91_spill] sm:$0xff] %v12914_v21  ;;  %v3309_v23 = vadd.f32 %v3308_v44, %v3307_v48  ;;  %v12920_v34 = vpop.f32.mrb[59].mxu0  ;;  %v3390_v12 = vmul.f32 %v12914_v21, %v12914_v21  ;;  %v3510_v14 = vsel %vm2265_vm7, %v3389_v50, 0.0  ;;  %v3314_v18 = vsel %vm2265_vm7, %v12914_v21, 0.0 }
 0x380   :  { %18893 = vst [vmem:[#allocation92_spill] sm:$0xff] %v12920_v34  ;;  %v3506_v33 = vsel %vm2265_vm7, %v3387_v62, 0.0  ;;  %v3310_v37 = vsel %vm2265_vm7, %v12920_v34, 0.0  ;;  %v3388_v25 = vmul.f32 %v12920_v34, %v12920_v34 }
 0x381   :  { %v3507_v49 = vadd.f32 %v3506_v33, %v3505_v41  ;;  %v3311_v28 = vadd.f32 %v3310_v37, %v3309_v23  ;;  %v3512_v44 = vsel %vm2265_vm7, %v3390_v12, 0.0 }
 0x382   :  { %v3508_v48 = vsel %vm2265_vm7, %v3388_v25, 0.0 }
 0x383   :  { %v3313_v63 = vadd.f32 %v3312_v4, %v3311_v28  ;;  %v3509_v43 = vadd.f32 %v3508_v48, %v3507_v49 }
 0x385   :  { %v3511_v17 = vadd.f32 %v3510_v14, %v3509_v43  ;;  %v3315_v41 = vadd.f32 %v3314_v18, %v3313_v63 }
 0x387   :  { %v3513_v62 = vadd.f32 %v3512_v44, %v3511_v17 }
 0x398   :  { %v12937_v54 = vpop.f32.mrb[60].mxu0 }
 0x399   :  { %18894 = vst [vmem:[#allocation93_spill] sm:$0xff] %v12937_v54  ;;  %v3180_v23 = vpop.f32.mrb[61].mxu0  ;;  %v3393_v50 = vmul.f32 %v12937_v54, %v12937_v54  ;;  %v3320_v43 = vsel %vm2265_vm7, %v12937_v54, 0.0 }
 0x39a   :  { %v3316_v33 = vsel %vm2265_vm7, %v3180_v23, 0.0  ;;  %v3391_v37 = vmul.f32 %v3180_v23, %v3180_v23  ;;  %v12940_v25 = vpop.f32.mrb[62].mxu0 }
 0x39b   :  { %18895 = vst [vmem:[#allocation94_spill] sm:$0xff] %v12940_v25  ;;  %v3317_v46 = vadd.f32 %v3316_v33, %v3315_v41  ;;  %v3183_v49 = vpop.f32.mrb[63].mxu0  ;;  %v3394_v14 = vmul.f32 %v12940_v25, %v12940_v25  ;;  %v3518_v44 = vsel %vm2265_vm7, %v3393_v50, 0.0  ;;  %v3322_v33 = vsel %vm2265_vm7, %v12940_v25, 0.0 }
 0x39c   :  { %v3514_v28 = vsel %vm2265_vm7, %v3391_v37, 0.0  ;;  %v3318_v4 = vsel %vm2265_vm7, %v3183_v49, 0.0  ;;  %v3392_v48 = vmul.f32 %v3183_v49, %v3183_v49 }
 0x39d   :  { %v3515_v12 = vadd.f32 %v3514_v28, %v3513_v62  ;;  %v3319_v63 = vadd.f32 %v3318_v4, %v3317_v46  ;;  %v3520_v62 = vsel %vm2265_vm7, %v3394_v14, 0.0  ;;  %v3538_v14 = vlaneseq }
 0x39e   :  { %v3516_v18 = vsel %vm2265_vm7, %v3392_v48, 0.0 }
 0x39f   :  { %v3321_v17 = vadd.f32 %v3320_v43, %v3319_v63  ;;  %v3517_v41 = vadd.f32 %v3516_v18, %v3515_v12 }
 0x3a1   :  { %v3323_v37 = vadd.f32 %v3322_v33, %v3321_v17  ;;  %v3519_v42 = vadd.f32 %v3518_v44, %v3517_v41 }
 0x3a3   :  { %v3324_v46 = vrot.slane %v3323_v37, 4  ;;  %v3521_v28 = vadd.f32 %v3520_v62, %v3519_v42  ;;  %v3539_v42 = vshrl.u32 %v3538_v14, 7 }
 0x3a5   :  { %v3325_v4 = vadd.f32 %v3324_v46, %v3323_v37  ;;  %v3522_v38 = vrot.slane %v3521_v28, 4 }
 0x3a7   :  { %v3326_v54 = vrot.slane %v3325_v4, 2  ;;  %v3523_v21 = vadd.f32 %v3522_v38, %v3521_v28  ;;  %v3195_v38 = vld [vmem:[%s18316_s2] sm:$0x1] }
 0x3a9   :  { %v3327_v0 = vadd.f32 %v3326_v54, %v3325_v4  ;;  %v3524_v34 = vrot.slane %v3523_v21, 2  ;;  %v12958_v54 = vsub.s32 0, %v3539_v42 }
 0x3ab   :  { %v3328_v48 = vrot.slane %v3327_v0, 1  ;;  %v3525_v63 = vadd.f32 %v3524_v34, %v3523_v21  ;;  %18896 = vst [vmem:[#allocation95_spill] sm:$0xff] %v12958_v54 }
 0x3ad   :  { %v3329_v12 = vadd.f32 %v3328_v48, %v3327_v0  ;;  %v3526_v43 = vrot.slane %v3525_v63, 1  ;;  %v3196_v0 = vld [vmem:[%s18317_s3] sm:$0x1] }
 0x3af   :  { %v3330_v50 = vmul.f32 0.001953125, %v3329_v12  ;;  %v3527_v18 = vadd.f32 %v3526_v43, %v3525_v63 }
 0x3b1   :  { %v3528_v56 = vmul.f32 0.001953125, %v3527_v18  ;;  %v3529_v25 = vmul.f32 %v3330_v50, %v3330_v50 }
 0x3b3   :  { %v3530_v17 = vsub.f32 %v3528_v56, %v3529_v25 }
 0x3b5   :  { %v3531_v41 = vmax.f32 %v3530_v17, 0.0 }
 0x3b7   :  { %v3532_v44 = vadd.f32 1e-05, %v3531_v41 }
 0x3b9   :  { %9645 = vrsqrt.f32 %v3532_v44 }
 0x3c3   :  { %v9646_v33 = vpop.eup %9645 }
 0x3c4   :  { %v3534_v21 = vmul.f32 %v9646_v33, %v3195_v38 }
 0x3c6   :  { %v3535_v34 = vmul.f32 %v3534_v21, %v3330_v50  ;;  %v12964_v56 = vrot.slane %v3534_v21, %v12958_v54 }
 0x3c8   :  { %v3536_v25 = vsub.f32 %v3196_v0, %v3535_v34  ;;  %v3603_v37 = vmul.f32 %v12964_v56, %v3180_v23  ;;  %v3604_v62 = vmul.f32 %v12964_v56, %v3183_v49  ;;  %v12970_v46 = vmul.f32 %v12964_v56, %v12021_v51  ;;  %v18903_v0 = vld [vmem:[#allocation43_spill] sm:$0xff] }
 0x3c9   :  { %v12974_v28 = vmul.f32 %v12964_v56, %v12031_v45  ;;  %v12978_v4 = vmul.f32 %v12017_v8, %v12964_v56  ;;  %v12982_v48 = vmul.f32 %v12027_v58, %v12964_v56  ;;  %v12986_v23 = vmul.f32 %v12964_v56, %v12163_v5 }
 0x3ca   :  { %v12989_v51 = vrot.slane %v3536_v25, %v12958_v54  ;;  %v12993_v45 = vmul.f32 %v12964_v56, %v12178_v53  ;;  %v12997_v8 = vmul.f32 %v12148_v61, %v12964_v56  ;;  %v13001_v58 = vmul.f32 %v12174_v29, %v12964_v56 }
 0x3cb   :  { %v13005_v5 = vmul.f32 %v12964_v56, %v12321_v52  ;;  %v13009_v49 = vmul.f32 %v12964_v56, %v12338_v57  ;;  %v13013_v53 = vmul.f32 %v12319_v11, %v12964_v56  ;;  %v13017_v61 = vmul.f32 %v12333_v13, %v12964_v56 }
 0x3cc   :  { %v3673_v63 = vadd.f32 %v12989_v51, %v3603_v37  ;;  %v3674_v29 = vadd.f32 %v12989_v51, %v3604_v62  ;;  %v13023_v52 = vmul.f32 %v12964_v56, %v12419_v3  ;;  %v13027_v57 = vmul.f32 %v12964_v56, %v12429_v1  ;;  %v18905_v37 = vld [vmem:[#allocation102_spill] sm:$0xff] }
 0x3cd   :  { %v13031_v11 = vmul.f32 %v12417_v47, %v12964_v56  ;;  %v13035_v13 = vmul.f32 %v12426_v55, %v12964_v56  ;;  %v13039_v12 = vmul.f32 %v12964_v56, %v12472_v10  ;;  %v13043_v3 = vmul.f32 %v12964_v56, %v12486_v31 }
 0x3ce   :  { %v3737_v43 = vmax.f32 %v3673_v63, 0.0  ;;  %v3738_v50 = vmax.f32 %v3674_v29, 0.0  ;;  %v13047_v1 = vmul.f32 %v12468_v2, %v12964_v56  ;;  %v13051_v47 = vmul.f32 %v12480_v35, %v12964_v56 }
 0x3cf   :  { %v13055_v55 = vmul.f32 %v12964_v56, %v12525_v16  ;;  %v13059_v10 = vmul.f32 %v12964_v56, %v12537_v20  ;;  %v13063_v31 = vmul.f32 %v12521_v19, %v12964_v56  ;;  %v13067_v2 = vmul.f32 %v12533_v27, %v12964_v56 }
 0x3d0   :  { %v13069_v18 = vpack.c.bf16 %v3737_v43, %v3737_v43  ;;  %v9351_v35 = vpack.c.bf16 %v3738_v50, %v3738_v50  ;;  %v13073_v17 = vmul.f32 %v12964_v56, %v12573_v9  ;;  %v13077_v16 = vmul.f32 %v12964_v56, %v12589_v59  ;;  %v18906_v50 = vld [vmem:[#allocation61_spill] sm:$0xff] }
 0x3d1   :  { %v13081_v20 = vmul.f32 %v12571_v7, %v12964_v56  ;;  %v13085_v19 = vmul.f32 %v12585_v40, %v12964_v56  ;;  %v13089_v27 = vmul.f32 %v12964_v56, %v12631_v6  ;;  %v13093_v9 = vmul.f32 %v12964_v56, %v12647_v26 }
 0x3d2   :  { %v4682_v41 = vshrl.u32 %v13069_v18, 16  ;;  %v4690_v59 = vshrl.u32 %v9351_v35, 16  ;;  %v4693_v44 = vshll.u32 %v9351_v35, 16  ;;  %v13098_v7 = vmul.f32 %v12629_v32, %v12964_v56 }
 0x3d3   :  { %v13102_v40 = vmul.f32 %v12643_v30, %v12964_v56  ;;  %v13106_v6 = vmul.f32 %v12964_v56, %v12689_v39  ;;  %v13110_v26 = vmul.f32 %v12964_v56, %v12697_v15  ;;  %v13114_v14 = vmul.f32 %v12687_v36, %v12964_v56  ;;  %v18898_v30 = vld [vmem:[#allocation52_spill] sm:$0xff]  ;;  %v5028_v15 = vld [vmem:[#allocation2 + $0x194] sm:$0x1]  ;;  %v18902_v36 = vld [vmem:[#allocation58_spill] sm:$0xff] }
 0x3d4   :  { %v13116_v42 = vrot.slane %v4682_v41, 7  ;;  %v4692_v32 = vrot.slane %v4690_v59, 7  ;;  %v13120_v38 = vmul.f32 %v12695_v22, %v12964_v56  ;;  %v13124_v33 = vmul.f32 %v12964_v56, %v18898_v30  ;;  %v18904_v22 = vld [vmem:[#allocation49_spill] sm:$0xff]  ;;  %v18907_v41 = vld [vmem:[#allocation55_spill] sm:$0xff]  ;;  %v18908_v30 = vld [vmem:[#allocation64_spill] sm:$0xff] }
 0x3d5   :  { %v18899_v39 = vmov 0  ;;  %v13134_v21 = vmul.f32 %v12964_v56, %v18902_v36  ;;  %v13138_v34 = vmul.f32 %v18903_v0, %v12964_v56  ;;  %v13142_v25 = vmul.f32 %v18904_v22, %v12964_v56  ;;  %v18909_v0 = vld [vmem:[#allocation85_spill] sm:$0xff] }
 0x3d6   :  { %18897 = vst [vmem:[#allocation96_spill] sm:$0xff] %v13116_v42  ;;  %v18900_v39 = vsel %vm13128_vm14, 4294967295, %v18899_v39  ;;  %v13146_v62 = vmul.f32 %v12964_v56, %v18905_v37  ;;  %v4688_v63 = vrot.slane %v13116_v42, 4  ;;  %v4695_v29 = vor.u32 %v4693_v44, %v4692_v32  ;;  %v18910_v37 = vld [vmem:[#allocation67_spill] sm:$0xff] }
 0x3d7   :  { %18901 = vst [vmem:[#allocation97_spill] sm:$0xff] %v18900_v39  ;;  %v4697_v43 = vrot.slane %v4692_v32, 4  ;;  %v13151_v35 = vmul.f32 %v12964_v56, %v18906_v50  ;;  %v13155_v59 = vmul.f32 %v18907_v41, %v12964_v56  ;;  %v13159_v36 = vmul.f32 %v18908_v30, %v12964_v56  ;;  %v18911_v41 = vld [vmem:[#allocation84_spill] sm:$0xff]  ;;  %v18912_v30 = vld [vmem:[#allocation70_spill] sm:$0xff]  ;;  %v18914_v39 = vld [vmem:[#allocation73_spill] sm:$0xff] }
 0x3d8   :  { %v13163_v22 = vmul.f32 %v12964_v56, %v18909_v0  ;;  %v13167_v44 = vmul.f32 %v12964_v56, %v18910_v37  ;;  %v4696_v32 = vsel %vm13128_vm14, %v4688_v63, %v4695_v29  ;;  %v13175_v54 = vmul.f32 %v18911_v41, %v12964_v56  ;;  %v18913_v0 = vld [vmem:[#allocation87_spill] sm:$0xff] }
 0x3d9   :  { %v5029_v50 = vsel %vm11573_vm3, %v4697_v43, %v5028_v15  ;;  %v13179_v42 = vmul.f32 %v18912_v30, %v12964_v56  ;;  %5027 = vst.msk [vmem:[#allocation2 + $0x190] sm:$0xf] %vm3773_vm15, %v4696_v32  ;;  %v13184_v37 = vmul.f32 %v12964_v56, %v18913_v0  ;;  %v13188_v63 = vmul.f32 %v12964_v56, %v18914_v39  ;;  %v18915_v15 = vld [vmem:[#allocation86_spill] sm:$0xff]  ;;  %v18917_v43 = vld [vmem:[#allocation76_spill] sm:$0xff]  ;;  %v18919_v30 = vld [vmem:[#allocation89_spill] sm:$0xff] }
 0x3da   :  { %5030 = vst [vmem:[#allocation2 + $0x194] sm:$0x1] %v5029_v50  ;;  %v13192_v29 = vmul.f32 %v18915_v15, %v12964_v56  ;;  %v13196_v41 = vmul.f32 %v18917_v43, %v12964_v56  ;;  %v13200_v32 = vmul.f32 %v12964_v56, %v18919_v30  ;;  %v18921_v50 = vld [vmem:[#allocation83_spill] sm:$0xff]  ;;  %v13208_v39 = vmul.f32 %v18923_v60, %v12964_v56 }
 0x3db   :  { %v13204_v0 = vmul.f32 %v12964_v56, %v18921_v50  ;;  %v13212_v15 = vmul.f32 %v12871_v24, %v12964_v56 }
 0x3dc   :  { %18916 = vst [vmem:[#allocation98_spill] sm:$0xff] %v13192_v29  ;;  %18918 = vst [vmem:[#allocation99_spill] sm:$0xff] %v13196_v41  ;;  %v18926_v29 = vld [vmem:[#allocation90_spill] sm:$0xff]  ;;  %v18928_v41 = vld [vmem:[#allocation92_spill] sm:$0xff] }
 0x3dd   :  { %18920 = vst [vmem:[#allocation100_spill] sm:$0xff] %v13200_v32  ;;  %18922 = vst [vmem:[#allocation101_spill] sm:$0xff] %v13204_v0  ;;  %v13216_v43 = vmul.f32 %v12964_v56, %v18926_v29  ;;  %v13220_v30 = vmul.f32 %v12964_v56, %v18928_v41  ;;  %v18929_v32 = vld [vmem:[#allocation79_spill] sm:$0xff]  ;;  %v13241_v41 = vadd.f32 %v12989_v51, %v12970_v46 }
 0x3de   :  { %18924 = vst [vmem:[#allocation52_spill] sm:$0xff] %v13208_v39  ;;  %18925 = vst [vmem:[#allocation58_spill] sm:$0xff] %v13212_v15  ;;  %v13224_v50 = vmul.f32 %v18929_v32, %v12964_v56  ;;  %v18930_v0 = vld [vmem:[#allocation91_spill] sm:$0xff]  ;;  %v18931_v39 = vld [vmem:[#allocation93_spill] sm:$0xff]  ;;  %v13245_v32 = vadd.f32 %v12989_v51, %v12974_v28  ;;  %v13261_v46 = vadd.f32 %v12989_v51, %v12993_v45 }
 0x3df   :  { %18927 = vst [vmem:[#allocation43_spill] sm:$0xff] %v13216_v43  ;;  %v13228_v60 = vmul.f32 %v18930_v0, %v12964_v56  ;;  %v13232_v24 = vmul.f32 %v18931_v39, %v12964_v56  ;;  %v18932_v15 = vld [vmem:[#allocation94_spill] sm:$0xff]  ;;  %v13249_v0 = vadd.f32 %v12989_v51, %v12978_v4  ;;  %v13253_v39 = vadd.f32 %v12989_v51, %v12982_v48 }
 0x3e0   :  { %v13236_v29 = vmul.f32 %v18932_v15, %v12964_v56  ;;  %v13257_v56 = vadd.f32 %v12989_v51, %v12986_v23  ;;  %v13265_v28 = vadd.f32 %v12989_v51, %v12997_v8  ;;  %v13269_v4 = vadd.f32 %v12989_v51, %v13001_v58 }
 0x3e1   :  { %v13273_v48 = vadd.f32 %v12989_v51, %v13005_v5  ;;  %v13277_v23 = vadd.f32 %v12989_v51, %v13009_v49  ;;  %v13281_v45 = vadd.f32 %v12989_v51, %v13013_v53  ;;  %v13285_v8 = vadd.f32 %v12989_v51, %v13017_v61 }
 0x3e2   :  { %v13289_v58 = vadd.f32 %v12989_v51, %v13023_v52  ;;  %v13293_v5 = vadd.f32 %v12989_v51, %v13027_v57  ;;  %v13297_v49 = vadd.f32 %v12989_v51, %v13031_v11  ;;  %v13301_v53 = vadd.f32 %v12989_v51, %v13035_v13 }
 0x3e3   :  { %v13305_v61 = vadd.f32 %v12989_v51, %v13039_v12  ;;  %v13309_v52 = vadd.f32 %v12989_v51, %v13043_v3  ;;  %v13313_v57 = vadd.f32 %v12989_v51, %v13047_v1  ;;  %v13317_v11 = vadd.f32 %v12989_v51, %v13051_v47  ;;  %v18944_v15 = vld [vmem:[#allocation98_spill] sm:$0xff]  ;;  %v18946_v43 = vld [vmem:[#allocation99_spill] sm:$0xff] }
 0x3e4   :  { %v13321_v13 = vadd.f32 %v12989_v51, %v13055_v55  ;;  %v13325_v12 = vadd.f32 %v12989_v51, %v13059_v10  ;;  %v13329_v3 = vadd.f32 %v12989_v51, %v13063_v31  ;;  %v13333_v1 = vadd.f32 %v12989_v51, %v13067_v2 }
 0x3e5   :  { %v13337_v47 = vadd.f32 %v12989_v51, %v13073_v17  ;;  %v13341_v55 = vadd.f32 %v12989_v51, %v13077_v16  ;;  %v13345_v10 = vadd.f32 %v12989_v51, %v13081_v20  ;;  %v13349_v31 = vadd.f32 %v12989_v51, %v13085_v19 }
 0x3e6   :  { %v13353_v2 = vadd.f32 %v12989_v51, %v13089_v27  ;;  %v13357_v17 = vadd.f32 %v12989_v51, %v13093_v9  ;;  %v13361_v16 = vadd.f32 %v12989_v51, %v13098_v7  ;;  %v13365_v20 = vadd.f32 %v12989_v51, %v13102_v40 }
 0x3e7   :  { %v13369_v19 = vadd.f32 %v12989_v51, %v13106_v6  ;;  %v13373_v27 = vadd.f32 %v12989_v51, %v13110_v26  ;;  %v13377_v9 = vadd.f32 %v12989_v51, %v13114_v14  ;;  %v13381_v7 = vadd.f32 %v12989_v51, %v13120_v38 }
 0x3e8   :  { %v13385_v40 = vadd.f32 %v12989_v51, %v13124_v33  ;;  %v13389_v6 = vadd.f32 %v12989_v51, %v13134_v21  ;;  %v13393_v26 = vadd.f32 %v12989_v51, %v13138_v34  ;;  %v13397_v14 = vadd.f32 %v12989_v51, %v13142_v25 }
 0x3e9   :  { %v13401_v38 = vadd.f32 %v12989_v51, %v13146_v62  ;;  %v13405_v33 = vadd.f32 %v12989_v51, %v13151_v35  ;;  %v13409_v21 = vadd.f32 %v12989_v51, %v13155_v59  ;;  %v13413_v34 = vadd.f32 %v12989_v51, %v13159_v36 }
 0x3ea   :  { %18933 = vst [vmem:[#allocation49_spill] sm:$0xff] %v13385_v40  ;;  %v13417_v25 = vadd.f32 %v12989_v51, %v13163_v22  ;;  %v13421_v62 = vadd.f32 %v12989_v51, %v13167_v44  ;;  %v13425_v35 = vadd.f32 %v12989_v51, %v13175_v54  ;;  %v13429_v59 = vadd.f32 %v12989_v51, %v13179_v42 }
 0x3eb   :  { %18934 = vst [vmem:[#allocation102_spill] sm:$0xff] %v13401_v38  ;;  %18935 = vst [vmem:[#allocation61_spill] sm:$0xff] %v13405_v33  ;;  %v13433_v36 = vadd.f32 %v12989_v51, %v13184_v37  ;;  %v13437_v22 = vadd.f32 %v12989_v51, %v13188_v63  ;;  %v13441_v44 = vadd.f32 %v12989_v51, %v18944_v15 }
 0x3ec   :  { %18936 = vst [vmem:[#allocation55_spill] sm:$0xff] %v13409_v21  ;;  %18937 = vst [vmem:[#allocation64_spill] sm:$0xff] %v13413_v34  ;;  %v13445_v54 = vadd.f32 %v12989_v51, %v18946_v43  ;;  %v18974_v21 = vmax.f32 %v13245_v32, 0.0 }
 0x3ed   :  { %18938 = vst [vmem:[#allocation85_spill] sm:$0xff] %v13417_v25  ;;  %18939 = vst [vmem:[#allocation67_spill] sm:$0xff] %v13421_v62  ;;  %v18973_v62 = vmax.f32 %v13241_v41, 0.0 }
 0x3ee   :  { %18940 = vst [vmem:[#allocation84_spill] sm:$0xff] %v13425_v35  ;;  %18941 = vst [vmem:[#allocation70_spill] sm:$0xff] %v13429_v59  ;;  %v18947_v35 = vld [vmem:[#allocation100_spill] sm:$0xff]  ;;  %v18948_v59 = vld [vmem:[#allocation101_spill] sm:$0xff]  ;;  %v13574_v34 = vpack.c.bf16 %v18974_v21, %v18974_v21 }
 0x3ef   :  { %18942 = vst [vmem:[#allocation87_spill] sm:$0xff] %v13433_v36  ;;  %18943 = vst [vmem:[#allocation73_spill] sm:$0xff] %v13437_v22  ;;  %v13449_v42 = vadd.f32 %v12989_v51, %v18947_v35  ;;  %v13453_v37 = vadd.f32 %v12989_v51, %v18948_v59  ;;  %v18949_v36 = vld [vmem:[#allocation52_spill] sm:$0xff]  ;;  %v18950_v22 = vld [vmem:[#allocation58_spill] sm:$0xff]  ;;  %v13469_v35 = vadd.f32 %v12989_v51, %v13220_v30  ;;  %v18959_v30 = vshll.u32 %v13069_v18, 16 }
 0x3f0   :  { %18945 = vst [vmem:[#allocation86_spill] sm:$0xff] %v13441_v44  ;;  %v13457_v63 = vadd.f32 %v12989_v51, %v18949_v36  ;;  %v13461_v15 = vadd.f32 %v12989_v51, %v18950_v22  ;;  %v18951_v44 = vld [vmem:[#allocation43_spill] sm:$0xff]  ;;  %v13473_v59 = vadd.f32 %v12989_v51, %v13224_v50  ;;  %v13477_v36 = vadd.f32 %v12989_v51, %v13228_v60 }
 0x3f1   :  { %v13465_v43 = vadd.f32 %v12989_v51, %v18951_v44  ;;  %18953 = vst [vmem:[#allocation89_spill] sm:$0xff] %v13469_v35  ;;  %v13481_v22 = vadd.f32 %v12989_v51, %v13232_v24  ;;  %v13485_v44 = vadd.f32 %v12989_v51, %v13236_v29  ;;  %v18972_v51 = vmax.f32 %v13249_v0, 0.0 }
 0x3f2   :  { %18954 = vst [vmem:[#allocation83_spill] sm:$0xff] %v13473_v59  ;;  %18955 = vst [vmem:[#allocation88_spill] sm:$0xff] %v13477_v36  ;;  %v3680_v36 = vmax.f32 %v13253_v39, 0.0  ;;  %v13569_v33 = vpack.c.bf16 %v18973_v62, %v18973_v62  ;;  %v18975_v18 = vmax.f32 %v13257_v56, 0.0  ;;  %v18978_v62 = vmax.f32 %v13265_v28, 0.0 }
 0x3f3   :  { %18952 = vst [vmem:[#allocation76_spill] sm:$0xff] %v13465_v43  ;;  %18956 = vst [vmem:[#allocation90_spill] sm:$0xff] %v13481_v22  ;;  %v18958_v43 = vld [vmem:[#allocation96_spill] sm:$0xff]  ;;  %v9292_v29 = vpack.c.bf16 %v18972_v51, %v18972_v51  ;;  %v18976_v51 = vmax.f32 %v13261_v46, 0.0  ;;  %v18979_v56 = vmax.f32 %v13269_v4, 0.0 }
 0x3f4   :  { %18957 = vst [vmem:[#allocation92_spill] sm:$0xff] %v13485_v44  ;;  %v13490_v35 = vor.u32 %v18959_v30, %v18958_v43  ;;  %v5024_v30 = vld [vmem:[#allocation2 + $0x18c] sm:$0xf]  ;;  %v9293_v24 = vpack.c.bf16 %v3680_v36, %v3680_v36  ;;  %v13589_v32 = vpack.c.bf16 %v18978_v62, %v18978_v62  ;;  %v18981_v44 = vmax.f32 %v13277_v23, 0.0  ;;  %v4821_v4 = vld [vmem:[#allocation2 + $0x18] sm:$0xf] }
 0x3f5   :  { %v4189_v0 = vshrl.u32 %v9292_v29, 16  ;;  %v13584_v41 = vpack.c.bf16 %v18976_v51, %v18976_v51  ;;  %v4192_v21 = vshll.u32 %v9292_v29, 16  ;;  %v18982_v29 = vmax.f32 %v13281_v45, 0.0  ;;  %v4825_v62 = vld [vmem:[#allocation2 + $0x20] sm:$0x1] }
 0x3f6   :  { %v5025_v22 = vsel %vm13542_vm1, %v13490_v35, %v5024_v30  ;;  %v13579_v35 = vpack.c.bf16 %v18975_v18, %v18975_v18  ;;  %v4197_v36 = vshrl.u32 %v9293_v24, 16  ;;  %v4200_v30 = vshll.u32 %v9293_v24, 16 }
 0x3f7   :  { %v18966_v39 = vld [vmem:[#allocation86_spill] sm:$0xff]  ;;  %5026 = vst [vmem:[#allocation2 + $0x18c] sm:$0xf] %v5025_v22  ;;  %18977 = vst [vmem:[#allocation79_spill] sm:$0xff] %v13584_v41  ;;  %v13594_v18 = vpack.c.bf16 %v18979_v56, %v18979_v56  ;;  %v18980_v22 = vmax.f32 %v13273_v48, 0.0  ;;  %v4191_v46 = vrot.slane %v4189_v0, 7  ;;  %v13604_v28 = vpack.c.bf16 %v18981_v44, %v18981_v44 }
 0x3f8   :  { %v18968_v25 = vld [vmem:[#allocation89_spill] sm:$0xff]  ;;  %v4199_v51 = vrot.slane %v4197_v36, 7  ;;  %v13609_v24 = vpack.c.bf16 %v18982_v29, %v18982_v29  ;;  %v18984_v56 = vmax.f32 %v13285_v8, 0.0  ;;  %v18986_v0 = vmax.f32 %v13289_v58, 0.0 }
 0x3f9   :  { %v18969_v38 = vld [vmem:[#allocation83_spill] sm:$0xff]  ;;  %v18970_v59 = vld [vmem:[#allocation88_spill] sm:$0xff]  ;;  %v13599_v40 = vpack.c.bf16 %v18980_v22, %v18980_v22  ;;  %v18987_v23 = vmax.f32 %v13293_v5, 0.0  ;;  %v18988_v45 = vmax.f32 %v13297_v49, 0.0  ;;  %v4194_v29 = vor.u32 %v4192_v21, %v4191_v46 }
 0x3fa   :  { %v18967_v60 = vld [vmem:[#allocation76_spill] sm:$0xff]  ;;  %18983 = vst [vmem:[#allocation91_spill] sm:$0xff] %v13609_v24  ;;  %v13614_v48 = vpack.c.bf16 %v18984_v56, %v18984_v56  ;;  %v13619_v36 = vpack.c.bf16 %v18986_v0, %v18986_v0  ;;  %v4195_v8 = vrot.slane %v4191_v46, 4  ;;  %v4202_v50 = vor.u32 %v4200_v30, %v4199_v51 }
 0x3fb   :  { %v13624_v44 = vpack.c.bf16 %v18987_v23, %v18987_v23  ;;  %v13629_v22 = vpack.c.bf16 %v18988_v45, %v18988_v45  ;;  %v4204_v56 = vrot.slane %v4199_v51, 4  ;;  %v18990_v0 = vmax.f32 %v13305_v61, 0.0 }
 0x3fc   :  { %18985 = vst [vmem:[#allocation93_spill] sm:$0xff] %v13614_v48  ;;  %v18989_v48 = vmax.f32 %v13301_v53, 0.0  ;;  %v18991_v23 = vmax.f32 %v13309_v52, 0.0  ;;  %v18992_v21 = vmax.f32 %v13313_v57, 0.0  ;;  %v4203_v53 = vsel %vm13128_vm14, %v4195_v8, %v4202_v50 }
 0x3fd   :  { %v13639_v5 = vpack.c.bf16 %v18990_v0, %v18990_v0  ;;  %v4822_v51 = vsel %vm13542_vm1, %v4194_v29, %v4821_v4  ;;  %v18996_v45 = vmax.f32 %v13317_v11, 0.0  ;;  %4824 = vst.msk [vmem:[#allocation2 + $0x1c] sm:$0xf] %vm3773_vm15, %v4203_v53  ;;  %v18998_v57 = vmax.f32 %v13321_v13, 0.0 }
 0x3fe   :  { %v13634_v58 = vpack.c.bf16 %v18989_v48, %v18989_v48  ;;  %v13644_v49 = vpack.c.bf16 %v18991_v23, %v18991_v23  ;;  %v13649_v30 = vpack.c.bf16 %v18992_v21, %v18992_v21  ;;  %v4826_v48 = vsel %vm11573_vm3, %v4204_v56, %v4825_v62  ;;  %4823 = vst [vmem:[#allocation2 + $0x18] sm:$0xf] %v4822_v51 }
 0x3ff   :  { %v13660_v52 = vpack.c.bf16 %v18996_v45, %v18996_v45  ;;  %4827 = vst [vmem:[#allocation2 + $0x20] sm:$0x1] %v4826_v48  ;;  %v13666_v0 = vpack.c.bf16 %v18998_v57, %v18998_v57  ;;  %v19000_v50 = vmax.f32 %v13325_v12, 0.0  ;;  %v19002_v62 = vmax.f32 %v13329_v3, 0.0 }
 0x400   :  { %18993 = vst [vmem:[#allocation94_spill] sm:$0xff] %v13649_v30  ;;  %v19004_v29 = vmax.f32 %v13333_v1, 0.0  ;;  %v19006_v13 = vmax.f32 %v13337_v47, 0.0  ;;  %v19008_v12 = vmax.f32 %v13341_v55, 0.0  ;;  %v19010_v3 = vmax.f32 %v13345_v10, 0.0 }
 0x401   :  { %18997 = vst [vmem:[#allocation98_spill] sm:$0xff] %v13660_v52  ;;  %18999 = vst [vmem:[#allocation99_spill] sm:$0xff] %v13666_v0  ;;  %v13671_v4 = vpack.c.bf16 %v19000_v50, %v19000_v50  ;;  %v13676_v11 = vpack.c.bf16 %v19002_v62, %v19002_v62  ;;  %v19012_v1 = vmax.f32 %v13349_v31, 0.0  ;;  %v19014_v47 = vmax.f32 %v13353_v2, 0.0 }
 0x402   :  { %v13681_v8 = vpack.c.bf16 %v19004_v29, %v19004_v29  ;;  %v13686_v56 = vpack.c.bf16 %v19006_v13, %v19006_v13  ;;  %v13691_v23 = vpack.c.bf16 %v19008_v12, %v19008_v12  ;;  %v13696_v21 = vpack.c.bf16 %v19010_v3, %v19010_v3  ;;  %v19030_v12 = vld [vmem:[#allocation49_spill] sm:$0xff] }
 0x403   :  { %19001 = vst [vmem:[#allocation100_spill] sm:$0xff] %v13671_v4  ;;  %19003 = vst [vmem:[#allocation101_spill] sm:$0xff] %v13676_v11  ;;  %v13701_v53 = vpack.c.bf16 %v19012_v1, %v19012_v1  ;;  %v13706_v51 = vpack.c.bf16 %v19014_v47, %v19014_v47  ;;  %v19016_v55 = vmax.f32 %v13357_v17, 0.0  ;;  %v19018_v10 = vmax.f32 %v13361_v16, 0.0 }
 0x404   :  { %19005 = vst [vmem:[#allocation52_spill] sm:$0xff] %v13681_v8  ;;  %19007 = vst [vmem:[#allocation58_spill] sm:$0xff] %v13686_v56  ;;  %v19020_v31 = vmax.f32 %v13365_v20, 0.0  ;;  %v19022_v2 = vmax.f32 %v13369_v19, 0.0  ;;  %v19024_v17 = vmax.f32 %v13373_v27, 0.0  ;;  %v19026_v16 = vmax.f32 %v13377_v9, 0.0 }
 0x405   :  { %19009 = vst [vmem:[#allocation43_spill] sm:$0xff] %v13691_v23  ;;  %19011 = vst [vmem:[#allocation96_spill] sm:$0xff] %v13696_v21  ;;  %v13711_v48 = vpack.c.bf16 %v19016_v55, %v19016_v55  ;;  %v13716_v45 = vpack.c.bf16 %v19018_v10, %v19018_v10  ;;  %v19028_v20 = vmax.f32 %v13381_v7, 0.0  ;;  %v19031_v19 = vmax.f32 %v19030_v12, 0.0  ;;  %v19039_v10 = vld [vmem:[#allocation102_spill] sm:$0xff] }
 0x406   :  { %19013 = vst [vmem:[#allocation86_spill] sm:$0xff] %v13701_v53  ;;  %19015 = vst [vmem:[#allocation76_spill] sm:$0xff] %v13706_v51  ;;  %v13721_v57 = vpack.c.bf16 %v19020_v31, %v19020_v31  ;;  %v13726_v50 = vpack.c.bf16 %v19022_v2, %v19022_v2  ;;  %v13731_v62 = vpack.c.bf16 %v19024_v17, %v19024_v17  ;;  %v19033_v27 = vmax.f32 %v13389_v6, 0.0  ;;  %v19042_v17 = vld [vmem:[#allocation61_spill] sm:$0xff] }
 0x407   :  { %19017 = vst [vmem:[#allocation89_spill] sm:$0xff] %v13711_v48  ;;  %19019 = vst [vmem:[#allocation83_spill] sm:$0xff] %v13716_v45  ;;  %v13736_v29 = vpack.c.bf16 %v19026_v16, %v19026_v16  ;;  %v13741_v13 = vpack.c.bf16 %v19028_v20, %v19028_v20  ;;  %v13746_v3 = vpack.c.bf16 %v19031_v19, %v19031_v19  ;;  %v19035_v9 = vmax.f32 %v13393_v26, 0.0  ;;  %v19045_v20 = vld [vmem:[#allocation55_spill] sm:$0xff]  ;;  %v19048_v19 = vld [vmem:[#allocation64_spill] sm:$0xff] }
 0x408   :  { %19021 = vst [vmem:[#allocation88_spill] sm:$0xff] %v13721_v57  ;;  %19023 = vst [vmem:[#allocation97_spill] sm:$0xff] %v13726_v50  ;;  %v13751_v1 = vpack.c.bf16 %v19033_v27, %v19033_v27  ;;  %v19037_v7 = vmax.f32 %v13397_v14, 0.0  ;;  %v19040_v31 = vmax.f32 %v19039_v10, 0.0  ;;  %v19043_v6 = vmax.f32 %v19042_v17, 0.0 }
 0x409   :  { %19025 = vst [vmem:[#allocation103_spill] sm:$0xff] %v13731_v62  ;;  %19027 = vst [vmem:[#allocation104_spill] sm:$0xff] %v13736_v29  ;;  %v13756_v47 = vpack.c.bf16 %v19035_v9, %v19035_v9  ;;  %v19046_v26 = vmax.f32 %v19045_v20, 0.0  ;;  %v19049_v14 = vmax.f32 %v19048_v19, 0.0  ;;  %v19051_v9 = vld [vmem:[#allocation85_spill] sm:$0xff] }
 0x40a   :  { %19029 = vst [vmem:[#allocation105_spill] sm:$0xff] %v13741_v13  ;;  %19032 = vst [vmem:[#allocation49_spill] sm:$0xff] %v13746_v3  ;;  %v13761_v55 = vpack.c.bf16 %v19037_v7, %v19037_v7  ;;  %v13766_v2 = vpack.c.bf16 %v19040_v31, %v19040_v31  ;;  %v13771_v16 = vpack.c.bf16 %v19043_v6, %v19043_v6  ;;  %v19052_v7 = vmax.f32 %v19051_v9, 0.0  ;;  %v19054_v31 = vld [vmem:[#allocation67_spill] sm:$0xff]  ;;  %v5045_v9 = vld [vmem:[#allocation2 + $0x1c] sm:$0xf] }
 0x40b   :  { %19034 = vst [vmem:[#allocation106_spill] sm:$0xff] %v13751_v1  ;;  %19036 = vst [vmem:[#allocation107_spill] sm:$0xff] %v13756_v47  ;;  %v13776_v12 = vpack.c.bf16 %v19046_v26, %v19046_v26  ;;  %v13781_v27 = vpack.c.bf16 %v19049_v14, %v19049_v14  ;;  %v19055_v17 = vmax.f32 %v19054_v31, 0.0 }
 0x40c   :  { %19038 = vst [vmem:[#allocation108_spill] sm:$0xff] %v13761_v55  ;;  %19041 = vst [vmem:[#allocation102_spill] sm:$0xff] %v13766_v2  ;;  %v13786_v10 = vpack.c.bf16 %v19052_v7, %v19052_v7  ;;  %v5046_v2 = vld [vmem:[#allocation2 + $0x20] sm:$0x1]  ;;  %v19063_v7 = vld [vmem:[#allocation87_spill] sm:$0xff]  ;;  %v5204_v55 = vshll.u32 %v5045_v9, 16 }
 0x40d   :  { %19044 = vst [vmem:[#allocation61_spill] sm:$0xff] %v13771_v16  ;;  %19047 = vst [vmem:[#allocation55_spill] sm:$0xff] %v13776_v12  ;;  %v13791_v6 = vpack.c.bf16 %v19055_v17, %v19055_v17  ;;  %v19057_v16 = vld [vmem:[#allocation84_spill] sm:$0xff]  ;;  %v19060_v12 = vld [vmem:[#allocation70_spill] sm:$0xff] }
 0x40e   :  { %19050 = vst [vmem:[#allocation64_spill] sm:$0xff] %v13781_v27  ;;  %19053 = vst [vmem:[#allocation85_spill] sm:$0xff] %v13786_v10  ;;  %v19058_v20 = vmax.f32 %v19057_v16, 0.0  ;;  %v19061_v19 = vmax.f32 %v19060_v12, 0.0  ;;  %v5044_v27 = vld [vmem:[#allocation2 + $0x18] sm:$0xf] }
 0x40f   :  { %19056 = vst [vmem:[#allocation67_spill] sm:$0xff] %v13791_v6  ;;  %v19064_v10 = vmax.f32 %v19063_v7, 0.0  ;;  %v19066_v17 = vld [vmem:[#allocation73_spill] sm:$0xff]  ;;  %v5198_v7 = vshll.u32 %v5044_v27, 16 }
 0x410   :  { %v13796_v26 = vpack.c.bf16 %v19058_v20, %v19058_v20  ;;  %v13801_v14 = vpack.c.bf16 %v19061_v19, %v19061_v19  ;;  %v19067_v6 = vmax.f32 %v19066_v17, 0.0  ;;  %v19069_v20 = vmax.f32 %v18966_v39, 0.0 }
 0x411   :  { %v13806_v31 = vpack.c.bf16 %v19064_v10, %v19064_v10  ;;  %v19071_v19 = vmax.f32 %v13445_v54, 0.0  ;;  %v5208_v10 = vshrl.u32 %v5045_v9, 16  ;;  %v19073_v17 = vmax.f32 %v13449_v42, 0.0 }
 0x412   :  { %19059 = vst [vmem:[#allocation84_spill] sm:$0xff] %v13796_v26  ;;  %19062 = vst [vmem:[#allocation70_spill] sm:$0xff] %v13801_v14  ;;  %v13811_v16 = vpack.c.bf16 %v19067_v6, %v19067_v6  ;;  %v13816_v12 = vpack.c.bf16 %v19069_v20, %v19069_v20  ;;  %v5195_v26 = vshrl.u32 %v5044_v27, 16  ;;  %v19075_v39 = vmax.f32 %v13453_v37, 0.0 }
 0x413   :  { %19065 = vst [vmem:[#allocation87_spill] sm:$0xff] %v13806_v31  ;;  %v13821_v14 = vpack.c.bf16 %v19071_v19, %v19071_v19  ;;  %v5214_v31 = vshll.u32 %v5046_v2, 16  ;;  %v13826_v6 = vpack.c.bf16 %v19073_v17, %v19073_v17  ;;  %v19077_v54 = vmax.f32 %v13457_v63, 0.0 }
 0x414   :  { %19068 = vst [vmem:[#allocation73_spill] sm:$0xff] %v13811_v16  ;;  %19070 = vst [vmem:[#allocation109_spill] sm:$0xff] %v13816_v12  ;;  %v13831_v20 = vpack.c.bf16 %v19075_v39, %v19075_v39  ;;  %v5200_v27 = vrot.slane %v5198_v7, 5  ;;  %v5206_v12 = vrot.slane %v5204_v55, 5  ;;  %v5210_v9 = vrot.slane %v5208_v10, 4 }
 0x415   :  { %19072 = vst [vmem:[#allocation110_spill] sm:$0xff] %v13821_v14  ;;  %19074 = vst [vmem:[#allocation111_spill] sm:$0xff] %v13826_v6  ;;  %v13836_v19 = vpack.c.bf16 %v19077_v54, %v19077_v54  ;;  %v5197_v14 = vrot.slane %v5195_v26, 4  ;;  %v5216_v2 = vrot.slane %v5214_v31, 5  ;;  %v19079_v42 = vmax.f32 %v13461_v15, 0.0 }
 0x416   :  { %19076 = vst [vmem:[#allocation112_spill] sm:$0xff] %v13831_v20  ;;  %v19081_v37 = vmax.f32 %v18967_v60, 0.0  ;;  %v19083_v63 = vmax.f32 %v18968_v25, 0.0  ;;  %v5211_v7 = vor.u32 %v5210_v9, %v5206_v12  ;;  %v19085_v55 = vmax.f32 %v18969_v38, 0.0  ;;  %v19117_v20 = vld [vmem:[#allocation79_spill] sm:$0xff] }
 0x417   :  { %19078 = vst [vmem:[#allocation113_spill] sm:$0xff] %v13836_v19  ;;  %v13841_v17 = vpack.c.bf16 %v19079_v42, %v19079_v42  ;;  %v5201_v26 = vor.u32 %v5200_v27, %v5197_v14  ;;  %v19087_v15 = vmax.f32 %v18970_v59, 0.0  ;;  %v4172_v60 = vshrl.u32 %v13569_v33, 16 }
 0x418   :  { %v13846_v39 = vpack.c.bf16 %v19081_v37, %v19081_v37  ;;  %v13851_v54 = vpack.c.bf16 %v19083_v63, %v19083_v63  ;;  %v13856_v31 = vpack.c.bf16 %v19085_v55, %v19085_v55  ;;  %v4175_v42 = vshll.u32 %v13569_v33, 16 }
 0x419   :  { %19080 = vst [vmem:[#allocation114_spill] sm:$0xff] %v13841_v17  ;;  %v13861_v10 = vpack.c.bf16 %v19087_v15, %v19087_v15  ;;  %v4180_v25 = vshrl.u32 %v13574_v34, 16  ;;  %v4183_v37 = vshll.u32 %v13574_v34, 16  ;;  %v5202_v14 = vrot.slane %v5201_v26, 4  ;;  %v4835_v17 = vld [vmem:[#allocation2 + $0x30] sm:$0xf] }
 0x41a   :  { %19082 = vst [vmem:[#allocation115_spill] sm:$0xff] %v13846_v39  ;;  %19084 = vst [vmem:[#allocation116_spill] sm:$0xff] %v13851_v54  ;;  %v5212_v27 = vrot.slane %v5211_v7, 4  ;;  %v4174_v63 = vrot.slane %v4172_v60, 7  ;;  %v4818_v7 = vld [vmem:[#allocation2 + $0x14] sm:$0x1] }
 0x41b   :  { %19086 = vst [vmem:[#allocation117_spill] sm:$0xff] %v13856_v31  ;;  %19088 = vst [vmem:[#allocation118_spill] sm:$0xff] %v13861_v10  ;;  %v4182_v55 = vrot.slane %v4180_v25, 7  ;;  %v4814_v10 = vld [vmem:[#allocation2 + $0xc] sm:$0xf]  ;;  %v5207_v33 = vsel %vm9905_vm2, %v5202_v14, %v5206_v12  ;;  %v19124_v19 = vshll.u32 %v13594_v18, 16 }
 0x41c   :  { %v5217_v54 = vsel %vm9905_vm2, %v5212_v27, %v5216_v2  ;;  %v4177_v60 = vor.u32 %v4175_v42, %v4174_v63  ;;  %v4178_v25 = vrot.slane %v4174_v63, 4  ;;  %v19126_v31 = vshrl.u32 %v13619_v36, 16 }
 0x41d   :  { %v13877_v38 = vcombine.low %v5207_v33, %v5217_v54  ;;  %v4185_v9 = vor.u32 %v4183_v37, %v4182_v55  ;;  %v4187_v59 = vrot.slane %v4182_v55, 4  ;;  %v19103_v37 = vld [vmem:[#allocation64_spill] sm:$0xff] }
 0x41e   :  { %v4815_v54 = vsel %vm13542_vm1, %v4177_v60, %v4814_v10  ;;  %v19092_v60 = vld [vmem:[#allocation90_spill] sm:$0xff] }
 0x41f   :  { %19090 = vst [vmem:[#allocation119_spill] sm:$0xff] %v13877_v38  ;;  %6566 = vrot.lane.b32.xlu0 %v13877_v38, %s9830_s23  ;;  %v4186_v2 = vsel %vm13128_vm14, %v4178_v25, %v4185_v9  ;;  %4816 = vst [vmem:[#allocation2 + $0xc] sm:$0xf] %v4815_v54  ;;  %v4819_v14 = vsel %vm11573_vm3, %v4187_v59, %v4818_v7  ;;  %v19091_v9 = vld [vmem:[#allocation93_spill] sm:$0xff]  ;;  %v19095_v59 = vld [vmem:[#allocation92_spill] sm:$0xff] }
 0x420   :  { %4817 = vst.msk [vmem:[#allocation2 + $0x10] sm:$0xf] %vm3773_vm15, %v4186_v2  ;;  %4820 = vst [vmem:[#allocation2 + $0x14] sm:$0x1] %v4819_v14  ;;  %v19093_v2 = vmax.f32 %v19092_v60, 0.0  ;;  %v19096_v33 = vmax.f32 %v19095_v59, 0.0 }
 0x421   :  { %v19106_v59 = vld [vmem:[#allocation84_spill] sm:$0xff]  ;;  %v19125_v16 = vshrl.u32 %v19091_v9, 16 }
 0x422   :  { %v13923_v54 = vpack.c.bf16 %v19093_v2, %v19093_v2  ;;  %v13928_v7 = vpack.c.bf16 %v19096_v33, %v19096_v33  ;;  %v19100_v2 = vld [vmem:[#allocation102_spill] sm:$0xff] }
 0x424   :  { %19094 = vst [vmem:[#allocation93_spill] sm:$0xff] %v13923_v54  ;;  %19097 = vst [vmem:[#allocation90_spill] sm:$0xff] %v13928_v7 }
 0x426   :  { %v5041_v27 = vld [vmem:[#allocation2 + $0xc] sm:$0xf] }
 0x427   :  { %v5042_v14 = vld [vmem:[#allocation2 + $0x10] sm:$0xf]  ;;  %v5043_v41 = vld [vmem:[#allocation2 + $0x14] sm:$0x1]  ;;  %v5171_v42 = vshrl.u32 %v5041_v27, 16  ;;  %v5174_v26 = vshll.u32 %v5041_v27, 16 }
 0x428   :  { %v5180_v25 = vshll.u32 %v5042_v14, 16  ;;  %v5184_v63 = vshrl.u32 %v5042_v14, 16  ;;  %v5190_v60 = vshll.u32 %v5043_v41, 16 }
 0x429   :  { %v5173_v33 = vrot.slane %v5171_v42, 4  ;;  %v5176_v12 = vrot.slane %v5174_v26, 5  ;;  %v19114_v26 = vshrl.u32 %v13589_v32, 16 }
 0x42a   :  { %v5182_v15 = vrot.slane %v5180_v25, 5  ;;  %v5186_v34 = vrot.slane %v5184_v63, 4  ;;  %v5192_v38 = vrot.slane %v5190_v60, 5 }
 0x42b   :  { %v5177_v8 = vor.u32 %v5176_v12, %v5173_v33  ;;  %v19118_v33 = vshrl.u32 %v19117_v20, 16 }
 0x42c   :  { %v5187_v14 = vor.u32 %v5186_v34, %v5182_v15  ;;  %v19119_v34 = vshrl.u32 %v13599_v40, 16 }
 0x42d   :  { %v5178_v25 = vrot.slane %v5177_v8, 4  ;;  %v19102_v8 = vld [vmem:[#allocation55_spill] sm:$0xff]  ;;  %v14026_v6 = vrot.slane %v19118_v33, 7 }
 0x42e   :  { %v5188_v60 = vrot.slane %v5187_v14, 4  ;;  %v4839_v14 = vld [vmem:[#allocation2 + $0x38] sm:$0x1]  ;;  %v14030_v27 = vrot.slane %v19119_v34, 7  ;;  %v14046_v34 = vrot.slane %v19125_v16, 7 }
 0x42f   :  { %v5183_v42 = vsel %vm9905_vm2, %v5178_v25, %v5182_v15  ;;  %v19101_v15 = vld [vmem:[#allocation61_spill] sm:$0xff]  ;;  %v19116_v25 = vshrl.u32 %v13579_v35, 16 }
 0x430   :  { %v5193_v63 = vsel %vm9905_vm2, %v5188_v60, %v5192_v38  ;;  %v19099_v60 = vld [vmem:[#allocation108_spill] sm:$0xff]  ;;  %v19120_v38 = vshrl.u32 %v13604_v28, 16 }
 0x431   :  { %v13956_v55 = vcombine.low %v5183_v42, %v5193_v63  ;;  %v4225_v42 = vrot.slane %v19114_v26, 7  ;;  %v19115_v63 = vshrl.u32 %v13594_v18, 16  ;;  %v14022_v12 = vrot.slane %v19116_v25, 7 }
 0x432   :  { %v14034_v7 = vrot.slane %v19120_v38, 7  ;;  %v19122_v26 = vshrl.u32 %v13609_v24, 16  ;;  %v19123_v25 = vshll.u32 %v13589_v32, 16  ;;  %v14050_v38 = vrot.slane %v19126_v31, 7 }
 0x433   :  { %19098 = vst [vmem:[#allocation92_spill] sm:$0xff] %v13956_v55  ;;  %6564 = vrot.lane.b32.xlu1 %v13956_v55, %s9830_s23  ;;  %v19107_v55 = vld [vmem:[#allocation70_spill] sm:$0xff]  ;;  %v4233_v10 = vrot.slane %v19115_v63, 7  ;;  %v4229_v39 = vrot.slane %v4225_v42, 4  ;;  %v19127_v24 = vshrl.u32 %v13624_v44, 16  ;;  %v19129_v32 = vshrl.u32 %v13629_v22, 16 }
 0x434   :  { %19121 = vst [vmem:[#allocation79_spill] sm:$0xff] %v14034_v7  ;;  %v14038_v63 = vrot.slane %v19122_v26, 7  ;;  %v4228_v54 = vor.u32 %v19123_v25, %v4225_v42  ;;  %v19130_v31 = vshrl.u32 %v13634_v58, 16 }
 0x435   :  { %v4236_v33 = vor.u32 %v19124_v19, %v4233_v10  ;;  %v4238_v41 = vrot.slane %v4233_v10, 4  ;;  %v14054_v26 = vrot.slane %v19127_v24, 7  ;;  %v14058_v25 = vrot.slane %v19129_v32, 7 }
 0x436   :  { %v4836_v19 = vsel %vm13542_vm1, %v4228_v54, %v4835_v17  ;;  %v14068_v10 = vrot.slane %v19130_v31, 7  ;;  %v19132_v24 = vshrl.u32 %v13639_v5, 16  ;;  %v19135_v17 = vshrl.u32 %v13649_v30, 16 }
 0x437   :  { %19128 = vst [vmem:[#allocation120_spill] sm:$0xff] %v14054_v26  ;;  %v4237_v18 = vsel %vm13128_vm14, %v4229_v39, %v4236_v33  ;;  %v4840_v16 = vsel %vm11573_vm3, %v4238_v41, %v4839_v14  ;;  %4837 = vst [vmem:[#allocation2 + $0x30] sm:$0xf] %v4836_v19  ;;  %v19133_v39 = vshrl.u32 %v13644_v49, 16  ;;  %v19136_v41 = vshrl.u32 %v13660_v52, 16 }
 0x438   :  { %19131 = vst [vmem:[#allocation121_spill] sm:$0xff] %v14068_v10  ;;  %4838 = vst.msk [vmem:[#allocation2 + $0x34] sm:$0xf] %vm3773_vm15, %v4237_v18  ;;  %v14073_v42 = vrot.slane %v19132_v24, 7  ;;  %v14081_v54 = vrot.slane %v19135_v17, 7  ;;  %v19138_v32 = vshrl.u32 %v13666_v0, 16 }
 0x439   :  { %4841 = vst [vmem:[#allocation2 + $0x38] sm:$0x1] %v4840_v16  ;;  %v14077_v33 = vrot.slane %v19133_v39, 7  ;;  %v14085_v14 = vrot.slane %v19136_v41, 7  ;;  %v19139_v19 = vshrl.u32 %v13671_v4, 16  ;;  %v19141_v31 = vshrl.u32 %v13676_v11, 16 }
 0x43a   :  { %v14089_v18 = vrot.slane %v19138_v32, 7  ;;  %v19142_v39 = vld [vmem:[#allocation52_spill] sm:$0xff]  ;;  %v19145_v52 = vshrl.u32 %v13686_v56, 16  ;;  %v19146_v0 = vshrl.u32 %v13691_v23, 16  ;;  %v19148_v4 = vshrl.u32 %v13696_v21, 16 }
 0x43b   :  { %19134 = vst [vmem:[#allocation122_spill] sm:$0xff] %v14077_v33  ;;  %19137 = vst [vmem:[#allocation123_spill] sm:$0xff] %v14085_v14  ;;  %v14093_v16 = vrot.slane %v19139_v19, 7  ;;  %v14097_v24 = vrot.slane %v19141_v31, 7  ;;  %v19143_v30 = vshrl.u32 %v19142_v39, 16  ;;  %v19149_v11 = vshrl.u32 %v13701_v53, 16 }
 0x43c   :  { %v14105_v41 = vrot.slane %v19145_v52, 7  ;;  %v14109_v32 = vrot.slane %v19146_v0, 7  ;;  %v14113_v19 = vrot.slane %v19148_v4, 7  ;;  %v19151_v39 = vshrl.u32 %v13706_v51, 16 }
 0x43d   :  { %19140 = vst [vmem:[#allocation124_spill] sm:$0xff] %v14093_v16  ;;  %v14101_v17 = vrot.slane %v19143_v30, 7  ;;  %v14117_v31 = vrot.slane %v19149_v11, 7  ;;  %v19152_v56 = vshrl.u32 %v13711_v48, 16  ;;  %v19154_v23 = vshrl.u32 %v13716_v45, 16 }
 0x43e   :  { %19147 = vst [vmem:[#allocation126_spill] sm:$0xff] %v14109_v32  ;;  %v14121_v30 = vrot.slane %v19151_v39, 7  ;;  %v19155_v21 = vshrl.u32 %v13721_v57, 16  ;;  %v19157_v53 = vshrl.u32 %v13726_v50, 16  ;;  %v19158_v51 = vshrl.u32 %v13731_v62, 16 }
 0x43f   :  { %19144 = vst [vmem:[#allocation125_spill] sm:$0xff] %v14101_v17  ;;  %19150 = vst [vmem:[#allocation127_spill] sm:$0xff] %v14117_v31  ;;  %v14125_v52 = vrot.slane %v19152_v56, 7  ;;  %v14129_v0 = vrot.slane %v19154_v23, 7  ;;  %v19160_v48 = vshrl.u32 %v13736_v29, 16  ;;  %v19161_v45 = vshrl.u32 %v13741_v13, 16 }
 0x440   :  { %v14133_v4 = vrot.slane %v19155_v21, 7  ;;  %v14137_v11 = vrot.slane %v19157_v53, 7  ;;  %v14141_v39 = vrot.slane %v19158_v51, 7  ;;  %v19163_v57 = vshrl.u32 %v13746_v3, 16 }
 0x441   :  { %19153 = vst [vmem:[#allocation128_spill] sm:$0xff] %v14125_v52  ;;  %v14145_v56 = vrot.slane %v19160_v48, 7  ;;  %v14149_v23 = vrot.slane %v19161_v45, 7  ;;  %v19165_v50 = vshrl.u32 %v13751_v1, 16  ;;  %v19167_v62 = vshrl.u32 %v13756_v47, 16 }
 0x442   :  { %19156 = vst [vmem:[#allocation129_spill] sm:$0xff] %v14133_v4  ;;  %19159 = vst [vmem:[#allocation130_spill] sm:$0xff] %v14141_v39  ;;  %v14153_v21 = vrot.slane %v19163_v57, 7  ;;  %v19169_v29 = vshrl.u32 %v19099_v60, 16  ;;  %v19171_v13 = vshrl.u32 %v19100_v2, 16  ;;  %v19173_v3 = vshrl.u32 %v19101_v15, 16 }
 0x443   :  { %19162 = vst [vmem:[#allocation131_spill] sm:$0xff] %v14149_v23  ;;  %v14157_v53 = vrot.slane %v19165_v50, 7  ;;  %v14161_v51 = vrot.slane %v19167_v62, 7  ;;  %v19175_v1 = vshrl.u32 %v19102_v8, 16  ;;  %v19177_v47 = vshrl.u32 %v19103_v37, 16 }
 0x444   :  { %19164 = vst [vmem:[#allocation132_spill] sm:$0xff] %v14153_v21  ;;  %v14165_v48 = vrot.slane %v19169_v29, 7  ;;  %v14169_v45 = vrot.slane %v19171_v13, 7  ;;  %v14173_v57 = vrot.slane %v19173_v3, 7  ;;  %v5051_v60 = vld [vmem:[#allocation2 + $0x34] sm:$0xf] }
 0x445   :  { %19166 = vst [vmem:[#allocation133_spill] sm:$0xff] %v14157_v53  ;;  %19168 = vst [vmem:[#allocation134_spill] sm:$0xff] %v14161_v51  ;;  %v14177_v50 = vrot.slane %v19175_v1, 7  ;;  %v14181_v62 = vrot.slane %v19177_v47, 7  ;;  %v5050_v51 = vld [vmem:[#allocation2 + $0x30] sm:$0xf] }
 0x446   :  { %19170 = vst [vmem:[#allocation135_spill] sm:$0xff] %v14165_v48  ;;  %19172 = vst [vmem:[#allocation136_spill] sm:$0xff] %v14169_v45  ;;  %v5052_v29 = vld [vmem:[#allocation2 + $0x38] sm:$0x1]  ;;  %v19179_v2 = vshll.u32 %v13579_v35, 16  ;;  %v19180_v15 = vshll.u32 %v19117_v20, 16 }
 0x447   :  { %19174 = vst [vmem:[#allocation137_spill] sm:$0xff] %v14173_v57  ;;  %19176 = vst [vmem:[#allocation138_spill] sm:$0xff] %v14177_v50  ;;  %v19181_v8 = vshll.u32 %v13599_v40, 16  ;;  %v19183_v47 = vshll.u32 %v13604_v28, 16  ;;  %v5246_v50 = vshll.u32 %v5050_v51, 16  ;;  %v5252_v57 = vshll.u32 %v5051_v60, 16 }
 0x448   :  { %19178 = vst [vmem:[#allocation139_spill] sm:$0xff] %v14181_v62  ;;  %v4211_v13 = vor.u32 %v19179_v2, %v14022_v12  ;;  %v4219_v3 = vor.u32 %v19180_v15, %v14026_v6  ;;  %v5243_v62 = vshrl.u32 %v5050_v51, 16  ;;  %v5256_v45 = vshrl.u32 %v5051_v60, 16  ;;  %v19185_v2 = vld [vmem:[#allocation85_spill] sm:$0xff]  ;;  %v19188_v20 = vld [vmem:[#allocation67_spill] sm:$0xff] }
 0x449   :  { %v14192_v1 = vor.u32 %v19181_v8, %v14030_v27  ;;  %v14197_v37 = vor.u32 %v19183_v47, %v14034_v7  ;;  %v5262_v35 = vshll.u32 %v5052_v29, 16  ;;  %v19186_v48 = vshrl.u32 %v19185_v2, 16  ;;  %v19195_v2 = vld [vmem:[#allocation87_spill] sm:$0xff] }
 0x44a   :  { %v19189_v15 = vshrl.u32 %v19188_v20, 16  ;;  %v19191_v40 = vshrl.u32 %v19106_v59, 16  ;;  %v5245_v28 = vrot.slane %v5243_v62, 4  ;;  %v5248_v47 = vrot.slane %v5246_v50, 5  ;;  %v19198_v20 = vld [vmem:[#allocation73_spill] sm:$0xff] }
 0x44b   :  { %19182 = vst [vmem:[#allocation140_spill] sm:$0xff] %v14192_v1  ;;  %19184 = vst [vmem:[#allocation141_spill] sm:$0xff] %v14197_v37  ;;  %v14201_v53 = vrot.slane %v19186_v48, 7  ;;  %v5254_v1 = vrot.slane %v5252_v57, 5  ;;  %v5258_v37 = vrot.slane %v5256_v45, 4  ;;  %v5264_v51 = vrot.slane %v5262_v35, 5 }
 0x44c   :  { %v14205_v21 = vrot.slane %v19189_v15, 7  ;;  %v14209_v8 = vrot.slane %v19191_v40, 7  ;;  %v19193_v60 = vshrl.u32 %v19107_v55, 16  ;;  %v19196_v48 = vshrl.u32 %v19195_v2, 16  ;;  %v19204_v45 = vld [vmem:[#allocation110_spill] sm:$0xff] }
 0x44d   :  { %19187 = vst [vmem:[#allocation142_spill] sm:$0xff] %v14201_v53  ;;  %v19199_v15 = vshrl.u32 %v19198_v20, 16  ;;  %v5249_v59 = vor.u32 %v5248_v47, %v5245_v28  ;;  %v5259_v40 = vor.u32 %v5258_v37, %v5254_v1  ;;  %v19205_v57 = vshrl.u32 %v19204_v45, 16  ;;  %v19216_v37 = vld [vmem:[#allocation114_spill] sm:$0xff] }
 0x44e   :  { %19190 = vst [vmem:[#allocation143_spill] sm:$0xff] %v14205_v21  ;;  %19192 = vst [vmem:[#allocation144_spill] sm:$0xff] %v14209_v8  ;;  %v14213_v29 = vrot.slane %v19193_v60, 7  ;;  %v14217_v53 = vrot.slane %v19196_v48, 7  ;;  %v19201_v8 = vld [vmem:[#allocation109_spill] sm:$0xff]  ;;  %v19207_v60 = vld [vmem:[#allocation111_spill] sm:$0xff] }
 0x44f   :  { %v14221_v21 = vrot.slane %v19199_v15, 7  ;;  %v19202_v62 = vshrl.u32 %v19201_v8, 16  ;;  %v14229_v35 = vrot.slane %v19205_v57, 7  ;;  %v19208_v55 = vshrl.u32 %v19207_v60, 16  ;;  %v19210_v48 = vld [vmem:[#allocation112_spill] sm:$0xff]  ;;  %v19213_v15 = vld [vmem:[#allocation113_spill] sm:$0xff] }
 0x450   :  { %19194 = vst [vmem:[#allocation145_spill] sm:$0xff] %v14213_v29  ;;  %19197 = vst [vmem:[#allocation146_spill] sm:$0xff] %v14217_v53  ;;  %v19211_v2 = vshrl.u32 %v19210_v48, 16  ;;  %v19214_v20 = vshrl.u32 %v19213_v15, 16  ;;  %v19217_v47 = vshrl.u32 %v19216_v37, 16  ;;  %v5250_v45 = vrot.slane %v5249_v59, 4 }
 0x451   :  { %19200 = vst [vmem:[#allocation147_spill] sm:$0xff] %v14221_v21  ;;  %v14225_v50 = vrot.slane %v19202_v62, 7  ;;  %19206 = vst [vmem:[#allocation149_spill] sm:$0xff] %v14229_v35  ;;  %v14233_v29 = vrot.slane %v19208_v55, 7  ;;  %v4828_v8 = vld [vmem:[#allocation2 + $0x24] sm:$0xf] }
 0x452   :  { %v14237_v53 = vrot.slane %v19211_v2, 7  ;;  %v14241_v28 = vrot.slane %v19214_v20, 7  ;;  %v14245_v62 = vrot.slane %v19217_v47, 7  ;;  %v5260_v57 = vrot.slane %v5259_v40, 4  ;;  %v19219_v35 = vld [vmem:[#allocation115_spill] sm:$0xff]  ;;  %v19222_v55 = vld [vmem:[#allocation116_spill] sm:$0xff] }
 0x453   :  { %19203 = vst [vmem:[#allocation148_spill] sm:$0xff] %v14225_v50  ;;  %19209 = vst [vmem:[#allocation150_spill] sm:$0xff] %v14233_v29  ;;  %v19220_v50 = vshrl.u32 %v19219_v35, 16  ;;  %v19223_v29 = vshrl.u32 %v19222_v55, 16  ;;  %v4832_v2 = vld [vmem:[#allocation2 + $0x2c] sm:$0x1] }
 0x454   :  { %19212 = vst [vmem:[#allocation151_spill] sm:$0xff] %v14237_v53  ;;  %19215 = vst [vmem:[#allocation152_spill] sm:$0xff] %v14241_v28  ;;  %v19224_v53 = vld [vmem:[#allocation117_spill] sm:$0xff]  ;;  %v19226_v28 = vld [vmem:[#allocation118_spill] sm:$0xff] }
 0x455   :  { %19218 = vst [vmem:[#allocation153_spill] sm:$0xff] %v14245_v62  ;;  %v14249_v60 = vrot.slane %v19220_v50, 7  ;;  %v14253_v48 = vrot.slane %v19223_v29, 7  ;;  %v19225_v15 = vshrl.u32 %v19224_v53, 16  ;;  %v19227_v37 = vshrl.u32 %v19226_v28, 16  ;;  %v19228_v62 = vld [vmem:[#allocation93_spill] sm:$0xff] }
 0x456   :  { %v19229_v59 = vshrl.u32 %v19228_v62, 16  ;;  %v19230_v35 = vld [vmem:[#allocation90_spill] sm:$0xff]  ;;  %v5255_v29 = vsel %vm9905_vm2, %v5250_v45, %v5254_v1  ;;  %v5265_v53 = vsel %vm9905_vm2, %v5260_v57, %v5264_v51  ;;  %v4221_v28 = vrot.slane %v14026_v6, 4 }
 0x457   :  { %19221 = vst [vmem:[#allocation154_spill] sm:$0xff] %v14249_v60  ;;  %v14257_v20 = vrot.slane %v19225_v15, 7  ;;  %v14261_v47 = vrot.slane %v19227_v37, 7  ;;  %v19231_v50 = vshrl.u32 %v19230_v35, 16  ;;  %v4212_v15 = vrot.slane %v14022_v12, 4  ;;  %v19234_v12 = vld [vmem:[#allocation91_spill] sm:$0xff] }
 0x458   :  { %v14265_v40 = vrot.slane %v19229_v59, 7  ;;  %v14277_v37 = vcombine.low %v5255_v29, %v5265_v53  ;;  %v4829_v59 = vsel %vm13542_vm1, %v4211_v13, %v4828_v8  ;;  %v4833_v1 = vsel %vm11573_vm3, %v4221_v28, %v4832_v2  ;;  %v19299_v55 = vld [vmem:[#allocation134_spill] sm:$0xff] }
 0x459   :  { %v14269_v60 = vrot.slane %v19231_v50, 7  ;;  %v4220_v35 = vsel %vm13128_vm14, %v4212_v15, %v4219_v3  ;;  %4830 = vst [vmem:[#allocation2 + $0x24] sm:$0xf] %v4829_v59  ;;  %v19235_v51 = vshll.u32 %v19234_v12, 16  ;;  %4834 = vst [vmem:[#allocation2 + $0x2c] sm:$0x1] %v4833_v1 }
 0x45a   :  { %19233 = vst [vmem:[#allocation155_spill] sm:$0xff] %v14277_v37  ;;  %6570 = vrot.lane.b32.xlu0 %v14277_v37, %s9830_s23  ;;  %4831 = vst.msk [vmem:[#allocation2 + $0x28] sm:$0xf] %vm3773_vm15, %v4220_v35  ;;  %v19236_v13 = vshll.u32 %v19091_v9, 16  ;;  %v19237_v45 = vshll.u32 %v13619_v36, 16  ;;  %v19239_v2 = vshll.u32 %v13624_v44, 16 }
 0x45b   :  { %v14290_v6 = vor.u32 %v19235_v51, %v14038_v63  ;;  %v19240_v9 = vshll.u32 %v13629_v22, 16  ;;  %v19242_v36 = vshll.u32 %v13634_v58, 16  ;;  %v19243_v44 = vshll.u32 %v13639_v5, 16  ;;  %v19246_v58 = vld [vmem:[#allocation94_spill] sm:$0xff]  ;;  %v19264_v50 = vld [vmem:[#allocation43_spill] sm:$0xff] }
 0x45c   :  { %v14299_v3 = vor.u32 %v19236_v13, %v14046_v34  ;;  %v14305_v28 = vor.u32 %v19237_v45, %v14050_v38  ;;  %v14311_v29 = vor.u32 %v19239_v2, %v14054_v26  ;;  %v19245_v22 = vshll.u32 %v13644_v49, 16  ;;  %v19249_v5 = vld [vmem:[#allocation98_spill] sm:$0xff]  ;;  %v19251_v49 = vld [vmem:[#allocation99_spill] sm:$0xff] }
 0x45d   :  { %v14317_v15 = vor.u32 %v19240_v9, %v14058_v25  ;;  %v14323_v1 = vor.u32 %v19242_v36, %v14068_v10  ;;  %v14329_v51 = vor.u32 %v19243_v44, %v14073_v42  ;;  %v19247_v9 = vshll.u32 %v19246_v58, 16  ;;  %v19254_v58 = vld [vmem:[#allocation100_spill] sm:$0xff] }
 0x45e   :  { %19238 = vst [vmem:[#allocation91_spill] sm:$0xff] %v14305_v28  ;;  %v14335_v45 = vor.u32 %v19245_v22, %v14077_v33  ;;  %v19250_v44 = vshll.u32 %v19249_v5, 16  ;;  %v19252_v22 = vshll.u32 %v19251_v49, 16  ;;  %v19256_v5 = vld [vmem:[#allocation101_spill] sm:$0xff]  ;;  %v19259_v49 = vld [vmem:[#allocation52_spill] sm:$0xff]  ;;  %v19334_v28 = vld [vmem:[#allocation146_spill] sm:$0xff] }
 0x45f   :  { %19241 = vst [vmem:[#allocation156_spill] sm:$0xff] %v14317_v15  ;;  %19244 = vst [vmem:[#allocation157_spill] sm:$0xff] %v14329_v51  ;;  %v14341_v36 = vor.u32 %v19247_v9, %v14081_v54  ;;  %v19255_v9 = vshll.u32 %v19254_v58, 16  ;;  %v19261_v58 = vld [vmem:[#allocation58_spill] sm:$0xff]  ;;  %v19327_v15 = vld [vmem:[#allocation144_spill] sm:$0xff] }
 0x460   :  { %v14347_v35 = vor.u32 %v19250_v44, %v14085_v14  ;;  %v14353_v13 = vor.u32 %v19252_v22, %v14089_v18  ;;  %v19257_v44 = vshll.u32 %v19256_v5, 16  ;;  %v5047_v62 = vld [vmem:[#allocation2 + $0x24] sm:$0xf]  ;;  %v19260_v22 = vshll.u32 %v19259_v49, 16  ;;  %v19266_v49 = vld [vmem:[#allocation96_spill] sm:$0xff] }
 0x461   :  { %19248 = vst [vmem:[#allocation94_spill] sm:$0xff] %v14341_v36  ;;  %v14359_v59 = vor.u32 %v19255_v9, %v14093_v16  ;;  %v19262_v9 = vshll.u32 %v19261_v58, 16  ;;  %v5048_v5 = vld [vmem:[#allocation2 + $0x28] sm:$0xf]  ;;  %v5219_v37 = vshrl.u32 %v5047_v62, 16  ;;  %v19265_v16 = vshll.u32 %v19264_v50, 16 }
 0x462   :  { %19253 = vst [vmem:[#allocation98_spill] sm:$0xff] %v14353_v13  ;;  %v14365_v57 = vor.u32 %v19257_v44, %v14097_v24  ;;  %v14371_v8 = vor.u32 %v19260_v22, %v14101_v17  ;;  %v5049_v44 = vld [vmem:[#allocation2 + $0x2c] sm:$0x1]  ;;  %v19267_v22 = vshll.u32 %v19266_v49, 16  ;;  %v5228_v17 = vshll.u32 %v5048_v5, 16 }
 0x463   :  { %v14377_v53 = vor.u32 %v19262_v9, %v14105_v41  ;;  %v14383_v13 = vor.u32 %v19265_v16, %v14109_v32  ;;  %v5232_v58 = vshrl.u32 %v5048_v5, 16  ;;  %v5238_v9 = vshll.u32 %v5049_v44, 16  ;;  %v19271_v5 = vld [vmem:[#allocation76_spill] sm:$0xff] }
 0x464   :  { %19258 = vst [vmem:[#allocation99_spill] sm:$0xff] %v14365_v57  ;;  %v5222_v57 = vshll.u32 %v5047_v62, 16  ;;  %v14388_v2 = vor.u32 %v19267_v22, %v14113_v19  ;;  %v5221_v12 = vrot.slane %v5219_v37, 4  ;;  %v19269_v62 = vld [vmem:[#allocation86_spill] sm:$0xff]  ;;  %v5230_v16 = vrot.slane %v5228_v17, 5 }
 0x465   :  { %19263 = vst [vmem:[#allocation100_spill] sm:$0xff] %v14377_v53  ;;  %v19270_v33 = vshll.u32 %v19269_v62, 16  ;;  %v5234_v51 = vrot.slane %v5232_v58, 4  ;;  %v5240_v10 = vrot.slane %v5238_v9, 5  ;;  %v19272_v44 = vshll.u32 %v19271_v5, 16  ;;  %v19276_v58 = vld [vmem:[#allocation83_spill] sm:$0xff] }
 0x466   :  { %19268 = vst [vmem:[#allocation101_spill] sm:$0xff] %v14388_v2  ;;  %v5224_v14 = vrot.slane %v5222_v57, 5  ;;  %v19274_v57 = vld [vmem:[#allocation89_spill] sm:$0xff]  ;;  %v19277_v9 = vshll.u32 %v19276_v58, 16  ;;  %v19279_v5 = vld [vmem:[#allocation88_spill] sm:$0xff] }
 0x467   :  { %v14395_v50 = vor.u32 %v19270_v33, %v14117_v31  ;;  %v14401_v2 = vor.u32 %v19272_v44, %v14121_v30  ;;  %v19275_v53 = vshll.u32 %v19274_v57, 16  ;;  %v5235_v33 = vor.u32 %v5234_v51, %v5230_v16  ;;  %v19320_v31 = vld [vmem:[#allocation142_spill] sm:$0xff] }
 0x468   :  { %v5225_v22 = vor.u32 %v5224_v14, %v5221_v12  ;;  %v14413_v62 = vor.u32 %v19277_v9, %v14129_v0  ;;  %v19280_v44 = vshll.u32 %v19279_v5, 16  ;;  %v19284_v9 = vld [vmem:[#allocation103_spill] sm:$0xff] }
 0x469   :  { %19273 = vst [vmem:[#allocation52_spill] sm:$0xff] %v14401_v2  ;;  %v14407_v36 = vor.u32 %v19275_v53, %v14125_v52  ;;  %v19281_v53 = vld [vmem:[#allocation97_spill] sm:$0xff]  ;;  %v5236_v17 = vrot.slane %v5235_v33, 4 }
 0x46a   :  { %19278 = vst [vmem:[#allocation58_spill] sm:$0xff] %v14413_v62  ;;  %v5226_v12 = vrot.slane %v5225_v22, 4  ;;  %v14419_v49 = vor.u32 %v19280_v44, %v14133_v4  ;;  %v19282_v51 = vshll.u32 %v19281_v53, 16  ;;  %v19285_v62 = vshll.u32 %v19284_v9, 16  ;;  %v19286_v44 = vld [vmem:[#allocation104_spill] sm:$0xff]  ;;  %v19289_v33 = vld [vmem:[#allocation105_spill] sm:$0xff] }
 0x46b   :  { %v19287_v57 = vshll.u32 %v19286_v44, 16  ;;  %v19291_v22 = vld [vmem:[#allocation132_spill] sm:$0xff]  ;;  %v19296_v53 = vld [vmem:[#allocation133_spill] sm:$0xff] }
 0x46c   :  { %v14425_v37 = vor.u32 %v19282_v51, %v14137_v11  ;;  %v14431_v14 = vor.u32 %v19285_v62, %v14141_v39  ;;  %v5231_v5 = vsel %vm9905_vm2, %v5226_v12, %v5230_v16  ;;  %v19290_v51 = vshll.u32 %v19289_v33, 16  ;;  %v19292_v39 = vld [vmem:[#allocation49_spill] sm:$0xff] }
 0x46d   :  { %v14439_v4 = vor.u32 %v19287_v57, %v14145_v56  ;;  %v5241_v62 = vsel %vm9905_vm2, %v5236_v17, %v5240_v10  ;;  %v19293_v16 = vshll.u32 %v19292_v39, 16  ;;  %v19300_v10 = vld [vmem:[#allocation107_spill] sm:$0xff] }
 0x46e   :  { %19283 = vst [vmem:[#allocation43_spill] sm:$0xff] %v14425_v37  ;;  %v14445_v58 = vor.u32 %v19290_v51, %v14149_v23  ;;  %v14456_v44 = vcombine.low %v5231_v5, %v5241_v62  ;;  %v19301_v17 = vshll.u32 %v19300_v10, 16  ;;  %v19306_v62 = vld [vmem:[#allocation136_spill] sm:$0xff]  ;;  %v19311_v51 = vld [vmem:[#allocation61_spill] sm:$0xff] }
 0x46f   :  { %19288 = vst [vmem:[#allocation96_spill] sm:$0xff] %v14439_v4  ;;  %v14453_v12 = vor.u32 %v19293_v16, %v19291_v22  ;;  %v19297_v4 = vld [vmem:[#allocation106_spill] sm:$0xff]  ;;  %v19303_v16 = vld [vmem:[#allocation135_spill] sm:$0xff]  ;;  %v19312_v39 = vshll.u32 %v19311_v51, 16  ;;  %v19321_v51 = vld [vmem:[#allocation85_spill] sm:$0xff] }
 0x470   :  { %19295 = vst [vmem:[#allocation76_spill] sm:$0xff] %v14456_v44  ;;  %v19298_v37 = vshll.u32 %v19297_v4, 16  ;;  %v14467_v9 = vor.u32 %v19301_v17, %v19299_v55  ;;  %v19307_v4 = vld [vmem:[#allocation102_spill] sm:$0xff]  ;;  %6568 = vrot.lane.b32.xlu1 %v14456_v44, %s9830_s23  ;;  %v19310_v17 = vld [vmem:[#allocation137_spill] sm:$0xff] }
 0x471   :  { %19294 = vst [vmem:[#allocation86_spill] sm:$0xff] %v14453_v12  ;;  %v19304_v12 = vld [vmem:[#allocation108_spill] sm:$0xff] }
 0x472   :  { %v14461_v33 = vor.u32 %v19298_v37, %v19296_v53  ;;  %19302 = vst [vmem:[#allocation89_spill] sm:$0xff] %v14467_v9  ;;  %v19305_v23 = vshll.u32 %v19304_v12, 16  ;;  %v19308_v37 = vshll.u32 %v19307_v4, 16  ;;  %v14487_v9 = vor.u32 %v19312_v39, %v19310_v17  ;;  %v19313_v12 = vld [vmem:[#allocation138_spill] sm:$0xff]  ;;  %v19314_v53 = vld [vmem:[#allocation55_spill] sm:$0xff] }
 0x473   :  { %v19315_v5 = vshll.u32 %v19314_v53, 16  ;;  %v19322_v39 = vshll.u32 %v19321_v51, 16  ;;  %v19324_v17 = vld [vmem:[#allocation143_spill] sm:$0xff]  ;;  %v19332_v51 = vld [vmem:[#allocation70_spill] sm:$0xff] }
 0x474   :  { %v14473_v57 = vor.u32 %v19305_v23, %v19303_v16  ;;  %v14479_v52 = vor.u32 %v19308_v37, %v19306_v62  ;;  %v19317_v37 = vld [vmem:[#allocation139_spill] sm:$0xff]  ;;  %v4849_v23 = vld [vmem:[#allocation2 + $0x48] sm:$0xf] }
 0x475   :  { %v14493_v16 = vor.u32 %v19315_v5, %v19313_v12  ;;  %v14505_v32 = vor.u32 %v19322_v39, %v19320_v31  ;;  %v19325_v53 = vld [vmem:[#allocation67_spill] sm:$0xff]  ;;  %v19333_v39 = vshll.u32 %v19332_v51, 16  ;;  %v19342_v51 = vld [vmem:[#allocation109_spill] sm:$0xff] }
 0x476   :  { %19309 = vst [vmem:[#allocation83_spill] sm:$0xff] %v14479_v52  ;;  %v19318_v52 = vld [vmem:[#allocation64_spill] sm:$0xff]  ;;  %v19326_v5 = vshll.u32 %v19325_v53, 16  ;;  %v19335_v53 = vld [vmem:[#allocation87_spill] sm:$0xff] }
 0x477   :  { %19316 = vst [vmem:[#allocation88_spill] sm:$0xff] %v14493_v16  ;;  %v19319_v2 = vshll.u32 %v19318_v52, 16  ;;  %19323 = vst [vmem:[#allocation97_spill] sm:$0xff] %v14505_v32  ;;  %v19328_v52 = vld [vmem:[#allocation84_spill] sm:$0xff] }
 0x478   :  { %v14511_v16 = vor.u32 %v19326_v5, %v19324_v17  ;;  %v19336_v5 = vshll.u32 %v19335_v53, 16  ;;  %v19341_v17 = vld [vmem:[#allocation148_spill] sm:$0xff]  ;;  %v19346_v53 = vld [vmem:[#allocation110_spill] sm:$0xff] }
 0x479   :  { %v14499_v44 = vor.u32 %v19319_v2, %v19317_v37  ;;  %v19329_v2 = vshll.u32 %v19328_v52, 16  ;;  %v19331_v37 = vld [vmem:[#allocation145_spill] sm:$0xff] }
 0x47a   :  { %v14523_v32 = vor.u32 %v19333_v39, %v19331_v37  ;;  %v14529_v7 = vor.u32 %v19336_v5, %v19334_v28  ;;  %v19338_v52 = vld [vmem:[#allocation73_spill] sm:$0xff]  ;;  %v19343_v39 = vshll.u32 %v19342_v51, 16  ;;  %v19347_v5 = vshll.u32 %v19346_v53, 16  ;;  %v19349_v28 = vld [vmem:[#allocation150_spill] sm:$0xff]  ;;  %v19354_v51 = vld [vmem:[#allocation112_spill] sm:$0xff] }
 0x47b   :  { %v14517_v26 = vor.u32 %v19329_v2, %v19327_v15  ;;  %v19339_v2 = vshll.u32 %v19338_v52, 16  ;;  %v19345_v37 = vld [vmem:[#allocation149_spill] sm:$0xff]  ;;  %v19350_v52 = vld [vmem:[#allocation111_spill] sm:$0xff] }
 0x47c   :  { %19337 = vst [vmem:[#allocation104_spill] sm:$0xff] %v14529_v7  ;;  %v14541_v15 = vor.u32 %v19343_v39, %v19341_v17  ;;  %v14547_v7 = vor.u32 %v19347_v5, %v19345_v37  ;;  %v19355_v39 = vshll.u32 %v19354_v51, 16  ;;  %v19357_v17 = vld [vmem:[#allocation152_spill] sm:$0xff]  ;;  %v19358_v53 = vld [vmem:[#allocation113_spill] sm:$0xff]  ;;  %v19365_v51 = vld [vmem:[#allocation115_spill] sm:$0xff] }
 0x47d   :  { %19330 = vst [vmem:[#allocation103_spill] sm:$0xff] %v14517_v26  ;;  %v14535_v26 = vor.u32 %v19339_v2, %v14221_v21  ;;  %v19351_v2 = vshll.u32 %v19350_v52, 16  ;;  %v19353_v21 = vld [vmem:[#allocation151_spill] sm:$0xff]  ;;  %v19359_v5 = vshll.u32 %v19358_v53, 16  ;;  %v19361_v37 = vld [vmem:[#allocation153_spill] sm:$0xff]  ;;  %v19362_v52 = vld [vmem:[#allocation114_spill] sm:$0xff] }
 0x47e   :  { %19344 = vst [vmem:[#allocation132_spill] sm:$0xff] %v14541_v15  ;;  %19348 = vst [vmem:[#allocation49_spill] sm:$0xff] %v14547_v7  ;;  %v14559_v15 = vor.u32 %v19355_v39, %v19353_v21  ;;  %v19366_v39 = vshll.u32 %v19365_v51, 16  ;;  %v4853_v21 = vld [vmem:[#allocation2 + $0x50] sm:$0x1]  ;;  %v4680_v53 = vrot.slane %v14261_v47, 4 }
 0x47f   :  { %19340 = vst [vmem:[#allocation105_spill] sm:$0xff] %v14535_v26  ;;  %v14553_v26 = vor.u32 %v19351_v2, %v19349_v28  ;;  %v14565_v7 = vor.u32 %v19359_v5, %v19357_v17  ;;  %v19363_v2 = vshll.u32 %v19362_v52, 16  ;;  %v19364_v28 = vld [vmem:[#allocation154_spill] sm:$0xff]  ;;  %v19368_v5 = vld [vmem:[#allocation116_spill] sm:$0xff]  ;;  %v4705_v52 = vrot.slane %v14265_v40, 4 }
 0x480   :  { %19356 = vst [vmem:[#allocation134_spill] sm:$0xff] %v14559_v15  ;;  %v14577_v15 = vor.u32 %v19366_v39, %v19364_v28  ;;  %v19373_v39 = vld [vmem:[#allocation118_spill] sm:$0xff]  ;;  %v19382_v51 = vrot.slane %v14030_v27, 4  ;;  %v19385_v27 = vrot.slane %v14073_v42, 4  ;;  %v19388_v42 = vrot.slane %v14097_v24, 4 }
 0x481   :  { %19352 = vst [vmem:[#allocation106_spill] sm:$0xff] %v14553_v26  ;;  %19360 = vst [vmem:[#allocation107_spill] sm:$0xff] %v14565_v7  ;;  %v14571_v26 = vor.u32 %v19363_v2, %v19361_v37  ;;  %v19369_v7 = vshll.u32 %v19368_v5, 16  ;;  %v19370_v2 = vld [vmem:[#allocation117_spill] sm:$0xff] }
 0x482   :  { %19367 = vst [vmem:[#allocation108_spill] sm:$0xff] %v14577_v15  ;;  %v19371_v17 = vshll.u32 %v19370_v2, 16  ;;  %v19374_v15 = vshll.u32 %v19373_v39, 16  ;;  %v19375_v5 = vld [vmem:[#allocation93_spill] sm:$0xff]  ;;  %v19377_v2 = vld [vmem:[#allocation90_spill] sm:$0xff]  ;;  %v19379_v39 = vrot.slane %v14038_v63, 4 }
 0x483   :  { %v14583_v4 = vor.u32 %v19369_v7, %v14253_v48  ;;  %v19376_v7 = vshll.u32 %v19375_v5, 16  ;;  %v4850_v5 = vsel %vm13542_vm1, %v14290_v6, %v4849_v23  ;;  %v4322_v6 = vsel %vm13128_vm14, %v19385_v27, %v14335_v45 }
 0x484   :  { %v14589_v10 = vor.u32 %v19371_v17, %v14257_v20  ;;  %v14595_v37 = vor.u32 %v19374_v15, %v14261_v47  ;;  %v19378_v17 = vshll.u32 %v19377_v2, 16  ;;  %v4271_v15 = vsel %vm13128_vm14, %v19379_v39, %v14299_v3  ;;  %4851 = vst [vmem:[#allocation2 + $0x48] sm:$0xf] %v4850_v5  ;;  %4873 = vst.msk [vmem:[#allocation2 + $0x70] sm:$0xf] %vm3773_vm15, %v4322_v6  ;;  %v19409_v6 = vld [vmem:[#allocation150_spill] sm:$0xff] }
 0x485   :  { %v14601_v28 = vor.u32 %v19376_v7, %v14265_v40  ;;  %4852 = vst.msk [vmem:[#allocation2 + $0x4c] sm:$0xf] %vm3773_vm15, %v4271_v15  ;;  %v19380_v7 = vrot.slane %v14046_v34, 4  ;;  %v19383_v3 = vrot.slane %v14050_v38, 4  ;;  %v19384_v34 = vrot.slane %v14058_v25, 4  ;;  %v19417_v40 = vld [vmem:[#allocation79_spill] sm:$0xff] }
 0x486   :  { %19372 = vst [vmem:[#allocation136_spill] sm:$0xff] %v14589_v10  ;;  %v4712_v10 = vor.u32 %v19378_v17, %v14269_v60  ;;  %v19381_v17 = vld [vmem:[#allocation141_spill] sm:$0xff]  ;;  %v19386_v38 = vrot.slane %v14081_v54, 4  ;;  %v19387_v23 = vrot.slane %v14089_v18, 4  ;;  %v19389_v54 = vrot.slane %v14105_v41, 4 }
 0x487   :  { %v4854_v2 = vsel %vm11573_vm3, %v19380_v7, %v4853_v21  ;;  %v4254_v63 = vsel %vm13128_vm14, %v19382_v51, %v19381_v17  ;;  %v4288_v39 = vsel %vm13128_vm14, %v19383_v3, %v14311_v29  ;;  %v4305_v21 = vsel %vm13128_vm14, %v19384_v34, %v14323_v1  ;;  %v14677_v41 = vld [vmem:[#allocation2 + $0x3c] sm:$0xf]  ;;  %v19405_v3 = vld [vmem:[#allocation49_spill] sm:$0xff]  ;;  %v19408_v27 = vld [vmem:[#allocation134_spill] sm:$0xff] }
 0x488   :  { %4855 = vst [vmem:[#allocation2 + $0x50] sm:$0x1] %v4854_v2  ;;  %v4339_v29 = vsel %vm13128_vm14, %v19386_v38, %v14347_v35  ;;  %v4356_v25 = vsel %vm13128_vm14, %v19387_v23, %v14359_v59  ;;  %4845 = vst.msk [vmem:[#allocation2 + $0x40] sm:$0xf] %vm3773_vm15, %v4254_v63  ;;  %v4373_v1 = vsel %vm13128_vm14, %v19388_v42, %v14371_v8  ;;  %v19390_v18 = vrot.slane %v14113_v19, 4  ;;  %v19402_v2 = vld [vmem:[#allocation105_spill] sm:$0xff] }
 0x489   :  { %4859 = vst.msk [vmem:[#allocation2 + $0x58] sm:$0xf] %vm3773_vm15, %v4288_v39  ;;  %v4390_v35 = vsel %vm13128_vm14, %v19389_v54, %v14383_v13  ;;  %v19391_v45 = vrot.slane %v14121_v30, 4  ;;  %4866 = vst.msk [vmem:[#allocation2 + $0x64] sm:$0xf] %vm3773_vm15, %v4305_v21  ;;  %v19392_v19 = vrot.slane %v14129_v0, 4 }
 0x48a   :  { %v4407_v59 = vsel %vm13128_vm14, %v19390_v18, %v14395_v50  ;;  %4880 = vst.msk [vmem:[#allocation2 + $0x7c] sm:$0xf] %vm3773_vm15, %v4339_v29  ;;  %4887 = vst.msk [vmem:[#allocation2 + $0x88] sm:$0xf] %vm3773_vm15, %v4356_v25  ;;  %v19393_v30 = vrot.slane %v14137_v11, 4  ;;  %v19395_v51 = vrot.slane %v19291_v22, 4 }
 0x48b   :  { %v4424_v24 = vsel %vm13128_vm14, %v19391_v45, %v14407_v36  ;;  %v4441_v8 = vsel %vm13128_vm14, %v19392_v19, %v14419_v49  ;;  %v19394_v36 = vrot.slane %v14145_v56, 4  ;;  %4894 = vst.msk [vmem:[#allocation2 + $0x94] sm:$0xf] %vm3773_vm15, %v4373_v1  ;;  %4901 = vst.msk [vmem:[#allocation2 + $0xa0] sm:$0xf] %vm3773_vm15, %v4390_v35  ;;  %v19397_v22 = vrot.slane %v19306_v62, 4 }
 0x48c   :  { %v4458_v13 = vsel %vm13128_vm14, %v19393_v30, %v14431_v14  ;;  %v4492_v0 = vsel %vm13128_vm14, %v19395_v51, %v14461_v33  ;;  %4908 = vst.msk [vmem:[#allocation2 + $0xac] sm:$0xf] %vm3773_vm15, %v4407_v59  ;;  %4915 = vst.msk [vmem:[#allocation2 + $0xb8] sm:$0xf] %vm3773_vm15, %v4424_v24  ;;  %v4846_v11 = vld [vmem:[#allocation2 + $0x44] sm:$0x1]  ;;  %v4713_v19 = vsel %vm13128_vm14, %v4705_v52, %v4712_v10 }
 0x48d   :  { %v4475_v50 = vsel %vm13128_vm14, %v19394_v36, %v14445_v58  ;;  %v4856_v49 = vld [vmem:[#allocation2 + $0x54] sm:$0xf]  ;;  %v4860_v56 = vld [vmem:[#allocation2 + $0x5c] sm:$0x1]  ;;  %v19396_v14 = vrot.slane %v19299_v55, 4  ;;  %v4526_v33 = vsel %vm13128_vm14, %v19397_v22, %v14487_v9  ;;  %v19398_v15 = vrot.slane %v19313_v12, 4 }
 0x48e   :  { %v19399_v7 = vrot.slane %v19320_v31, 4  ;;  %4922 = vst.msk [vmem:[#allocation2 + $0xc4] sm:$0xf] %vm3773_vm15, %v4441_v8  ;;  %4929 = vst.msk [vmem:[#allocation2 + $0xe8] sm:$0xf] %vm3773_vm15, %v4458_v13  ;;  %v19406_v39 = vld [vmem:[#allocation148_spill] sm:$0xff] }
 0x48f   :  { %v4509_v58 = vsel %vm13128_vm14, %v19396_v14, %v14473_v57  ;;  %v4543_v5 = vsel %vm13128_vm14, %v19398_v15, %v14499_v44  ;;  %4936 = vst.msk [vmem:[#allocation2 + $0xf4] sm:$0xf] %vm3773_vm15, %v4475_v50  ;;  %4943 = vst.msk [vmem:[#allocation2 + $0x100] sm:$0xf] %vm3773_vm15, %v4492_v0  ;;  %v4863_v9 = vld [vmem:[#allocation2 + $0x60] sm:$0xf] }
 0x490   :  { %v4560_v55 = vsel %vm13128_vm14, %v19399_v7, %v14511_v16  ;;  %v4867_v57 = vld [vmem:[#allocation2 + $0x68] sm:$0x1]  ;;  %v14727_v62 = vld [vmem:[#allocation2 + $0x78] sm:$0xf]  ;;  %v19407_v34 = vrot.slane %v19406_v39, 4  ;;  %v19410_v38 = vrot.slane %v19409_v6, 4 }
 0x491   :  { %v19400_v44 = vld [vmem:[#allocation144_spill] sm:$0xff]  ;;  %v19403_v16 = vld [vmem:[#allocation146_spill] sm:$0xff]  ;;  %4950 = vst.msk [vmem:[#allocation2 + $0x10c] sm:$0xf] %vm3773_vm15, %v4509_v58  ;;  %4957 = vst.msk [vmem:[#allocation2 + $0x118] sm:$0xf] %vm3773_vm15, %v4526_v33 }
 0x492   :  { %v19401_v12 = vrot.slane %v19400_v44, 4  ;;  %v19404_v17 = vrot.slane %v19403_v16, 4  ;;  %v4611_v21 = vsel %vm13128_vm14, %v19407_v34, %v19405_v3  ;;  %v4628_v29 = vsel %vm13128_vm14, %v19410_v38, %v19408_v27  ;;  %4964 = vst.msk [vmem:[#allocation2 + $0x124] sm:$0xf] %vm3773_vm15, %v4543_v5  ;;  %4971 = vst.msk [vmem:[#allocation2 + $0x130] sm:$0xf] %vm3773_vm15, %v4560_v55 }
 0x493   :  { %v4881_v23 = vld [vmem:[#allocation2 + $0x80] sm:$0x1]  ;;  %v4874_v25 = vld [vmem:[#allocation2 + $0x74] sm:$0x1]  ;;  %v19411_v42 = vld [vmem:[#allocation152_spill] sm:$0xff]  ;;  %v19415_v45 = vrot.slane %v14257_v20, 4 }
 0x494   :  { %v4577_v31 = vsel %vm13128_vm14, %v19401_v12, %v14523_v32  ;;  %v4594_v63 = vsel %vm13128_vm14, %v19404_v17, %v19402_v2  ;;  %v4870_v32 = vld [vmem:[#allocation2 + $0x6c] sm:$0xf]  ;;  %v19412_v1 = vrot.slane %v19411_v42, 4  ;;  %4992 = vst.msk [vmem:[#allocation2 + $0x154] sm:$0xf] %vm3773_vm15, %v4611_v21  ;;  %v19418_v10 = vrot.slane %v19417_v40, 4 }
 0x495   :  { %v19413_v35 = vld [vmem:[#allocation154_spill] sm:$0xff]  ;;  %v4679_v24 = vsel %vm13128_vm14, %v19415_v45, %v14595_v37  ;;  %4978 = vst.msk [vmem:[#allocation2 + $0x13c] sm:$0xf] %vm3773_vm15, %v4577_v31  ;;  %4985 = vst.msk [vmem:[#allocation2 + $0x148] sm:$0xf] %vm3773_vm15, %v4594_v63  ;;  %v19416_v37 = vld [vmem:[#allocation140_spill] sm:$0xff] }
 0x496   :  { %v4645_v54 = vsel %vm13128_vm14, %v19412_v1, %v14571_v26  ;;  %v19414_v18 = vrot.slane %v19413_v35, 4  ;;  %4999 = vst.msk [vmem:[#allocation2 + $0x160] sm:$0xf] %vm3773_vm15, %v4628_v29  ;;  %v14776_v26 = vld [vmem:[#allocation2 + $0x90] sm:$0xf]  ;;  %v4843_v46 = vsel %vm13542_vm1, %v19416_v37, %v14677_v41  ;;  %v4847_v52 = vsel %vm11573_vm3, %v19418_v10, %v4846_v11  ;;  %v19420_v36 = vld [vmem:[#allocation120_spill] sm:$0xff] }
 0x497   :  { %v4888_v20 = vld [vmem:[#allocation2 + $0x8c] sm:$0x1]  ;;  %v19419_v30 = vld [vmem:[#allocation91_spill] sm:$0xff]  ;;  %v19421_v50 = vrot.slane %v19420_v36, 4  ;;  %5006 = vst.msk [vmem:[#allocation2 + $0x16c] sm:$0xf] %vm3773_vm15, %v4645_v54 }
 0x498   :  { %v4662_v59 = vsel %vm13128_vm14, %v19414_v18, %v14583_v4  ;;  %v14778_v4 = vld [vmem:[#allocation2 + $0x84] sm:$0xf]  ;;  %v5057_v8 = vld [vmem:[#allocation2 + $0x4c] sm:$0xf]  ;;  %v4857_v13 = vsel %vm13542_vm1, %v19419_v30, %v4856_v49  ;;  %5020 = vst.msk [vmem:[#allocation2 + $0x184] sm:$0xf] %vm3773_vm15, %v4679_v24 }
 0x499   :  { %v4861_v51 = vsel %vm11573_vm3, %v19421_v50, %v4860_v56  ;;  %5013 = vst.msk [vmem:[#allocation2 + $0x178] sm:$0xf] %vm3773_vm15, %v4662_v59  ;;  %5034 = vst.msk [vmem:[#allocation2 + $0x19c] sm:$0xf] %vm3773_vm15, %v4713_v19  ;;  %v4895_v41 = vld [vmem:[#allocation2 + $0x98] sm:$0x1] }
 0x49a   :  { %v14799_v0 = vld [vmem:[#allocation2 + $0x9c] sm:$0xf]  ;;  %v4902_v11 = vld [vmem:[#allocation2 + $0xa4] sm:$0x1]  ;;  %v5056_v14 = vld [vmem:[#allocation2 + $0x48] sm:$0xf] }
 0x49b   :  { %v5058_v58 = vld [vmem:[#allocation2 + $0x50] sm:$0x1]  ;;  %v5300_v49 = vshll.u32 %v5057_v8, 16  ;;  %v5304_v22 = vshrl.u32 %v5057_v8, 16  ;;  %v19422_v33 = vld [vmem:[#allocation156_spill] sm:$0xff]  ;;  %v19423_v15 = vld [vmem:[#allocation121_spill] sm:$0xff] }
 0x49c   :  { %v4864_v56 = vsel %vm13542_vm1, %v19422_v33, %v4863_v9  ;;  %v19424_v5 = vrot.slane %v19423_v15, 4  ;;  %4844 = vst [vmem:[#allocation2 + $0x3c] sm:$0xf] %v4843_v46  ;;  %4848 = vst [vmem:[#allocation2 + $0x44] sm:$0x1] %v4847_v52  ;;  %v5291_v31 = vshrl.u32 %v5056_v14, 16 }
 0x49d   :  { %4858 = vst [vmem:[#allocation2 + $0x54] sm:$0xf] %v4857_v13  ;;  %4862 = vst [vmem:[#allocation2 + $0x5c] sm:$0x1] %v4861_v51  ;;  %v4905_v55 = vld [vmem:[#allocation2 + $0xa8] sm:$0xf] }
 0x49e   :  { %v4868_v7 = vsel %vm11573_vm3, %v19424_v5, %v4867_v57  ;;  %v4909_v44 = vld [vmem:[#allocation2 + $0xb0] sm:$0x1]  ;;  %v4912_v12 = vld [vmem:[#allocation2 + $0xb4] sm:$0xf]  ;;  %v5294_v2 = vshll.u32 %v5056_v14, 16  ;;  %v5310_v16 = vshll.u32 %v5058_v58, 16 }
 0x49f   :  { %v19425_v17 = vld [vmem:[#allocation157_spill] sm:$0xff]  ;;  %4865 = vst [vmem:[#allocation2 + $0x60] sm:$0xf] %v4864_v56  ;;  %4869 = vst [vmem:[#allocation2 + $0x68] sm:$0x1] %v4868_v7  ;;  %v14811_v57 = vrot.slane %v5300_v49, 5 }
 0x4a0   :  { %v4871_v63 = vsel %vm13542_vm1, %v19425_v17, %v4870_v32  ;;  %v4919_v9 = vld [vmem:[#allocation2 + $0xc0] sm:$0xf]  ;;  %v4923_v3 = vld [vmem:[#allocation2 + $0xc8] sm:$0x1]  ;;  %v4916_v39 = vld [vmem:[#allocation2 + $0xbc] sm:$0x1] }
 0x4a1   :  { %v5306_v34 = vrot.slane %v5304_v22, 4  ;;  %v19426_v21 = vld [vmem:[#allocation122_spill] sm:$0xff]  ;;  %4872 = vst [vmem:[#allocation2 + $0x6c] sm:$0xf] %v4871_v63  ;;  %v14821_v32 = vld [vmem:[#allocation2 + $0xf0] sm:$0xf] }
 0x4a2   :  { %v19427_v27 = vrot.slane %v19426_v21, 4  ;;  %v19428_v38 = vld [vmem:[#allocation94_spill] sm:$0xff]  ;;  %v14823_v42 = vld [vmem:[#allocation2 + $0xe4] sm:$0xf]  ;;  %v5293_v1 = vrot.slane %v5291_v31, 4  ;;  %v5296_v54 = vrot.slane %v5294_v2, 5 }
 0x4a3   :  { %v4878_v29 = vsel %vm13542_vm1, %v19428_v38, %v14727_v62  ;;  %v14825_v35 = vrot.slane %v5310_v16, 5  ;;  %v19429_v18 = vld [vmem:[#allocation123_spill] sm:$0xff]  ;;  %v4930_v24 = vld [vmem:[#allocation2 + $0xec] sm:$0x1]  ;;  %v14831_v19 = vld [vmem:[#allocation2 + $0xfc] sm:$0xf]  ;;  %v5307_v62 = vor.u32 %v5306_v34, %v14811_v57 }
 0x4a4   :  { %v4875_v6 = vsel %vm11573_vm3, %v19427_v27, %v4874_v25  ;;  %v19430_v59 = vrot.slane %v19429_v18, 4  ;;  %4879 = vst [vmem:[#allocation2 + $0x78] sm:$0xf] %v4878_v29  ;;  %v4937_v25 = vld [vmem:[#allocation2 + $0xf8] sm:$0x1]  ;;  %v19431_v8 = vld [vmem:[#allocation98_spill] sm:$0xff]  ;;  %v5297_v51 = vor.u32 %v5296_v54, %v5293_v1 }
 0x4a5   :  { %4876 = vst [vmem:[#allocation2 + $0x74] sm:$0x1] %v4875_v6  ;;  %v4885_v37 = vsel %vm13542_vm1, %v19431_v8, %v14778_v4  ;;  %v19432_v46 = vld [vmem:[#allocation124_spill] sm:$0xff]  ;;  %v14846_v30 = vld [vmem:[#allocation2 + $0x108] sm:$0xf]  ;;  %v19435_v14 = vld [vmem:[#allocation125_spill] sm:$0xff] }
 0x4a6   :  { %v4882_v45 = vsel %vm11573_vm3, %v19430_v59, %v4881_v23  ;;  %v19433_v40 = vrot.slane %v19432_v46, 4  ;;  %v19434_v23 = vld [vmem:[#allocation99_spill] sm:$0xff]  ;;  %v4944_v36 = vld [vmem:[#allocation2 + $0x104] sm:$0x1]  ;;  %v19436_v4 = vrot.slane %v19435_v14, 4  ;;  %v19438_v22 = vld [vmem:[#allocation126_spill] sm:$0xff] }
 0x4a7   :  { %v4892_v52 = vsel %vm13542_vm1, %v19434_v23, %v14776_v26  ;;  %4883 = vst [vmem:[#allocation2 + $0x80] sm:$0x1] %v4882_v45  ;;  %v4951_v13 = vld [vmem:[#allocation2 + $0x110] sm:$0x1]  ;;  %v14848_v50 = vld [vmem:[#allocation2 + $0x114] sm:$0xf] }
 0x4a8   :  { %v4889_v10 = vsel %vm11573_vm3, %v19433_v40, %v4888_v20  ;;  %v4896_v58 = vsel %vm11573_vm3, %v19436_v4, %v4895_v41  ;;  %v19437_v20 = vld [vmem:[#allocation100_spill] sm:$0xff]  ;;  %v19439_v26 = vrot.slane %v19438_v22, 4  ;;  %4886 = vst [vmem:[#allocation2 + $0x84] sm:$0xf] %v4885_v37  ;;  %4893 = vst [vmem:[#allocation2 + $0x90] sm:$0xf] %v4892_v52 }
 0x4a9   :  { %v4899_v49 = vsel %vm13542_vm1, %v19437_v20, %v14799_v0  ;;  %4890 = vst [vmem:[#allocation2 + $0x8c] sm:$0x1] %v4889_v10  ;;  %v14862_v56 = vld [vmem:[#allocation2 + $0x120] sm:$0xf]  ;;  %v4965_v15 = vld [vmem:[#allocation2 + $0x128] sm:$0x1] }
 0x4aa   :  { %v4903_v33 = vsel %vm11573_vm3, %v19439_v26, %v4902_v11  ;;  %v4958_v5 = vld [vmem:[#allocation2 + $0x11c] sm:$0x1]  ;;  %v5308_v7 = vrot.slane %v5307_v62, 4  ;;  %v19440_v31 = vld [vmem:[#allocation101_spill] sm:$0xff]  ;;  %v19441_v2 = vld [vmem:[#allocation127_spill] sm:$0xff]  ;;  %v5298_v21 = vrot.slane %v5297_v51, 4 }
 0x4ab   :  { %v4906_v41 = vsel %vm13542_vm1, %v19440_v31, %v4905_v55  ;;  %v19442_v16 = vrot.slane %v19441_v2, 4  ;;  %v19443_v17 = vld [vmem:[#allocation52_spill] sm:$0xff]  ;;  %4897 = vst [vmem:[#allocation2 + $0x98] sm:$0x1] %v4896_v58  ;;  %4900 = vst [vmem:[#allocation2 + $0x9c] sm:$0xf] %v4899_v49 }
 0x4ac   :  { %v4913_v11 = vsel %vm13542_vm1, %v19443_v17, %v4912_v12  ;;  %4904 = vst [vmem:[#allocation2 + $0xa4] sm:$0x1] %v4903_v33  ;;  %v14874_v63 = vld [vmem:[#allocation2 + $0x138] sm:$0xf]  ;;  %v4968_v34 = vld [vmem:[#allocation2 + $0x12c] sm:$0xf] }
 0x4ad   :  { %v4910_v0 = vsel %vm11573_vm3, %v19442_v16, %v4909_v44  ;;  %v19444_v27 = vld [vmem:[#allocation128_spill] sm:$0xff]  ;;  %v19446_v38 = vld [vmem:[#allocation58_spill] sm:$0xff]  ;;  %v19447_v29 = vld [vmem:[#allocation129_spill] sm:$0xff]  ;;  %4907 = vst [vmem:[#allocation2 + $0xa8] sm:$0xf] %v4906_v41  ;;  %vm19501_vm14 = vcmask 1041408  }
 0x4ae   :  { %v19445_v6 = vrot.slane %v19444_v27, 4  ;;  %v4920_v44 = vsel %vm13542_vm1, %v19446_v38, %v4919_v9  ;;  %v19448_v1 = vrot.slane %v19447_v29, 4  ;;  %4911 = vst [vmem:[#allocation2 + $0xb0] sm:$0x1] %v4910_v0  ;;  %4914 = vst [vmem:[#allocation2 + $0xb4] sm:$0xf] %v4913_v11 }
 0x4af   :  { %v4979_v54 = vld [vmem:[#allocation2 + $0x140] sm:$0x1]  ;;  %v4972_v18 = vld [vmem:[#allocation2 + $0x134] sm:$0x1]  ;;  %v14887_v59 = vld [vmem:[#allocation2 + $0x150] sm:$0xf] }
 0x4b0   :  { %v4917_v55 = vsel %vm11573_vm3, %v19445_v6, %v4916_v39  ;;  %v4924_v12 = vsel %vm11573_vm3, %v19448_v1, %v4923_v3  ;;  %v5313_v39 = vsel %vm9905_vm2, %v5308_v7, %v14825_v35  ;;  %v19450_v62 = vld [vmem:[#allocation43_spill] sm:$0xff]  ;;  %v19451_v8 = vld [vmem:[#allocation130_spill] sm:$0xff]  ;;  %v19453_v46 = vld [vmem:[#allocation96_spill] sm:$0xff]  ;;  %4921 = vst [vmem:[#allocation2 + $0xc0] sm:$0xf] %v4920_v44 }
 0x4b1   :  { %v4927_v9 = vsel %vm13542_vm1, %v19450_v62, %v14823_v42  ;;  %v19452_v37 = vrot.slane %v19451_v8, 4  ;;  %v4934_v40 = vsel %vm13542_vm1, %v19453_v46, %v14821_v32  ;;  %4918 = vst [vmem:[#allocation2 + $0xbc] sm:$0x1] %v4917_v55  ;;  %4925 = vst [vmem:[#allocation2 + $0xc8] sm:$0x1] %v4924_v12  ;;  %v5303_v42 = vsel %vm9905_vm2, %v5298_v21, %v14811_v57  ;;  %v19454_v52 = vld [vmem:[#allocation131_spill] sm:$0xff] }
 0x4b2   :  { %v4982_v10 = vld [vmem:[#allocation2 + $0x144] sm:$0xf]  ;;  %v4993_v35 = vld [vmem:[#allocation2 + $0x158] sm:$0x1]  ;;  %v4986_v23 = vld [vmem:[#allocation2 + $0x14c] sm:$0x1]  ;;  %v14919_v26 = vcombine.low %v5303_v42, %v5313_v39 }
 0x4b3   :  { %v4931_v3 = vsel %vm11573_vm3, %v19452_v37, %v4930_v24  ;;  %v19455_v51 = vrot.slane %v19454_v52, 4  ;;  %v19456_v14 = vld [vmem:[#allocation86_spill] sm:$0xff]  ;;  %v19457_v4 = vld [vmem:[#allocation133_spill] sm:$0xff]  ;;  %4928 = vst [vmem:[#allocation2 + $0xe4] sm:$0xf] %v4927_v9  ;;  %v19460_v7 = vld [vmem:[#allocation135_spill] sm:$0xff] }
 0x4b4   :  { %v4941_v32 = vsel %vm13542_vm1, %v19456_v14, %v14831_v19  ;;  %v19458_v58 = vrot.slane %v19457_v4, 4  ;;  %4932 = vst [vmem:[#allocation2 + $0xec] sm:$0x1] %v4931_v3  ;;  %4935 = vst [vmem:[#allocation2 + $0xf0] sm:$0xf] %v4934_v40  ;;  %v19461_v19 = vrot.slane %v19460_v7, 4  ;;  %6574 = vrot.lane.b32.xlu0 %v14919_v26, %s9830_s23 }
 0x4b5   :  { %v4938_v24 = vsel %vm11573_vm3, %v19455_v51, %v4937_v25  ;;  %v5003_v49 = vld [vmem:[#allocation2 + $0x168] sm:$0xf]  ;;  %v4996_v57 = vld [vmem:[#allocation2 + $0x15c] sm:$0xf]  ;;  %v5007_v22 = vld [vmem:[#allocation2 + $0x170] sm:$0x1] }
 0x4b6   :  { %v4945_v20 = vsel %vm11573_vm3, %v19458_v58, %v4944_v36  ;;  %v19459_v25 = vld [vmem:[#allocation89_spill] sm:$0xff]  ;;  %v4952_v31 = vsel %vm11573_vm3, %v19461_v19, %v4951_v13  ;;  %v19462_v36 = vld [vmem:[#allocation83_spill] sm:$0xff]  ;;  %4939 = vst [vmem:[#allocation2 + $0xf8] sm:$0x1] %v4938_v24  ;;  %4942 = vst [vmem:[#allocation2 + $0xfc] sm:$0xf] %v4941_v32 }
 0x4b7   :  { %v4948_v33 = vsel %vm13542_vm1, %v19459_v25, %v14846_v30  ;;  %v4955_v41 = vsel %vm13542_vm1, %v19462_v36, %v14848_v50  ;;  %4946 = vst [vmem:[#allocation2 + $0x104] sm:$0x1] %v4945_v20  ;;  %v5000_v2 = vld [vmem:[#allocation2 + $0x164] sm:$0x1]  ;;  %v5017_v16 = vld [vmem:[#allocation2 + $0x180] sm:$0xf]  ;;  %vm19502_vm15 = vmmov %vm19501_vm14 }
 0x4b8   :  { %v5010_v0 = vld [vmem:[#allocation2 + $0x174] sm:$0xf]  ;;  %v19463_v17 = vld [vmem:[#allocation137_spill] sm:$0xff]  ;;  %v19465_v21 = vld [vmem:[#allocation88_spill] sm:$0xff]  ;;  %4949 = vst [vmem:[#allocation2 + $0x108] sm:$0xf] %v4948_v33 }
 0x4b9   :  { %v19464_v11 = vrot.slane %v19463_v17, 4  ;;  %v4962_v13 = vsel %vm13542_vm1, %v19465_v21, %v14862_v56  ;;  %v19466_v27 = vld [vmem:[#allocation139_spill] sm:$0xff]  ;;  %v19468_v55 = vld [vmem:[#allocation97_spill] sm:$0xff]  ;;  %4953 = vst [vmem:[#allocation2 + $0x110] sm:$0x1] %v4952_v31  ;;  %v19474_v8 = vld [vmem:[#allocation104_spill] sm:$0xff] }
 0x4ba   :  { %v19467_v6 = vrot.slane %v19466_v27, 4  ;;  %v4969_v38 = vsel %vm13542_vm1, %v19468_v55, %v4968_v34  ;;  %4956 = vst [vmem:[#allocation2 + $0x114] sm:$0xf] %v4955_v41  ;;  %v5021_v44 = vld [vmem:[#allocation2 + $0x188] sm:$0x1]  ;;  %v19469_v1 = vld [vmem:[#allocation143_spill] sm:$0xff]  ;;  %v4983_v37 = vsel %vm13542_vm1, %v19474_v8, %v4982_v10 }
 0x4bb   :  { %v4959_v30 = vsel %vm11573_vm3, %v19464_v11, %v4958_v5  ;;  %v5014_v29 = vld [vmem:[#allocation2 + $0x17c] sm:$0x1]  ;;  %v5031_v5 = vld [vmem:[#allocation2 + $0x198] sm:$0xf]  ;;  %v19470_v56 = vrot.slane %v19469_v1, 4  ;;  %v19472_v34 = vld [vmem:[#allocation145_spill] sm:$0xff] }
 0x4bc   :  { %v4966_v50 = vsel %vm11573_vm3, %v19467_v6, %v4965_v15  ;;  %v19471_v15 = vld [vmem:[#allocation103_spill] sm:$0xff]  ;;  %v19473_v62 = vrot.slane %v19472_v34, 4  ;;  %4960 = vst [vmem:[#allocation2 + $0x11c] sm:$0x1] %v4959_v30  ;;  %4963 = vst [vmem:[#allocation2 + $0x120] sm:$0xf] %v4962_v13 }
 0x4bd   :  { %v4973_v12 = vsel %vm11573_vm3, %v19470_v56, %v4972_v18  ;;  %v4976_v39 = vsel %vm13542_vm1, %v19471_v15, %v14874_v63  ;;  %4967 = vst [vmem:[#allocation2 + $0x128] sm:$0x1] %v4966_v50  ;;  %4970 = vst [vmem:[#allocation2 + $0x12c] sm:$0xf] %v4969_v38  ;;  %v5035_v3 = vld [vmem:[#allocation2 + $0x1a0] sm:$0x1] }
 0x4be   :  { %v4980_v9 = vsel %vm11573_vm3, %v19473_v62, %v4979_v54  ;;  %v19475_v18 = vld [vmem:[#allocation147_spill] sm:$0xff]  ;;  %v19477_v63 = vld [vmem:[#allocation132_spill] sm:$0xff]  ;;  %v19478_v54 = vld [vmem:[#allocation149_spill] sm:$0xff]  ;;  %4974 = vst [vmem:[#allocation2 + $0x134] sm:$0x1] %v4973_v12  ;;  %v19487_v36 = vrot.slane %v14253_v48, 4 }
 0x4bf   :  { %v19476_v46 = vrot.slane %v19475_v18, 4  ;;  %v4990_v42 = vsel %vm13542_vm1, %v19477_v63, %v14887_v59  ;;  %v19479_v52 = vrot.slane %v19478_v54, 4  ;;  %v19480_v51 = vld [vmem:[#allocation106_spill] sm:$0xff]  ;;  %v5053_v14 = vld [vmem:[#allocation2 + $0x3c] sm:$0xf]  ;;  %v19483_v58 = vld [vmem:[#allocation107_spill] sm:$0xff] }
 0x4c0   :  { %v4997_v24 = vsel %vm13542_vm1, %v19480_v51, %v4996_v57  ;;  %v5054_v32 = vld [vmem:[#allocation2 + $0x40] sm:$0xf]  ;;  %4977 = vst [vmem:[#allocation2 + $0x138] sm:$0xf] %v4976_v39  ;;  %4981 = vst [vmem:[#allocation2 + $0x140] sm:$0x1] %v4980_v9  ;;  %v5004_v20 = vsel %vm13542_vm1, %v19483_v58, %v5003_v49  ;;  %v5015_v49 = vsel %vm11573_vm3, %v19487_v36, %v5014_v29 }
 0x4c1   :  { %v4987_v40 = vsel %vm11573_vm3, %v19476_v46, %v4986_v23  ;;  %v4994_v10 = vsel %vm11573_vm3, %v19479_v52, %v4993_v35  ;;  %4984 = vst [vmem:[#allocation2 + $0x144] sm:$0xf] %v4983_v37  ;;  %v19481_v23 = vld [vmem:[#allocation151_spill] sm:$0xff]  ;;  %v19484_v35 = vld [vmem:[#allocation153_spill] sm:$0xff]  ;;  %v19486_v33 = vld [vmem:[#allocation108_spill] sm:$0xff]  ;;  %v19489_v17 = vrot.slane %v14269_v60, 4 }
 0x4c2   :  { %v19482_v4 = vrot.slane %v19481_v23, 4  ;;  %v19485_v25 = vrot.slane %v19484_v35, 4  ;;  %v5011_v7 = vsel %vm13542_vm1, %v19486_v33, %v5010_v0  ;;  %v5055_v19 = vld [vmem:[#allocation2 + $0x44] sm:$0x1]  ;;  %4988 = vst [vmem:[#allocation2 + $0x14c] sm:$0x1] %v4987_v40  ;;  %v5032_v0 = vsel %vm13542_vm1, %v14601_v28, %v5031_v5 }
 0x4c3   :  { %4991 = vst [vmem:[#allocation2 + $0x150] sm:$0xf] %v4990_v42  ;;  %4995 = vst [vmem:[#allocation2 + $0x158] sm:$0x1] %v4994_v10  ;;  %v5062_v31 = vld [vmem:[#allocation2 + $0x60] sm:$0xf]  ;;  %v5036_v11 = vsel %vm11573_vm3, %v19489_v17, %v5035_v3 }
 0x4c4   :  { %v5001_v59 = vsel %vm11573_vm3, %v19482_v4, %v5000_v2  ;;  %v5008_v57 = vsel %vm11573_vm3, %v19485_v25, %v5007_v22  ;;  %4998 = vst [vmem:[#allocation2 + $0x15c] sm:$0xf] %v4997_v24  ;;  %v19488_v41 = vld [vmem:[#allocation136_spill] sm:$0xff]  ;;  %v5022_v22 = vsel %vm11573_vm3, %v4680_v53, %v5021_v44  ;;  %5005 = vst [vmem:[#allocation2 + $0x168] sm:$0xf] %v5004_v20  ;;  %v5270_v30 = vshll.u32 %v5053_v14, 16 }
 0x4c5   :  { %v5018_v2 = vsel %vm13542_vm1, %v19488_v41, %v5017_v16  ;;  %5002 = vst [vmem:[#allocation2 + $0x164] sm:$0x1] %v5001_v59  ;;  %5009 = vst [vmem:[#allocation2 + $0x170] sm:$0x1] %v5008_v57  ;;  %v5063_v48 = vld [vmem:[#allocation2 + $0x64] sm:$0xf] }
 0x4c6   :  { %5012 = vst [vmem:[#allocation2 + $0x174] sm:$0xf] %v5011_v7  ;;  %v5267_v16 = vshrl.u32 %v5053_v14, 16  ;;  %v5276_v47 = vshll.u32 %v5054_v32, 16  ;;  %5016 = vst [vmem:[#allocation2 + $0x17c] sm:$0x1] %v5015_v49 }
 0x4c7   :  { %5019 = vst [vmem:[#allocation2 + $0x180] sm:$0xf] %v5018_v2  ;;  %5023 = vst [vmem:[#allocation2 + $0x188] sm:$0x1] %v5022_v22  ;;  %v5280_v53 = vshrl.u32 %v5054_v32, 16  ;;  %v5286_v43 = vshll.u32 %v5055_v19, 16 }
 0x4c8   :  { %5033 = vst [vmem:[#allocation2 + $0x198] sm:$0xf] %v5032_v0  ;;  %5037 = vst [vmem:[#allocation2 + $0x1a0] sm:$0x1] %v5036_v11  ;;  %v5064_v28 = vld [vmem:[#allocation2 + $0x68] sm:$0x1] }
 0x4c9   :  { %v5339_v21 = vshrl.u32 %v5062_v31, 16  ;;  %v5342_v13 = vshll.u32 %v5062_v31, 16  ;;  %v5269_v27 = vrot.slane %v5267_v16, 4  ;;  %v5272_v6 = vrot.slane %v5270_v30, 5  ;;  %v5059_v55 = vld [vmem:[#allocation2 + $0x54] sm:$0xf] }
 0x4ca   :  { %v5278_v50 = vrot.slane %v5276_v47, 5  ;;  %v5348_v60 = vshll.u32 %v5063_v48, 16  ;;  %v5282_v38 = vrot.slane %v5280_v53, 4  ;;  %v5288_v44 = vrot.slane %v5286_v43, 5  ;;  %v5060_v1 = vld [vmem:[#allocation2 + $0x58] sm:$0xf] }
 0x4cb   :  { %v5341_v29 = vrot.slane %v5339_v21, 4  ;;  %v5344_v5 = vrot.slane %v5342_v13, 5  ;;  %v5273_v56 = vor.u32 %v5272_v6, %v5269_v27  ;;  %v5352_v15 = vshrl.u32 %v5063_v48, 16  ;;  %v5061_v46 = vld [vmem:[#allocation2 + $0x5c] sm:$0x1] }
 0x4cc   :  { %v5350_v12 = vrot.slane %v5348_v60, 5  ;;  %v5358_v39 = vshll.u32 %v5064_v28, 16  ;;  %v5283_v34 = vor.u32 %v5282_v38, %v5278_v50  ;;  %v5315_v9 = vshrl.u32 %v5059_v55, 16  ;;  %v5068_v10 = vld [vmem:[#allocation2 + $0x78] sm:$0xf] }
 0x4cd   :  { %v5345_v62 = vor.u32 %v5344_v5, %v5341_v29  ;;  %v5318_v8 = vshll.u32 %v5059_v55, 16  ;;  %v5274_v37 = vrot.slane %v5273_v56, 4  ;;  %v5354_v3 = vrot.slane %v5352_v15, 4  ;;  %v5069_v23 = vld [vmem:[#allocation2 + $0x7c] sm:$0xf] }
 0x4ce   :  { %v5360_v18 = vrot.slane %v5358_v39, 5  ;;  %v5324_v40 = vshll.u32 %v5060_v1, 16  ;;  %v5284_v63 = vrot.slane %v5283_v34, 4  ;;  %v5317_v54 = vrot.slane %v5315_v9, 4  ;;  %v5065_v7 = vld [vmem:[#allocation2 + $0x6c] sm:$0xf] }
 0x4cf   :  { %v5346_v42 = vrot.slane %v5345_v62, 4  ;;  %v5320_v52 = vrot.slane %v5318_v8, 5  ;;  %v5279_v51 = vsel %vm9905_vm2, %v5274_v37, %v5278_v50  ;;  %v5355_v24 = vor.u32 %v5354_v3, %v5350_v12  ;;  %v5070_v36 = vld [vmem:[#allocation2 + $0x80] sm:$0x1]  ;;  %v5066_v17 = vld [vmem:[#allocation2 + $0x70] sm:$0xf] }
 0x4d0   :  { %v5326_v14 = vrot.slane %v5324_v40, 5  ;;  %v5328_v32 = vshrl.u32 %v5060_v1, 16  ;;  %v5289_v4 = vsel %vm9905_vm2, %v5284_v63, %v5288_v44  ;;  %v5334_v20 = vshll.u32 %v5061_v46, 16  ;;  %v5067_v21 = vld [vmem:[#allocation2 + $0x74] sm:$0x1] }
 0x4d1   :  { %v5351_v59 = vsel %vm9905_vm2, %v5346_v42, %v5350_v12  ;;  %v5321_v58 = vor.u32 %v5320_v52, %v5317_v54  ;;  %v15018_v35 = vcombine.low %v5279_v51, %v5289_v4  ;;  %v5356_v25 = vrot.slane %v5355_v24, 4  ;;  %v5074_v55 = vld [vmem:[#allocation2 + $0x90] sm:$0xf]  ;;  %v5075_v1 = vld [vmem:[#allocation2 + $0x94] sm:$0xf] }
 0x4d2   :  { %v5330_v57 = vrot.slane %v5328_v32, 4  ;;  %v5387_v33 = vshrl.u32 %v5068_v10, 16  ;;  %v5336_v31 = vrot.slane %v5334_v20, 5  ;;  %v5390_v49 = vshll.u32 %v5068_v10, 16  ;;  %v5071_v63 = vld [vmem:[#allocation2 + $0x84] sm:$0xf] }
 0x4d3   :  { %v5322_v19 = vrot.slane %v5321_v58, 4  ;;  %v5396_v41 = vshll.u32 %v5069_v23, 16  ;;  %6572 = vrot.lane.b32.xlu1 %v15018_v35, %s9830_s23  ;;  %v5361_v2 = vsel %vm9905_vm2, %v5356_v25, %v5360_v18  ;;  %v5400_v48 = vshrl.u32 %v5069_v23, 16  ;;  %v5076_v18 = vld [vmem:[#allocation2 + $0x98] sm:$0x1] }
 0x4d4   :  { %v5331_v22 = vor.u32 %v5330_v57, %v5326_v14  ;;  %v5389_v0 = vrot.slane %v5387_v33, 4  ;;  %v15024_v11 = vcombine.low %v5351_v59, %v5361_v2  ;;  %v5392_v30 = vrot.slane %v5390_v49, 5  ;;  %v5072_v51 = vld [vmem:[#allocation2 + $0x88] sm:$0xf]  ;;  %v5073_v33 = vld [vmem:[#allocation2 + $0x8c] sm:$0x1] }
 0x4d5   :  { %v5327_v16 = vsel %vm9905_vm2, %v5322_v19, %v5326_v14  ;;  %v5398_v47 = vrot.slane %v5396_v41, 5  ;;  %v5402_v43 = vrot.slane %v5400_v48, 4  ;;  %v5406_v28 = vshll.u32 %v5070_v36, 16 }
 0x4d6   :  { %v5332_v53 = vrot.slane %v5331_v22, 4  ;;  %v5363_v13 = vshrl.u32 %v5065_v7, 16  ;;  %6578 = vrot.lane.b32.xlu0 %v15024_v11, %s9830_s23  ;;  %v5393_v27 = vor.u32 %v5392_v30, %v5389_v0  ;;  %v5366_v6 = vshll.u32 %v5065_v7, 16  ;;  %v5081_v22 = vld [vmem:[#allocation2 + $0xac] sm:$0xf] }
 0x4d7   :  { %v5372_v50 = vshll.u32 %v5066_v17, 16  ;;  %v5376_v60 = vshrl.u32 %v5066_v17, 16  ;;  %v5403_v44 = vor.u32 %v5402_v43, %v5398_v47  ;;  %v5408_v29 = vrot.slane %v5406_v28, 5 }
 0x4d8   :  { %v5337_v38 = vsel %vm9905_vm2, %v5332_v53, %v5336_v31  ;;  %v5365_v5 = vrot.slane %v5363_v13, 4  ;;  %v5394_v12 = vrot.slane %v5393_v27, 4  ;;  %v5368_v15 = vrot.slane %v5366_v6, 5  ;;  %v5080_v31 = vld [vmem:[#allocation2 + $0xa8] sm:$0xf] }
 0x4d9   :  { %v15032_v56 = vcombine.low %v5327_v16, %v5337_v38  ;;  %v5374_v39 = vrot.slane %v5372_v50, 5  ;;  %v5404_v34 = vrot.slane %v5403_v44, 4  ;;  %v5378_v62 = vrot.slane %v5376_v60, 4  ;;  %v5082_v13 = vld [vmem:[#allocation2 + $0xb0] sm:$0x1] }
 0x4da   :  { %v5382_v9 = vshll.u32 %v5067_v21, 16  ;;  %v5435_v8 = vshrl.u32 %v5074_v55, 16  ;;  %v5399_v37 = vsel %vm9905_vm2, %v5394_v12, %v5398_v47  ;;  %v5369_v3 = vor.u32 %v5368_v15, %v5365_v5  ;;  %v5077_v50 = vld [vmem:[#allocation2 + $0x9c] sm:$0xf] }
 0x4db   :  { %6576 = vrot.lane.b32.xlu1 %v15032_v56, %s9830_s23  ;;  %v5438_v46 = vshll.u32 %v5074_v55, 16  ;;  %v5444_v40 = vshll.u32 %v5075_v1, 16  ;;  %v5409_v42 = vsel %vm9905_vm2, %v5404_v34, %v5408_v29  ;;  %v5379_v54 = vor.u32 %v5378_v62, %v5374_v39  ;;  %v5078_v62 = vld [vmem:[#allocation2 + $0xa0] sm:$0xf] }
 0x4dc   :  { %v5384_v52 = vrot.slane %v5382_v9, 5  ;;  %v5437_v10 = vrot.slane %v5435_v8, 4  ;;  %v15040_v24 = vcombine.low %v5399_v37, %v5409_v42  ;;  %v5370_v14 = vrot.slane %v5369_v3, 4 }
 0x4dd   :  { %v5440_v32 = vrot.slane %v5438_v46, 5  ;;  %v5446_v23 = vrot.slane %v5444_v40, 5  ;;  %v5380_v4 = vrot.slane %v5379_v54, 4  ;;  %v5448_v59 = vshrl.u32 %v5075_v1, 16  ;;  %v5079_v46 = vld [vmem:[#allocation2 + $0xa4] sm:$0x1] }
 0x4de   :  { %v5454_v58 = vshll.u32 %v5076_v18, 16  ;;  %v5411_v20 = vshrl.u32 %v5071_v63, 16  ;;  %6582 = vrot.lane.b32.xlu0 %v15040_v24, %s9830_s23  ;;  %v5375_v25 = vsel %vm9905_vm2, %v5370_v14, %v5374_v39  ;;  %v5414_v7 = vshll.u32 %v5071_v63, 16  ;;  %v5098_v40 = vld [vmem:[#allocation2 + $0xf0] sm:$0xf] }
 0x4df   :  { %v5441_v57 = vor.u32 %v5440_v32, %v5437_v10  ;;  %v5420_v19 = vshll.u32 %v5072_v51, 16  ;;  %v5385_v36 = vsel %vm9905_vm2, %v5380_v4, %v5384_v52  ;;  %v5450_v49 = vrot.slane %v5448_v59, 4 }
 0x4e0   :  { %v5456_v41 = vrot.slane %v5454_v58, 5  ;;  %v5413_v2 = vrot.slane %v5411_v20, 4  ;;  %v15048_v0 = vcombine.low %v5375_v25, %v5385_v36  ;;  %v5416_v17 = vrot.slane %v5414_v7, 5  ;;  %v5099_v58 = vld [vmem:[#allocation2 + $0xf4] sm:$0xf] }
 0x4e1   :  { %v5442_v48 = vrot.slane %v5441_v57, 4  ;;  %v5422_v16 = vrot.slane %v5420_v19, 5  ;;  %v5451_v30 = vor.u32 %v5450_v49, %v5446_v23  ;;  %v5424_v47 = vshrl.u32 %v5072_v51, 16  ;;  %v5100_v19 = vld [vmem:[#allocation2 + $0xf8] sm:$0x1] }
 0x4e2   :  { %v5430_v53 = vshll.u32 %v5073_v33, 16  ;;  %v5483_v43 = vshrl.u32 %v5080_v31, 16  ;;  %6580 = vrot.lane.b32.xlu1 %v15048_v0, %s9830_s23  ;;  %v5417_v21 = vor.u32 %v5416_v17, %v5413_v2  ;;  %v5486_v27 = vshll.u32 %v5080_v31, 16  ;;  %v5083_v2 = vld [vmem:[#allocation2 + $0xb4] sm:$0xf] }
 0x4e3   :  { %v5447_v28 = vsel %vm9905_vm2, %v5442_v48, %v5446_v23  ;;  %v5492_v6 = vshll.u32 %v5081_v22, 16  ;;  %v5452_v60 = vrot.slane %v5451_v30, 4  ;;  %v5426_v55 = vrot.slane %v5424_v47, 4 }
 0x4e4   :  { %v5432_v38 = vrot.slane %v5430_v53, 5  ;;  %v5485_v44 = vrot.slane %v5483_v43, 4  ;;  %v5418_v29 = vrot.slane %v5417_v21, 4  ;;  %v5488_v5 = vrot.slane %v5486_v27, 5 }
 0x4e5   :  { %v5494_v1 = vrot.slane %v5492_v6, 5  ;;  %v5496_v12 = vshrl.u32 %v5081_v22, 16  ;;  %v5457_v15 = vsel %vm9905_vm2, %v5452_v60, %v5456_v41  ;;  %v5427_v39 = vor.u32 %v5426_v55, %v5422_v16  ;;  %v5085_v6 = vld [vmem:[#allocation2 + $0xbc] sm:$0x1] }
 0x4e6   :  { %v5502_v34 = vshll.u32 %v5082_v13, 16  ;;  %v5459_v9 = vshrl.u32 %v5077_v50, 16  ;;  %v15056_v8 = vcombine.low %v5447_v28, %v5457_v15  ;;  %v5423_v37 = vsel %vm9905_vm2, %v5418_v29, %v5422_v16  ;;  %v5084_v28 = vld [vmem:[#allocation2 + $0xb8] sm:$0xf]  ;;  %v5104_v15 = vld [vmem:[#allocation2 + $0x108] sm:$0xf] }
 0x4e7   :  { %v5489_v3 = vor.u32 %v5488_v5, %v5485_v44  ;;  %v5498_v18 = vrot.slane %v5496_v12, 4  ;;  %v5428_v63 = vrot.slane %v5427_v39, 4  ;;  %v5462_v52 = vshll.u32 %v5077_v50, 16 }
 0x4e8   :  { %v5504_v42 = vrot.slane %v5502_v34, 5  ;;  %v5461_v54 = vrot.slane %v5459_v9, 4  ;;  %6586 = vrot.lane.b32.xlu0 %v15056_v8, %s9830_s23  ;;  %v5468_v14 = vshll.u32 %v5078_v62, 16  ;;  %v5472_v32 = vshrl.u32 %v5078_v62, 16 }
 0x4e9   :  { %v5490_v10 = vrot.slane %v5489_v3, 4  ;;  %v5499_v51 = vor.u32 %v5498_v18, %v5494_v1  ;;  %v5433_v23 = vsel %vm9905_vm2, %v5428_v63, %v5432_v38  ;;  %v5464_v4 = vrot.slane %v5462_v52, 5  ;;  %v5106_v52 = vld [vmem:[#allocation2 + $0x110] sm:$0x1] }
 0x4ea   :  { %v5478_v59 = vshll.u32 %v5079_v46, 16  ;;  %v5579_v20 = vshrl.u32 %v5098_v40, 16  ;;  %v15064_v25 = vcombine.low %v5423_v37, %v5433_v23  ;;  %v5470_v7 = vrot.slane %v5468_v14, 5  ;;  %v5105_v37 = vld [vmem:[#allocation2 + $0x10c] sm:$0xf] }
 0x4eb   :  { %v5495_v57 = vsel %vm9905_vm2, %v5490_v10, %v5494_v1  ;;  %v5500_v33 = vrot.slane %v5499_v51, 4  ;;  %v5465_v31 = vor.u32 %v5464_v4, %v5461_v54  ;;  %v5474_v36 = vrot.slane %v5472_v32, 4  ;;  %v5095_v4 = vld [vmem:[#allocation2 + $0xe4] sm:$0xf] }
 0x4ec   :  { %v5480_v49 = vrot.slane %v5478_v59, 5  ;;  %v5581_v41 = vrot.slane %v5579_v20, 4  ;;  %6584 = vrot.lane.b32.xlu1 %v15064_v25, %s9830_s23  ;;  %v5582_v48 = vshll.u32 %v5098_v40, 16  ;;  %v5588_v17 = vshll.u32 %v5099_v58, 16 }
 0x4ed   :  { %v5505_v22 = vsel %vm9905_vm2, %v5500_v33, %v5504_v42  ;;  %v5592_v16 = vshrl.u32 %v5099_v58, 16  ;;  %v5466_v47 = vrot.slane %v5465_v31, 4  ;;  %v5475_v53 = vor.u32 %v5474_v36, %v5470_v7  ;;  %v5096_v33 = vld [vmem:[#allocation2 + $0xe8] sm:$0xf] }
 0x4ee   :  { %v15072_v30 = vcombine.low %v5495_v57, %v5505_v22  ;;  %v5598_v43 = vshll.u32 %v5100_v19, 16  ;;  %v5584_v21 = vrot.slane %v5582_v48, 5  ;;  %v5590_v13 = vrot.slane %v5588_v17, 5 }
 0x4ef   :  { %v5594_v27 = vrot.slane %v5592_v16, 4  ;;  %v5507_v50 = vshrl.u32 %v5083_v2, 16  ;;  %v5471_v60 = vsel %vm9905_vm2, %v5466_v47, %v5470_v7  ;;  %v5476_v55 = vrot.slane %v5475_v53, 4 }
 0x4f0   :  { %6590 = vrot.lane.b32.xlu0 %v15072_v30, %s9830_s23  ;;  %v5600_v38 = vrot.slane %v5598_v43, 5  ;;  %v5510_v44 = vshll.u32 %v5083_v2, 16  ;;  %v5585_v29 = vor.u32 %v5584_v21, %v5581_v41  ;;  %v5516_v12 = vshll.u32 %v5084_v28, 16  ;;  %v5097_v2 = vld [vmem:[#allocation2 + $0xec] sm:$0x1] }
 0x4f1   :  { %v5595_v5 = vor.u32 %v5594_v27, %v5590_v13  ;;  %v5509_v1 = vrot.slane %v5507_v50, 4  ;;  %v5481_v39 = vsel %vm9905_vm2, %v5476_v55, %v5480_v49  ;;  %v5520_v62 = vshrl.u32 %v5084_v28, 16  ;;  %v5110_v43 = vld [vmem:[#allocation2 + $0x120] sm:$0xf] }
 0x4f2   :  { %v5512_v34 = vrot.slane %v5510_v44, 5  ;;  %v5526_v9 = vshll.u32 %v5085_v6, 16  ;;  %v15080_v3 = vcombine.low %v5471_v60, %v5481_v39  ;;  %v5586_v18 = vrot.slane %v5585_v29, 4  ;;  %v5111_v6 = vld [vmem:[#allocation2 + $0x124] sm:$0xf] }
 0x4f3   :  { %v5596_v46 = vrot.slane %v5595_v5, 4  ;;  %v5518_v40 = vrot.slane %v5516_v12, 5  ;;  %v5522_v42 = vrot.slane %v5520_v62, 4  ;;  %v5627_v10 = vshrl.u32 %v5104_v15, 16  ;;  %v5112_v39 = vld [vmem:[#allocation2 + $0x128] sm:$0x1] }
 0x4f4   :  { %v5513_v63 = vor.u32 %v5512_v34, %v5509_v1  ;;  %v5528_v54 = vrot.slane %v5526_v9, 5  ;;  %6588 = vrot.lane.b32.xlu1 %v15080_v3, %s9830_s23  ;;  %v5591_v51 = vsel %vm9905_vm2, %v5586_v18, %v5590_v13  ;;  %v5630_v32 = vshll.u32 %v5104_v15, 16 }
 0x4f5   :  { %v5601_v14 = vsel %vm9905_vm2, %v5596_v46, %v5600_v38  ;;  %v5636_v23 = vshll.u32 %v5105_v37, 16  ;;  %v5523_v20 = vor.u32 %v5522_v42, %v5518_v40  ;;  %v5629_v57 = vrot.slane %v5627_v10, 4  ;;  %v5102_v10 = vld [vmem:[#allocation2 + $0x100] sm:$0xf] }
 0x4f6   :  { %v15088_v59 = vcombine.low %v5591_v51, %v5601_v14  ;;  %v5514_v58 = vrot.slane %v5513_v63, 4  ;;  %v5632_v7 = vrot.slane %v5630_v32, 5  ;;  %v5640_v31 = vshrl.u32 %v5105_v37, 16 }
 0x4f7   :  { %v5638_v19 = vrot.slane %v5636_v23, 5  ;;  %v5646_v36 = vshll.u32 %v5106_v52, 16  ;;  %v5524_v41 = vrot.slane %v5523_v20, 4  ;;  %v5555_v22 = vshrl.u32 %v5095_v4, 16  ;;  %v5103_v20 = vld [vmem:[#allocation2 + $0x104] sm:$0x1] }
 0x4f8   :  { %6598 = vrot.lane.b32.xlu0 %v15088_v59, %s9830_s23  ;;  %v5519_v49 = vsel %vm9905_vm2, %v5514_v58, %v5518_v40  ;;  %v5558_v48 = vshll.u32 %v5095_v4, 16  ;;  %v5633_v17 = vor.u32 %v5632_v7, %v5629_v57  ;;  %v5642_v16 = vrot.slane %v5640_v31, 4  ;;  %v5101_v40 = vld [vmem:[#allocation2 + $0xfc] sm:$0xf] }
 0x4f9   :  { %v5648_v47 = vrot.slane %v5646_v36, 5  ;;  %v5564_v53 = vshll.u32 %v5096_v33, 16  ;;  %v5529_v28 = vsel %vm9905_vm2, %v5524_v41, %v5528_v54  ;;  %v5557_v21 = vrot.slane %v5555_v22, 4 }
 0x4fa   :  { %v5560_v13 = vrot.slane %v5558_v48, 5  ;;  %v5568_v27 = vshrl.u32 %v5096_v33, 16  ;;  %v15096_v50 = vcombine.low %v5519_v49, %v5529_v28  ;;  %v5634_v60 = vrot.slane %v5633_v17, 4  ;;  %v5116_v49 = vld [vmem:[#allocation2 + $0x138] sm:$0xf] }
 0x4fb   :  { %v5643_v55 = vor.u32 %v5642_v16, %v5638_v19  ;;  %v5566_v38 = vrot.slane %v5564_v53, 5  ;;  %v5574_v5 = vshll.u32 %v5097_v2, 16  ;;  %v5675_v1 = vshrl.u32 %v5110_v43, 16  ;;  %v5117_v17 = vld [vmem:[#allocation2 + $0x13c] sm:$0xf] }
 0x4fc   :  { %v5561_v44 = vor.u32 %v5560_v13, %v5557_v21  ;;  %v5570_v29 = vrot.slane %v5568_v27, 4  ;;  %6592 = vrot.lane.b32.xlu1 %v15096_v50, %s9830_s23  ;;  %v5639_v12 = vsel %vm9905_vm2, %v5634_v60, %v5638_v19  ;;  %v5678_v34 = vshll.u32 %v5110_v43, 16 }
 0x4fd   :  { %v5644_v15 = vrot.slane %v5643_v55, 4  ;;  %v5684_v62 = vshll.u32 %v5111_v6, 16  ;;  %v5576_v18 = vrot.slane %v5574_v5, 5  ;;  %v5677_v46 = vrot.slane %v5675_v1, 4 }
 0x4fe   :  { %v5562_v9 = vrot.slane %v5561_v44, 4  ;;  %v5571_v37 = vor.u32 %v5570_v29, %v5566_v38  ;;  %v5680_v42 = vrot.slane %v5678_v34, 5  ;;  %v5688_v52 = vshrl.u32 %v5111_v6, 16  ;;  %v5107_v29 = vld [vmem:[#allocation2 + $0x114] sm:$0xf] }
 0x4ff   :  { %v5649_v63 = vsel %vm9905_vm2, %v5644_v15, %v5648_v47  ;;  %v5686_v54 = vrot.slane %v5684_v62, 5  ;;  %v5694_v23 = vshll.u32 %v5112_v39, 16  ;;  %v5603_v57 = vshrl.u32 %v5101_v40, 16  ;;  %v5108_v39 = vld [vmem:[#allocation2 + $0x118] sm:$0xf] }
 0x500   :  { %v15104_v51 = vcombine.low %v5639_v12, %v5649_v63  ;;  %v5567_v14 = vsel %vm9905_vm2, %v5562_v9, %v5566_v38  ;;  %v5572_v32 = vrot.slane %v5571_v37, 4  ;;  %v5681_v4 = vor.u32 %v5680_v42, %v5677_v46  ;;  %v5118_v38 = vld [vmem:[#allocation2 + $0x140] sm:$0x1] }
 0x501   :  { %v5690_v58 = vrot.slane %v5688_v52, 4  ;;  %v5606_v33 = vshll.u32 %v5101_v40, 16  ;;  %v5696_v19 = vrot.slane %v5694_v23, 5  ;;  %v5612_v31 = vshll.u32 %v5102_v10, 16  ;;  %v5109_v52 = vld [vmem:[#allocation2 + $0x11c] sm:$0x1] }
 0x502   :  { %6602 = vrot.lane.b32.xlu0 %v15104_v51, %s9830_s23  ;;  %v5577_v7 = vsel %vm9905_vm2, %v5572_v32, %v5576_v18  ;;  %v5616_v36 = vshrl.u32 %v5102_v10, 16  ;;  %v5682_v2 = vrot.slane %v5681_v4, 4  ;;  %v5605_v48 = vrot.slane %v5603_v57, 4  ;;  %v5122_v32 = vld [vmem:[#allocation2 + $0x150] sm:$0xf] }
 0x503   :  { %v15112_v41 = vcombine.low %v5567_v14, %v5577_v7  ;;  %v5691_v22 = vor.u32 %v5690_v58, %v5686_v54  ;;  %v5608_v16 = vrot.slane %v5606_v33, 5  ;;  %v5614_v47 = vrot.slane %v5612_v31, 5  ;;  %v5123_v57 = vld [vmem:[#allocation2 + $0x154] sm:$0xf] }
 0x504   :  { %v5618_v53 = vrot.slane %v5616_v36, 4  ;;  %v5622_v43 = vshll.u32 %v5103_v20, 16  ;;  %v5687_v28 = vsel %vm9905_vm2, %v5682_v2, %v5686_v54  ;;  %v5723_v13 = vshrl.u32 %v5116_v49, 16 }
 0x505   :  { %6596 = vrot.lane.b32.xlu1 %v15112_v41, %s9830_s23  ;;  %v5692_v21 = vrot.slane %v5691_v22, 4  ;;  %v5726_v27 = vshll.u32 %v5116_v49, 16  ;;  %v5609_v6 = vor.u32 %v5608_v16, %v5605_v48  ;;  %v5732_v44 = vshll.u32 %v5117_v17, 16  ;;  %v5124_v22 = vld [vmem:[#allocation2 + $0x158] sm:$0x1] }
 0x506   :  { %v5619_v60 = vor.u32 %v5618_v53, %v5614_v47  ;;  %v5624_v55 = vrot.slane %v5622_v43, 5  ;;  %v5725_v1 = vrot.slane %v5723_v13, 4  ;;  %v5736_v15 = vshrl.u32 %v5117_v17, 16  ;;  %v5113_v43 = vld [vmem:[#allocation2 + $0x12c] sm:$0xf] }
 0x507   :  { %v5697_v5 = vsel %vm9905_vm2, %v5692_v21, %v5696_v19  ;;  %v5728_v12 = vrot.slane %v5726_v27, 5  ;;  %v5610_v62 = vrot.slane %v5609_v6, 4  ;;  %v5734_v37 = vrot.slane %v5732_v44, 5  ;;  %v5114_v44 = vld [vmem:[#allocation2 + $0x130] sm:$0xf] }
 0x508   :  { %v15120_v34 = vcombine.low %v5687_v28, %v5697_v5  ;;  %v5620_v9 = vrot.slane %v5619_v60, 4  ;;  %v5738_v46 = vrot.slane %v5736_v15, 4  ;;  %v5742_v40 = vshll.u32 %v5118_v38, 16 }
 0x509   :  { %v5729_v18 = vor.u32 %v5728_v12, %v5725_v1  ;;  %v5651_v63 = vshrl.u32 %v5107_v29, 16  ;;  %v5615_v42 = vsel %vm9905_vm2, %v5610_v62, %v5614_v47  ;;  %v5654_v10 = vshll.u32 %v5107_v29, 16 }
 0x50a   :  { %19490 = vst [vmem:[#allocation102_spill] sm:$0xff] %v15120_v34  ;;  %6606 = vrot.lane.b32.xlu0 %v15120_v34, %s9830_s23  ;;  %v5625_v54 = vsel %vm9905_vm2, %v5620_v9, %v5624_v55  ;;  %v5660_v14 = vshll.u32 %v5108_v39, 16  ;;  %v5739_v58 = vor.u32 %v5738_v46, %v5734_v37  ;;  %v5744_v20 = vrot.slane %v5742_v40, 5  ;;  %v5115_v9 = vld [vmem:[#allocation2 + $0x134] sm:$0x1] }
 0x50b   :  { %v15128_v23 = vcombine.low %v5615_v42, %v5625_v54  ;;  %v5730_v4 = vrot.slane %v5729_v18, 4  ;;  %v5653_v33 = vrot.slane %v5651_v63, 4  ;;  %v5656_v7 = vrot.slane %v5654_v10, 5  ;;  %v5128_v42 = vld [vmem:[#allocation2 + $0x168] sm:$0xf] }
 0x50c   :  { %v5662_v19 = vrot.slane %v5660_v14, 5  ;;  %v5664_v31 = vshrl.u32 %v5108_v39, 16  ;;  %v5740_v49 = vrot.slane %v5739_v58, 4  ;;  %v5670_v2 = vshll.u32 %v5109_v52, 16 }
 0x50d   :  { %6600 = vrot.lane.b32.xlu1 %v15128_v23, %s9830_s23  ;;  %v5735_v36 = vsel %vm9905_vm2, %v5730_v4, %v5734_v37  ;;  %v5771_v48 = vshrl.u32 %v5122_v32, 16  ;;  %v5657_v17 = vor.u32 %v5656_v7, %v5653_v33  ;;  %v5774_v47 = vshll.u32 %v5122_v32, 16  ;;  %v5129_v32 = vld [vmem:[#allocation2 + $0x16c] sm:$0xf] }
 0x50e   :  { %v5666_v16 = vrot.slane %v5664_v31, 4  ;;  %v5780_v53 = vshll.u32 %v5123_v57, 16  ;;  %v5745_v28 = vsel %vm9905_vm2, %v5740_v49, %v5744_v20  ;;  %v5672_v21 = vrot.slane %v5670_v2, 5  ;;  %v5130_v31 = vld [vmem:[#allocation2 + $0x170] sm:$0x1] }
 0x50f   :  { %v5773_v13 = vrot.slane %v5771_v48, 4  ;;  %v5784_v27 = vshrl.u32 %v5123_v57, 16  ;;  %v15136_v6 = vcombine.low %v5735_v36, %v5745_v28  ;;  %v5658_v60 = vrot.slane %v5657_v17, 4  ;;  %v5119_v17 = vld [vmem:[#allocation2 + $0x144] sm:$0xf] }
 0x510   :  { %v5667_v55 = vor.u32 %v5666_v16, %v5662_v19  ;;  %v5776_v38 = vrot.slane %v5774_v47, 5  ;;  %v5782_v29 = vrot.slane %v5780_v53, 5  ;;  %v5790_v1 = vshll.u32 %v5124_v22, 16  ;;  %v5120_v28 = vld [vmem:[#allocation2 + $0x148] sm:$0xf] }
 0x511   :  { %19491 = vst [vmem:[#allocation61_spill] sm:$0xff] %v15136_v6  ;;  %v5786_v5 = vrot.slane %v5784_v27, 4  ;;  %v5699_v12 = vshrl.u32 %v5113_v43, 16  ;;  %6610 = vrot.lane.b32.xlu0 %v15136_v6, %s9830_s23  ;;  %v5663_v15 = vsel %vm9905_vm2, %v5658_v60, %v5662_v19  ;;  %v5702_v37 = vshll.u32 %v5113_v43, 16 }
 0x512   :  { %v5668_v39 = vrot.slane %v5667_v55, 4  ;;  %v5777_v62 = vor.u32 %v5776_v38, %v5773_v13  ;;  %v5792_v46 = vrot.slane %v5790_v1, 5  ;;  %v5708_v63 = vshll.u32 %v5114_v44, 16 }
 0x513   :  { %v5787_v18 = vor.u32 %v5786_v5, %v5782_v29  ;;  %v5701_v40 = vrot.slane %v5699_v12, 4  ;;  %v5704_v10 = vrot.slane %v5702_v37, 5  ;;  %v5712_v14 = vshrl.u32 %v5114_v44, 16  ;;  %v5121_v12 = vld [vmem:[#allocation2 + $0x14c] sm:$0x1] }
 0x514   :  { %v5673_v54 = vsel %vm9905_vm2, %v5668_v39, %v5672_v21  ;;  %v5778_v52 = vrot.slane %v5777_v62, 4  ;;  %v5710_v20 = vrot.slane %v5708_v63, 5  ;;  %v5718_v57 = vshll.u32 %v5115_v9, 16 }
 0x515   :  { %v15144_v4 = vcombine.low %v5663_v15, %v5673_v54  ;;  %v5788_v58 = vrot.slane %v5787_v18, 4  ;;  %v5705_v7 = vor.u32 %v5704_v10, %v5701_v40  ;;  %v5714_v19 = vrot.slane %v5712_v14, 4 }
 0x516   :  { %v5783_v33 = vsel %vm9905_vm2, %v5778_v52, %v5782_v29  ;;  %v5819_v36 = vshrl.u32 %v5128_v42, 16  ;;  %v5720_v2 = vrot.slane %v5718_v57, 5  ;;  %v5822_v22 = vshll.u32 %v5128_v42, 16  ;;  %v15162_v42 = vld [vmem:[#allocation2 + $0x15c] sm:$0xf] }
 0x517   :  { %6604 = vrot.lane.b32.xlu1 %v15144_v4, %s9830_s23  ;;  %v5793_v49 = vsel %vm9905_vm2, %v5788_v58, %v5792_v46  ;;  %v5828_v48 = vshll.u32 %v5129_v32, 16  ;;  %v5706_v47 = vrot.slane %v5705_v7, 4  ;;  %v5715_v53 = vor.u32 %v5714_v19, %v5710_v20 }
 0x518   :  { %v15152_v16 = vcombine.low %v5783_v33, %v5793_v49  ;;  %v5821_v43 = vrot.slane %v5819_v36, 4  ;;  %v5824_v21 = vrot.slane %v5822_v22, 5  ;;  %v5832_v27 = vshrl.u32 %v5129_v32, 16  ;;  %v15171_v33 = vld [vmem:[#allocation2 + $0x10] sm:$0xf] }
 0x519   :  { %v5830_v13 = vrot.slane %v5828_v48, 5  ;;  %v5838_v60 = vshll.u32 %v5130_v31, 16  ;;  %v5711_v55 = vsel %vm9905_vm2, %v5706_v47, %v5710_v20  ;;  %v5716_v38 = vrot.slane %v5715_v53, 4  ;;  %v15168_v20 = vld [vmem:[#allocation2 + $0xc] sm:$0xf] }
 0x51a   :  { %19492 = vst [vmem:[#allocation138_spill] sm:$0xff] %v15152_v16  ;;  %6614 = vrot.lane.b32.xlu0 %v15152_v16, %s9830_s23  ;;  %v5747_v44 = vshrl.u32 %v5119_v17, 16  ;;  %v5750_v29 = vshll.u32 %v5119_v17, 16  ;;  %v5825_v5 = vor.u32 %v5824_v21, %v5821_v43  ;;  %v5834_v1 = vrot.slane %v5832_v27, 4  ;;  %v9746_v36 = vld [vmem:[#allocation2 + $0x14] sm:$0x1] }
 0x51b   :  { %v5756_v15 = vshll.u32 %v5120_v28, 16  ;;  %v5721_v39 = vsel %vm9905_vm2, %v5716_v38, %v5720_v2  ;;  %v5760_v37 = vshrl.u32 %v5120_v28, 16  ;;  %v5840_v54 = vrot.slane %v5838_v60, 5  ;;  %v15174_v2 = vld [vmem:[#allocation2 + $0x160] sm:$0xf] }
 0x51c   :  { %v5749_v62 = vrot.slane %v5747_v44, 4  ;;  %v5752_v9 = vrot.slane %v5750_v29, 5  ;;  %v15160_v18 = vcombine.low %v5711_v55, %v5721_v39  ;;  %v5826_v46 = vrot.slane %v5825_v5, 4  ;;  %v15179_v53 = vld [vmem:[#allocation2 + $0x164] sm:$0x1] }
 0x51d   :  { %v5835_v40 = vor.u32 %v5834_v1, %v5830_v13  ;;  %v5758_v63 = vrot.slane %v5756_v15, 5  ;;  %v5762_v10 = vrot.slane %v5760_v37, 4  ;;  %v5766_v14 = vshll.u32 %v5121_v12, 16 }
 0x51e   :  { %19493 = vst [vmem:[#allocation55_spill] sm:$0xff] %v15160_v18  ;;  %v5753_v52 = vor.u32 %v5752_v9, %v5749_v62  ;;  %6608 = vrot.lane.b32.xlu1 %v15160_v18, %s9830_s23  ;;  %v5831_v32 = vsel %vm9905_vm2, %v5826_v46, %v5830_v13  ;;  %v9112_v57 = vrot.slane %v15168_v20, 9  ;;  %v6019_v7 = vrot.slane %v15171_v33, 5  ;;  %v15199_v46 = vld [vmem:[#allocation2 + $0x4] sm:$0xf] }
 0x51f   :  { %v5836_v58 = vrot.slane %v5835_v40, 4  ;;  %v5763_v31 = vor.u32 %v5762_v10, %v5758_v63  ;;  %v6022_v49 = vrot.slane %v9746_v36, 5  ;;  %v5795_v22 = vshrl.u32 %v15162_v42, 16  ;;  %v9782_v18 = vld [vmem:[#allocation2 + $0x98] sm:$0x1] }
 0x520   :  { %v5754_v19 = vrot.slane %v5753_v52, 4  ;;  %v5768_v17 = vrot.slane %v5766_v14, 5  ;;  %v6021_v47 = vrot.slane %v6019_v7, 4  ;;  %v5798_v43 = vshll.u32 %v15162_v42, 16  ;;  %v15204_v52 = vld [vmem:[#allocation2] sm:$0xf] }
 0x521   :  { %v5841_v48 = vsel %vm9905_vm2, %v5836_v58, %v5840_v54  ;;  %v5764_v13 = vrot.slane %v5763_v31, 4  ;;  %v5797_v27 = vrot.slane %v5795_v22, 4  ;;  %v5804_v44 = vshll.u32 %v15174_v2, 16  ;;  %v9749_v14 = vld [vmem:[#allocation2 + $0x8] sm:$0x1] }
 0x522   :  { %v15182_v28 = vcombine.low %v5831_v32, %v5841_v48  ;;  %v5759_v21 = vsel %vm9905_vm2, %v5754_v19, %v5758_v63  ;;  %v6023_v55 = vsel %vm10594_vm5, %v6021_v47, %v6022_v49  ;;  %v5800_v38 = vrot.slane %v5798_v43, 5  ;;  %v9751_v49 = vld [vmem:[#allocation2 + $0x18] sm:$0xf] }
 0x523   :  { %v5808_v29 = vshrl.u32 %v15174_v2, 16  ;;  %v5769_v5 = vsel %vm9905_vm2, %v5764_v13, %v5768_v17  ;;  %v6020_v1 = vsel %vm10594_vm5, %v9112_v57, %v6019_v7  ;;  %v5814_v12 = vshll.u32 %v15179_v53, 16  ;;  %v9750_v57 = vld [vmem:[#allocation2 + $0x1c] sm:$0xf] }
 0x524   :  { %19494 = vst [vmem:[#allocation64_spill] sm:$0xff] %v15182_v28  ;;  %6618 = vrot.lane.b32.xlu0 %v15182_v28, %s9830_s23  ;;  %v15197_v15 = vcombine.low %v5759_v21, %v5769_v5  ;;  %v5801_v39 = vor.u32 %v5800_v38, %v5797_v27  ;;  %v5806_v62 = vrot.slane %v5804_v44, 5  ;;  %v9212_v37 = vcombine.low %v6020_v1, %v6023_v55  ;;  %v9752_v27 = vld [vmem:[#allocation2 + $0x20] sm:$0x1]  ;;  %v3842_v28 = vld [vmem:[#allocation2 + $0xcc] sm:$0x1] }
 0x525   :  { %v5810_v9 = vrot.slane %v5808_v29, 4  ;;  %v6012_v40 = vrot.slane %v15199_v46, 5  ;;  %v9111_v10 = vrot.slane %v15204_v52, 9  ;;  %v6015_v32 = vrot.slane %v9749_v14, 5  ;;  %v19498_v29 = vld [vmem:[#allocation119_spill] sm:$0xff] }
 0x526   :  { %19496 = vst [vmem:[#allocation142_spill] sm:$0xff] %v15197_v15  ;;  %6612 = vrot.lane.b32.xlu1 %v15197_v15, %s9830_s23  ;;  %v5802_v63 = vrot.slane %v5801_v39, 4  ;;  %v6026_v7 = vrot.slane %v9750_v57, 5  ;;  %v5816_v36 = vrot.slane %v5814_v12, 5  ;;  %v15210_v22 = vcombine.low %v9751_v49, %v9750_v57  ;;  %v9753_v12 = vld [vmem:[#allocation2 + $0x28] sm:$0xf] }
 0x527   :  { %v5811_v54 = vor.u32 %v5810_v9, %v5806_v62  ;;  %v6014_v58 = vrot.slane %v6012_v40, 4  ;;  %v6013_v17 = vsel %vm10594_vm5, %v9111_v10, %v6012_v40  ;;  %v9113_v13 = vrot.slane %v9751_v49, 9  ;;  %v9754_v40 = vld [vmem:[#allocation2 + $0x24] sm:$0xf]  ;;  %v15265_v49 = vpop.permute.xlu0 %6562 }
 0x528   :  { %6724 = vrot.lane.b32.xlu0 %v9212_v37, %s9831_s19  ;;  %v5807_v19 = vsel %vm9905_vm2, %v5802_v63, %v5806_v62  ;;  %v6028_v43 = vrot.slane %v6026_v7, 4  ;;  %v6029_v55 = vrot.slane %v9752_v27, 5  ;;  %v6033_v39 = vrot.slane %v9753_v12, 5  ;;  %v9635_v62 = vld [vmem:[%s18318_s4] sm:$0xff]  }
 0x529   :  { %v5812_v31 = vrot.slane %v5811_v54, 4  ;;  %v6016_v47 = vsel %vm10594_vm5, %v6014_v58, %v6015_v32  ;;  %v6027_v5 = vsel %vm10594_vm5, %v9113_v13, %v6026_v7  ;;  %v15236_v9 = vcombine.low %v15168_v20, %v15171_v33  ;;  %9494 = vmatprep.subr.bf16.mxu1 %v9635_v62  ;;  %v9636_v54 = vld [vmem:[%s18318_s4 + $0x8] sm:$0xff]   ;;  %v19499_v32 = vld [vmem:[#allocation92_spill] sm:$0xff]  ;;  %v9637_v58 = vld [vmem:[%s18318_s4 + $0x10] ss:$0 sps:$4 sm:$0x33]  }
 0x52a   :  { %v9211_v38 = vcombine.low %v6013_v17, %v6016_v47  ;;  %v6030_v44 = vsel %vm10594_vm5, %v6028_v43, %v6029_v55  ;;  %v15241_v63 = vcombine.low %v9754_v40, %v9753_v12  ;;  %9495 = vmatpush3.bf16.msra.mxu1 %v9635_v62  ;;  %v6035_v10 = vrot.slane %v6033_v39, 4  ;;  %v9755_v33 = vld [vmem:[#allocation2 + $0x2c] sm:$0x1]  ;;  %v19500_v7 = vld [vmem:[#allocation76_spill] sm:$0xff]  ;;  %v9757_v47 = vld [vmem:[#allocation2 + $0x30] sm:$0xf] }
 0x52b   :  { %v5817_v48 = vsel %vm9905_vm2, %v5812_v31, %v5816_v36  ;;  %v9213_v1 = vcombine.low %v6027_v5, %v6030_v44  ;;  %v9114_v20 = vrot.slane %v9754_v40, 9  ;;  %v6036_v14 = vrot.slane %v9755_v33, 5  ;;  %9496 = vmatprep.subr.bf16.mxu1 %v9636_v54  ;;  %v15274_v13 = vpop.permute.xlu0 %6594  ;;  %v9758_v55 = vld [vmem:[#allocation2 + $0x38] sm:$0x1]  ;;  %v19504_v5 = vld [vmem:[#allocation155_spill] sm:$0xff] }
 0x52c   :  { %v15218_v21 = vcombine.low %v5807_v19, %v5817_v48  ;;  %6794 = vrot.lane.b32.xlu0 %v15210_v22, %s9832_s29  ;;  %v7835_v36 = vsel %vm19502_vm15, %v9637_v58, 0  ;;  %v9756_v48 = vld [vmem:[#allocation2 + $0x34] sm:$0xf]  ;;  %19503 = vst [vmem:[#allocation67_spill] sm:$0xff] %v15274_v13  ;;  %v9115_v27 = vrot.slane %v9757_v47, 9  ;;  %v6099_v34 = vrot.slane %v9782_v18, 5  ;;  %vm19528_vm15 = vmmov %vm19524_vm0 }
 0x52d   :  { %v6037_v57 = vsel %vm10594_vm5, %v6035_v10, %v6036_v14  ;;  %v6034_v19 = vsel %vm10594_vm5, %v9114_v20, %v6033_v39  ;;  %v6040_v17 = vrot.slane %v9756_v48, 5  ;;  %v9759_v62 = vld [vmem:[#allocation2 + $0x40] sm:$0xf]  ;;  %v15291_v20 = vpop.permute.xlu1 %6564  ;;  %v9771_v13 = vld [vmem:[#allocation2 + $0x70] sm:$0xf]  ;;  %vm19525_vm1 = vcmask 293888  }
 0x52e   :  { %19497 = vst [vmem:[#allocation85_spill] sm:$0xff] %v15218_v21  ;;  %6616 = vrot.lane.b32.xlu1 %v15218_v21, %s9830_s23  ;;  %9497 = vmatpush3.bf16.msra.mxu1 %v9636_v54  ;;  %v9214_v31 = vcombine.low %v6034_v19, %v6037_v57  ;;  %v6047_v40 = vrot.slane %v9759_v62, 5  ;;  %v9760_v54 = vld [vmem:[#allocation2 + $0x3c] sm:$0xf] }
 0x52f   :  { %9565 = vmatprep.subr.msk.bf16.mxu1 %vm19501_vm14, %v9637_v58  ;;  %v6042_v43 = vrot.slane %v6040_v17, 4  ;;  %v15284_v39 = vpop.permute.xlu0 %6566  ;;  %v15289_v10 = vcombine.low %v9760_v54, %v9759_v62  ;;  %v9116_v14 = vrot.slane %v9760_v54, 9  ;;  %v9764_v54 = vld [vmem:[#allocation2 + $0x50] sm:$0x1]  ;;  %vm19526_vm14 = vmmov %vm19525_vm1 }
 0x530   :  { %6864 = vrot.lane.b32.xlu0 %v19498_v29, %s9833_s9  ;;  %v6049_v33 = vrot.slane %v6047_v40, 4 }
 0x531   :  { %v15303_v19 = vpop.permute.xlu1 %6568 }
 0x532   :  { %6722 = vrot.lane.b32.xlu1 %v9211_v38, %s9831_s19  ;;  %9499 = vmatpush3.bf16.msra.mxu1 %v7835_v36  ;;  %v6043_v38 = vrot.slane %v9758_v55, 5  ;;  %v6048_v36 = vsel %vm10594_vm5, %v9116_v14, %v6047_v40 }
 0x534   :  { %6934 = vrot.lane.b32.xlu0 %v9213_v1, %s9834_s12  ;;  %v6044_v44 = vsel %vm10594_vm5, %v6042_v43, %v6043_v38 }
 0x536   :  { %6792 = vrot.lane.b32.xlu1 %v15236_v9, %s9832_s29 }
 0x538   :  { %7004 = vrot.lane.b32.xlu0 %v15241_v63, %s9835_s15 }
 0x53a   :  { %6862 = vrot.lane.b32.xlu1 %v19499_v32, %s9833_s9  ;;  %v9761_v32 = vld [vmem:[#allocation2 + $0x44] sm:$0x1] }
 0x53b   :  { %v6050_v58 = vrot.slane %v9761_v32, 5  ;;  %v6204_v32 = vrot.slane %v15179_v53, 5 }
 0x53c   :  { %7074 = vrot.lane.b32.xlu0 %v19500_v7, %s9836_s1 }
 0x53d   :  { %v6051_v57 = vsel %vm10594_vm5, %v6049_v33, %v6050_v58  ;;  %v6057_v33 = vrot.slane %v9764_v54, 5 }
 0x53e   :  { %6932 = vrot.lane.b32.xlu1 %v9212_v37, %s9834_s12  ;;  %v15270_v37 = vcombine.low %v9757_v47, %v9756_v48  ;;  %v9216_v48 = vcombine.low %v6048_v36, %v6051_v57  ;;  %v9762_v47 = vld [vmem:[#allocation2 + $0x4c] sm:$0xf] }
 0x53f   :  { %v6054_v43 = vrot.slane %v9762_v47, 5 }
 0x540   :  { %7144 = vrot.lane.b32.xlu0 %v9214_v31, %s9837_s16 }
 0x541   :  { %v6056_v38 = vrot.slane %v6054_v43, 4 }
 0x542   :  { %7002 = vrot.lane.b32.xlu1 %v15210_v22, %s9835_s15 }
 0x544   :  { %6728 = vrot.lane.b32.xlu0 %v9214_v31, %s9831_s19 }
 0x546   :  { %7072 = vrot.lane.b32.xlu1 %v19498_v29, %s9836_s1  ;;  %v6041_v29 = vsel %vm10594_vm5, %v9115_v27, %v6040_v17 }
 0x547   :  { %v9215_v12 = vcombine.low %v6041_v29, %v6044_v44  ;;  %v9138_v44 = vrot.slane %v15162_v42, 9  ;;  %v6201_v29 = vrot.slane %v15174_v2, 5  ;;  %v6058_v42 = vsel %vm10594_vm5, %v6056_v38, %v6057_v33 }
 0x548   :  { %6798 = vrot.lane.b32.xlu0 %v15270_v37, %s9832_s29 }
 0x549   :  { %v6203_v14 = vrot.slane %v6201_v29, 4  ;;  %v6202_v2 = vsel %vm10594_vm5, %v9138_v44, %v6201_v29  ;;  %v9766_v29 = vld [vmem:[#allocation2 + $0x54] sm:$0xf] }
 0x54a   :  { %7142 = vrot.lane.b32.xlu1 %v9213_v1, %s9837_s16 }
 0x54b   :  { %v6205_v58 = vsel %vm10594_vm5, %v6203_v14, %v6204_v32 }
 0x54c   :  { %6868 = vrot.lane.b32.xlu0 %v19504_v5, %s9833_s9  ;;  %v15340_v57 = vcombine.low %v6202_v2, %v6205_v58 }
 0x54e   :  { %6726 = vrot.lane.b32.xlu1 %v9213_v1, %s9831_s19  ;;  %v15295_v1 = vpop.permute.xlu0 %6570  ;;  %19505 = vst [vmem:[#allocation84_spill] sm:$0xff] %v15340_v57  ;;  %v6075_v57 = vrot.slane %v9771_v13, 5 }
 0x550   :  { %6938 = vrot.lane.b32.xlu0 %v9215_v12, %s9834_s12 }
 0x552   :  { %6796 = vrot.lane.b32.xlu1 %v15241_v63, %s9832_s29  ;;  %v15308_v17 = vpop.permute.xlu0 %6574 }
 0x554   :  { %7008 = vrot.lane.b32.xlu0 %v15289_v10, %s9835_s15 }
 0x556   :  { %6866 = vrot.lane.b32.xlu1 %v19500_v7, %s9833_s9  ;;  %v15313_v7 = vpop.permute.xlu1 %6572  ;;  %v15316_v27 = vpop.permute.xlu0 %6578 }
 0x558   :  { %7078 = vrot.lane.b32.xlu0 %v15018_v35, %s9836_s1 }
 0x55a   :  { %6936 = vrot.lane.b32.xlu1 %v9214_v31, %s9834_s12  ;;  %v9763_v31 = vld [vmem:[#allocation2 + $0x48] sm:$0xf]  ;;  %v15326_v62 = vpop.permute.xlu1 %6576 }
 0x55b   :  { %v15320_v55 = vcombine.low %v9763_v31, %v9762_v47  ;;  %v9117_v40 = vrot.slane %v9763_v31, 9  ;;  %v9765_v31 = vld [vmem:[#allocation2 + $0x58] sm:$0xf] }
 0x55c   :  { %7148 = vrot.lane.b32.xlu0 %v9216_v48, %s9837_s16  ;;  %v6061_v38 = vrot.slane %v9765_v31, 5  ;;  %v15352_v54 = vcombine.low %v9766_v29, %v9765_v31 }
 0x55d   :  { %v6055_v53 = vsel %vm10594_vm5, %v9117_v40, %v6054_v43  ;;  %v9118_v43 = vrot.slane %v9766_v29, 9  ;;  %v9767_v40 = vld [vmem:[#allocation2 + $0x5c] sm:$0x1] }
 0x55e   :  { %7006 = vrot.lane.b32.xlu1 %v15270_v37, %s9835_s15  ;;  %v9217_v36 = vcombine.low %v6055_v53, %v6058_v42  ;;  %v15345_v47 = vpop.permute.xlu1 %6580  ;;  %v6063_v33 = vrot.slane %v6061_v38, 4  ;;  %v6064_v14 = vrot.slane %v9767_v40, 5  ;;  %v9769_v40 = vld [vmem:[#allocation2 + $0x60] sm:$0xf] }
 0x55f   :  { %v6062_v2 = vsel %vm10594_vm5, %v9118_v43, %v6061_v38 }
 0x560   :  { %6732 = vrot.lane.b32.xlu0 %v9216_v48, %s9831_s19  ;;  %v6065_v42 = vsel %vm10594_vm5, %v6063_v33, %v6064_v14  ;;  %v9119_v14 = vrot.slane %v9769_v40, 9 }
 0x561   :  { %v9218_v58 = vcombine.low %v6062_v2, %v6065_v42  ;;  %v9770_v42 = vld [vmem:[#allocation2 + $0x68] sm:$0x1] }
 0x562   :  { %7076 = vrot.lane.b32.xlu1 %v19504_v5, %s9836_s1  ;;  %v15330_v5 = vpop.permute.xlu0 %6582  ;;  %v6071_v2 = vrot.slane %v9770_v42, 5 }
 0x564   :  { %6802 = vrot.lane.b32.xlu0 %v15320_v55, %s9832_s29 }
 0x566   :  { %7146 = vrot.lane.b32.xlu1 %v9215_v12, %s9837_s16  ;;  %v15348_v44 = vpop.permute.xlu0 %6586 }
 0x567   :  { %19506 = vst [vmem:[#allocation70_spill] sm:$0xff] %v15348_v44 }
 0x568   :  { %6872 = vrot.lane.b32.xlu0 %v14919_v26, %s9833_s9 }
 0x56a   :  { %6730 = vrot.lane.b32.xlu1 %v9215_v12, %s9831_s19  ;;  %v15356_v12 = vpop.permute.xlu1 %6584  ;;  %v15360_v32 = vpop.permute.xlu0 %6590 }
 0x56b   :  { %19507 = vst [vmem:[#allocation87_spill] sm:$0xff] %v15360_v32 }
 0x56c   :  { %6942 = vrot.lane.b32.xlu0 %v9217_v36, %s9834_s12 }
 0x56e   :  { %6800 = vrot.lane.b32.xlu1 %v15289_v10, %s9832_s29  ;;  %v15369_v53 = vpop.permute.xlu1 %6588  ;;  %v15372_v31 = vpop.permute.xlu0 %6598 }
 0x56f   :  { %19508 = vst [vmem:[#allocation73_spill] sm:$0xff] %v15369_v53  ;;  %19509 = vst [vmem:[#allocation109_spill] sm:$0xff] %v15372_v31 }
 0x570   :  { %7012 = vrot.lane.b32.xlu0 %v15352_v54, %s9835_s15 }
 0x572   :  { %6870 = vrot.lane.b32.xlu1 %v15018_v35, %s9833_s9  ;;  %v9768_v35 = vld [vmem:[#allocation2 + $0x64] sm:$0xf]  ;;  %v15377_v33 = vpop.permute.xlu1 %6592 }
 0x573   :  { %v6068_v29 = vrot.slane %v9768_v35, 5  ;;  %19510 = vst [vmem:[#allocation110_spill] sm:$0xff] %v15377_v33  ;;  %v15379_v38 = vcombine.low %v9769_v40, %v9768_v35 }
 0x574   :  { %7082 = vrot.lane.b32.xlu0 %v15032_v56, %s9836_s1 }
 0x575   :  { %v6070_v43 = vrot.slane %v6068_v29, 4  ;;  %v6069_v40 = vsel %vm10594_vm5, %v9119_v14, %v6068_v29 }
 0x576   :  { %6940 = vrot.lane.b32.xlu1 %v9216_v48, %s9834_s12  ;;  %v15383_v48 = vpop.permute.xlu0 %6602 }
 0x577   :  { %19511 = vst [vmem:[#allocation111_spill] sm:$0xff] %v15383_v48  ;;  %v15388_v31 = vpop.permute.xlu1 %6596  ;;  %v6072_v35 = vsel %vm10594_vm5, %v6070_v43, %v6071_v2  ;;  %v9772_v2 = vld [vmem:[#allocation2 + $0x6c] sm:$0xf] }
 0x578   :  { %7152 = vrot.lane.b32.xlu0 %v9218_v58, %s9837_s16  ;;  %19512 = vst [vmem:[#allocation112_spill] sm:$0xff] %v15388_v31  ;;  %v9219_v42 = vcombine.low %v6069_v40, %v6072_v35  ;;  %v3952_v31 = vld [vmem:[#allocation2 + $0xd4] sm:$0x1]  ;;  %v9120_v14 = vrot.slane %v9772_v2, 9 }
 0x579   :  { %v3953_v43 = vsel %vm11590_vm6, 0, %v3952_v31  ;;  %v9773_v35 = vld [vmem:[#allocation2 + $0x74] sm:$0x1] }
 0x57a   :  { %7010 = vrot.lane.b32.xlu1 %v15320_v55, %s9835_s15  ;;  %3954 = vst [vmem:[#allocation2 + $0xd4] sm:$0x1] %v3953_v43  ;;  %v6078_v31 = vrot.slane %v9773_v35, 5  ;;  %v6076_v43 = vsel %vm10594_vm5, %v9120_v14, %v6075_v57 }
 0x57c   :  { %6736 = vrot.lane.b32.xlu0 %v9218_v58, %s9831_s19  ;;  %v15396_v48 = vpop.permute.xlu0 %6606 }
 0x57d   :  { %19513 = vst [vmem:[#allocation113_spill] sm:$0xff] %v15396_v48  ;;  %v15406_v48 = vcombine.low %v9772_v2, %v9771_v13 }
 0x57e   :  { %7080 = vrot.lane.b32.xlu1 %v14919_v26, %s9836_s1  ;;  %v3843_v26 = vsel %vm11573_vm3, 0, %v3842_v28 }
 0x57f   :  { %3844 = vst [vmem:[#allocation2 + $0xcc] sm:$0x1] %v3843_v26  ;;  %v15404_v28 = vpop.permute.xlu1 %6600 }
 0x580   :  { %6806 = vrot.lane.b32.xlu0 %v15379_v38, %s9832_s29  ;;  %19515 = vst [vmem:[#allocation114_spill] sm:$0xff] %v15404_v28 }
 0x582   :  { %7150 = vrot.lane.b32.xlu1 %v9217_v36, %s9837_s16 }
 0x583   :  { %v15410_v29 = vpop.permute.xlu0 %6610 }
 0x584   :  { %6876 = vrot.lane.b32.xlu0 %v15024_v11, %s9833_s9  ;;  %19516 = vst [vmem:[#allocation115_spill] sm:$0xff] %v15410_v29 }
 0x586   :  { %6734 = vrot.lane.b32.xlu1 %v9217_v36, %s9831_s19  ;;  %v6077_v36 = vrot.slane %v6075_v57, 4 }
 0x588   :  { %6946 = vrot.lane.b32.xlu0 %v9219_v42, %s9834_s12  ;;  %v6079_v13 = vsel %vm10594_vm5, %v6077_v36, %v6078_v31  ;;  %v9774_v36 = vld [vmem:[#allocation2 + $0x7c] sm:$0xf] }
 0x589   :  { %v15416_v26 = vpop.permute.xlu1 %6604  ;;  %v9220_v2 = vcombine.low %v6076_v43, %v6079_v13  ;;  %v6082_v31 = vrot.slane %v9774_v36, 5  ;;  %v9776_v43 = vld [vmem:[#allocation2 + $0x80] sm:$0x1] }
 0x58a   :  { %6804 = vrot.lane.b32.xlu1 %v15352_v54, %s9832_s29  ;;  %19517 = vst [vmem:[#allocation116_spill] sm:$0xff] %v15416_v26 }
 0x58b   :  { %v6084_v14 = vrot.slane %v6082_v31, 4 }
 0x58c   :  { %7016 = vrot.lane.b32.xlu0 %v15406_v48, %s9835_s15  ;;  %v15422_v40 = vpop.permute.xlu0 %6614 }
 0x58d   :  { %19518 = vst [vmem:[#allocation117_spill] sm:$0xff] %v15422_v40  ;;  %v9775_v40 = vld [vmem:[#allocation2 + $0x78] sm:$0xf] }
 0x58e   :  { %6874 = vrot.lane.b32.xlu1 %v15032_v56, %s9833_s9  ;;  %v15435_v29 = vcombine.low %v9775_v40, %v9774_v36  ;;  %v9121_v13 = vrot.slane %v9775_v40, 9 }
 0x590   :  { %7086 = vrot.lane.b32.xlu0 %v15048_v0, %s9836_s1  ;;  %v15427_v35 = vpop.permute.xlu1 %6608 }
 0x591   :  { %19519 = vst [vmem:[#allocation118_spill] sm:$0xff] %v15427_v35 }
 0x592   :  { %6944 = vrot.lane.b32.xlu1 %v9218_v58, %s9834_s12 }
 0x594   :  { %7156 = vrot.lane.b32.xlu0 %v9220_v2, %s9837_s16 }
 0x596   :  { %7014 = vrot.lane.b32.xlu1 %v15379_v38, %s9835_s15  ;;  %v15432_v56 = vpop.permute.xlu0 %6618 }
 0x597   :  { %19520 = vst [vmem:[#allocation93_spill] sm:$0xff] %v15432_v56  ;;  %v6085_v56 = vrot.slane %v9776_v43, 5  ;;  %v9777_v43 = vld [vmem:[#allocation2 + $0x88] sm:$0xf] }
 0x598   :  { %6740 = vrot.lane.b32.xlu0 %v9220_v2, %s9831_s19  ;;  %v15439_v57 = vpop.permute.xlu1 %6612  ;;  %v6089_v28 = vrot.slane %v9777_v43, 5 }
 0x599   :  { %19521 = vst [vmem:[#allocation90_spill] sm:$0xff] %v15439_v57  ;;  %v6086_v36 = vsel %vm10594_vm5, %v6084_v14, %v6085_v56  ;;  %v9778_v56 = vld [vmem:[#allocation2 + $0x84] sm:$0xf] }
 0x59a   :  { %7084 = vrot.lane.b32.xlu1 %v15024_v11, %s9836_s1  ;;  %v6725_v58 = vpop.permute.xlu0 %6724  ;;  %v6083_v11 = vsel %vm10594_vm5, %v9121_v13, %v6082_v31  ;;  %v15457_v14 = vcombine.low %v9778_v56, %v9777_v43  ;;  %v6091_v33 = vrot.slane %v6089_v28, 4  ;;  %v9779_v13 = vld [vmem:[#allocation2 + $0x8c] sm:$0x1] }
 0x59b   :  { %v15453_v40 = vcombine.low %v6083_v11, %v6086_v36  ;;  %v6092_v36 = vrot.slane %v9779_v13, 5 }
 0x59c   :  { %6810 = vrot.lane.b32.xlu0 %v15435_v29, %s9832_s29 }
 0x59d   :  { %v6093_v43 = vsel %vm10594_vm5, %v6091_v33, %v6092_v36  ;;  %v9780_v36 = vld [vmem:[#allocation2 + $0x94] sm:$0xf] }
 0x59e   :  { %7154 = vrot.lane.b32.xlu1 %v9219_v42, %s9837_s16  ;;  %v6795_v35 = vpop.permute.xlu0 %6794  ;;  %v6096_v15 = vrot.slane %v9780_v36, 5 }
 0x5a0   :  { %v15446_v26 = vpop.permute.xlu1 %6616  ;;  %6880 = vrot.lane.b32.xlu0 %v15040_v24, %s9833_s9 }
 0x5a1   :  { %19522 = vst [vmem:[#allocation141_spill] sm:$0xff] %v15446_v26 }
 0x5a2   :  { %6738 = vrot.lane.b32.xlu1 %v9219_v42, %s9831_s19  ;;  %v6865_v57 = vpop.permute.xlu0 %6864  ;;  %v9122_v42 = vrot.slane %v9778_v56, 9 }
 0x5a4   :  { %v6723_v16 = vpop.permute.xlu1 %6722  ;;  %6950 = vrot.lane.b32.xlu0 %v15453_v40, %s9834_s12  ;;  %v6090_v21 = vsel %vm10594_vm5, %v9122_v42, %v6089_v28  ;;  %v9781_v28 = vld [vmem:[#allocation2 + $0x90] sm:$0xf] }
 0x5a5   :  { %v15472_v56 = vcombine.low %v6090_v21, %v6093_v43  ;;  %v6098_v43 = vrot.slane %v6096_v15, 4 }
 0x5a6   :  { %6808 = vrot.lane.b32.xlu1 %v15406_v48, %s9832_s29  ;;  %v6935_v26 = vpop.permute.xlu0 %6934 }
 0x5a8   :  { %v6793_v31 = vpop.permute.xlu1 %6792  ;;  %7020 = vrot.lane.b32.xlu0 %v15457_v14, %s9835_s15 }
 0x5aa   :  { %6878 = vrot.lane.b32.xlu1 %v15048_v0, %s9833_s9  ;;  %v7005_v11 = vpop.permute.xlu0 %7004  ;;  %v9147_v0 = vcombine.low %v15204_v52, %v15199_v46  ;;  %v7211_v52 = vsel %vm2265_vm7, %v15236_v9, %v15291_v20 }
 0x5ab   :  { %v7305_v53 = vsel %vm2362_vm8, %v7211_v52, %v6725_v58 }
 0x5ac   :  { %v6863_v32 = vpop.permute.xlu1 %6862  ;;  %7090 = vrot.lane.b32.xlu0 %v15064_v25, %s9836_s1  ;;  %v7208_v21 = vsel %vm2265_vm7, %v9147_v0, %v15265_v49  ;;  %v7369_v0 = vsel %vm2427_vm9, %v7305_v53, %v6795_v35  ;;  %v6100_v53 = vsel %vm10594_vm5, %v6098_v43, %v6099_v34  ;;  %v9785_v43 = vld [vmem:[#allocation2 + $0xa4] sm:$0x1] }
 0x5ad   :  { %v7303_v42 = vsel %vm2362_vm8, %v7208_v21, %v6723_v16  ;;  %v7433_v9 = vsel %vm2492_vm10, %v7369_v0, %v6865_v57 }
 0x5ae   :  { %6948 = vrot.lane.b32.xlu1 %v9220_v2, %s9834_s12  ;;  %v7075_v61 = vpop.permute.xlu0 %7074  ;;  %v15484_v2 = vcombine.low %v9781_v28, %v9780_v36  ;;  %v7367_v44 = vsel %vm2427_vm9, %v7303_v42, %v6793_v31  ;;  %v9123_v36 = vrot.slane %v9781_v28, 9  ;;  %v7497_v58 = vsel %vm2557_vm11, %v7433_v9, %v6935_v26  ;;  %v9784_v28 = vld [vmem:[#allocation2 + $0x9c] sm:$0xf] }
 0x5af   :  { %v9124_v42 = vrot.slane %v9784_v28, 9 }
 0x5b0   :  { %v6933_v13 = vpop.permute.xlu1 %6932  ;;  %7160 = vrot.lane.b32.xlu0 %v15472_v56, %s9837_s16  ;;  %v6097_v26 = vsel %vm10594_vm5, %v9123_v36, %v6096_v15 }
 0x5b2   :  { %7018 = vrot.lane.b32.xlu1 %v15435_v29, %s9835_s15  ;;  %v7145_v33 = vpop.permute.xlu0 %7144 }
 0x5b4   :  { %v7003_v6 = vpop.permute.xlu1 %7002  ;;  %6744 = vrot.lane.b32.xlu0 %v15472_v56, %s9831_s19 }
 0x5b6   :  { %7088 = vrot.lane.b32.xlu1 %v15040_v24, %s9836_s1  ;;  %v15488_v46 = vpop.permute.xlu0 %6728  ;;  %v7431_v24 = vsel %vm2492_vm10, %v7367_v44, %v6863_v32  ;;  %v7561_v44 = vsel %vm2622_vm12, %v7497_v58, %v7005_v11  ;;  %v15520_v11 = vcombine.low %v6097_v26, %v6100_v53  ;;  %v9786_v53 = vld [vmem:[#allocation2 + $0xac] sm:$0xf]  ;;  %v7217_v26 = vsel %vm2265_vm7, %v15241_v63, %v15303_v19 }
 0x5b7   :  { %v7495_v16 = vsel %vm2557_vm11, %v7431_v24, %v6933_v13  ;;  %v7625_v35 = vsel %vm2687_vm13, %v7561_v44, %v7075_v61  ;;  %v9783_v13 = vld [vmem:[#allocation2 + $0xa0] sm:$0xf]  ;;  %v6110_v44 = vrot.slane %v9786_v53, 5 }
 0x5b8   :  { %v7073_v49 = vpop.permute.xlu1 %7072  ;;  %6814 = vrot.lane.b32.xlu0 %v15484_v2, %s9832_s29  ;;  %v7559_v31 = vsel %vm2622_vm12, %v7495_v16, %v7003_v6  ;;  %v7689_v6 = vsel %vm19524_vm0, %v7625_v35, %v7145_v33  ;;  %v6103_v21 = vrot.slane %v9783_v13, 5  ;;  %v15525_v15 = vcombine.low %v9784_v28, %v9783_v13 }
 0x5b9   :  { %v7623_v32 = vsel %vm2687_vm13, %v7559_v31, %v7073_v49  ;;  %v6106_v49 = vrot.slane %v9785_v43, 5  ;;  %v6112_v13 = vrot.slane %v6110_v44, 4 }
 0x5ba   :  { %7158 = vrot.lane.b32.xlu1 %v15453_v40, %s9837_s16  ;;  %v6799_v20 = vpop.permute.xlu0 %6798  ;;  %19527 = vst [vmem:[#allocation144_spill] sm:$0xff] %v15525_v15  ;;  %v6105_v33 = vrot.slane %v6103_v21, 4  ;;  %v6104_v9 = vsel %vm10594_vm5, %v9124_v42, %v6103_v21  ;;  %v7309_v21 = vsel %vm2362_vm8, %v7217_v26, %v15488_v46  ;;  %v9788_v42 = vld [vmem:[#allocation2 + $0xb0] sm:$0x1] }
 0x5bb   :  { %v6113_v43 = vrot.slane %v9788_v42, 5 }
 0x5bc   :  { %v7143_v18 = vpop.permute.xlu1 %7142  ;;  %6884 = vrot.lane.b32.xlu0 %v15056_v8, %s9833_s9  ;;  %v6107_v24 = vsel %vm10594_vm5, %v6105_v33, %v6106_v49 }
 0x5bd   :  { %v7687_v57 = vsel %vm19523_vm4, %v7623_v32, %v7143_v18  ;;  %v15541_v58 = vcombine.low %v6104_v9, %v6107_v24  ;;  %v9787_v18 = vld [vmem:[#allocation2 + $0xa8] sm:$0xf]  ;;  %vm19529_vm4 = vmmov %vm19524_vm0 }
 0x5be   :  { %6742 = vrot.lane.b32.xlu1 %v15453_v40, %s9831_s19  ;;  %9500 = vmatprep.mubr.msk.bf16.mxu1 %vm19525_vm1, %v7687_v57  ;;  %v6869_v34 = vpop.permute.xlu0 %6868  ;;  %v15552_v35 = vcombine.low %v9787_v18, %v9786_v53  ;;  %v9125_v33 = vrot.slane %v9787_v18, 9  ;;  %vm19530_vm0 = vmmov %vm19525_vm1 }
 0x5bf   :  { %9501 = vmatmul.mubr.msk.bf16.vlgmr.msra.gmra.mrb[0].mxu1 %vm19526_vm14, %v7689_v6  ;;  %vm19531_vm1 = vmmov %vm19530_vm0 }
 0x5c0   :  { %v6727_v61 = vpop.permute.xlu1 %6726  ;;  %6954 = vrot.lane.b32.xlu0 %v15520_v11, %s9834_s12  ;;  %vm19532_vm14 = vmmov %vm19529_vm4 }
 0x5c2   :  { %6812 = vrot.lane.b32.xlu1 %v15457_v14, %s9832_s29  ;;  %v6939_v40 = vpop.permute.xlu0 %6938 }
 0x5c4   :  { %v6797_v52 = vpop.permute.xlu1 %6796  ;;  %7024 = vrot.lane.b32.xlu0 %v15525_v15, %s9835_s15 }
 0x5c6   :  { %6882 = vrot.lane.b32.xlu1 %v15064_v25, %s9833_s9  ;;  %v7009_v0 = vpop.permute.xlu0 %7008 }
 0x5c8   :  { %v6867_v36 = vpop.permute.xlu1 %6866  ;;  %7094 = vrot.lane.b32.xlu0 %v15080_v3, %s9836_s1 }
 0x5ca   :  { %6952 = vrot.lane.b32.xlu1 %v15472_v56, %s9834_s12  ;;  %v7079_v16 = vpop.permute.xlu0 %7078  ;;  %v7214_v56 = vsel %vm2265_vm7, %v15210_v22, %v15284_v39 }
 0x5cb   :  { %v7307_v6 = vsel %vm2362_vm8, %v7214_v56, %v6727_v61  ;;  %v15596_v56 = vld [vmem:[#allocation2 + $0xc0] sm:$0xf] }
 0x5cc   :  { %v6937_v31 = vpop.permute.xlu1 %6936  ;;  %7164 = vrot.lane.b32.xlu0 %v15541_v58, %s9837_s16  ;;  %v7371_v22 = vsel %vm2427_vm9, %v7307_v6, %v6797_v52  ;;  %v6235_v6 = vshrl.u32 %v15596_v56, 16 }
 0x5cd   :  { %v7435_v28 = vsel %vm2492_vm10, %v7371_v22, %v6867_v36 }
 0x5ce   :  { %7022 = vrot.lane.b32.xlu1 %v15484_v2, %s9835_s15  ;;  %v7149_v25 = vpop.permute.xlu0 %7148  ;;  %v7499_v19 = vsel %vm2557_vm11, %v7435_v28, %v6937_v31 }
 0x5d0   :  { %v7007_v32 = vpop.permute.xlu1 %7006  ;;  %6748 = vrot.lane.b32.xlu0 %v15541_v58, %s9831_s19 }
 0x5d1   :  { %v7563_v52 = vsel %vm2622_vm12, %v7499_v19, %v7007_v32  ;;  %v9789_v32 = vld [vmem:[#allocation2 + $0xb8] sm:$0xf] }
 0x5d2   :  { %7092 = vrot.lane.b32.xlu1 %v15056_v8, %s9836_s1  ;;  %v15556_v57 = vpop.permute.xlu0 %6732  ;;  %v7373_v8 = vsel %vm2427_vm9, %v7309_v21, %v6799_v20  ;;  %v6114_v20 = vsel %vm10594_vm5, %v6112_v13, %v6113_v43  ;;  %v6238_v21 = vshll.u32 %v15596_v56, 16 }
 0x5d3   :  { %v7437_v63 = vsel %vm2492_vm10, %v7373_v8, %v6869_v34 }
 0x5d4   :  { %v7077_v39 = vpop.permute.xlu1 %7076  ;;  %6818 = vrot.lane.b32.xlu0 %v15552_v35, %s9832_s29  ;;  %v7501_v61 = vsel %vm2557_vm11, %v7437_v63, %v6939_v40  ;;  %v6111_v40 = vsel %vm10594_vm5, %v9125_v33, %v6110_v44  ;;  %v9790_v44 = vld [vmem:[#allocation2 + $0xb4] sm:$0xf]  ;;  %v9791_v33 = vld [vmem:[#allocation2 + $0xbc] sm:$0x1]  ;;  %v6237_v63 = vrot.slane %v6235_v6, 4 }
 0x5d5   :  { %v7565_v49 = vsel %vm2622_vm12, %v7501_v61, %v7009_v0  ;;  %v7627_v24 = vsel %vm2687_vm13, %v7563_v52, %v7077_v39  ;;  %v15593_v53 = vcombine.low %v6111_v40, %v6114_v20  ;;  %v9126_v28 = vrot.slane %v9790_v44, 9  ;;  %v15630_v40 = vld [vmem:[#allocation2 + $0xcc] sm:$0xf] }
 0x5d6   :  { %7162 = vrot.lane.b32.xlu1 %v15520_v11, %s9837_s16  ;;  %v15573_v46 = vpop.permute.xlu0 %6802  ;;  %v7629_v34 = vsel %vm2687_vm13, %v7565_v49, %v7079_v16  ;;  %v6117_v16 = vrot.slane %v9789_v32, 5  ;;  %v6120_v42 = vrot.slane %v9791_v33, 5  ;;  %v6240_v61 = vrot.slane %v6238_v21, 5 }
 0x5d7   :  { %v7693_v31 = vsel %vm19529_vm4, %v7629_v34, %v7149_v25  ;;  %v15600_v25 = vld [vmem:[#allocation2 + $0xc4] sm:$0xf]  ;;  %v6303_v21 = vshrl.u32 %v15630_v40, 16 }
 0x5d8   :  { %v7147_v36 = vpop.permute.xlu1 %7146  ;;  %6888 = vrot.lane.b32.xlu0 %v15072_v30, %s9833_s9  ;;  %v6119_v13 = vrot.slane %v6117_v16, 4  ;;  %v6248_v22 = vshrl.u32 %v15600_v25, 16  ;;  %v6244_v39 = vshll.u32 %v15600_v25, 16  ;;  %v6290_v33 = vrot.slane %v15600_v25, 5 }
 0x5d9   :  { %v7691_v9 = vsel %vm19528_vm15, %v7627_v24, %v7147_v36  ;;  %v6118_v24 = vsel %vm10594_vm5, %v9126_v28, %v6117_v16  ;;  %v15624_v36 = vld [vmem:[#allocation2 + $0xd0] sm:$0xf]  ;;  %vm19533_vm15 = vmmov %vm19529_vm4 }
 0x5da   :  { %6746 = vrot.lane.b32.xlu1 %v15520_v11, %s9831_s19  ;;  %9504 = vmatprep.mubr.msk.bf16.mxu1 %vm19530_vm0, %v7691_v9  ;;  %v15591_v0 = vpop.permute.xlu0 %6872  ;;  %v15602_v11 = vcombine.low %v9790_v44, %v9789_v32  ;;  %v6121_v19 = vsel %vm10594_vm5, %v6119_v13, %v6120_v42  ;;  %v6246_v52 = vrot.slane %v6244_v39, 5  ;;  %v6250_v20 = vrot.slane %v6248_v22, 4  ;;  %v5088_v9 = vld [vmem:[#allocation2 + $0xc8] sm:$0x1]  ;;  %vm19534_vm4 = vmmov %vm19530_vm0 }
 0x5db   :  { %9505 = vmatmul.mubr.msk.bf16.gmra.mrb[4].mxu1 %vm19531_vm1, %v7693_v31  ;;  %v15628_v34 = vcombine.low %v6118_v24, %v6121_v19  ;;  %v6241_v31 = vor.u32 %v6240_v61, %v6237_v63  ;;  %v6316_v6 = vshrl.u32 %v15624_v36, 16  ;;  %v6312_v16 = vshll.u32 %v15624_v36, 16  ;;  %vm19535_vm1 = vmmov %vm19532_vm14 }
 0x5dc   :  { %v6731_v18 = vpop.permute.xlu1 %6730  ;;  %6958 = vrot.lane.b32.xlu0 %v15593_v53, %s9834_s12  ;;  %v6251_v32 = vor.u32 %v6250_v20, %v6246_v52  ;;  %v6254_v13 = vshll.u32 %v5088_v9, 16  ;;  %v6305_v20 = vrot.slane %v6303_v21, 4 }
 0x5dd   :  { %v6242_v39 = vrot.slane %v6241_v31, 4  ;;  %v15643_v63 = vrot.slane %v6312_v16, 5  ;;  %v6318_v19 = vrot.slane %v6316_v6, 4  ;;  %v7223_v31 = vsel %vm2265_vm7, %v15289_v10, %v15313_v7 }
 0x5de   :  { %6816 = vrot.lane.b32.xlu1 %v15525_v15, %s9832_s29  ;;  %v15606_v26 = vpop.permute.xlu0 %6942  ;;  %v6252_v28 = vrot.slane %v6251_v32, 4  ;;  %v6256_v61 = vrot.slane %v6254_v13, 5  ;;  %v7220_v15 = vsel %vm2265_vm7, %v15270_v37, %v15295_v1  ;;  %v15657_v16 = vcombine.low %v15596_v56, %v15600_v25  ;;  %v5091_v13 = vld [vmem:[#allocation2 + $0xd4] sm:$0x1] }
 0x5df   :  { %v9143_v6 = vrot.slane %v15596_v56, 9  ;;  %v7311_v21 = vsel %vm2362_vm8, %v7220_v15, %v6731_v18  ;;  %v6247_v37 = vsel %vm9905_vm2, %v6242_v39, %v6246_v52  ;;  %v6292_v1 = vrot.slane %v6290_v33, 4 }
 0x5e0   :  { %v6801_v8 = vpop.permute.xlu1 %6800  ;;  %7028 = vrot.lane.b32.xlu0 %v15602_v11, %s9835_s15  ;;  %v6257_v10 = vsel %vm9905_vm2, %v6252_v28, %v6256_v61  ;;  %v6293_v56 = vrot.slane %v5088_v9, 5  ;;  %v6319_v25 = vor.u32 %v6318_v19, %v15643_v63  ;;  %v6322_v39 = vshll.u32 %v5091_v13, 16 }
 0x5e1   :  { %v7375_v7 = vsel %vm2427_vm9, %v7311_v21, %v6801_v8  ;;  %v15681_v9 = vcombine.low %v6247_v37, %v6257_v10 }
 0x5e2   :  { %6886 = vrot.lane.b32.xlu1 %v15080_v3, %s9833_s9  ;;  %v15616_v43 = vpop.permute.xlu0 %7012 }
 0x5e4   :  { %v6871_v49 = vpop.permute.xlu1 %6870  ;;  %7098 = vrot.lane.b32.xlu0 %v15096_v50, %s9836_s1 }
 0x5e5   :  { %v7439_v18 = vsel %vm2492_vm10, %v7375_v7, %v6871_v49  ;;  %v6291_v49 = vsel %vm10594_vm5, %v9143_v6, %v6290_v33  ;;  %v6324_v6 = vrot.slane %v6322_v39, 5  ;;  %v6361_v7 = vrot.slane %v5091_v13, 5 }
 0x5e6   :  { %6956 = vrot.lane.b32.xlu1 %v15541_v58, %s9834_s12  ;;  %v7083_v3 = vpop.permute.xlu0 %7082  ;;  %v6306_v58 = vshll.u32 %v15630_v40, 16 }
 0x5e8   :  { %v6941_v44 = vpop.permute.xlu1 %6940  ;;  %7168 = vrot.lane.b32.xlu0 %v15628_v34, %s9837_s16  ;;  %v6308_v24 = vrot.slane %v6306_v58, 5 }
 0x5ea   :  { %7026 = vrot.lane.b32.xlu1 %v15552_v35, %s9835_s15  ;;  %v7153_v22 = vpop.permute.xlu0 %7152  ;;  %v6309_v52 = vor.u32 %v6308_v24, %v6305_v20  ;;  %v6320_v24 = vrot.slane %v6319_v25, 4 }
 0x5ec   :  { %v7011_v42 = vpop.permute.xlu1 %7010  ;;  %6752 = vrot.lane.b32.xlu0 %v15628_v34, %s9831_s19  ;;  %v6310_v33 = vrot.slane %v6309_v52, 4 }
 0x5ee   :  { %7096 = vrot.lane.b32.xlu1 %v15072_v30, %s9836_s1  ;;  %v15653_v32 = vpop.permute.xlu0 %6736  ;;  %v7313_v30 = vsel %vm2362_vm8, %v7223_v31, %v15556_v57  ;;  %v7503_v57 = vsel %vm2557_vm11, %v7439_v18, %v6941_v44 }
 0x5ef   :  { %v7377_v15 = vsel %vm2427_vm9, %v7313_v30, %v15573_v46  ;;  %v7567_v46 = vsel %vm2622_vm12, %v7503_v57, %v7011_v42 }
 0x5f0   :  { %v7081_v58 = vpop.permute.xlu1 %7080  ;;  %6822 = vrot.lane.b32.xlu0 %v15657_v16, %s9832_s29  ;;  %v7441_v28 = vsel %vm2492_vm10, %v7377_v15, %v15591_v0  ;;  %v6294_v0 = vsel %vm10594_vm5, %v6292_v1, %v6293_v56  ;;  %v6325_v1 = vsel %vm9905_vm2, %v6320_v24, %v6324_v6  ;;  %v15721_v56 = vld [vmem:[#allocation2 + $0xe8] sm:$0xf] }
 0x5f1   :  { %v7505_v19 = vsel %vm2557_vm11, %v7441_v28, %v15606_v26  ;;  %v7631_v61 = vsel %vm2687_vm13, %v7567_v46, %v7081_v58  ;;  %v6358_v26 = vrot.slane %v15624_v36, 5  ;;  %v15704_v37 = vcombine.low %v6291_v49, %v6294_v0  ;;  %v15732_v28 = vld [vmem:[#allocation2 + $0xe4] sm:$0xf] }
 0x5f2   :  { %7166 = vrot.lane.b32.xlu1 %v15593_v53, %s9837_s16  ;;  %v15679_v8 = vpop.permute.xlu0 %6806  ;;  %v7569_v44 = vsel %vm2622_vm12, %v7505_v19, %v15616_v43  ;;  %v9128_v57 = vrot.slane %v15732_v28, 9  ;;  %v9794_v19 = vld [vmem:[#allocation2 + $0xec] sm:$0x1] }
 0x5f3   :  { %v7633_v42 = vsel %vm2687_vm13, %v7569_v44, %v7083_v3  ;;  %v9249_v3 = vcombine.low %v15630_v40, %v15624_v36  ;;  %v6360_v30 = vrot.slane %v6358_v26, 4  ;;  %v6131_v36 = vrot.slane %v15721_v56, 5 }
 0x5f4   :  { %v7151_v20 = vpop.permute.xlu1 %7150  ;;  %6892 = vrot.lane.b32.xlu0 %v15681_v9, %s9833_s9  ;;  %v7697_v21 = vsel %vm19533_vm15, %v7633_v42, %v7153_v22  ;;  %v9145_v22 = vrot.slane %v15630_v40, 9  ;;  %v6134_v46 = vrot.slane %v9794_v19, 5  ;;  %vm19537_vm15 = vmmov %vm19530_vm0 }
 0x5f5   :  { %v7695_v31 = vsel %vm19532_vm14, %v7631_v61, %v7151_v20  ;;  %v6362_v15 = vsel %vm10594_vm5, %v6360_v30, %v6361_v7  ;;  %v6133_v18 = vrot.slane %v6131_v36, 4  ;;  %v6132_v20 = vsel %vm10594_vm5, %v9128_v57, %v6131_v36  ;;  %vm19536_vm14 = vmmov %vm19535_vm1 }
 0x5f6   :  { %6750 = vrot.lane.b32.xlu1 %v15593_v53, %s9831_s19  ;;  %9508 = vmatprep.mubr.msk.bf16.mxu1 %vm19534_vm4, %v7695_v31  ;;  %v15702_v43 = vpop.permute.xlu0 %6876  ;;  %v6315_v53 = vsel %vm9905_vm2, %v6310_v33, %v15643_v63  ;;  %v6359_v63 = vsel %vm10594_vm5, %v9145_v22, %v6358_v26  ;;  %v9797_v33 = vld [vmem:[#allocation2 + $0xe0] sm:$0x1]  ;;  %vm19538_vm4 = vmmov %vm19530_vm0 }
 0x5f7   :  { %9509 = vmatmul.mubr.msk.bf16.gmra.mrb[8].mxu1 %vm19530_vm0, %v7697_v21  ;;  %v9251_v40 = vcombine.low %v6315_v53, %v6325_v1  ;;  %v9253_v39 = vcombine.low %v6359_v63, %v6362_v15  ;;  %v6135_v0 = vsel %vm10594_vm5, %v6133_v18, %v6134_v46  ;;  %v6127_v6 = vrot.slane %v9797_v33, 5  ;;  %v9798_v21 = vld [vmem:[#allocation2 + $0xf4] sm:$0xf]  ;;  %v9799_v1 = vld [vmem:[#allocation2 + $0xf0] sm:$0xf]  ;;  %vm19539_vm0 = vmmov %vm19535_vm1 }
 0x5f8   :  { %v6735_v10 = vpop.permute.xlu1 %6734  ;;  %6962 = vrot.lane.b32.xlu0 %v15704_v37, %s9834_s12  ;;  %v15747_v26 = vcombine.low %v6132_v20, %v6135_v0  ;;  %v7229_v53 = vsel %vm2265_vm7, %v15352_v54, %v15326_v62  ;;  %v15760_v30 = vcombine.low %v9799_v1, %v9798_v21  ;;  %v9129_v15 = vrot.slane %v9799_v1, 9  ;;  %v9800_v18 = vld [vmem:[#allocation2 + $0xf8] sm:$0x1]  ;;  %v9803_v1 = vld [vmem:[#allocation2 + $0x104] sm:$0x1] }
 0x5f9   :  { %v7317_v62 = vsel %vm2362_vm8, %v7229_v53, %v15653_v32 }
 0x5fa   :  { %6820 = vrot.lane.b32.xlu1 %v15602_v11, %s9832_s29  ;;  %v15719_v58 = vpop.permute.xlu0 %6946 }
 0x5fc   :  { %v6805_v25 = vpop.permute.xlu1 %6804  ;;  %7032 = vrot.lane.b32.xlu0 %v9249_v3, %s9835_s15  ;;  %v6138_v3 = vrot.slane %v9798_v21, 5 }
 0x5fe   :  { %6890 = vrot.lane.b32.xlu1 %v15096_v50, %s9833_s9  ;;  %v7017_v13 = vpop.permute.xlu0 %7016  ;;  %v15739_v50 = vld [vmem:[#allocation2 + $0xdc] sm:$0xf] }
 0x5ff   :  { %v6124_v44 = vrot.slane %v15739_v50, 5 }
 0x600   :  { %v6875_v52 = vpop.permute.xlu1 %6874  ;;  %7102 = vrot.lane.b32.xlu0 %v9251_v40, %s9836_s1 }
 0x601   :  { %v6126_v31 = vrot.slane %v6124_v44, 4 }
 0x602   :  { %6960 = vrot.lane.b32.xlu1 %v15628_v34, %s9834_s12  ;;  %v7087_v49 = vpop.permute.xlu0 %7086  ;;  %v15749_v34 = vld [vmem:[#allocation2 + $0xd8] sm:$0xf] }
 0x603   :  { %v9127_v42 = vrot.slane %v15749_v34, 9 }
 0x604   :  { %v6945_v61 = vpop.permute.xlu1 %6944  ;;  %7172 = vrot.lane.b32.xlu0 %v9253_v39, %s9837_s16  ;;  %v6141_v39 = vrot.slane %v9800_v18, 5 }
 0x605   :  { %v6125_v40 = vsel %vm10594_vm5, %v9127_v42, %v6124_v44 }
 0x606   :  { %7030 = vrot.lane.b32.xlu1 %v15657_v16, %s9835_s15  ;;  %v7157_v24 = vpop.permute.xlu0 %7156  ;;  %v7226_v16 = vsel %vm2265_vm7, %v15320_v55, %v15308_v17  ;;  %v6128_v17 = vsel %vm10594_vm5, %v6126_v31, %v6127_v6  ;;  %v6140_v55 = vrot.slane %v6138_v3, 4  ;;  %v9801_v31 = vld [vmem:[#allocation2 + $0x100] sm:$0xf] }
 0x607   :  { %v7315_v36 = vsel %vm2362_vm8, %v7226_v16, %v6735_v10  ;;  %v9227_v32 = vcombine.low %v6125_v40, %v6128_v17  ;;  %v6145_v33 = vrot.slane %v9801_v31, 5 }
 0x608   :  { %v7015_v22 = vpop.permute.xlu1 %7014  ;;  %6756 = vrot.lane.b32.xlu0 %v15747_v26, %s9831_s19  ;;  %v7379_v54 = vsel %vm2427_vm9, %v7315_v36, %v6805_v25 }
 0x609   :  { %v7443_v10 = vsel %vm2492_vm10, %v7379_v54, %v6875_v52  ;;  %v6142_v52 = vsel %vm10594_vm5, %v6140_v55, %v6141_v39 }
 0x60a   :  { %7100 = vrot.lane.b32.xlu1 %v15681_v9, %s9836_s1  ;;  %v15764_v7 = vpop.permute.xlu0 %6740  ;;  %v7381_v9 = vsel %vm2427_vm9, %v7317_v62, %v15679_v8  ;;  %v7507_v19 = vsel %vm2557_vm11, %v7443_v10, %v6945_v61 }
 0x60b   :  { %v7445_v57 = vsel %vm2492_vm10, %v7381_v9, %v15702_v43  ;;  %v7571_v8 = vsel %vm2622_vm12, %v7507_v19, %v7015_v22  ;;  %v6147_v22 = vrot.slane %v6145_v33, 4 }
 0x60c   :  { %v7085_v63 = vpop.permute.xlu1 %7084  ;;  %6826 = vrot.lane.b32.xlu0 %v15760_v30, %s9832_s29  ;;  %v7509_v46 = vsel %vm2557_vm11, %v7445_v57, %v15719_v58  ;;  %v6139_v58 = vsel %vm10594_vm5, %v9129_v15, %v6138_v3  ;;  %v9805_v15 = vld [vmem:[#allocation2 + $0x108] sm:$0xf]  ;;  %v7235_v57 = vsel %vm2265_vm7, %v15406_v48, %v15345_v47 }
 0x60d   :  { %v7573_v0 = vsel %vm2622_vm12, %v7509_v46, %v7017_v13  ;;  %v7635_v44 = vsel %vm2687_vm13, %v7571_v8, %v7085_v63  ;;  %v15800_v42 = vcombine.low %v6139_v58, %v6142_v52  ;;  %v9804_v63 = vld [vmem:[#allocation2 + $0x10c] sm:$0xf]  ;;  %v7321_v46 = vsel %vm2362_vm8, %v7235_v57, %v15764_v7  ;;  %v9810_v57 = vld [vmem:[#allocation2 + $0x124] sm:$0xf] }
 0x60e   :  { %7170 = vrot.lane.b32.xlu1 %v15704_v37, %s9837_s16  ;;  %v6811_v25 = vpop.permute.xlu0 %6810  ;;  %v7637_v37 = vsel %vm2687_vm13, %v7573_v0, %v7087_v49  ;;  %v15805_v49 = vcombine.low %v15732_v28, %v15721_v56  ;;  %v6148_v56 = vrot.slane %v9803_v1, 5  ;;  %v6152_v9 = vrot.slane %v9804_v63, 5  ;;  %v9806_v0 = vld [vmem:[#allocation2 + $0x110] sm:$0x1]  ;;  %v9808_v1 = vld [vmem:[#allocation2 + $0x114] sm:$0xf] }
 0x60f   :  { %v7701_v20 = vsel %vm19536_vm14, %v7637_v37, %v7157_v24  ;;  %v9802_v24 = vld [vmem:[#allocation2 + $0xfc] sm:$0xf]  ;;  %v15836_v18 = vcombine.low %v9805_v15, %v9804_v63  ;;  %v9131_v52 = vrot.slane %v9805_v15, 9  ;;  %vm19541_vm14 = vmmov %vm19538_vm4 }
 0x610   :  { %v7155_v43 = vpop.permute.xlu1 %7154  ;;  %6896 = vrot.lane.b32.xlu0 %v15088_v59, %s9833_s9  ;;  %v15809_v21 = vcombine.low %v9802_v24, %v9801_v31  ;;  %v9130_v53 = vrot.slane %v9802_v24, 9  ;;  %v6149_v36 = vsel %vm10594_vm5, %v6147_v22, %v6148_v56  ;;  %v9807_v22 = vld [vmem:[#allocation2 + $0x118] sm:$0xf] }
 0x611   :  { %v7699_v61 = vsel %vm19535_vm1, %v7635_v44, %v7155_v43  ;;  %v6155_v44 = vrot.slane %v9806_v0, 5  ;;  %vm19540_vm1 = vmmov %vm19539_vm0  ;;  %v15878_v56 = vcombine.low %v9808_v1, %v9807_v22 }
 0x612   :  { %6754 = vrot.lane.b32.xlu1 %v9227_v32, %s9831_s19  ;;  %9512 = vmatprep.mubr.msk.bf16.mxu1 %vm19537_vm15, %v7699_v61  ;;  %v6881_v13 = vpop.permute.xlu0 %6880  ;;  %v6146_v17 = vsel %vm10594_vm5, %v9130_v53, %v6145_v33  ;;  %v6154_v32 = vrot.slane %v6152_v9, 4  ;;  %v6153_v33 = vsel %vm10594_vm5, %v9131_v52, %v6152_v9  ;;  %vm19542_vm15 = vmmov %vm19538_vm4 }
 0x613   :  { %9513 = vmatmul.mubr.msk.bf16.gmra.mrb[12].mxu1 %vm19538_vm4, %v7701_v20  ;;  %v15825_v62 = vcombine.low %v6146_v17, %v6149_v36  ;;  %v9809_v17 = vld [vmem:[#allocation2 + $0x11c] sm:$0x1]  ;;  %vm19544_vm4 = vmmov %vm19539_vm0 }
 0x614   :  { %v6739_v6 = vpop.permute.xlu1 %6738  ;;  %6966 = vrot.lane.b32.xlu0 %v15800_v42, %s9834_s12 }
 0x616   :  { %6824 = vrot.lane.b32.xlu1 %v15805_v49, %s9832_s29  ;;  %v6951_v3 = vpop.permute.xlu0 %6950 }
 0x618   :  { %v6809_v16 = vpop.permute.xlu1 %6808  ;;  %7036 = vrot.lane.b32.xlu0 %v15809_v21, %s9835_s15 }
 0x61a   :  { %6894 = vrot.lane.b32.xlu1 %v15112_v41, %s9833_s9  ;;  %v7021_v28 = vpop.permute.xlu0 %7020 }
 0x61c   :  { %v6879_v40 = vpop.permute.xlu1 %6878  ;;  %7106 = vrot.lane.b32.xlu0 %v15128_v23, %s9836_s1 }
 0x61e   :  { %6964 = vrot.lane.b32.xlu1 %v15747_v26, %s9834_s12  ;;  %v7091_v55 = vpop.permute.xlu0 %7090  ;;  %v7232_v26 = vsel %vm2265_vm7, %v15379_v38, %v15316_v27 }
 0x61f   :  { %v7319_v19 = vsel %vm2362_vm8, %v7232_v26, %v6739_v6 }
 0x620   :  { %v6949_v54 = vpop.permute.xlu1 %6948  ;;  %7176 = vrot.lane.b32.xlu0 %v15825_v62, %s9837_s16  ;;  %v7383_v27 = vsel %vm2427_vm9, %v7319_v19, %v6809_v16  ;;  %v6159_v16 = vrot.slane %v9807_v22, 5  ;;  %v6166_v19 = vrot.slane %v9810_v57, 5 }
 0x621   :  { %v7447_v8 = vsel %vm2492_vm10, %v7383_v27, %v6879_v40  ;;  %v9132_v40 = vrot.slane %v9808_v1, 9 }
 0x622   :  { %7034 = vrot.lane.b32.xlu1 %v15760_v30, %s9835_s15  ;;  %v7161_v41 = vpop.permute.xlu0 %7160  ;;  %v7511_v48 = vsel %vm2557_vm11, %v7447_v8, %v6949_v54  ;;  %v6168_v52 = vrot.slane %v6166_v19, 4 }
 0x623   :  { %v6160_v9 = vsel %vm10594_vm5, %v9132_v40, %v6159_v16 }
 0x624   :  { %v7019_v10 = vpop.permute.xlu1 %7018  ;;  %6760 = vrot.lane.b32.xlu0 %v15825_v62, %s9831_s19 }
 0x625   :  { %v7575_v37 = vsel %vm2622_vm12, %v7511_v48, %v7019_v10  ;;  %v9812_v48 = vld [vmem:[#allocation2 + $0x128] sm:$0x1] }
 0x626   :  { %7104 = vrot.lane.b32.xlu1 %v15088_v59, %s9836_s1  ;;  %v15840_v39 = vpop.permute.xlu0 %6744  ;;  %v7385_v59 = vsel %vm2427_vm9, %v7321_v46, %v6811_v25  ;;  %v6156_v25 = vsel %vm10594_vm5, %v6154_v32, %v6155_v44  ;;  %v9811_v46 = vld [vmem:[#allocation2 + $0x120] sm:$0xf] }
 0x627   :  { %v7449_v47 = vsel %vm2492_vm10, %v7385_v59, %v6881_v13  ;;  %v15905_v27 = vcombine.low %v9811_v46, %v9810_v57  ;;  %v7241_v59 = vsel %vm2265_vm7, %v15457_v14, %v15356_v12 }
 0x628   :  { %v7089_v38 = vpop.permute.xlu1 %7088  ;;  %6830 = vrot.lane.b32.xlu0 %v15836_v18, %s9832_s29  ;;  %v7513_v43 = vsel %vm2557_vm11, %v7449_v47, %v6951_v3  ;;  %v15873_v3 = vcombine.low %v6153_v33, %v6156_v25  ;;  %v7325_v0 = vsel %vm2362_vm8, %v7241_v59, %v15840_v39  ;;  %v9133_v47 = vrot.slane %v9811_v46, 9 }
 0x629   :  { %v7577_v61 = vsel %vm2622_vm12, %v7513_v43, %v7021_v28  ;;  %v7639_v58 = vsel %vm2687_vm13, %v7575_v37, %v7089_v38  ;;  %v6161_v28 = vrot.slane %v6159_v16, 4  ;;  %v6169_v43 = vrot.slane %v9812_v48, 5 }
 0x62a   :  { %7174 = vrot.lane.b32.xlu1 %v15800_v42, %s9837_s16  ;;  %v6815_v7 = vpop.permute.xlu0 %6814  ;;  %v7641_v13 = vsel %vm2687_vm13, %v7577_v61, %v7091_v55  ;;  %v6162_v55 = vrot.slane %v9809_v17, 5 }
 0x62b   :  { %v7705_v6 = vsel %vm19540_vm1, %v7641_v13, %v7161_v41  ;;  %v19543_v13 = vld [vmem:[#allocation102_spill] sm:$0xff]  ;;  %vm19545_vm1 = vmmov %vm19541_vm14 }
 0x62c   :  { %v7159_v20 = vpop.permute.xlu1 %7158  ;;  %6900 = vrot.lane.b32.xlu0 %v15104_v51, %s9833_s9  ;;  %v6163_v41 = vsel %vm10594_vm5, %v6161_v28, %v6162_v55  ;;  %v9814_v28 = vld [vmem:[#allocation2 + $0x12c] sm:$0xf] }
 0x62d   :  { %v7703_v31 = vsel %vm19539_vm0, %v7639_v58, %v7159_v20  ;;  %v15894_v26 = vcombine.low %v6160_v9, %v6163_v41  ;;  %v9134_v55 = vrot.slane %v9814_v28, 9 }
 0x62e   :  { %6758 = vrot.lane.b32.xlu1 %v15800_v42, %s9831_s19  ;;  %9516 = vmatprep.mubr.msk.bf16.mxu1 %vm19541_vm14, %v7703_v31  ;;  %v6885_v24 = vpop.permute.xlu0 %6884  ;;  %vm19546_vm14 = vmmov %vm19545_vm1 }
 0x62f   :  { %9517 = vmatmul.mubr.msk.bf16.gmra.mrb[16].mxu1 %vm19542_vm15, %v7705_v6  ;;  %v6167_v6 = vsel %vm10594_vm5, %v9133_v47, %v6166_v19  ;;  %vm19552_vm15 = vmmov %vm19539_vm0 }
 0x630   :  { %v6743_v53 = vpop.permute.xlu1 %6742  ;;  %6970 = vrot.lane.b32.xlu0 %v15873_v3, %s9834_s12 }
 0x632   :  { %6828 = vrot.lane.b32.xlu1 %v15809_v21, %s9832_s29  ;;  %v6955_v42 = vpop.permute.xlu0 %6954 }
 0x634   :  { %v6813_v36 = vpop.permute.xlu1 %6812  ;;  %7040 = vrot.lane.b32.xlu0 %v15878_v56, %s9835_s15 }
 0x636   :  { %6898 = vrot.lane.b32.xlu1 %v15128_v23, %s9833_s9  ;;  %v7025_v54 = vpop.permute.xlu0 %7024 }
 0x638   :  { %v6883_v63 = vpop.permute.xlu1 %6882  ;;  %7110 = vrot.lane.b32.xlu0 %v15144_v4, %s9836_s1 }
 0x63a   :  { %6968 = vrot.lane.b32.xlu1 %v15825_v62, %s9834_s12  ;;  %v7095_v10 = vpop.permute.xlu0 %7094  ;;  %v7238_v62 = vsel %vm2265_vm7, %v15435_v29, %v15330_v5 }
 0x63b   :  { %v7323_v8 = vsel %vm2362_vm8, %v7238_v62, %v6743_v53  ;;  %v9813_v53 = vld [vmem:[#allocation2 + $0x130] sm:$0xf]  ;;  %v9816_v62 = vld [vmem:[#allocation2 + $0x13c] sm:$0xf] }
 0x63c   :  { %v6953_v15 = vpop.permute.xlu1 %6952  ;;  %7180 = vrot.lane.b32.xlu0 %v15894_v26, %s9837_s16  ;;  %v7387_v5 = vsel %vm2427_vm9, %v7323_v8, %v6813_v36  ;;  %v6173_v1 = vrot.slane %v9813_v53, 5  ;;  %v15947_v36 = vcombine.low %v9814_v28, %v9813_v53  ;;  %v6180_v46 = vrot.slane %v9816_v62, 5  ;;  %v19548_v8 = vld [vmem:[#allocation70_spill] sm:$0xff] }
 0x63d   :  { %v7451_v44 = vsel %vm2492_vm10, %v7387_v5, %v6883_v63 }
 0x63e   :  { %7038 = vrot.lane.b32.xlu1 %v15836_v18, %s9835_s15  ;;  %v7165_v23 = vpop.permute.xlu0 %7164  ;;  %v7515_v14 = vsel %vm2557_vm11, %v7451_v44, %v6953_v15  ;;  %v6175_v40 = vrot.slane %v6173_v1, 4  ;;  %v19547_v15 = vld [vmem:[#allocation55_spill] sm:$0xff]  ;;  %v6182_v48 = vrot.slane %v6180_v46, 4 }
 0x640   :  { %v7023_v32 = vpop.permute.xlu1 %7022  ;;  %6764 = vrot.lane.b32.xlu0 %v15894_v26, %s9831_s19 }
 0x641   :  { %v7579_v25 = vsel %vm2622_vm12, %v7515_v14, %v7023_v32 }
 0x642   :  { %7108 = vrot.lane.b32.xlu1 %v15104_v51, %s9836_s1  ;;  %v15909_v38 = vpop.permute.xlu0 %6748  ;;  %v7389_v51 = vsel %vm2427_vm9, %v7325_v0, %v6815_v7  ;;  %v6170_v7 = vsel %vm10594_vm5, %v6168_v52, %v6169_v43  ;;  %v9817_v52 = vld [vmem:[#allocation2 + $0x138] sm:$0xf] }
 0x643   :  { %v7453_v12 = vsel %vm2492_vm10, %v7389_v51, %v6885_v24  ;;  %v15942_v16 = vcombine.low %v6167_v6, %v6170_v7  ;;  %v15974_v0 = vcombine.low %v9817_v52, %v9816_v62  ;;  %v19550_v51 = vld [vmem:[#allocation144_spill] sm:$0xff]  ;;  %v9818_v7 = vld [vmem:[#allocation2 + $0x140] sm:$0x1] }
 0x644   :  { %v7093_v29 = vpop.permute.xlu1 %7092  ;;  %6834 = vrot.lane.b32.xlu0 %v15905_v27, %s9832_s29  ;;  %v7517_v37 = vsel %vm2557_vm11, %v7453_v12, %v6955_v42 }
 0x645   :  { %v7581_v61 = vsel %vm2622_vm12, %v7517_v37, %v7025_v54  ;;  %v7643_v58 = vsel %vm2687_vm13, %v7579_v25, %v7093_v29  ;;  %v9815_v54 = vld [vmem:[#allocation2 + $0x134] sm:$0x1]  ;;  %v19549_v29 = vld [vmem:[#allocation73_spill] sm:$0xff]  ;;  %v9135_v25 = vrot.slane %v9817_v52, 9 }
 0x646   :  { %7178 = vrot.lane.b32.xlu1 %v15873_v3, %s9837_s16  ;;  %v6819_v39 = vpop.permute.xlu0 %6818  ;;  %v7645_v31 = vsel %vm2687_vm13, %v7581_v61, %v7095_v10  ;;  %v6176_v41 = vrot.slane %v9815_v54, 5  ;;  %v7247_v44 = vsel %vm2265_vm7, %v19550_v51, %v19549_v29  ;;  %v6183_v61 = vrot.slane %v9818_v7, 5  ;;  %v4006_v51 = vld [vmem:[#allocation2 + $0x1ac] sm:$0x1]  ;;  %v9823_v7 = vld [vmem:[#allocation2 + $0x150] sm:$0xf] }
 0x647   :  { %v7709_v24 = vsel %vm19539_vm0, %v7645_v31, %v7165_v23  ;;  %v6174_v23 = vsel %vm10594_vm5, %v9134_v55, %v6173_v1  ;;  %v7329_v43 = vsel %vm2362_vm8, %v7247_v44, %v15909_v38 }
 0x648   :  { %v7163_v20 = vpop.permute.xlu1 %7162  ;;  %6904 = vrot.lane.b32.xlu0 %v19543_v13, %s9833_s9  ;;  %v6177_v9 = vsel %vm10594_vm5, %v6175_v40, %v6176_v41  ;;  %v7393_v14 = vsel %vm2427_vm9, %v7329_v43, %v6819_v39  ;;  %v6184_v39 = vsel %vm10594_vm5, %v6182_v48, %v6183_v61  ;;  %v9820_v41 = vld [vmem:[#allocation2 + $0x144] sm:$0xf]  ;;  %v4007_v48 = vsel %vm11590_vm6, 0, %v4006_v51  ;;  %v16108_v51 = vld [vmem:[#allocation2 + $0x174] sm:$0xf] }
 0x649   :  { %v7707_v33 = vsel %vm19544_vm4, %v7643_v58, %v7163_v20  ;;  %v15963_v19 = vcombine.low %v6174_v23, %v6177_v9  ;;  %vm19553_vm4 = vmmov %vm19539_vm0  ;;  %v9136_v23 = vrot.slane %v9820_v41, 9  ;;  %4008 = vst [vmem:[#allocation2 + $0x1ac] sm:$0x1] %v4007_v48  ;;  %v16112_v48 = vld [vmem:[#allocation2 + $0x178] sm:$0xf] }
 0x64a   :  { %6762 = vrot.lane.b32.xlu1 %v15873_v3, %s9831_s19  ;;  %9520 = vmatprep.mubr.msk.bf16.mxu1 %vm19545_vm1, %v7707_v33  ;;  %v6889_v22 = vpop.permute.xlu0 %6888  ;;  %vm19554_vm0 = vmmov %vm19545_vm1 }
 0x64b   :  { %9521 = vmatmul.mubr.msk.bf16.gmra.mrb[20].mxu1 %vm19546_vm14, %v7709_v24  ;;  %v7457_v58 = vsel %vm2492_vm10, %v7393_v14, %v6889_v22  ;;  %v19551_v22 = vld [vmem:[#allocation61_spill] sm:$0xff]  ;;  %vm19555_vm1 = vmmov %vm19554_vm0 }
 0x64c   :  { %v6747_v42 = vpop.permute.xlu1 %6746  ;;  %6974 = vrot.lane.b32.xlu0 %v15942_v16, %s9834_s12  ;;  %vm19562_vm6 = vmmov %vm19553_vm4 }
 0x64d   :  { %vm19564_vm14 = vmmov %vm19554_vm0 }
 0x64e   :  { %6832 = vrot.lane.b32.xlu1 %v15878_v56, %s9832_s29  ;;  %v6959_v3 = vpop.permute.xlu0 %6958 }
 0x650   :  { %v6817_v17 = vpop.permute.xlu1 %6816  ;;  %7044 = vrot.lane.b32.xlu0 %v15947_v36, %s9835_s15 }
 0x652   :  { %6902 = vrot.lane.b32.xlu1 %v15144_v4, %s9833_s9  ;;  %v7029_v63 = vpop.permute.xlu0 %7028 }
 0x654   :  { %v6887_v10 = vpop.permute.xlu1 %6886  ;;  %7114 = vrot.lane.b32.xlu0 %v19547_v15, %s9836_s1 }
 0x656   :  { %6972 = vrot.lane.b32.xlu1 %v15894_v26, %s9834_s12  ;;  %v7099_v57 = vpop.permute.xlu0 %7098  ;;  %v7244_v26 = vsel %vm2265_vm7, %v15484_v2, %v19548_v8  ;;  %v19556_v8 = vld [vmem:[#allocation142_spill] sm:$0xff] }
 0x657   :  { %v7327_v47 = vsel %vm2362_vm8, %v7244_v26, %v6747_v42  ;;  %v6181_v42 = vsel %vm10594_vm5, %v9135_v25, %v6180_v46  ;;  %v3896_v46 = vld [vmem:[#allocation2 + $0x1a4] sm:$0x1] }
 0x658   :  { %v6957_v32 = vpop.permute.xlu1 %6956  ;;  %7184 = vrot.lane.b32.xlu0 %v15963_v19, %s9837_s16  ;;  %v7391_v2 = vsel %vm2427_vm9, %v7327_v47, %v6817_v17  ;;  %v16013_v40 = vcombine.low %v6181_v42, %v6184_v39  ;;  %v9819_v17 = vld [vmem:[#allocation2 + $0x148] sm:$0xf]  ;;  %v3897_v52 = vsel %vm11573_vm3, 0, %v3896_v46  ;;  %vm19563_vm3 = vmmov %vm19553_vm4  ;;  %v9825_v46 = vld [vmem:[#allocation2 + $0x15c] sm:$0xf] }
 0x659   :  { %v7455_v37 = vsel %vm2492_vm10, %v7391_v2, %v6887_v10  ;;  %v6187_v55 = vrot.slane %v9819_v17, 5  ;;  %3898 = vst [vmem:[#allocation2 + $0x1a4] sm:$0x1] %v3897_v52  ;;  %v19566_v47 = vld [vmem:[#allocation85_spill] sm:$0xff] }
 0x65a   :  { %7042 = vrot.lane.b32.xlu1 %v15905_v27, %s9835_s15  ;;  %v7169_v4 = vpop.permute.xlu0 %7168  ;;  %v7519_v20 = vsel %vm2557_vm11, %v7455_v37, %v6957_v32 }
 0x65b   :  { %v6189_v9 = vrot.slane %v6187_v55, 4  ;;  %v6188_v29 = vsel %vm10594_vm5, %v9136_v23, %v6187_v55 }
 0x65c   :  { %v7027_v59 = vpop.permute.xlu1 %7026  ;;  %6768 = vrot.lane.b32.xlu0 %v15963_v19, %s9831_s19 }
 0x65d   :  { %v7583_v31 = vsel %vm2622_vm12, %v7519_v20, %v7027_v59  ;;  %v19560_v20 = vld [vmem:[#allocation110_spill] sm:$0xff] }
 0x65e   :  { %7112 = vrot.lane.b32.xlu1 %v19543_v13, %s9836_s1  ;;  %v15978_v5 = vpop.permute.xlu0 %6752  ;;  %v7521_v13 = vsel %vm2557_vm11, %v7457_v58, %v6959_v3 }
 0x65f   :  { %v7585_v33 = vsel %vm2622_vm12, %v7521_v13, %v7029_v63  ;;  %v16018_v63 = vcombine.low %v9820_v41, %v9819_v17  ;;  %v7253_v13 = vsel %vm2265_vm7, %v15602_v11, %v19560_v20  ;;  %v19567_v20 = vld [vmem:[#allocation84_spill] sm:$0xff] }
 0x660   :  { %v7097_v12 = vpop.permute.xlu1 %7096  ;;  %6838 = vrot.lane.b32.xlu0 %v15974_v0, %s9832_s29  ;;  %v7649_v53 = vsel %vm2687_vm13, %v7585_v33, %v7099_v57  ;;  %v9821_v57 = vld [vmem:[#allocation2 + $0x14c] sm:$0x1]  ;;  %v7333_v33 = vsel %vm2362_vm8, %v7253_v13, %v15978_v5 }
 0x661   :  { %v7647_v6 = vsel %vm2687_vm13, %v7583_v31, %v7097_v12  ;;  %v7713_v28 = vsel %vm19553_vm4, %v7649_v53, %v7169_v4  ;;  %v6190_v32 = vrot.slane %v9821_v57, 5  ;;  %v9822_v12 = vld [vmem:[#allocation2 + $0x154] sm:$0xf]  ;;  %v9137_v53 = vrot.slane %v9823_v7, 9  ;;  %vm19571_vm4 = vmmov %vm19563_vm3 }
 0x662   :  { %7182 = vrot.lane.b32.xlu1 %v15942_v16, %s9837_s16  ;;  %v15995_v38 = vpop.permute.xlu0 %6822  ;;  %v6194_v14 = vrot.slane %v9822_v12, 5  ;;  %v16049_v61 = vcombine.low %v9823_v7, %v9822_v12  ;;  %v5843_v12 = vshrl.u32 %v16108_v51, 16 }
 0x663   :  { %v6191_v62 = vsel %vm10594_vm5, %v6189_v9, %v6190_v32 }
 0x664   :  { %v7167_v24 = vpop.permute.xlu1 %7166  ;;  %6908 = vrot.lane.b32.xlu0 %v19551_v22, %s9833_s9  ;;  %v16036_v44 = vcombine.low %v6188_v29, %v6191_v62  ;;  %v6196_v39 = vrot.slane %v6194_v14, 4 }
 0x665   :  { %v7711_v1 = vsel %vm19552_vm15, %v7647_v6, %v7167_v24  ;;  %v7397_v24 = vsel %vm2427_vm9, %v7333_v33, %v15995_v38  ;;  %vm19565_vm15 = vmmov %vm19554_vm0 }
 0x666   :  { %6766 = vrot.lane.b32.xlu1 %v15942_v16, %s9831_s19  ;;  %9524 = vmatprep.mubr.msk.bf16.mxu1 %vm19554_vm0, %v7711_v1  ;;  %v6893_v3 = vpop.permute.xlu0 %6892  ;;  %v9824_v1 = vld [vmem:[#allocation2 + $0x158] sm:$0x1]  ;;  %vm19572_vm0 = vmmov %vm19563_vm3 }
 0x667   :  { %9525 = vmatmul.mubr.msk.bf16.gmra.mrb[24].mxu1 %vm19555_vm1, %v7713_v28  ;;  %v6197_v11 = vrot.slane %v9824_v1, 5  ;;  %v7461_v42 = vsel %vm2492_vm10, %v7397_v24, %v6893_v3  ;;  %v19561_v3 = vld [vmem:[#allocation138_spill] sm:$0xff] }
 0x668   :  { %v6751_v54 = vpop.permute.xlu1 %6750  ;;  %6978 = vrot.lane.b32.xlu0 %v16013_v40, %s9834_s12  ;;  %v9829_v1 = vld [vmem:[#allocation2 + $0x168] sm:$0xf] }
 0x669   :  { %v6198_v38 = vsel %vm10594_vm5, %v6196_v39, %v6197_v11 }
 0x66a   :  { %6836 = vrot.lane.b32.xlu1 %v15947_v36, %s9832_s29  ;;  %v6963_v16 = vpop.permute.xlu0 %6962 }
 0x66b   :  { %v7525_v17 = vsel %vm2557_vm11, %v7461_v42, %v6963_v16  ;;  %v6195_v16 = vsel %vm10594_vm5, %v9137_v53, %v6194_v14  ;;  %v5846_v14 = vshll.u32 %v16108_v51, 16 }
 0x66c   :  { %v6821_v10 = vpop.permute.xlu1 %6820  ;;  %7048 = vrot.lane.b32.xlu0 %v16018_v63, %s9835_s15 }
 0x66d   :  { %v16133_v39 = vrot.slane %v5846_v14, 5 }
 0x66e   :  { %6906 = vrot.lane.b32.xlu1 %v19547_v15, %s9833_s9  ;;  %v7033_v4 = vpop.permute.xlu0 %7032 }
 0x670   :  { %v6891_v59 = vpop.permute.xlu1 %6890  ;;  %7118 = vrot.lane.b32.xlu0 %v19556_v8, %s9836_s1 }
 0x672   :  { %6976 = vrot.lane.b32.xlu1 %v15963_v19, %s9834_s12  ;;  %v7103_v15 = vpop.permute.xlu0 %7102  ;;  %v19559_v19 = vld [vmem:[#allocation87_spill] sm:$0xff] }
 0x673   :  { %v7250_v25 = vsel %vm2265_vm7, %v15552_v35, %v19559_v19  ;;  %v5852_v19 = vshll.u32 %v16112_v48, 16 }
 0x674   :  { %v6961_v43 = vpop.permute.xlu1 %6960  ;;  %7188 = vrot.lane.b32.xlu0 %v16036_v44, %s9837_s16  ;;  %v7331_v31 = vsel %vm2362_vm8, %v7250_v25, %v6751_v54  ;;  %v7589_v54 = vsel %vm2622_vm12, %v7525_v17, %v7033_v4  ;;  %v16091_v4 = vcombine.low %v6195_v16, %v6198_v38  ;;  %v9163_v25 = vcombine.low %v15749_v34, %v15739_v50  ;;  %v9828_v50 = vld [vmem:[#allocation2 + $0x170] sm:$0x1]  ;;  %v19569_v38 = vld [vmem:[#allocation112_spill] sm:$0xff] }
 0x675   :  { %v7395_v35 = vsel %vm2427_vm9, %v7331_v31, %v6821_v10  ;;  %v7653_v10 = vsel %vm2687_vm13, %v7589_v54, %v7103_v15  ;;  %v16131_v31 = vrot.slane %v5843_v12, 4  ;;  %v6211_v34 = vrot.slane %v9828_v50, 5 }
 0x676   :  { %7046 = vrot.lane.b32.xlu1 %v15974_v0, %s9835_s15  ;;  %v7173_v2 = vpop.permute.xlu0 %7172  ;;  %v7259_v54 = vsel %vm2265_vm7, %v15805_v49, %v19569_v38 }
 0x677   :  { %v7717_v57 = vsel %vm19563_vm3, %v7653_v10, %v7173_v2  ;;  %vm19576_vm3 = vmmov %vm19572_vm0 }
 0x678   :  { %v7031_v37 = vpop.permute.xlu1 %7030  ;;  %6772 = vrot.lane.b32.xlu0 %v16036_v44, %s9831_s19 }
 0x67a   :  { %7116 = vrot.lane.b32.xlu1 %v19551_v22, %s9836_s1  ;;  %v16053_v58 = vpop.permute.xlu0 %6756  ;;  %v7459_v22 = vsel %vm2492_vm10, %v7395_v35, %v6891_v59  ;;  %v9826_v59 = vld [vmem:[#allocation2 + $0x160] sm:$0xf] }
 0x67b   :  { %v7523_v28 = vsel %vm2557_vm11, %v7459_v22, %v6961_v43  ;;  %v16096_v26 = vcombine.low %v9825_v46, %v9826_v59  ;;  %v16114_v43 = vld [vmem:[#allocation2 + $0x16c] sm:$0xf]  ;;  %v19568_v22 = vld [vmem:[#allocation67_spill] sm:$0xff]  ;;  %v7337_v59 = vsel %vm2362_vm8, %v7259_v54, %v16053_v58 }
 0x67c   :  { %v7101_v6 = vpop.permute.xlu1 %7100  ;;  %6842 = vrot.lane.b32.xlu0 %v16049_v61, %s9832_s29  ;;  %v7587_v55 = vsel %vm2622_vm12, %v7523_v28, %v7031_v37  ;;  %v6208_v2 = vrot.slane %v16114_v43, 5  ;;  %v5856_v37 = vshrl.u32 %v16112_v48, 16  ;;  %v7256_v53 = vsel %vm2265_vm7, %v9163_v25, %v19568_v22 }
 0x67d   :  { %v7651_v41 = vsel %vm2687_vm13, %v7587_v55, %v7101_v6  ;;  %v16141_v6 = vrot.slane %v5852_v19, 5  ;;  %v16146_v11 = vcombine.low %v9829_v1, %v16114_v43  ;;  %v9139_v55 = vrot.slane %v9829_v1, 9 }
 0x67e   :  { %7186 = vrot.lane.b32.xlu1 %v16013_v40, %s9837_s16  ;;  %v16071_v5 = vpop.permute.xlu0 %6826  ;;  %v6210_v13 = vrot.slane %v6208_v2, 4  ;;  %v5858_v24 = vrot.slane %v5856_v37, 4 }
 0x67f   :  { %v7401_v58 = vsel %vm2427_vm9, %v7337_v59, %v16071_v5  ;;  %v5133_v5 = vld [vmem:[#allocation2 + $0x17c] sm:$0x1] }
 0x680   :  { %v7171_v9 = vpop.permute.xlu1 %7170  ;;  %6912 = vrot.lane.b32.xlu0 %v19561_v3, %s9833_s9  ;;  %v6212_v10 = vsel %vm10594_vm5, %v6210_v13, %v6211_v34  ;;  %v5859_v37 = vor.u32 %v5858_v24, %v16141_v6 }
 0x681   :  { %v7715_v23 = vsel %vm19562_vm6, %v7651_v41, %v7171_v9  ;;  %vm19573_vm6 = vmmov %vm19555_vm1 }
 0x682   :  { %6770 = vrot.lane.b32.xlu1 %v16013_v40, %s9831_s19  ;;  %9528 = vmatprep.mubr.msk.bf16.mxu1 %vm19564_vm14, %v7715_v23  ;;  %v16089_v32 = vpop.permute.xlu0 %6896  ;;  %v5849_v23 = vor.u32 %v16133_v39, %v16131_v31  ;;  %vm19577_vm14 = vmmov %vm19572_vm0 }
 0x683   :  { %9529 = vmatmul.mubr.msk.bf16.gmra.mrb[28].mxu1 %vm19565_vm15, %v7717_v57  ;;  %v7465_v34 = vsel %vm2492_vm10, %v7401_v58, %v16089_v32  ;;  %vm19578_vm15 = vmmov %vm19555_vm1 }
 0x684   :  { %v6755_v62 = vpop.permute.xlu1 %6754  ;;  %6982 = vrot.lane.b32.xlu0 %v16091_v4, %s9834_s12 }
 0x685   :  { %v7335_v41 = vsel %vm2362_vm8, %v7256_v53, %v6755_v62 }
 0x686   :  { %6840 = vrot.lane.b32.xlu1 %v16018_v63, %s9832_s29  ;;  %v16100_v40 = vpop.permute.xlu0 %6966 }
 0x688   :  { %v6825_v52 = vpop.permute.xlu1 %6824  ;;  %7052 = vrot.lane.b32.xlu0 %v16096_v26, %s9835_s15 }
 0x689   :  { %v7399_v12 = vsel %vm2427_vm9, %v7335_v41, %v6825_v52 }
 0x68a   :  { %6910 = vrot.lane.b32.xlu1 %v19556_v8, %s9833_s9  ;;  %v16106_v29 = vpop.permute.xlu0 %7036 }
 0x68c   :  { %v6895_v15 = vpop.permute.xlu1 %6894  ;;  %7122 = vrot.lane.b32.xlu0 %v19566_v47, %s9836_s1 }
 0x68d   :  { %v7463_v52 = vsel %vm2492_vm10, %v7399_v12, %v6895_v15  ;;  %v7529_v15 = vsel %vm2557_vm11, %v7465_v34, %v16100_v40  ;;  %v6209_v40 = vsel %vm10594_vm5, %v9139_v55, %v6208_v2  ;;  %v5850_v2 = vrot.slane %v5849_v23, 4 }
 0x68e   :  { %6980 = vrot.lane.b32.xlu1 %v16036_v44, %s9834_s12  ;;  %v16121_v8 = vpop.permute.xlu0 %7106  ;;  %v16227_v43 = vcombine.low %v6209_v40, %v6212_v10  ;;  %v6215_v55 = vrot.slane %v16112_v48, 5  ;;  %v16239_v10 = vcombine.low %v16108_v51, %v16112_v48 }
 0x68f   :  { %v5855_v23 = vsel %vm9905_vm2, %v5850_v2, %v16141_v6  ;;  %v16257_v6 = vld [vmem:[#allocation2 + $0x184] sm:$0xf]  ;;  %v19575_v2 = vld [vmem:[#allocation114_spill] sm:$0xff] }
 0x690   :  { %v6965_v7 = vpop.permute.xlu1 %6964  ;;  %7192 = vrot.lane.b32.xlu0 %v19567_v20, %s9837_s16  ;;  %v5880_v34 = vshrl.u32 %v16257_v6, 16 }
 0x691   :  { %v7527_v24 = vsel %vm2557_vm11, %v7463_v52, %v6965_v7  ;;  %v7593_v7 = vsel %vm2622_vm12, %v7529_v15, %v16106_v29 }
 0x692   :  { %7050 = vrot.lane.b32.xlu1 %v16049_v61, %s9835_s15  ;;  %v16137_v44 = vpop.f32.mrb[0].mxu1  ;;  %v7177_v33 = vpop.permute.xlu0 %7176 }
 0x693   :  { %v16139_v35 = vpop.f32.mrb[1].mxu1  ;;  %v8264_v16 = vmul.f32 %v16137_v44, %v16137_v44  ;;  %v8131_v19 = vsel %vm2265_vm7, %v16137_v44, 0.0 }
 0x694   :  { %v8262_v42 = vmul.f32 %v16139_v35, %v16139_v35  ;;  %v7035_v28 = vpop.permute.xlu1 %7034  ;;  %v16150_v17 = vpop.f32.mrb[2].mxu1  ;;  %6776 = vrot.lane.b32.xlu0 %v19567_v20, %s9831_s19  ;;  %v8128_v57 = vsel %vm2265_vm7, %v16139_v35, 0.0 }
 0x695   :  { %v16158_v9 = vpop.f32.mrb[3].mxu1  ;;  %v8265_v13 = vmul.f32 %v16150_v17, %v16150_v17  ;;  %v8329_v22 = vsel %vm2265_vm7, %v8264_v16, 0.0  ;;  %v8133_v53 = vsel %vm2265_vm7, %v16150_v17, 0.0 }
 0x696   :  { %v8129_v46 = vsel %vm2265_vm7, %v16158_v9, 0.0  ;;  %v8263_v49 = vmul.f32 %v16158_v9, %v16158_v9  ;;  %7120 = vrot.lane.b32.xlu1 %v19561_v3, %s9836_s1  ;;  %v16174_v62 = vpop.permute.xlu0 %6760  ;;  %v8326_v25 = vsel %vm2265_vm7, %v8262_v42, 0.0  ;;  %v7591_v42 = vsel %vm2622_vm12, %v7527_v24, %v7035_v28 }
 0x697   :  { %v8130_v14 = vadd.f32 %v8129_v46, %v8128_v57  ;;  %v8331_v54 = vsel %vm2265_vm7, %v8265_v13, 0.0  ;;  %v19570_v57 = vld [vmem:[#allocation64_spill] sm:$0xff]  ;;  %v7657_v28 = vsel %vm2687_vm13, %v7593_v7, %v16121_v8  ;;  %v5860_v8 = vrot.slane %v5859_v37, 4 }
 0x698   :  { %v8327_v3 = vsel %vm2265_vm7, %v8263_v49, 0.0  ;;  %v7105_v31 = vpop.permute.xlu1 %7104  ;;  %6846 = vrot.lane.b32.xlu0 %v16146_v11, %s9832_s29  ;;  %v5862_v49 = vshll.u32 %v5133_v5, 16  ;;  %v7721_v59 = vsel %vm19572_vm0, %v7657_v28, %v7177_v33  ;;  %v9140_v13 = vrot.slane %v16108_v51, 9 }
 0x699   :  { %v8132_v39 = vadd.f32 %v8131_v19, %v8130_v14  ;;  %v8328_v50 = vadd.f32 %v8327_v3, %v8326_v25  ;;  %v7655_v41 = vsel %vm2687_vm13, %v7591_v42, %v7105_v31  ;;  %v6217_v19 = vrot.slane %v6215_v55, 4  ;;  %v16249_v31 = vld [vmem:[#allocation2 + $0x180] sm:$0xf] }
 0x69a   :  { %7190 = vrot.lane.b32.xlu1 %v16091_v4, %s9837_s16  ;;  %v16199_v1 = vpop.permute.xlu0 %6830  ;;  %v5864_v33 = vrot.slane %v5862_v49, 5  ;;  %v6218_v3 = vrot.slane %v5133_v5, 5  ;;  %v5867_v51 = vshrl.u32 %v16249_v31, 16  ;;  %v5876_v24 = vshll.u32 %v16257_v6, 16 }
 0x69b   :  { %v8330_v38 = vadd.f32 %v8329_v22, %v8328_v50  ;;  %v16204_v32 = vadd.f32 %v8133_v53, %v8132_v39  ;;  %v6216_v50 = vsel %vm10594_vm5, %v9140_v13, %v6215_v55  ;;  %v16283_v7 = vrot.slane %v5880_v34, 4 }
 0x69c   :  { %v7175_v16 = vpop.permute.xlu1 %7174  ;;  %6916 = vrot.lane.b32.xlu0 %v19570_v57, %s9833_s9  ;;  %v5865_v37 = vsel %vm9905_vm2, %v5860_v8, %v5864_v33  ;;  %v6219_v52 = vsel %vm10594_vm5, %v6217_v19, %v6218_v3  ;;  %v16277_v15 = vrot.slane %v5867_v51, 4  ;;  %v7265_v8 = vsel %vm2265_vm7, %v15809_v21, %v19575_v2 }
 0x69d   :  { %v7719_v46 = vsel %vm19571_vm4, %v7655_v41, %v7175_v16  ;;  %v16219_v29 = vadd.f32 %v8331_v54, %v8330_v38  ;;  %v16255_v58 = vcombine.low %v5855_v23, %v5865_v37  ;;  %v16273_v53 = vcombine.low %v6216_v50, %v6219_v52  ;;  %v19574_v16 = vld [vmem:[#allocation109_spill] sm:$0xff]  ;;  %vm19579_vm4 = vmmov %vm19555_vm1 }
 0x69e   :  { %6774 = vrot.lane.b32.xlu1 %v16091_v4, %s9831_s19  ;;  %9532 = vmatprep.mubr.msk.bf16.mxu1 %vm19555_vm1, %v7719_v46  ;;  %v16225_v12 = vpop.permute.xlu0 %6900  ;;  %v16281_v38 = vrot.slane %v5876_v24, 5  ;;  %v7262_v40 = vsel %vm2265_vm7, %v15760_v30, %v19574_v16  ;;  %v7341_v3 = vsel %vm2362_vm8, %v7265_v8, %v16174_v62  ;;  %vm19582_vm1 = vmmov %vm19572_vm0 }
 0x69f   :  { %9533 = vmatmul.mubr.msk.bf16.gmra.mrb[32].mxu1 %vm19573_vm6, %v7721_v59  ;;  %v7405_v62 = vsel %vm2427_vm9, %v7341_v3, %v16199_v1  ;;  %v16348_v1 = vld [vmem:[#allocation2 + $0x18c] sm:$0xf]  ;;  %vm19583_vm6 = vmmov %vm19579_vm4 }
 0x6a0   :  { %v6759_v14 = vpop.permute.xlu1 %6758  ;;  %6986 = vrot.lane.b32.xlu0 %v16227_v43, %s9834_s12  ;;  %v5883_v23 = vor.u32 %v16283_v7, %v16281_v38  ;;  %v7469_v7 = vsel %vm2492_vm10, %v7405_v62, %v16225_v12  ;;  %v5891_v3 = vshrl.u32 %v16348_v1, 16 }
 0x6a1   :  { %v7339_v52 = vsel %vm2362_vm8, %v7262_v40, %v6759_v14 }
 0x6a2   :  { %6844 = vrot.lane.b32.xlu1 %v16096_v26, %s9832_s29  ;;  %v16235_v4 = vpop.permute.xlu0 %6970  ;;  %v5893_v62 = vrot.slane %v5891_v3, 4 }
 0x6a4   :  { %v6829_v25 = vpop.permute.xlu1 %6828  ;;  %7056 = vrot.lane.b32.xlu0 %v16239_v10, %s9835_s15 }
 0x6a6   :  { %6914 = vrot.lane.b32.xlu1 %v19566_v47, %s9833_s9  ;;  %v16253_v48 = vpop.permute.xlu0 %7040  ;;  %v5870_v47 = vshll.u32 %v16249_v31, 16 }
 0x6a8   :  { %v6899_v39 = vpop.permute.xlu1 %6898  ;;  %7126 = vrot.lane.b32.xlu0 %v16255_v58, %s9836_s1  ;;  %v16279_v42 = vrot.slane %v5870_v47, 5  ;;  %v7403_v47 = vsel %vm2427_vm9, %v7339_v52, %v6829_v25  ;;  %v5136_v25 = vld [vmem:[#allocation2 + $0x188] sm:$0x1] }
 0x6aa   :  { %6984 = vrot.lane.b32.xlu1 %v19567_v20, %s9834_s12  ;;  %v16271_v22 = vpop.permute.xlu0 %7110  ;;  %v5873_v30 = vor.u32 %v16279_v42, %v16277_v15 }
 0x6ac   :  { %v6969_v5 = vpop.permute.xlu1 %6968  ;;  %7196 = vrot.lane.b32.xlu0 %v16273_v53, %s9837_s16 }
 0x6ae   :  { %7054 = vrot.lane.b32.xlu1 %v16146_v11, %s9835_s15  ;;  %v16287_v20 = vpop.f32.mrb[4].mxu1  ;;  %v7181_v54 = vpop.permute.xlu0 %7180 }
 0x6af   :  { %v16289_v41 = vpop.f32.mrb[5].mxu1  ;;  %v8268_v37 = vmul.f32 %v16287_v20, %v16287_v20  ;;  %v8139_v34 = vsel %vm2265_vm7, %v16287_v20, 0.0 }
 0x6b0   :  { %v8135_v28 = vsel %vm2265_vm7, %v16289_v41, 0.0  ;;  %v8266_v46 = vmul.f32 %v16289_v41, %v16289_v41  ;;  %v7039_v49 = vpop.permute.xlu1 %7038  ;;  %v16298_v59 = vpop.f32.mrb[6].mxu1  ;;  %6778 = vrot.lane.b32.xlu0 %v16227_v43, %s9831_s19 }
 0x6b1   :  { %v8136_v55 = vadd.f32 %v8135_v28, %v16204_v32  ;;  %v16306_v33 = vpop.f32.mrb[7].mxu1  ;;  %v8269_v24 = vmul.f32 %v16298_v59, %v16298_v59  ;;  %v8337_v40 = vsel %vm2265_vm7, %v8268_v37, 0.0  ;;  %v8141_v28 = vsel %vm2265_vm7, %v16298_v59, 0.0 }
 0x6b2   :  { %v8333_v19 = vsel %vm2265_vm7, %v8266_v46, 0.0  ;;  %v8137_v13 = vsel %vm2265_vm7, %v16306_v33, 0.0  ;;  %v8267_v21 = vmul.f32 %v16306_v33, %v16306_v33  ;;  %7124 = vrot.lane.b32.xlu1 %v19570_v57, %s9836_s1  ;;  %v16321_v32 = vpop.permute.xlu0 %6764 }
 0x6b3   :  { %v8334_v51 = vadd.f32 %v8333_v19, %v16219_v29  ;;  %v8138_v50 = vadd.f32 %v8137_v13, %v8136_v55  ;;  %v7467_v29 = vsel %vm2492_vm10, %v7403_v47, %v6899_v39  ;;  %v7533_v39 = vsel %vm2557_vm11, %v7469_v7, %v16235_v4 }
 0x6b4   :  { %v8335_v57 = vsel %vm2265_vm7, %v8267_v21, 0.0  ;;  %v7109_v15 = vpop.permute.xlu1 %7108  ;;  %6848 = vrot.lane.b32.xlu0 %v16239_v10, %s9832_s29  ;;  %v7531_v16 = vsel %vm2557_vm11, %v7467_v29, %v6969_v5  ;;  %v16355_v5 = vld [vmem:[#allocation2 + $0x190] sm:$0xf]  ;;  %v7597_v55 = vsel %vm2622_vm12, %v7533_v39, %v16253_v48  ;;  %v8339_v37 = vsel %vm2265_vm7, %v8269_v24, 0.0 }
 0x6b5   :  { %v8140_v14 = vadd.f32 %v8139_v34, %v8138_v50  ;;  %v8336_v42 = vadd.f32 %v8335_v57, %v8334_v51  ;;  %v7595_v2 = vsel %vm2622_vm12, %v7531_v16, %v7039_v49  ;;  %v5886_v13 = vshll.u32 %v5136_v25, 16 }
 0x6b6   :  { %7194 = vrot.lane.b32.xlu1 %v16227_v43, %s9837_s16  ;;  %v16346_v46 = vpop.permute.xlu0 %6834  ;;  %v7659_v43 = vsel %vm2687_vm13, %v7595_v2, %v7109_v15  ;;  %v7661_v4 = vsel %vm2687_vm13, %v7597_v55, %v16271_v22  ;;  %v5894_v51 = vshll.u32 %v16348_v1, 16  ;;  %v5904_v50 = vshrl.u32 %v16355_v5, 16 }
 0x6b7   :  { %v8338_v12 = vadd.f32 %v8337_v40, %v8336_v42  ;;  %v16353_v8 = vadd.f32 %v8141_v28, %v8140_v14  ;;  %v7725_v48 = vsel %vm19577_vm14, %v7661_v4, %v7181_v54  ;;  %v5900_v22 = vshll.u32 %v16355_v5, 16  ;;  %v5139_v28 = vld [vmem:[#allocation2 + $0x194] sm:$0x1] }
 0x6b8   :  { %v7179_v19 = vpop.permute.xlu1 %7178  ;;  %6918 = vrot.lane.b32.xlu0 %v16255_v58, %s9833_s9  ;;  %v5874_v47 = vrot.slane %v5873_v30, 4  ;;  %v5884_v34 = vrot.slane %v5883_v23, 4  ;;  %v6222_v24 = vrot.slane %v16257_v6, 5  ;;  %v5888_v57 = vrot.slane %v5886_v13, 5 }
 0x6b9   :  { %v7723_v49 = vsel %vm19576_vm3, %v7659_v43, %v7179_v19  ;;  %v16366_v21 = vadd.f32 %v8339_v37, %v8338_v12  ;;  %v5896_v30 = vrot.slane %v5894_v51, 5  ;;  %v5902_v23 = vrot.slane %v5900_v22, 5  ;;  %vm19584_vm3 = vmmov %vm19579_vm4 }
 0x6ba   :  { %6620 = vrot.lane.b32.xlu1 %v16255_v58, %s9830_s23  ;;  %9536 = vmatprep.mubr.msk.bf16.mxu1 %vm19578_vm15, %v7723_v49  ;;  %v16373_v52 = vpop.permute.xlu0 %6904  ;;  %v16386_v58 = vcombine.low %v16249_v31, %v16257_v6  ;;  %v5906_v29 = vrot.slane %v5904_v50, 4  ;;  %v5879_v14 = vsel %vm9905_vm2, %v5874_v47, %v16281_v38  ;;  %v5889_v42 = vsel %vm9905_vm2, %v5884_v34, %v5888_v57  ;;  %v16418_v49 = vld [vmem:[#allocation2 + $0x19c] sm:$0xf]  ;;  %vm19589_vm14 = vmmov %vm19584_vm3 }
 0x6bb   :  { %9537 = vmatmul.mubr.msk.bf16.gmra.mrb[36].mxu1 %vm19579_vm4, %v7725_v48  ;;  %v6224_v7 = vrot.slane %v6222_v24, 4  ;;  %v6229_v6 = vrot.slane %v16355_v5, 5  ;;  %v6225_v40 = vrot.slane %v5136_v25, 5  ;;  %v16405_v39 = vcombine.low %v5879_v14, %v5889_v42  ;;  %v16413_v25 = vld [vmem:[#allocation2 + $0x198] sm:$0xf]  ;;  %vm19590_vm15 = vmmov %vm19584_vm3 }
 0x6bc   :  { %v16380_v54 = vpop.permute.xlu1 %6762  ;;  %6988 = vrot.lane.b32.xlu0 %v16273_v53, %s9834_s12  ;;  %v5897_v2 = vor.u32 %v5896_v30, %v5893_v62  ;;  %v5907_v12 = vor.u32 %v5906_v29, %v5902_v23  ;;  %v9142_v13 = vrot.slane %v16348_v1, 9  ;;  %v6232_v4 = vrot.slane %v5139_v28, 5  ;;  %vm19593_vm4 = vmmov %vm19572_vm0 }
 0x6bd   :  { %v6226_v55 = vsel %vm10594_vm5, %v6224_v7, %v6225_v40  ;;  %v6231_v37 = vrot.slane %v6229_v6, 4  ;;  %v6259_v47 = vshrl.u32 %v16413_v25, 16  ;;  %v6262_v57 = vshll.u32 %v16413_v25, 16 }
 0x6be   :  { %6780 = vrot.lane.b32.xlu1 %v16273_v53, %s9831_s19  ;;  %v16390_v15 = vpop.permute.xlu0 %6974  ;;  %v9141_v53 = vrot.slane %v16249_v31, 9  ;;  %v5910_v31 = vshll.u32 %v5139_v28, 16  ;;  %v5898_v51 = vrot.slane %v5897_v2, 4  ;;  %v5908_v50 = vrot.slane %v5907_v12, 4  ;;  %v19580_v28 = vld [vmem:[#allocation111_spill] sm:$0xff] }
 0x6bf   :  { %v6233_v22 = vsel %vm10594_vm5, %v6231_v37, %v6232_v4  ;;  %v6272_v62 = vshrl.u32 %v16418_v49, 16  ;;  %v6230_v30 = vsel %vm10594_vm5, %v9142_v13, %v6229_v6  ;;  %v6268_v29 = vshll.u32 %v16418_v49, 16 }
 0x6c0   :  { %v16398_v16 = vpop.permute.xlu1 %6832  ;;  %7058 = vrot.lane.b32.xlu0 %v16386_v58, %s9835_s15  ;;  %v6223_v19 = vsel %vm10594_vm5, %v9141_v53, %v6222_v24  ;;  %v5912_v24 = vrot.slane %v5910_v31, 5  ;;  %v5903_v7 = vsel %vm9905_vm2, %v5898_v51, %v5902_v23  ;;  %v16440_v40 = vcombine.low %v6230_v30, %v6233_v22 }
 0x6c1   :  { %v9241_v3 = vcombine.low %v6223_v19, %v6226_v55  ;;  %v7268_v2 = vsel %vm2265_vm7, %v15836_v18, %v19580_v28  ;;  %v16449_v12 = vcombine.low %v16348_v1, %v16355_v5  ;;  %v16451_v55 = vrot.slane %v6259_v47, 4  ;;  %v19581_v1 = vld [vmem:[#allocation116_spill] sm:$0xff] }
 0x6c2   :  { %6850 = vrot.lane.b32.xlu1 %v16386_v58, %s9832_s29  ;;  %v16407_v38 = vpop.permute.xlu0 %7044  ;;  %v5913_v53 = vsel %vm9905_vm2, %v5908_v50, %v5912_v24  ;;  %v16461_v18 = vrot.slane %v6262_v57, 5  ;;  %v16463_v13 = vrot.slane %v6272_v62, 4  ;;  %v7271_v5 = vsel %vm2265_vm7, %v15878_v56, %v19581_v1 }
 0x6c3   :  { %v9210_v50 = vcombine.low %v5903_v7, %v5913_v53  ;;  %v16471_v22 = vrot.slane %v6268_v29, 5  ;;  %v7343_v30 = vsel %vm2362_vm8, %v7268_v2, %v16380_v54 }
 0x6c4   :  { %v6903_v43 = vpop.permute.xlu1 %6902  ;;  %7128 = vrot.lane.b32.xlu0 %v16405_v39, %s9836_s1  ;;  %v7407_v53 = vsel %vm2427_vm9, %v7343_v30, %v16398_v16 }
 0x6c6   :  { %6920 = vrot.lane.b32.xlu1 %v16405_v39, %s9833_s9  ;;  %v16422_v48 = vpop.permute.xlu0 %7114 }
 0x6c8   :  { %v6973_v34 = vpop.permute.xlu1 %6972  ;;  %7198 = vrot.lane.b32.xlu0 %v9241_v3, %s9837_s16 }
 0x6ca   :  { %6990 = vrot.lane.b32.xlu1 %v9241_v3, %s9834_s12  ;;  %v16434_v14 = vpop.f32.mrb[8].mxu1  ;;  %v7185_v42 = vpop.permute.xlu0 %7184 }
 0x6cb   :  { %v16445_v6 = vpop.f32.mrb[9].mxu1  ;;  %v8272_v47 = vmul.f32 %v16434_v14, %v16434_v14  ;;  %v8147_v28 = vsel %vm2265_vm7, %v16434_v14, 0.0 }
 0x6cc   :  { %v8143_v23 = vsel %vm2265_vm7, %v16445_v6, 0.0  ;;  %v8270_v37 = vmul.f32 %v16445_v6, %v16445_v6  ;;  %v7043_v31 = vpop.permute.xlu1 %7042  ;;  %v16457_v19 = vpop.f32.mrb[10].mxu1  ;;  %7200 = vrot.lane.b32.xlu0 %v16440_v40, %s9837_s16 }
 0x6cd   :  { %v8144_v4 = vadd.f32 %v8143_v23, %v16353_v8  ;;  %v16469_v51 = vpop.f32.mrb[11].mxu1  ;;  %v7345_v8 = vsel %vm2362_vm8, %v7271_v5, %v16321_v32  ;;  %v8273_v23 = vmul.f32 %v16457_v19, %v16457_v19 }
 0x6ce   :  { %v8341_v24 = vsel %vm2265_vm7, %v8270_v37, 0.0  ;;  %v8145_v57 = vsel %vm2265_vm7, %v16469_v51, 0.0  ;;  %v8271_v62 = vmul.f32 %v16469_v51, %v16469_v51  ;;  %7060 = vrot.lane.b32.xlu1 %v16449_v12, %s9835_s15  ;;  %v16482_v56 = vpop.permute.xlu0 %6768  ;;  %v7409_v32 = vsel %vm2427_vm9, %v7345_v8, %v16346_v46 }
 0x6cf   :  { %v8342_v29 = vadd.f32 %v8341_v24, %v16366_v21  ;;  %v8146_v7 = vadd.f32 %v8145_v57, %v8144_v4  ;;  %v7471_v21 = vsel %vm2492_vm10, %v7407_v53, %v6903_v43  ;;  %v7473_v16 = vsel %vm2492_vm10, %v7409_v32, %v16373_v52  ;;  %v16509_v57 = vld [vmem:[#allocation2 + $0x1a8] sm:$0xf] }
 0x6d0   :  { %v8343_v37 = vsel %vm2265_vm7, %v8271_v62, 0.0  ;;  %v7113_v1 = vpop.permute.xlu1 %7112  ;;  %6782 = vrot.lane.b32.xlu0 %v9241_v3, %s9831_s19  ;;  %v7535_v5 = vsel %vm2557_vm11, %v7471_v21, %v6973_v34  ;;  %v8345_v4 = vsel %vm2265_vm7, %v8272_v47, 0.0  ;;  %v8149_v24 = vsel %vm2265_vm7, %v16457_v19, 0.0  ;;  %v16516_v34 = vld [vmem:[#allocation2 + $0x1a4] sm:$0xf] }
 0x6d1   :  { %v8148_v54 = vadd.f32 %v8147_v28, %v8146_v7  ;;  %v8344_v2 = vadd.f32 %v8343_v37, %v8342_v29  ;;  %v7537_v46 = vsel %vm2557_vm11, %v7473_v16, %v16390_v15  ;;  %v7599_v43 = vsel %vm2622_vm12, %v7535_v5, %v7043_v31 }
 0x6d2   :  { %7130 = vrot.lane.b32.xlu1 %v9210_v50, %s9836_s1  ;;  %v16507_v3 = vpop.permute.xlu0 %6838  ;;  %v7601_v47 = vsel %vm2622_vm12, %v7537_v46, %v16407_v38  ;;  %v8347_v8 = vsel %vm2265_vm7, %v8273_v23, 0.0  ;;  %v7663_v30 = vsel %vm2687_vm13, %v7599_v43, %v7113_v1  ;;  %v6340_v53 = vshrl.u32 %v16509_v57, 16  ;;  %v5142_v23 = vld [vmem:[#allocation2 + $0x1a0] sm:$0x1] }
 0x6d3   :  { %v8346_v62 = vadd.f32 %v8345_v4, %v8344_v2  ;;  %v16514_v52 = vadd.f32 %v8149_v24, %v8148_v54  ;;  %v7665_v15 = vsel %vm2687_vm13, %v7601_v47, %v16422_v48  ;;  %v6327_v37 = vshrl.u32 %v16516_v34, 16 }
 0x6d4   :  { %v7183_v29 = vpop.permute.xlu1 %7182  ;;  %6852 = vrot.lane.b32.xlu0 %v16449_v12, %s9832_s29  ;;  %v7729_v28 = vsel %vm19582_vm1, %v7665_v15, %v7185_v42  ;;  %v6330_v48 = vshll.u32 %v16516_v34, 16  ;;  %v6336_v1 = vshll.u32 %v16509_v57, 16  ;;  %v6265_v32 = vor.u32 %v16461_v18, %v16451_v55  ;;  %v5145_v18 = vld [vmem:[#allocation2 + $0x1ac] sm:$0x1]  ;;  %vm19594_vm1 = vmmov %vm19584_vm3 }
 0x6d5   :  { %v7727_v31 = vsel %vm19572_vm0, %v7663_v30, %v7183_v29  ;;  %v16527_v7 = vadd.f32 %v8347_v8, %v8346_v62  ;;  %v6275_v42 = vor.u32 %v16463_v13, %v16471_v22  ;;  %v6278_v21 = vshll.u32 %v5142_v23, 16 }
 0x6d6   :  { %6622 = vrot.lane.b32.xlu1 %v16405_v39, %s9830_s23  ;;  %9540 = vmatprep.mubr.msk.bf16.mxu1 %vm19583_vm6, %v7727_v31  ;;  %v16534_v38 = vpop.permute.xlu0 %6908  ;;  %v6329_v2 = vrot.slane %v6327_v37, 4  ;;  %v6332_v16 = vrot.slane %v6330_v48, 5  ;;  %v6338_v5 = vrot.slane %v6336_v1, 5  ;;  %v6342_v4 = vrot.slane %v6340_v53, 4  ;;  %vm19595_vm6 = vmmov %vm19594_vm1 }
 0x6d7   :  { %9541 = vmatmul.mubr.msk.bf16.gmra.mrb[40].mxu1 %vm19584_vm3, %v7729_v28  ;;  %v6266_v24 = vrot.slane %v6265_v32, 4  ;;  %v6276_v46 = vrot.slane %v6275_v42, 4  ;;  %v6297_v55 = vrot.slane %v16418_v49, 5  ;;  %v6280_v13 = vrot.slane %v6278_v21, 5  ;;  %vm19598_vm3 = vmmov %vm19572_vm0 }
 0x6d8   :  { %v16544_v39 = vpop.permute.xlu1 %6766  ;;  %6922 = vrot.lane.b32.xlu0 %v9210_v50, %s9833_s9  ;;  %v6333_v47 = vor.u32 %v6332_v16, %v6329_v2  ;;  %v6343_v8 = vor.u32 %v6342_v4, %v6338_v5  ;;  %v6346_v30 = vshll.u32 %v5145_v18, 16  ;;  %v6300_v28 = vrot.slane %v5142_v23, 5 }
 0x6d9   :  { %v6271_v29 = vsel %vm9905_vm2, %v6266_v24, %v16471_v22  ;;  %v6281_v15 = vsel %vm9905_vm2, %v6276_v46, %v6280_v13  ;;  %v6299_v31 = vrot.slane %v6297_v55, 4  ;;  %v9146_v23 = vrot.slane %v16516_v34, 9 }
 0x6da   :  { %6624 = vrot.lane.b32.xlu1 %v9210_v50, %s9830_s23  ;;  %v16548_v54 = vpop.permute.xlu0 %6978  ;;  %v9244_v50 = vcombine.low %v16413_v25, %v16418_v49  ;;  %v6365_v49 = vrot.slane %v16509_v57, 5  ;;  %v9246_v37 = vcombine.low %v6271_v29, %v6281_v15  ;;  %v6334_v1 = vrot.slane %v6333_v47, 4  ;;  %v19585_v47 = vld [vmem:[#allocation113_spill] sm:$0xff] }
 0x6db   :  { %v6344_v32 = vrot.slane %v6343_v8, 4  ;;  %v6348_v22 = vrot.slane %v6346_v30, 5  ;;  %v6301_v42 = vsel %vm10594_vm5, %v6299_v31, %v6300_v28  ;;  %v6368_v16 = vrot.slane %v5145_v18, 5  ;;  %v19586_v30 = vld [vmem:[#allocation118_spill] sm:$0xff] }
 0x6dc   :  { %v6837_v43 = vpop.permute.xlu1 %6836  ;;  %6992 = vrot.lane.b32.xlu0 %v16440_v40, %s9834_s12  ;;  %v6367_v2 = vrot.slane %v6365_v49, 4  ;;  %v6339_v13 = vsel %vm9905_vm2, %v6334_v1, %v6338_v5  ;;  %v7277_v18 = vsel %vm2265_vm7, %v15947_v36, %v19586_v30  ;;  %v9250_v45 = vcombine.low %v16516_v34, %v16509_v57 }
 0x6dd   :  { %v6366_v36 = vsel %vm10594_vm5, %v9146_v23, %v6365_v49  ;;  %v7349_v49 = vsel %vm2362_vm8, %v7277_v18, %v16482_v56 }
 0x6de   :  { %6784 = vrot.lane.b32.xlu1 %v16440_v40, %s9831_s19  ;;  %v16557_v62 = vpop.permute.xlu0 %7048  ;;  %v9144_v40 = vrot.slane %v16413_v25, 9  ;;  %v7413_v56 = vsel %vm2427_vm9, %v7349_v49, %v16507_v3 }
 0x6e0   :  { %v6907_v53 = vpop.permute.xlu1 %6906  ;;  %7062 = vrot.lane.b32.xlu0 %v9244_v50, %s9835_s15  ;;  %v6298_v25 = vsel %vm10594_vm5, %v9144_v40, %v6297_v55  ;;  %v7274_v55 = vsel %vm2265_vm7, %v15905_v27, %v19585_v47 }
 0x6e1   :  { %v9248_v24 = vcombine.low %v6298_v25, %v6301_v42  ;;  %v7347_v60 = vsel %vm2362_vm8, %v7274_v55, %v16544_v39 }
 0x6e2   :  { %6854 = vrot.lane.b32.xlu1 %v9244_v50, %s9832_s29  ;;  %v16568_v48 = vpop.permute.xlu0 %7118  ;;  %v6349_v50 = vsel %vm9905_vm2, %v6344_v32, %v6348_v22  ;;  %v7411_v25 = vsel %vm2427_vm9, %v7347_v60, %v6837_v43  ;;  %vm19587_vm2 = vmmov %vm19572_vm0 }
 0x6e3   :  { %v9252_v28 = vcombine.low %v6339_v13, %v6349_v50  ;;  %v7475_v13 = vsel %vm2492_vm10, %v7411_v25, %v6907_v53 }
 0x6e4   :  { %v6977_v21 = vpop.permute.xlu1 %6976  ;;  %7132 = vrot.lane.b32.xlu0 %v9246_v37, %s9836_s1 }
 0x6e5   :  { %v7539_v43 = vsel %vm2557_vm11, %v7475_v13, %v6977_v21 }
 0x6e6   :  { %6924 = vrot.lane.b32.xlu1 %v9246_v37, %s9833_s9  ;;  %v16577_v4 = vpop.f32.mrb[12].mxu1  ;;  %v7189_v46 = vpop.permute.xlu0 %7188  ;;  %v6369_v37 = vsel %vm10594_vm5, %v6367_v2, %v6368_v16  ;;  %vm19588_vm5 = vmmov %vm19572_vm0 }
 0x6e7   :  { %v16586_v8 = vpop.f32.mrb[13].mxu1  ;;  %v8276_v1 = vmul.f32 %v16577_v4, %v16577_v4  ;;  %v8155_v23 = vsel %vm2265_vm7, %v16577_v4, 0.0 }
 0x6e8   :  { %v8151_v29 = vsel %vm2265_vm7, %v16586_v8, 0.0  ;;  %v8274_v15 = vmul.f32 %v16586_v8, %v16586_v8  ;;  %v7047_v5 = vpop.permute.xlu1 %7046  ;;  %v16595_v31 = vpop.f32.mrb[14].mxu1  ;;  %7202 = vrot.lane.b32.xlu0 %v9248_v24, %s9837_s16 }
 0x6e9   :  { %v8152_v27 = vadd.f32 %v8151_v29, %v16514_v52  ;;  %v16601_v40 = vpop.f32.mrb[15].mxu1  ;;  %v8277_v2 = vmul.f32 %v16595_v31, %v16595_v31  ;;  %v8353_v47 = vsel %vm2265_vm7, %v8276_v1, 0.0  ;;  %v8157_v55 = vsel %vm2265_vm7, %v16595_v31, 0.0 }
 0x6ea   :  { %v8349_v32 = vsel %vm2265_vm7, %v8274_v15, 0.0  ;;  %v8153_v57 = vsel %vm2265_vm7, %v16601_v40, 0.0  ;;  %v8275_v52 = vmul.f32 %v16601_v40, %v16601_v40  ;;  %6994 = vrot.lane.b32.xlu1 %v9248_v24, %s9834_s12  ;;  %v6773_v34 = vpop.permute.xlu0 %6772  ;;  %v7603_v53 = vsel %vm2622_vm12, %v7539_v43, %v7047_v5 }
 0x6eb   :  { %v8350_v22 = vadd.f32 %v8349_v32, %v16527_v7  ;;  %v8154_v42 = vadd.f32 %v8153_v57, %v8152_v27  ;;  %v7477_v7 = vsel %vm2492_vm10, %v7413_v56, %v16534_v38  ;;  %v8355_v21 = vsel %vm2265_vm7, %v8277_v2, 0.0  ;;  %v19592_v56 = vld [vmem:[#allocation90_spill] sm:$0xff] }
 0x6ec   :  { %v8351_v16 = vsel %vm2265_vm7, %v8275_v52, 0.0  ;;  %v7117_v24 = vpop.permute.xlu1 %7116  ;;  %v7541_v3 = vsel %vm2557_vm11, %v7477_v7, %v16548_v54  ;;  %v9254_v5 = vcombine.low %v6366_v36, %v6369_v37  ;;  %v7283_v13 = vsel %vm2265_vm7, %v16018_v63, %v19592_v56 }
 0x6ed   :  { %v8156_v39 = vadd.f32 %v8155_v23, %v8154_v42  ;;  %v8352_v50 = vadd.f32 %v8351_v16, %v8350_v22  ;;  %v7605_v38 = vsel %vm2622_vm12, %v7541_v3, %v16557_v62  ;;  %v7667_v15 = vsel %vm2687_vm13, %v7603_v53, %v7117_v24  ;;  %v19591_v16 = vld [vmem:[#allocation115_spill] sm:$0xff] }
 0x6ee   :  { %7064 = vrot.lane.b32.xlu1 %v9250_v45, %s9835_s15  ;;  %v6843_v30 = vpop.permute.xlu0 %6842  ;;  %v7669_v1 = vsel %vm2687_vm13, %v7605_v38, %v16568_v48  ;;  %v7280_v24 = vsel %vm2265_vm7, %v15974_v0, %v19591_v16  ;;  %v7353_v0 = vsel %vm2362_vm8, %v7283_v13, %v6773_v34 }
 0x6ef   :  { %v8354_v18 = vadd.f32 %v8353_v47, %v8352_v50  ;;  %v8158_v29 = vadd.f32 %v8157_v55, %v8156_v39  ;;  %v7733_v54 = vsel %vm19588_vm5, %v7669_v1, %v7189_v46  ;;  %v7417_v1 = vsel %vm2427_vm9, %v7353_v0, %v6843_v30  ;;  %vm19600_vm5 = vmmov %vm19594_vm1 }
 0x6f0   :  { %v7187_v27 = vpop.permute.xlu1 %7186 }
 0x6f1   :  { %v7731_v45 = vsel %vm19587_vm2, %v7667_v15, %v7187_v27  ;;  %v8356_v32 = vadd.f32 %v8355_v21, %v8354_v18  ;;  %vm19599_vm2 = vmmov %vm19572_vm0 }
 0x6f2   :  { %7134 = vrot.lane.b32.xlu1 %v9252_v28, %s9836_s1  ;;  %9544 = vmatprep.mubr.msk.bf16.mxu1 %vm19589_vm14, %v7731_v45  ;;  %v6913_v57 = vpop.permute.xlu0 %6912  ;;  %vm19601_vm14 = vmmov %vm19594_vm1 }
 0x6f3   :  { %9545 = vmatmul.mubr.msk.bf16.gmra.mrb[44].mxu1 %vm19590_vm15, %v7733_v54  ;;  %vm19603_vm15 = vmmov %vm19572_vm0 }
 0x6f4   :  { %v6771_v62 = vpop.permute.xlu1 %6770 }
 0x6f5   :  { %v7351_v53 = vsel %vm2362_vm8, %v7280_v24, %v6771_v62 }
 0x6f6   :  { %7204 = vrot.lane.b32.xlu1 %v9254_v5, %s9837_s16  ;;  %v6983_v52 = vpop.permute.xlu0 %6982 }
 0x6f8   :  { %v6841_v49 = vpop.permute.xlu1 %6840 }
 0x6fa   :  { %v7053_v60 = vpop.permute.xlu0 %7052 }
 0x6fc   :  { %v6911_v48 = vpop.permute.xlu1 %6910 }
 0x6fe   :  { %v7123_v22 = vpop.permute.xlu0 %7122 }
 0x700   :  { %v6981_v42 = vpop.permute.xlu1 %6980 }
 0x702   :  { %v16651_v25 = vpop.f32.mrb[16].mxu1  ;;  %v7193_v46 = vpop.permute.xlu0 %7192 }
 0x703   :  { %v16653_v23 = vpop.f32.mrb[17].mxu1  ;;  %v8280_v7 = vmul.f32 %v16651_v25, %v16651_v25  ;;  %v8163_v38 = vsel %vm2265_vm7, %v16651_v25, 0.0 }
 0x704   :  { %v8159_v28 = vsel %vm2265_vm7, %v16653_v23, 0.0  ;;  %v8278_v36 = vmul.f32 %v16653_v23, %v16653_v23  ;;  %v7051_v37 = vpop.permute.xlu1 %7050  ;;  %v16659_v2 = vpop.f32.mrb[18].mxu1 }
 0x705   :  { %v8160_v39 = vadd.f32 %v8159_v28, %v8158_v29  ;;  %v16667_v50 = vpop.f32.mrb[19].mxu1  ;;  %v7415_v29 = vsel %vm2427_vm9, %v7351_v53, %v6841_v49  ;;  %v8281_v21 = vmul.f32 %v16659_v2, %v16659_v2  ;;  %v8361_v62 = vsel %vm2265_vm7, %v8280_v7, 0.0 }
 0x706   :  { %v8357_v43 = vsel %vm2265_vm7, %v8278_v36, 0.0  ;;  %v8161_v47 = vsel %vm2265_vm7, %v16667_v50, 0.0  ;;  %v8279_v55 = vmul.f32 %v16667_v50, %v16667_v50  ;;  %v6777_v3 = vpop.permute.xlu0 %6776  ;;  %v7479_v45 = vsel %vm2492_vm10, %v7415_v29, %v6911_v48 }
 0x707   :  { %v8358_v63 = vadd.f32 %v8357_v43, %v8356_v32  ;;  %v8162_v18 = vadd.f32 %v8161_v47, %v8160_v39  ;;  %v7481_v32 = vsel %vm2492_vm10, %v7417_v1, %v6913_v57  ;;  %v7543_v5 = vsel %vm2557_vm11, %v7479_v45, %v6981_v42  ;;  %v19597_v45 = vld [vmem:[#allocation141_spill] sm:$0xff] }
 0x708   :  { %v8359_v15 = vsel %vm2265_vm7, %v8279_v55, 0.0  ;;  %v7121_v27 = vpop.permute.xlu1 %7120  ;;  %v8165_v49 = vsel %vm2265_vm7, %v16659_v2, 0.0  ;;  %v7545_v36 = vsel %vm2557_vm11, %v7481_v32, %v6983_v52  ;;  %v7607_v16 = vsel %vm2622_vm12, %v7543_v5, %v7051_v37 }
 0x709   :  { %v8164_v34 = vadd.f32 %v8163_v38, %v8162_v18  ;;  %v8360_v54 = vadd.f32 %v8359_v15, %v8358_v63  ;;  %v7609_v48 = vsel %vm2622_vm12, %v7545_v36, %v7053_v60  ;;  %v8363_v56 = vsel %vm2265_vm7, %v8281_v21, 0.0 }
 0x70a   :  { %v6847_v28 = vpop.permute.xlu0 %6846  ;;  %v7671_v57 = vsel %vm2687_vm13, %v7607_v16, %v7121_v27  ;;  %v7673_v42 = vsel %vm2687_vm13, %v7609_v48, %v7123_v22  ;;  %v19596_v27 = vld [vmem:[#allocation117_spill] sm:$0xff] }
 0x70b   :  { %v8362_v24 = vadd.f32 %v8361_v62, %v8360_v54  ;;  %v8166_v30 = vadd.f32 %v8165_v49, %v8164_v34  ;;  %v7737_v43 = vsel %vm19572_vm0, %v7673_v42, %v7193_v46  ;;  %v7286_v1 = vsel %vm2265_vm7, %v16049_v61, %v19596_v27 }
 0x70c   :  { %v7191_v13 = vpop.permute.xlu1 %7190  ;;  %v7289_v34 = vsel %vm2265_vm7, %v16096_v26, %v19597_v45 }
 0x70d   :  { %v7735_v39 = vsel %vm19593_vm4, %v7671_v57, %v7191_v13  ;;  %v8364_v7 = vadd.f32 %v8363_v56, %v8362_v24  ;;  %v7357_v61 = vsel %vm2362_vm8, %v7289_v34, %v6777_v3  ;;  %vm19604_vm4 = vmmov %vm19594_vm1 }
 0x70e   :  { %9548 = vmatprep.mubr.msk.bf16.mxu1 %vm19594_vm1, %v7735_v39  ;;  %v6917_v52 = vpop.permute.xlu0 %6916  ;;  %v7421_v39 = vsel %vm2427_vm9, %v7357_v61, %v6847_v28 }
 0x70f   :  { %9549 = vmatmul.mubr.msk.bf16.gmra.mrb[48].mxu1 %vm19595_vm6, %v7737_v43  ;;  %vm19605_vm6 = vmmov %vm19572_vm0 }
 0x710   :  { %v6775_v37 = vpop.permute.xlu1 %6774 }
 0x711   :  { %v7355_v24 = vsel %vm2362_vm8, %v7286_v1, %v6775_v37 }
 0x712   :  { %v6987_v47 = vpop.permute.xlu0 %6986 }
 0x714   :  { %v6845_v60 = vpop.permute.xlu1 %6844 }
 0x715   :  { %v7419_v48 = vsel %vm2427_vm9, %v7355_v24, %v6845_v60 }
 0x716   :  { %v7057_v55 = vpop.permute.xlu0 %7056 }
 0x718   :  { %v6915_v0 = vpop.permute.xlu1 %6914 }
 0x719   :  { %v7483_v43 = vsel %vm2492_vm10, %v7419_v48, %v6915_v0 }
 0x71a   :  { %v7127_v53 = vpop.permute.xlu0 %7126 }
 0x71c   :  { %v6985_v63 = vpop.permute.xlu1 %6984 }
 0x71d   :  { %v7547_v37 = vsel %vm2557_vm11, %v7483_v43, %v6985_v63 }
 0x71e   :  { %v16701_v18 = vpop.f32.mrb[20].mxu1  ;;  %v7197_v22 = vpop.permute.xlu0 %7196 }
 0x71f   :  { %v16703_v29 = vpop.f32.mrb[21].mxu1  ;;  %v8284_v5 = vmul.f32 %v16701_v18, %v16701_v18  ;;  %v8171_v56 = vsel %vm2265_vm7, %v16701_v18, 0.0 }
 0x720   :  { %v8167_v46 = vsel %vm2265_vm7, %v16703_v29, 0.0  ;;  %v8282_v38 = vmul.f32 %v16703_v29, %v16703_v29  ;;  %v7055_v21 = vpop.permute.xlu1 %7054  ;;  %v16709_v15 = vpop.f32.mrb[22].mxu1 }
 0x721   :  { %v8168_v54 = vadd.f32 %v8167_v46, %v8166_v30  ;;  %v16717_v32 = vpop.f32.mrb[23].mxu1  ;;  %v8285_v57 = vmul.f32 %v16709_v15, %v16709_v15  ;;  %v8369_v60 = vsel %vm2265_vm7, %v8284_v5, 0.0  ;;  %v7611_v45 = vsel %vm2622_vm12, %v7547_v37, %v7055_v21 }
 0x722   :  { %v8365_v62 = vsel %vm2265_vm7, %v8282_v38, 0.0  ;;  %v8169_v49 = vsel %vm2265_vm7, %v16717_v32, 0.0  ;;  %v8283_v36 = vmul.f32 %v16717_v32, %v16717_v32  ;;  %v6779_v16 = vpop.permute.xlu0 %6778  ;;  %v8173_v38 = vsel %vm2265_vm7, %v16709_v15, 0.0 }
 0x723   :  { %v8366_v26 = vadd.f32 %v8365_v62, %v8364_v7  ;;  %v8170_v30 = vadd.f32 %v8169_v49, %v8168_v54  ;;  %v7485_v7 = vsel %vm2492_vm10, %v7421_v39, %v6917_v52  ;;  %v8371_v54 = vsel %vm2265_vm7, %v8285_v57, 0.0 }
 0x724   :  { %v8367_v13 = vsel %vm2265_vm7, %v8283_v36, 0.0  ;;  %v7125_v42 = vpop.permute.xlu1 %7124  ;;  %v7549_v1 = vsel %vm2557_vm11, %v7485_v7, %v6987_v47 }
 0x725   :  { %v8172_v3 = vadd.f32 %v8171_v56, %v8170_v30  ;;  %v8368_v46 = vadd.f32 %v8367_v13, %v8366_v26  ;;  %v7613_v0 = vsel %vm2622_vm12, %v7549_v1, %v7057_v55  ;;  %v7675_v52 = vsel %vm2687_vm13, %v7611_v45, %v7125_v42  ;;  %v19602_v26 = vld [vmem:[#allocation93_spill] sm:$0xff] }
 0x726   :  { %v6849_v27 = vpop.permute.xlu0 %6848  ;;  %v7677_v63 = vsel %vm2687_vm13, %v7613_v0, %v7127_v53  ;;  %v7292_v30 = vsel %vm2265_vm7, %v16146_v11, %v19602_v26 }
 0x727   :  { %v8370_v34 = vadd.f32 %v8369_v60, %v8368_v46  ;;  %v8174_v28 = vadd.f32 %v8173_v38, %v8172_v3  ;;  %v7741_v36 = vsel %vm19599_vm2, %v7677_v63, %v7197_v22  ;;  %v7359_v53 = vsel %vm2362_vm8, %v7292_v30, %v6779_v16  ;;  %vm19607_vm2 = vmmov %vm19572_vm0 }
 0x728   :  { %v7195_v62 = vpop.permute.xlu1 %7194  ;;  %v7423_v56 = vsel %vm2427_vm9, %v7359_v53, %v6849_v27 }
 0x729   :  { %v7739_v5 = vsel %vm19598_vm3, %v7675_v52, %v7195_v62  ;;  %v8372_v49 = vadd.f32 %v8371_v54, %v8370_v34  ;;  %vm19606_vm3 = vmmov %vm19594_vm1 }
 0x72a   :  { %9552 = vmatprep.mubr.msk.bf16.mxu1 %vm19600_vm5, %v7739_v5  ;;  %v6919_v47 = vpop.permute.xlu0 %6918  ;;  %vm19608_vm5 = vmmov %vm19594_vm1 }
 0x72b   :  { %9553 = vmatmul.mubr.msk.bf16.gmra.mrb[52].mxu1 %vm19601_vm14, %v7741_v36  ;;  %v7487_v22 = vsel %vm2492_vm10, %v7423_v56, %v6919_v47 }
 0x72c   :  { %v6621_v21 = vpop.permute.xlu1 %6620 }
 0x72d   :  { %v7295_v62 = vsel %vm2265_vm7, %v16239_v10, %v6621_v21 }
 0x72e   :  { %v6989_v61 = vpop.permute.xlu0 %6988 }
 0x72f   :  { %v7551_v13 = vsel %vm2557_vm11, %v7487_v22, %v6989_v61 }
 0x730   :  { %v6781_v55 = vpop.permute.xlu1 %6780 }
 0x732   :  { %v7059_v24 = vpop.permute.xlu0 %7058 }
 0x733   :  { %v7615_v39 = vsel %vm2622_vm12, %v7551_v13, %v7059_v24 }
 0x734   :  { %v6851_v48 = vpop.permute.xlu1 %6850 }
 0x736   :  { %v7129_v57 = vpop.permute.xlu0 %7128 }
 0x737   :  { %v7679_v3 = vsel %vm2687_vm13, %v7615_v39, %v7129_v57 }
 0x738   :  { %v6921_v42 = vpop.permute.xlu1 %6920 }
 0x73a   :  { %v16759_v43 = vpop.f32.mrb[24].mxu1  ;;  %v7199_v46 = vpop.permute.xlu0 %7198 }
 0x73b   :  { %v16762_v7 = vpop.f32.mrb[25].mxu1  ;;  %v7743_v11 = vsel %vm19603_vm15, %v7679_v3, %v7199_v46  ;;  %v8288_v45 = vmul.f32 %v16759_v43, %v16759_v43  ;;  %v8179_v36 = vsel %vm2265_vm7, %v16759_v43, 0.0 }
 0x73c   :  { %v8175_v16 = vsel %vm2265_vm7, %v16762_v7, 0.0  ;;  %v8286_v37 = vmul.f32 %v16762_v7, %v16762_v7  ;;  %v6991_v60 = vpop.permute.xlu1 %6990  ;;  %v16769_v38 = vpop.f32.mrb[26].mxu1  ;;  %9556 = vmatprep.mubr.msk.bf16.mxu1 %vm19604_vm4, %v7743_v11 }
 0x73d   :  { %v8176_v27 = vadd.f32 %v8175_v16, %v8174_v28  ;;  %v16772_v1 = vpop.f32.mrb[27].mxu1  ;;  %v7361_v28 = vsel %vm2362_vm8, %v7295_v62, %v6781_v55  ;;  %v8289_v47 = vmul.f32 %v16769_v38, %v16769_v38  ;;  %v8377_v10 = vsel %vm2265_vm7, %v8288_v45, 0.0 }
 0x73e   :  { %v8373_v34 = vsel %vm2265_vm7, %v8286_v37, 0.0  ;;  %v8177_v0 = vsel %vm2265_vm7, %v16772_v1, 0.0  ;;  %v8287_v54 = vmul.f32 %v16772_v1, %v16772_v1  ;;  %v7201_v52 = vpop.permute.xlu0 %7200  ;;  %v7425_v26 = vsel %vm2427_vm9, %v7361_v28, %v6851_v48 }
 0x73f   :  { %v8374_v63 = vadd.f32 %v8373_v34, %v8372_v49  ;;  %v8178_v5 = vadd.f32 %v8177_v0, %v8176_v27  ;;  %v7489_v56 = vsel %vm2492_vm10, %v7425_v26, %v6921_v42  ;;  %v8181_v49 = vsel %vm2265_vm7, %v16769_v38, 0.0 }
 0x740   :  { %v8375_v61 = vsel %vm2265_vm7, %v8287_v54, 0.0  ;;  %v7061_v24 = vpop.permute.xlu1 %7060  ;;  %v7553_v55 = vsel %vm2557_vm11, %v7489_v56, %v6991_v60  ;;  %v8379_v13 = vsel %vm2265_vm7, %v8289_v47, 0.0 }
 0x741   :  { %v8180_v30 = vadd.f32 %v8179_v36, %v8178_v5  ;;  %v8376_v53 = vadd.f32 %v8375_v61, %v8374_v63  ;;  %v7617_v39 = vsel %vm2622_vm12, %v7553_v55, %v7061_v24 }
 0x742   :  { %v6783_v21 = vpop.permute.xlu0 %6782 }
 0x743   :  { %v8378_v57 = vadd.f32 %v8377_v10, %v8376_v53  ;;  %v8182_v22 = vadd.f32 %v8181_v49, %v8180_v30 }
 0x744   :  { %v7131_v3 = vpop.permute.xlu1 %7130 }
 0x745   :  { %v7681_v48 = vsel %vm2687_vm13, %v7617_v39, %v7131_v3  ;;  %v8380_v46 = vadd.f32 %v8379_v13, %v8378_v57 }
 0x746   :  { %v7745_v42 = vsel %vm19572_vm0, %v7681_v48, %v7201_v52  ;;  %v6853_v11 = vpop.permute.xlu0 %6852 }
 0x747   :  { %9557 = vmatmul.mubr.msk.bf16.gmra.mrb[56].mxu1 %vm19594_vm1, %v7745_v42 }
 0x748   :  { %v6623_v16 = vpop.permute.xlu1 %6622 }
 0x749   :  { %v7298_v34 = vsel %vm2265_vm7, %v16386_v58, %v6623_v16 }
 0x74a   :  { %v6923_v37 = vpop.permute.xlu0 %6922  ;;  %v7363_v62 = vsel %vm2362_vm8, %v7298_v34, %v6783_v21 }
 0x74b   :  { %v7427_v63 = vsel %vm2427_vm9, %v7363_v62, %v6853_v11 }
 0x74c   :  { %v6625_v27 = vpop.permute.xlu1 %6624  ;;  %v7491_v28 = vsel %vm2492_vm10, %v7427_v63, %v6923_v37 }
 0x74e   :  { %v6993_v45 = vpop.permute.xlu0 %6992 }
 0x74f   :  { %v7555_v47 = vsel %vm2557_vm11, %v7491_v28, %v6993_v45 }
 0x750   :  { %v6785_v60 = vpop.permute.xlu1 %6784 }
 0x752   :  { %v7063_v0 = vpop.permute.xlu0 %7062 }
 0x753   :  { %v7619_v56 = vsel %vm2622_vm12, %v7555_v47, %v7063_v0  ;;  %v7301_v47 = vsel %vm2265_vm7, %v16449_v12, %v6625_v27 }
 0x754   :  { %v6855_v54 = vpop.permute.xlu1 %6854 }
 0x756   :  { %v16804_v5 = vpop.f32.mrb[28].mxu1  ;;  %v7133_v52 = vpop.permute.xlu0 %7132 }
 0x757   :  { %v16807_v36 = vpop.f32.mrb[29].mxu1  ;;  %v8292_v30 = vmul.f32 %v16804_v5, %v16804_v5  ;;  %v7683_v57 = vsel %vm2687_vm13, %v7619_v56, %v7133_v52 }
 0x758   :  { %v8183_v61 = vsel %vm2265_vm7, %v16807_v36, 0.0  ;;  %v8290_v58 = vmul.f32 %v16807_v36, %v16807_v36  ;;  %v6925_v24 = vpop.permute.xlu1 %6924  ;;  %v16814_v26 = vpop.f32.mrb[30].mxu1 }
 0x759   :  { %v8184_v53 = vadd.f32 %v8183_v61, %v8182_v22  ;;  %v16819_v10 = vpop.f32.mrb[31].mxu1  ;;  %v8187_v22 = vsel %vm2265_vm7, %v16804_v5, 0.0  ;;  %v8293_v42 = vmul.f32 %v16814_v26, %v16814_v26  ;;  %v8385_v34 = vsel %vm2265_vm7, %v8292_v30, 0.0 }
 0x75a   :  { %v8381_v49 = vsel %vm2265_vm7, %v8290_v58, 0.0  ;;  %v8185_v21 = vsel %vm2265_vm7, %v16819_v10, 0.0  ;;  %v8291_v55 = vmul.f32 %v16819_v10, %v16819_v10  ;;  %v7203_v13 = vpop.permute.xlu0 %7202  ;;  %v7365_v61 = vsel %vm2362_vm8, %v7301_v47, %v6785_v60 }
 0x75b   :  { %v8382_v39 = vadd.f32 %v8381_v49, %v8380_v46  ;;  %v8186_v3 = vadd.f32 %v8185_v21, %v8184_v53  ;;  %v7747_v48 = vsel %vm19605_vm6, %v7683_v57, %v7203_v13  ;;  %v8189_v46 = vsel %vm2265_vm7, %v16814_v26, 0.0 }
 0x75c   :  { %v8383_v11 = vsel %vm2265_vm7, %v8291_v55, 0.0  ;;  %v6995_v16 = vpop.permute.xlu1 %6994  ;;  %9560 = vmatprep.mubr.msk.bf16.mxu1 %vm19606_vm3, %v7747_v48  ;;  %v8387_v63 = vsel %vm2265_vm7, %v8293_v42, 0.0  ;;  %v7429_v58 = vsel %vm2427_vm9, %v7365_v61, %v6855_v54 }
 0x75d   :  { %v8188_v37 = vadd.f32 %v8187_v22, %v8186_v3  ;;  %v8384_v45 = vadd.f32 %v8383_v11, %v8382_v39  ;;  %v7493_v56 = vsel %vm2492_vm10, %v7429_v58, %v6925_v24 }
 0x75e   :  { %v7557_v30 = vsel %vm2557_vm11, %v7493_v56, %v6995_v16 }
 0x75f   :  { %v8386_v0 = vadd.f32 %v8385_v34, %v8384_v45  ;;  %v8190_v62 = vadd.f32 %v8189_v46, %v8188_v37 }
 0x760   :  { %v7065_v52 = vpop.permute.xlu1 %7064 }
 0x761   :  { %v8388_v28 = vadd.f32 %v8387_v63, %v8386_v0  ;;  %v7621_v49 = vsel %vm2622_vm12, %v7557_v30, %v7065_v52 }
 0x764   :  { %v7135_v53 = vpop.permute.xlu1 %7134 }
 0x765   :  { %v7685_v21 = vsel %vm2687_vm13, %v7621_v49, %v7135_v53 }
 0x768   :  { %v7205_v55 = vpop.permute.xlu1 %7204 }
 0x769   :  { %v7749_v57 = vsel %vm19607_vm2, %v7685_v21, %v7205_v55 }
 0x76a   :  { %9561 = vmatmul.mubr.msk.bf16.gmra.mrb[60].mxu1 %vm19608_vm5, %v7749_v57 }
 0x772   :  { %v16848_v13 = vpop.f32.mrb[32].mxu1 }
 0x773   :  { %v16850_v12 = vpop.f32.mrb[33].mxu1  ;;  %v8296_v3 = vmul.f32 %v16848_v13, %v16848_v13  ;;  %v8195_v37 = vsel %vm2265_vm7, %v16848_v13, 0.0 }
 0x774   :  { %v8191_v27 = vsel %vm2265_vm7, %v16850_v12, 0.0  ;;  %v8294_v60 = vmul.f32 %v16850_v12, %v16850_v12  ;;  %v16856_v54 = vpop.f32.mrb[34].mxu1 }
 0x775   :  { %v8192_v24 = vadd.f32 %v8191_v27, %v8190_v62  ;;  %v16858_v39 = vpop.f32.mrb[35].mxu1  ;;  %v8297_v45 = vmul.f32 %v16856_v54, %v16856_v54  ;;  %v8393_v62 = vsel %vm2265_vm7, %v8296_v3, 0.0  ;;  %v8197_v63 = vsel %vm2265_vm7, %v16856_v54, 0.0 }
 0x776   :  { %v8389_v48 = vsel %vm2265_vm7, %v8294_v60, 0.0  ;;  %v8193_v22 = vsel %vm2265_vm7, %v16858_v39, 0.0  ;;  %v8295_v42 = vmul.f32 %v16858_v39, %v16858_v39 }
 0x777   :  { %v8390_v11 = vadd.f32 %v8389_v48, %v8388_v28  ;;  %v8194_v16 = vadd.f32 %v8193_v22, %v8192_v24  ;;  %v8395_v28 = vsel %vm2265_vm7, %v8297_v45, 0.0 }
 0x778   :  { %v8391_v34 = vsel %vm2265_vm7, %v8295_v42, 0.0 }
 0x779   :  { %v8196_v46 = vadd.f32 %v8195_v37, %v8194_v16  ;;  %v8392_v0 = vadd.f32 %v8391_v34, %v8390_v11 }
 0x77b   :  { %v8394_v52 = vadd.f32 %v8393_v62, %v8392_v0  ;;  %v8198_v47 = vadd.f32 %v8197_v63, %v8196_v46 }
 0x77d   :  { %v8396_v61 = vadd.f32 %v8395_v28, %v8394_v52 }
 0x78e   :  { %v16876_v58 = vpop.f32.mrb[36].mxu1 }
 0x78f   :  { %v16878_v53 = vpop.f32.mrb[37].mxu1  ;;  %v8300_v57 = vmul.f32 %v16876_v58, %v16876_v58  ;;  %v8203_v22 = vsel %vm2265_vm7, %v16876_v58, 0.0 }
 0x790   :  { %v8199_v56 = vsel %vm2265_vm7, %v16878_v53, 0.0  ;;  %v8298_v30 = vmul.f32 %v16878_v53, %v16878_v53  ;;  %v16884_v49 = vpop.f32.mrb[38].mxu1 }
 0x791   :  { %v8200_v21 = vadd.f32 %v8199_v56, %v8198_v47  ;;  %v16886_v55 = vpop.f32.mrb[39].mxu1  ;;  %v8301_v42 = vmul.f32 %v16884_v49, %v16884_v49  ;;  %v8401_v45 = vsel %vm2265_vm7, %v8300_v57, 0.0  ;;  %v8205_v34 = vsel %vm2265_vm7, %v16884_v49, 0.0 }
 0x792   :  { %v8397_v27 = vsel %vm2265_vm7, %v8298_v30, 0.0  ;;  %v8201_v60 = vsel %vm2265_vm7, %v16886_v55, 0.0  ;;  %v8299_v24 = vmul.f32 %v16886_v55, %v16886_v55 }
 0x793   :  { %v8398_v3 = vadd.f32 %v8397_v27, %v8396_v61  ;;  %v8202_v48 = vadd.f32 %v8201_v60, %v8200_v21  ;;  %v8403_v62 = vsel %vm2265_vm7, %v8301_v42, 0.0 }
 0x794   :  { %v8399_v11 = vsel %vm2265_vm7, %v8299_v24, 0.0 }
 0x795   :  { %v8204_v16 = vadd.f32 %v8203_v22, %v8202_v48  ;;  %v8400_v37 = vadd.f32 %v8399_v11, %v8398_v3 }
 0x797   :  { %v8402_v46 = vadd.f32 %v8401_v45, %v8400_v37  ;;  %v8206_v0 = vadd.f32 %v8205_v34, %v8204_v16 }
 0x799   :  { %v8404_v63 = vadd.f32 %v8403_v62, %v8402_v46 }
 0x7aa   :  { %v16904_v52 = vpop.f32.mrb[40].mxu1 }
 0x7ab   :  { %19609 = vst [vmem:[#allocation105_spill] sm:$0xff] %v16904_v52  ;;  %v16906_v47 = vpop.f32.mrb[41].mxu1  ;;  %v8304_v57 = vmul.f32 %v16904_v52, %v16904_v52  ;;  %v8211_v22 = vsel %vm2265_vm7, %v16904_v52, 0.0 }
 0x7ac   :  { %19610 = vst [vmem:[#allocation146_spill] sm:$0xff] %v16906_v47  ;;  %v8207_v28 = vsel %vm2265_vm7, %v16906_v47, 0.0  ;;  %v8302_v61 = vmul.f32 %v16906_v47, %v16906_v47  ;;  %v16912_v56 = vpop.f32.mrb[42].mxu1 }
 0x7ad   :  { %19611 = vst [vmem:[#allocation49_spill] sm:$0xff] %v16912_v56  ;;  %v8208_v30 = vadd.f32 %v8207_v28, %v8206_v0  ;;  %v16914_v21 = vpop.f32.mrb[43].mxu1  ;;  %v8305_v42 = vmul.f32 %v16912_v56, %v16912_v56  ;;  %v8409_v45 = vsel %vm2265_vm7, %v8304_v57, 0.0  ;;  %v8213_v34 = vsel %vm2265_vm7, %v16912_v56, 0.0 }
 0x7ae   :  { %19612 = vst [vmem:[#allocation148_spill] sm:$0xff] %v16914_v21  ;;  %v8405_v27 = vsel %vm2265_vm7, %v8302_v61, 0.0  ;;  %v8209_v60 = vsel %vm2265_vm7, %v16914_v21, 0.0  ;;  %v8303_v24 = vmul.f32 %v16914_v21, %v16914_v21 }
 0x7af   :  { %v8406_v3 = vadd.f32 %v8405_v27, %v8404_v63  ;;  %v8210_v48 = vadd.f32 %v8209_v60, %v8208_v30  ;;  %v8411_v62 = vsel %vm2265_vm7, %v8305_v42, 0.0 }
 0x7b0   :  { %v8407_v11 = vsel %vm2265_vm7, %v8303_v24, 0.0 }
 0x7b1   :  { %v8212_v16 = vadd.f32 %v8211_v22, %v8210_v48  ;;  %v8408_v37 = vadd.f32 %v8407_v11, %v8406_v3 }
 0x7b3   :  { %v8410_v46 = vadd.f32 %v8409_v45, %v8408_v37  ;;  %v8214_v0 = vadd.f32 %v8213_v34, %v8212_v16 }
 0x7b5   :  { %v8412_v63 = vadd.f32 %v8411_v62, %v8410_v46 }
 0x7c6   :  { %v16932_v28 = vpop.f32.mrb[44].mxu1 }
 0x7c7   :  { %19613 = vst [vmem:[#allocation134_spill] sm:$0xff] %v16932_v28  ;;  %v16934_v61 = vpop.f32.mrb[45].mxu1  ;;  %v8308_v3 = vmul.f32 %v16932_v28, %v16932_v28  ;;  %v8219_v37 = vsel %vm2265_vm7, %v16932_v28, 0.0 }
 0x7c8   :  { %19614 = vst [vmem:[#allocation150_spill] sm:$0xff] %v16934_v61  ;;  %v8215_v30 = vsel %vm2265_vm7, %v16934_v61, 0.0  ;;  %v8306_v27 = vmul.f32 %v16934_v61, %v16934_v61  ;;  %v16940_v60 = vpop.f32.mrb[46].mxu1 }
 0x7c9   :  { %19615 = vst [vmem:[#allocation152_spill] sm:$0xff] %v16940_v60  ;;  %v8216_v57 = vadd.f32 %v8215_v30, %v8214_v0  ;;  %v16942_v24 = vpop.f32.mrb[47].mxu1  ;;  %v8309_v45 = vmul.f32 %v16940_v60, %v16940_v60  ;;  %v8417_v62 = vsel %vm2265_vm7, %v8308_v3, 0.0  ;;  %v8221_v30 = vsel %vm2265_vm7, %v16940_v60, 0.0 }
 0x7ca   :  { %19616 = vst [vmem:[#allocation154_spill] sm:$0xff] %v16942_v24  ;;  %v8413_v48 = vsel %vm2265_vm7, %v8306_v27, 0.0  ;;  %v8217_v22 = vsel %vm2265_vm7, %v16942_v24, 0.0  ;;  %v8307_v42 = vmul.f32 %v16942_v24, %v16942_v24 }
 0x7cb   :  { %v8414_v11 = vadd.f32 %v8413_v48, %v8412_v63  ;;  %v8218_v16 = vadd.f32 %v8217_v22, %v8216_v57  ;;  %v8419_v63 = vsel %vm2265_vm7, %v8309_v45, 0.0 }
 0x7cc   :  { %v8415_v34 = vsel %vm2265_vm7, %v8307_v42, 0.0 }
 0x7cd   :  { %v8220_v46 = vadd.f32 %v8219_v37, %v8218_v16  ;;  %v8416_v0 = vadd.f32 %v8415_v34, %v8414_v11 }
 0x7cf   :  { %v8418_v27 = vadd.f32 %v8417_v62, %v8416_v0  ;;  %v8222_v61 = vadd.f32 %v8221_v30, %v8220_v46 }
 0x7d1   :  { %v8420_v57 = vadd.f32 %v8419_v63, %v8418_v27 }
 0x7e2   :  { %v16960_v48 = vpop.f32.mrb[48].mxu1 }
 0x7e3   :  { %19617 = vst [vmem:[#allocation140_spill] sm:$0xff] %v16960_v48  ;;  %v16962_v22 = vpop.f32.mrb[49].mxu1  ;;  %v8312_v37 = vmul.f32 %v16960_v48, %v16960_v48  ;;  %v8227_v30 = vsel %vm2265_vm7, %v16960_v48, 0.0 }
 0x7e4   :  { %19618 = vst [vmem:[#allocation79_spill] sm:$0xff] %v16962_v22  ;;  %v8223_v28 = vsel %vm2265_vm7, %v16962_v22, 0.0  ;;  %v8310_v42 = vmul.f32 %v16962_v22, %v16962_v22  ;;  %v16968_v11 = vpop.f32.mrb[50].mxu1 }
 0x7e5   :  { %19619 = vst [vmem:[#allocation91_spill] sm:$0xff] %v16968_v11  ;;  %v8224_v3 = vadd.f32 %v8223_v28, %v8222_v61  ;;  %v16970_v16 = vpop.f32.mrb[51].mxu1  ;;  %v8313_v28 = vmul.f32 %v16968_v11, %v16968_v11  ;;  %v8229_v22 = vsel %vm2265_vm7, %v16968_v11, 0.0 }
 0x7e6   :  { %19620 = vst [vmem:[#allocation120_spill] sm:$0xff] %v16970_v16  ;;  %v8421_v45 = vsel %vm2265_vm7, %v8310_v42, 0.0  ;;  %v8225_v34 = vsel %vm2265_vm7, %v16970_v16, 0.0  ;;  %v8311_v46 = vmul.f32 %v16970_v16, %v16970_v16  ;;  %v8425_v42 = vsel %vm2265_vm7, %v8312_v37, 0.0 }
 0x7e7   :  { %v8422_v0 = vadd.f32 %v8421_v45, %v8420_v57  ;;  %v8226_v62 = vadd.f32 %v8225_v34, %v8224_v3  ;;  %v8427_v57 = vsel %vm2265_vm7, %v8313_v28, 0.0 }
 0x7e8   :  { %v8423_v61 = vsel %vm2265_vm7, %v8311_v46, 0.0 }
 0x7e9   :  { %v8228_v27 = vadd.f32 %v8227_v30, %v8226_v62  ;;  %v8424_v63 = vadd.f32 %v8423_v61, %v8422_v0 }
 0x7eb   :  { %v8426_v60 = vadd.f32 %v8425_v42, %v8424_v63  ;;  %v8230_v24 = vadd.f32 %v8229_v22, %v8228_v27  ;;  %v19703_v47 = vld [vmem:[#allocation79_spill] sm:$0xff] }
 0x7ed   :  { %v8428_v3 = vadd.f32 %v8427_v57, %v8426_v60 }
 0x7fe   :  { %v16988_v45 = vpop.f32.mrb[52].mxu1 }
 0x7ff   :  { %19621 = vst [vmem:[#allocation156_spill] sm:$0xff] %v16988_v45  ;;  %v16990_v34 = vpop.f32.mrb[53].mxu1  ;;  %v8316_v22 = vmul.f32 %v16988_v45, %v16988_v45  ;;  %v8235_v63 = vsel %vm2265_vm7, %v16988_v45, 0.0 }
 0x800   :  { %19622 = vst [vmem:[#allocation121_spill] sm:$0xff] %v16990_v34  ;;  %v8231_v48 = vsel %vm2265_vm7, %v16990_v34, 0.0  ;;  %v8314_v46 = vmul.f32 %v16990_v34, %v16990_v34  ;;  %v16996_v0 = vpop.f32.mrb[54].mxu1 }
 0x801   :  { %19623 = vst [vmem:[#allocation157_spill] sm:$0xff] %v16996_v0  ;;  %v8232_v37 = vadd.f32 %v8231_v48, %v8230_v24  ;;  %v16998_v62 = vpop.f32.mrb[55].mxu1  ;;  %v8317_v24 = vmul.f32 %v16996_v0, %v16996_v0  ;;  %v8237_v34 = vsel %vm2265_vm7, %v16996_v0, 0.0 }
 0x802   :  { %19624 = vst [vmem:[#allocation122_spill] sm:$0xff] %v16998_v62  ;;  %v8429_v60 = vsel %vm2265_vm7, %v8314_v46, 0.0  ;;  %v8233_v30 = vsel %vm2265_vm7, %v16998_v62, 0.0  ;;  %v8315_v28 = vmul.f32 %v16998_v62, %v16998_v62  ;;  %v8433_v46 = vsel %vm2265_vm7, %v8316_v22, 0.0 }
 0x803   :  { %v8430_v61 = vadd.f32 %v8429_v60, %v8428_v3  ;;  %v8234_v27 = vadd.f32 %v8233_v30, %v8232_v37  ;;  %v8435_v3 = vsel %vm2265_vm7, %v8317_v24, 0.0 }
 0x804   :  { %v8431_v48 = vsel %vm2265_vm7, %v8315_v28, 0.0 }
 0x805   :  { %v8236_v42 = vadd.f32 %v8235_v63, %v8234_v27  ;;  %v8432_v57 = vadd.f32 %v8431_v48, %v8430_v61 }
 0x807   :  { %v8434_v11 = vadd.f32 %v8433_v46, %v8432_v57  ;;  %v8238_v16 = vadd.f32 %v8237_v34, %v8236_v42 }
 0x809   :  { %v8436_v37 = vadd.f32 %v8435_v3, %v8434_v11 }
 0x81a   :  { %v17016_v60 = vpop.f32.mrb[56].mxu1 }
 0x81b   :  { %19625 = vst [vmem:[#allocation94_spill] sm:$0xff] %v17016_v60  ;;  %v17018_v30 = vpop.f32.mrb[57].mxu1  ;;  %v8320_v34 = vmul.f32 %v17016_v60, %v17016_v60  ;;  %v8243_v57 = vsel %vm2265_vm7, %v17016_v60, 0.0 }
 0x81c   :  { %19626 = vst [vmem:[#allocation123_spill] sm:$0xff] %v17018_v30  ;;  %v8239_v45 = vsel %vm2265_vm7, %v17018_v30, 0.0  ;;  %v8318_v28 = vmul.f32 %v17018_v30, %v17018_v30  ;;  %v17024_v61 = vpop.f32.mrb[58].mxu1 }
 0x81d   :  { %19627 = vst [vmem:[#allocation98_spill] sm:$0xff] %v17024_v61  ;;  %v8240_v22 = vadd.f32 %v8239_v45, %v8238_v16  ;;  %v17026_v27 = vpop.f32.mrb[59].mxu1  ;;  %v8321_v16 = vmul.f32 %v17024_v61, %v17024_v61  ;;  %v8245_v30 = vsel %vm2265_vm7, %v17024_v61, 0.0 }
 0x81e   :  { %19628 = vst [vmem:[#allocation124_spill] sm:$0xff] %v17026_v27  ;;  %v8437_v11 = vsel %vm2265_vm7, %v8318_v28, 0.0  ;;  %v8241_v63 = vsel %vm2265_vm7, %v17026_v27, 0.0  ;;  %v8319_v24 = vmul.f32 %v17026_v27, %v17026_v27  ;;  %v8441_v28 = vsel %vm2265_vm7, %v8320_v34, 0.0 }
 0x81f   :  { %v8438_v48 = vadd.f32 %v8437_v11, %v8436_v37  ;;  %v8242_v42 = vadd.f32 %v8241_v63, %v8240_v22  ;;  %v8443_v37 = vsel %vm2265_vm7, %v8321_v16, 0.0 }
 0x820   :  { %v8439_v45 = vsel %vm2265_vm7, %v8319_v24, 0.0 }
 0x821   :  { %v8244_v46 = vadd.f32 %v8243_v57, %v8242_v42  ;;  %v8440_v3 = vadd.f32 %v8439_v45, %v8438_v48 }
 0x823   :  { %v8442_v0 = vadd.f32 %v8441_v28, %v8440_v3  ;;  %v8246_v62 = vadd.f32 %v8245_v30, %v8244_v46 }
 0x825   :  { %v8444_v22 = vadd.f32 %v8443_v37, %v8442_v0 }
 0x83d   :  { %v17044_v11 = vpop.f32.mrb[60].mxu1 }
 0x83e   :  { %19629 = vst [vmem:[#allocation99_spill] sm:$0xff] %v17044_v11  ;;  %v17046_v63 = vpop.f32.mrb[61].mxu1  ;;  %v8324_v30 = vmul.f32 %v17044_v11, %v17044_v11  ;;  %v8251_v3 = vsel %vm2265_vm7, %v17044_v11, 0.0 }
 0x83f   :  { %19630 = vst [vmem:[#allocation125_spill] sm:$0xff] %v17046_v63  ;;  %v8247_v60 = vsel %vm2265_vm7, %v17046_v63, 0.0  ;;  %v8322_v24 = vmul.f32 %v17046_v63, %v17046_v63  ;;  %v17052_v48 = vpop.f32.mrb[62].mxu1 }
 0x840   :  { %19631 = vst [vmem:[#allocation100_spill] sm:$0xff] %v17052_v48  ;;  %v8248_v34 = vadd.f32 %v8247_v60, %v8246_v62  ;;  %v17054_v42 = vpop.f32.mrb[63].mxu1  ;;  %v8325_v62 = vmul.f32 %v17052_v48, %v17052_v48  ;;  %v8253_v63 = vsel %vm2265_vm7, %v17052_v48, 0.0 }
 0x841   :  { %19632 = vst [vmem:[#allocation126_spill] sm:$0xff] %v17054_v42  ;;  %v8445_v0 = vsel %vm2265_vm7, %v8322_v24, 0.0  ;;  %v8249_v57 = vsel %vm2265_vm7, %v17054_v42, 0.0  ;;  %v8323_v16 = vmul.f32 %v17054_v42, %v17054_v42  ;;  %v8449_v24 = vsel %vm2265_vm7, %v8324_v30, 0.0 }
 0x842   :  { %v8446_v45 = vadd.f32 %v8445_v0, %v8444_v22  ;;  %v8250_v46 = vadd.f32 %v8249_v57, %v8248_v34  ;;  %v8451_v22 = vsel %vm2265_vm7, %v8325_v62, 0.0 }
 0x843   :  { %v8447_v60 = vsel %vm2265_vm7, %v8323_v16, 0.0 }
 0x844   :  { %v8252_v28 = vadd.f32 %v8251_v3, %v8250_v46  ;;  %v8448_v37 = vadd.f32 %v8447_v60, %v8446_v45 }
 0x846   :  { %v8254_v61 = vadd.f32 %v8253_v63, %v8252_v28  ;;  %v8450_v27 = vadd.f32 %v8449_v24, %v8448_v37  ;;  %v19694_v24 = vld [vmem:[#allocation105_spill] sm:$0xff] }
 0x848   :  { %v8255_v34 = vrot.slane %v8254_v61, 4  ;;  %v8452_v0 = vadd.f32 %v8451_v22, %v8450_v27  ;;  %v19699_v22 = vld [vmem:[#allocation134_spill] sm:$0xff] }
 0x84a   :  { %v8256_v57 = vadd.f32 %v8255_v34, %v8254_v61  ;;  %v8453_v11 = vrot.slane %v8452_v0, 4  ;;  %v19695_v61 = vld [vmem:[#allocation49_spill] sm:$0xff]  ;;  %v19697_v34 = vld [vmem:[#allocation154_spill] sm:$0xff] }
 0x84c   :  { %v8257_v42 = vrot.slane %v8256_v57, 2  ;;  %v8454_v56 = vadd.f32 %v8453_v11, %v8452_v0  ;;  %v19696_v11 = vld [vmem:[#allocation150_spill] sm:$0xff] }
 0x84e   :  { %v8258_v52 = vadd.f32 %v8257_v42, %v8256_v57  ;;  %v8455_v21 = vrot.slane %v8454_v56, 2  ;;  %v19705_v42 = vld [vmem:[#allocation120_spill] sm:$0xff]  ;;  %v19713_v57 = vld [vmem:[#allocation122_spill] sm:$0xff] }
 0x850   :  { %v8259_v16 = vrot.slane %v8258_v52, 1  ;;  %v8456_v46 = vadd.f32 %v8455_v21, %v8454_v56  ;;  %v17134_v56 = vld [vmem:[%s18320_s6] sm:$0x1]  ;;  %v19701_v21 = vld [vmem:[#allocation152_spill] sm:$0xff] }
 0x852   :  { %v8260_v45 = vadd.f32 %v8259_v16, %v8258_v52  ;;  %v8457_v3 = vrot.slane %v8456_v46, 1  ;;  %v19711_v16 = vld [vmem:[#allocation121_spill] sm:$0xff] }
 0x854   :  { %v17072_v30 = vmul.f32 0.001953125, %v8260_v45  ;;  %v8458_v60 = vadd.f32 %v8457_v3, %v8456_v46  ;;  %v8126_v3 = vld [vmem:[%s18319_s5] sm:$0x1]  ;;  %v19692_v45 = vld [vmem:[#allocation146_spill] sm:$0xff]  ;;  %v19707_v46 = vld [vmem:[#allocation140_spill] sm:$0xff] }
 0x856   :  { %v8459_v48 = vmul.f32 0.001953125, %v8458_v60  ;;  %v8460_v63 = vmul.f32 %v17072_v30, %v17072_v30 }
 0x858   :  { %v8461_v62 = vsub.f32 %v8459_v48, %v8460_v63  ;;  %v19693_v48 = vld [vmem:[#allocation148_spill] sm:$0xff] }
 0x85a   :  { %v8462_v28 = vmax.f32 %v8461_v62, 0.0  ;;  %v19709_v62 = vld [vmem:[#allocation91_spill] sm:$0xff] }
 0x85c   :  { %v8463_v27 = vadd.f32 1e-05, %v8462_v28 }
 0x85e   :  { %9647 = vrsqrt.f32 %v8463_v27  ;;  %v19715_v27 = vld [vmem:[#allocation156_spill] sm:$0xff] }
 0x868   :  { %v9648_v28 = vpop.eup %9647 }
 0x869   :  { %v8465_v37 = vmul.f32 %v9648_v28, %v8126_v3  ;;  %v19687_v3 = vld [vmem:[#allocation95_spill] sm:$0xff] }
 0x86b   :  { %v17139_v60 = vmul.f32 %v8465_v37, %v17072_v30  ;;  %v17142_v28 = vrot.slane %v8465_v37, %v19687_v3 }
 0x86d   :  { %v17152_v52 = vmul.f32 %v17142_v28, %v16139_v35  ;;  %v17156_v30 = vmul.f32 %v17142_v28, %v16158_v9  ;;  %v17160_v37 = vmul.f32 %v16137_v44, %v17142_v28  ;;  %v17164_v0 = vmul.f32 %v16150_v17, %v17142_v28 }
 0x86e   :  { %v17168_v63 = vmul.f32 %v17142_v28, %v16289_v41  ;;  %v17172_v35 = vmul.f32 %v17142_v28, %v16306_v33  ;;  %v17176_v9 = vmul.f32 %v16287_v20, %v17142_v28  ;;  %v17180_v44 = vmul.f32 %v16298_v59, %v17142_v28 }
 0x86f   :  { %v17184_v17 = vmul.f32 %v17142_v28, %v16445_v6  ;;  %v17188_v41 = vmul.f32 %v17142_v28, %v16469_v51  ;;  %v17192_v33 = vmul.f32 %v16434_v14, %v17142_v28  ;;  %v17196_v20 = vmul.f32 %v16457_v19, %v17142_v28 }
 0x870   :  { %v17200_v59 = vmul.f32 %v17142_v28, %v16586_v8  ;;  %v17204_v6 = vmul.f32 %v17142_v28, %v16601_v40  ;;  %v17208_v51 = vmul.f32 %v16577_v4, %v17142_v28  ;;  %v17212_v14 = vmul.f32 %v16595_v31, %v17142_v28 }
 0x871   :  { %v17216_v19 = vmul.f32 %v17142_v28, %v16653_v23  ;;  %v17220_v8 = vmul.f32 %v17142_v28, %v16667_v50  ;;  %v17224_v40 = vmul.f32 %v16651_v25, %v17142_v28  ;;  %v17228_v4 = vmul.f32 %v16659_v2, %v17142_v28 }
 0x872   :  { %v17232_v31 = vmul.f32 %v17142_v28, %v16703_v29  ;;  %v17236_v23 = vmul.f32 %v17142_v28, %v16717_v32  ;;  %v17240_v50 = vmul.f32 %v16701_v18, %v17142_v28  ;;  %v17244_v25 = vmul.f32 %v16709_v15, %v17142_v28 }
 0x873   :  { %v17248_v2 = vmul.f32 %v17142_v28, %v16762_v7  ;;  %v17252_v29 = vmul.f32 %v17142_v28, %v16772_v1  ;;  %v17256_v32 = vmul.f32 %v16759_v43, %v17142_v28  ;;  %v17260_v18 = vmul.f32 %v16769_v38, %v17142_v28 }
 0x874   :  { %v17264_v15 = vmul.f32 %v17142_v28, %v16807_v36  ;;  %v17268_v7 = vmul.f32 %v17142_v28, %v16819_v10  ;;  %v17272_v1 = vmul.f32 %v16804_v5, %v17142_v28  ;;  %v17276_v43 = vmul.f32 %v16814_v26, %v17142_v28 }
 0x875   :  { %v17280_v38 = vmul.f32 %v17142_v28, %v16850_v12  ;;  %v17284_v36 = vmul.f32 %v17142_v28, %v16858_v39  ;;  %v17288_v10 = vmul.f32 %v16848_v13, %v17142_v28  ;;  %v17292_v5 = vmul.f32 %v16856_v54, %v17142_v28 }
 0x876   :  { %v17296_v26 = vmul.f32 %v17142_v28, %v16878_v53  ;;  %v17300_v12 = vmul.f32 %v17142_v28, %v16886_v55  ;;  %v17304_v39 = vmul.f32 %v16876_v58, %v17142_v28  ;;  %v17308_v13 = vmul.f32 %v16884_v49, %v17142_v28 }
 0x877   :  { %v17312_v54 = vmul.f32 %v17142_v28, %v19692_v45  ;;  %v17316_v53 = vmul.f32 %v17142_v28, %v19693_v48  ;;  %v17320_v55 = vmul.f32 %v19694_v24, %v17142_v28  ;;  %v17324_v58 = vmul.f32 %v19695_v61, %v17142_v28 }
 0x878   :  { %v17328_v49 = vmul.f32 %v17142_v28, %v19696_v11  ;;  %v17332_v45 = vmul.f32 %v17142_v28, %v19697_v34  ;;  %v17336_v48 = vmul.f32 %v19699_v22, %v17142_v28  ;;  %v17340_v24 = vmul.f32 %v19701_v21, %v17142_v28 }
 0x879   :  { %v17344_v61 = vmul.f32 %v17142_v28, %v19703_v47  ;;  %v17348_v11 = vmul.f32 %v17142_v28, %v19705_v42  ;;  %v17352_v34 = vmul.f32 %v19707_v46, %v17142_v28  ;;  %v17356_v22 = vmul.f32 %v19709_v62, %v17142_v28 }
 0x87a   :  { %19698 = vst [vmem:[#allocation101_spill] sm:$0xff] %v17332_v45  ;;  %19700 = vst [vmem:[#allocation127_spill] sm:$0xff] %v17336_v48  ;;  %v17360_v21 = vmul.f32 %v17142_v28, %v19711_v16  ;;  %v17364_v47 = vmul.f32 %v17142_v28, %v19713_v57  ;;  %v17368_v42 = vmul.f32 %v19715_v27, %v17142_v28 }
 0x87b   :  { %19702 = vst [vmem:[#allocation52_spill] sm:$0xff] %v17340_v24  ;;  %19704 = vst [vmem:[#allocation128_spill] sm:$0xff] %v17344_v61  ;;  %v19735_v24 = vld [vmem:[#allocation100_spill] sm:$0xff] }
 0x87c   :  { %19706 = vst [vmem:[#allocation58_spill] sm:$0xff] %v17348_v11  ;;  %19708 = vst [vmem:[#allocation129_spill] sm:$0xff] %v17352_v34  ;;  %v19717_v11 = vld [vmem:[#allocation157_spill] sm:$0xff]  ;;  %v19719_v34 = vld [vmem:[#allocation123_spill] sm:$0xff] }
 0x87d   :  { %19710 = vst [vmem:[#allocation3_spill] sm:$0xff] %v17356_v22  ;;  %19712 = vst [vmem:[#allocation43_spill] sm:$0xff] %v17360_v21  ;;  %v17372_v46 = vmul.f32 %v19717_v11, %v17142_v28  ;;  %v17376_v62 = vmul.f32 %v17142_v28, %v19719_v34  ;;  %v19721_v22 = vld [vmem:[#allocation124_spill] sm:$0xff]  ;;  %v19723_v21 = vld [vmem:[#allocation94_spill] sm:$0xff] }
 0x87e   :  { %19714 = vst [vmem:[#allocation130_spill] sm:$0xff] %v17364_v47  ;;  %19716 = vst [vmem:[#allocation96_spill] sm:$0xff] %v17368_v42  ;;  %v17380_v16 = vmul.f32 %v17142_v28, %v19721_v22  ;;  %v17384_v57 = vmul.f32 %v19723_v21, %v17142_v28  ;;  %v19725_v47 = vld [vmem:[#allocation98_spill] sm:$0xff]  ;;  %v19727_v42 = vld [vmem:[#allocation125_spill] sm:$0xff] }
 0x87f   :  { %19718 = vst [vmem:[#allocation131_spill] sm:$0xff] %v17372_v46  ;;  %19720 = vst [vmem:[#allocation86_spill] sm:$0xff] %v17376_v62  ;;  %v17388_v27 = vmul.f32 %v19725_v47, %v17142_v28  ;;  %v17392_v11 = vmul.f32 %v17142_v28, %v19727_v42  ;;  %v19729_v46 = vld [vmem:[#allocation126_spill] sm:$0xff]  ;;  %v19731_v62 = vld [vmem:[#allocation99_spill] sm:$0xff]  ;;  %v17406_v47 = vmul.f32 %v19735_v24, %v17142_v28 }
 0x880   :  { %19722 = vst [vmem:[#allocation133_spill] sm:$0xff] %v17380_v16  ;;  %19724 = vst [vmem:[#allocation89_spill] sm:$0xff] %v17384_v57  ;;  %v17396_v34 = vmul.f32 %v17142_v28, %v19729_v46  ;;  %v17400_v22 = vmul.f32 %v19731_v62, %v17142_v28  ;;  %v19736_v42 = vsub.f32 %v17134_v56, %v17139_v60  ;;  %v19737_v46 = vld [vmem:[#allocation31_spill] sm:$0xff] }
 0x881   :  { %19726 = vst [vmem:[#allocation135_spill] sm:$0xff] %v17388_v27  ;;  %19728 = vst [vmem:[#allocation83_spill] sm:$0xff] %v17392_v11  ;;  %v19738_v27 = vld [vmem:[#allocation28_spill] sm:$0xff]  ;;  %v19741_v24 = vld [vmem:[#allocation101_spill] sm:$0xff] }
 0x882   :  { %19730 = vst [vmem:[#allocation137_spill] sm:$0xff] %v17396_v34  ;;  %19732 = vst [vmem:[#allocation88_spill] sm:$0xff] %v17400_v22  ;;  %v17412_v11 = vrot.slane %v19736_v42, %v19687_v3  ;;  %v19742_v42 = vmov %v17336_v48  ;;  %v19743_v61 = vld [vmem:[#allocation52_spill] sm:$0xff] }
 0x883   :  { %v19744_v22 = vld [vmem:[#allocation128_spill] sm:$0xff]  ;;  %v19746_v48 = vld [vmem:[#allocation58_spill] sm:$0xff]  ;;  %v19748_v34 = vld [vmem:[#allocation129_spill] sm:$0xff] }
 0x884   :  { %v17420_v57 = vadd.f32 %v17412_v11, %v17152_v52  ;;  %v17424_v28 = vadd.f32 %v17412_v11, %v17156_v30  ;;  %v17428_v56 = vadd.f32 %v17412_v11, %v17160_v37  ;;  %v17432_v60 = vadd.f32 %v17412_v11, %v17164_v0  ;;  %v19750_v45 = vld [vmem:[#allocation3_spill] sm:$0xff] }
 0x885   :  { %v17436_v3 = vadd.f32 %v17412_v11, %v17168_v63  ;;  %v17440_v52 = vadd.f32 %v17412_v11, %v17172_v35  ;;  %v17444_v30 = vadd.f32 %v17412_v11, %v17176_v9  ;;  %v17448_v37 = vadd.f32 %v17412_v11, %v17180_v44  ;;  %v19752_v62 = vld [vmem:[#allocation43_spill] sm:$0xff]  ;;  %v19754_v21 = vld [vmem:[#allocation130_spill] sm:$0xff]  ;;  %v19756_v16 = vld [vmem:[#allocation96_spill] sm:$0xff] }
 0x886   :  { %v17452_v0 = vadd.f32 %v17412_v11, %v17184_v17  ;;  %v17456_v63 = vadd.f32 %v17412_v11, %v17188_v41  ;;  %v17460_v35 = vadd.f32 %v17412_v11, %v17192_v33  ;;  %v17464_v9 = vadd.f32 %v17412_v11, %v17196_v20 }
 0x887   :  { %v17468_v44 = vadd.f32 %v17412_v11, %v17200_v59  ;;  %v17472_v17 = vadd.f32 %v17412_v11, %v17204_v6  ;;  %v17476_v41 = vadd.f32 %v17412_v11, %v17208_v51  ;;  %v17480_v33 = vadd.f32 %v17412_v11, %v17212_v14 }
 0x888   :  { %v17484_v20 = vadd.f32 %v17412_v11, %v17216_v19  ;;  %v17488_v59 = vadd.f32 %v17412_v11, %v17220_v8  ;;  %v17492_v6 = vadd.f32 %v17412_v11, %v17224_v40  ;;  %v17496_v51 = vadd.f32 %v17412_v11, %v17228_v4 }
 0x889   :  { %v17500_v14 = vadd.f32 %v17412_v11, %v17232_v31  ;;  %v17504_v19 = vadd.f32 %v17412_v11, %v17236_v23  ;;  %v17508_v8 = vadd.f32 %v17412_v11, %v17240_v50  ;;  %v17512_v40 = vadd.f32 %v17412_v11, %v17244_v25 }
 0x88a   :  { %v17516_v4 = vadd.f32 %v17412_v11, %v17248_v2  ;;  %v17520_v31 = vadd.f32 %v17412_v11, %v17252_v29  ;;  %v17524_v23 = vadd.f32 %v17412_v11, %v17256_v32  ;;  %v17528_v50 = vadd.f32 %v17412_v11, %v17260_v18 }
 0x88b   :  { %v17532_v25 = vadd.f32 %v17412_v11, %v17264_v15  ;;  %v17536_v2 = vadd.f32 %v17412_v11, %v17268_v7  ;;  %v17540_v29 = vadd.f32 %v17412_v11, %v17272_v1  ;;  %v17544_v32 = vadd.f32 %v17412_v11, %v17276_v43 }
 0x88c   :  { %v17548_v18 = vadd.f32 %v17412_v11, %v17280_v38  ;;  %v17552_v15 = vadd.f32 %v17412_v11, %v17284_v36  ;;  %v17556_v7 = vadd.f32 %v17412_v11, %v17288_v10  ;;  %v17560_v1 = vadd.f32 %v17412_v11, %v17292_v5 }
 0x88d   :  { %v17564_v43 = vadd.f32 %v17412_v11, %v17296_v26  ;;  %v17568_v38 = vadd.f32 %v17412_v11, %v17300_v12  ;;  %v17572_v36 = vadd.f32 %v17412_v11, %v17304_v39  ;;  %v17576_v10 = vadd.f32 %v17412_v11, %v17308_v13 }
 0x88e   :  { %v17580_v5 = vadd.f32 %v17412_v11, %v17312_v54  ;;  %v17584_v26 = vadd.f32 %v17412_v11, %v17316_v53  ;;  %v17588_v12 = vadd.f32 %v17412_v11, %v17320_v55  ;;  %v17592_v39 = vadd.f32 %v17412_v11, %v17324_v58 }
 0x88f   :  { %v17596_v13 = vadd.f32 %v17412_v11, %v17328_v49  ;;  %v17600_v54 = vadd.f32 %v17412_v11, %v19741_v24  ;;  %v17604_v53 = vadd.f32 %v17412_v11, %v19742_v42  ;;  %v17608_v55 = vadd.f32 %v17412_v11, %v19743_v61 }
 0x890   :  { %v17612_v58 = vadd.f32 %v17412_v11, %v19744_v22  ;;  %v17616_v49 = vadd.f32 %v17412_v11, %v19746_v48  ;;  %v17620_v24 = vadd.f32 %v17412_v11, %v19748_v34  ;;  %v17624_v42 = vadd.f32 %v17412_v11, %v19750_v45 }
 0x891   :  { %v17628_v61 = vadd.f32 %v17412_v11, %v19752_v62  ;;  %v17632_v22 = vadd.f32 %v17412_v11, %v19754_v21  ;;  %v17636_v48 = vadd.f32 %v17412_v11, %v19756_v16 }
 0x892   :  { %19745 = vst [vmem:[#allocation139_spill] sm:$0xff] %v17612_v58  ;;  %19747 = vst [vmem:[#allocation97_spill] sm:$0xff] %v17616_v49  ;;  %v19758_v49 = vld [vmem:[#allocation131_spill] sm:$0xff] }
 0x893   :  { %19749 = vst [vmem:[#allocation143_spill] sm:$0xff] %v17620_v24  ;;  %19751 = vst [vmem:[#allocation103_spill] sm:$0xff] %v17624_v42  ;;  %v17640_v34 = vadd.f32 %v17412_v11, %v19758_v49  ;;  %v19760_v24 = vld [vmem:[#allocation86_spill] sm:$0xff]  ;;  %v19762_v42 = vld [vmem:[#allocation133_spill] sm:$0xff] }
 0x894   :  { %19753 = vst [vmem:[#allocation145_spill] sm:$0xff] %v17628_v61  ;;  %19755 = vst [vmem:[#allocation104_spill] sm:$0xff] %v17632_v22  ;;  %v17644_v45 = vadd.f32 %v17412_v11, %v19760_v24  ;;  %v17648_v62 = vadd.f32 %v17412_v11, %v19762_v42  ;;  %v19764_v61 = vld [vmem:[#allocation89_spill] sm:$0xff]  ;;  %v19766_v22 = vld [vmem:[#allocation135_spill] sm:$0xff] }
 0x895   :  { %19757 = vst [vmem:[#allocation147_spill] sm:$0xff] %v17636_v48  ;;  %19759 = vst [vmem:[#allocation132_spill] sm:$0xff] %v17640_v34  ;;  %v17652_v21 = vadd.f32 %v17412_v11, %v19764_v61  ;;  %v17656_v16 = vadd.f32 %v17412_v11, %v19766_v22  ;;  %v19768_v48 = vld [vmem:[#allocation83_spill] sm:$0xff]  ;;  %v19770_v34 = vld [vmem:[#allocation137_spill] sm:$0xff]  ;;  %v17672_v61 = vadd.f32 %v17412_v11, %v17406_v47 }
 0x896   :  { %19761 = vst [vmem:[#allocation149_spill] sm:$0xff] %v17644_v45  ;;  %19763 = vst [vmem:[#allocation106_spill] sm:$0xff] %v17648_v62  ;;  %v17660_v49 = vadd.f32 %v17412_v11, %v19768_v48  ;;  %v17664_v24 = vadd.f32 %v17412_v11, %v19770_v34  ;;  %v19772_v45 = vld [vmem:[#allocation88_spill] sm:$0xff]  ;;  %v19776_v48 = vld [vmem:[#allocation9_spill] sm:$0xff] }
 0x897   :  { %19765 = vst [vmem:[#allocation151_spill] sm:$0xff] %v17652_v21  ;;  %19767 = vst [vmem:[#allocation107_spill] sm:$0xff] %v17656_v16  ;;  %v17668_v42 = vadd.f32 %v17412_v11, %v19772_v45  ;;  %v19774_v21 = vld [vmem:[#allocation8_spill] sm:$0xff]  ;;  %v19780_v45 = vld [vmem:[#allocation5_spill] sm:$0xff] }
 0x898   :  { %19769 = vst [vmem:[#allocation153_spill] sm:$0xff] %v17660_v49  ;;  %19771 = vst [vmem:[#allocation108_spill] sm:$0xff] %v17664_v24  ;;  %v19775_v22 = vunpack.c.l.bf16 %v19774_v21  ;;  %v19777_v49 = vunpack.c.l.bf16 %v19776_v48  ;;  %v19778_v34 = vld [vmem:[#allocation4_spill] sm:$0xff]  ;;  %v19782_v47 = vld [vmem:[#allocation6_spill] sm:$0xff] }
 0x899   :  { %19773 = vst [vmem:[#allocation136_spill] sm:$0xff] %v17668_v42  ;;  %v19779_v24 = vunpack.c.l.bf16 %v19778_v34  ;;  %v19781_v42 = vunpack.c.l.bf16 %v19780_v45  ;;  %v19783_v21 = vunpack.c.l.bf16 %v19782_v47 }
 0x89a   :  { %v17677_v16 = vadd.f32 %v19775_v22, %v17420_v57  ;;  %v17682_v62 = vadd.f32 %v19777_v49, %v17424_v28  ;;  %v19784_v22 = vld [vmem:[#allocation7_spill] sm:$0xff]  ;;  %v19786_v49 = vld [vmem:[#allocation12_spill] sm:$0xff] }
 0x89b   :  { %v17687_v58 = vadd.f32 %v19779_v24, %v17428_v56  ;;  %v17692_v11 = vadd.f32 %v19781_v42, %v17432_v60  ;;  %v17697_v57 = vadd.f32 %v19783_v21, %v17436_v3  ;;  %v19785_v48 = vunpack.c.l.bf16 %v19784_v22  ;;  %v19788_v24 = vld [vmem:[#allocation13_spill] sm:$0xff]  ;;  %v19790_v42 = vld [vmem:[#allocation10_spill] sm:$0xff]  ;;  %v19792_v21 = vld [vmem:[#allocation11_spill] sm:$0xff] }
 0x89c   :  { %v19787_v34 = vunpack.c.l.bf16 %v19786_v49  ;;  %v19789_v45 = vunpack.c.l.bf16 %v19788_v24  ;;  %v19791_v47 = vunpack.c.l.bf16 %v19790_v42  ;;  %v19793_v22 = vunpack.c.l.bf16 %v19792_v21 }
 0x89d   :  { %v17702_v28 = vadd.f32 %v19785_v48, %v17440_v52  ;;  %v19794_v48 = vld [vmem:[#allocation16_spill] sm:$0xff] }
 0x89e   :  { %v17707_v56 = vadd.f32 %v19787_v34, %v17444_v30  ;;  %v17712_v60 = vadd.f32 %v19789_v45, %v17448_v37  ;;  %v17717_v3 = vadd.f32 %v19791_v47, %v17452_v0  ;;  %v17722_v52 = vadd.f32 %v19793_v22, %v17456_v63  ;;  %v19796_v34 = vld [vmem:[#allocation17_spill] sm:$0xff]  ;;  %v19798_v45 = vld [vmem:[#allocation14_spill] sm:$0xff]  ;;  %v19800_v47 = vld [vmem:[#allocation15_spill] sm:$0xff] }
 0x89f   :  { %v19795_v49 = vunpack.c.l.bf16 %v19794_v48  ;;  %v19797_v24 = vunpack.c.l.bf16 %v19796_v34  ;;  %v19799_v42 = vunpack.c.l.bf16 %v19798_v45  ;;  %v19801_v21 = vunpack.c.l.bf16 %v19800_v47  ;;  %v19802_v22 = vld [vmem:[#allocation20_spill] sm:$0xff] }
 0x8a0   :  { %v19803_v48 = vunpack.c.l.bf16 %v19802_v22 }
 0x8a1   :  { %v17727_v30 = vadd.f32 %v19795_v49, %v17460_v35  ;;  %v17732_v37 = vadd.f32 %v19797_v24, %v17464_v9  ;;  %v17737_v0 = vadd.f32 %v19799_v42, %v17468_v44  ;;  %v17742_v63 = vadd.f32 %v19801_v21, %v17472_v17  ;;  %v19804_v49 = vld [vmem:[#allocation21_spill] sm:$0xff]  ;;  %v19806_v24 = vld [vmem:[#allocation18_spill] sm:$0xff]  ;;  %v19808_v42 = vld [vmem:[#allocation19_spill] sm:$0xff] }
 0x8a2   :  { %v17747_v35 = vadd.f32 %v19803_v48, %v17476_v41  ;;  %v19805_v34 = vunpack.c.l.bf16 %v19804_v49  ;;  %v19807_v45 = vunpack.c.l.bf16 %v19806_v24  ;;  %v19809_v47 = vunpack.c.l.bf16 %v19808_v42  ;;  %v19810_v21 = vld [vmem:[#allocation24_spill] sm:$0xff]  ;;  %v19812_v48 = vld [vmem:[#allocation25_spill] sm:$0xff] }
 0x8a3   :  { %v19811_v22 = vunpack.c.l.bf16 %v19810_v21  ;;  %v19813_v49 = vunpack.c.l.bf16 %v19812_v48 }
 0x8a4   :  { %v17752_v9 = vadd.f32 %v19805_v34, %v17480_v33  ;;  %v17757_v44 = vadd.f32 %v19807_v45, %v17484_v20  ;;  %v17762_v17 = vadd.f32 %v19809_v47, %v17488_v59  ;;  %v19814_v34 = vld [vmem:[#allocation22_spill] sm:$0xff]  ;;  %v19816_v45 = vld [vmem:[#allocation23_spill] sm:$0xff]  ;;  %v19818_v47 = vld [vmem:[#allocation29_spill] sm:$0xff] }
 0x8a5   :  { %v17767_v41 = vadd.f32 %v19811_v22, %v17492_v6  ;;  %v17772_v33 = vadd.f32 %v19813_v49, %v17496_v51  ;;  %v19815_v24 = vunpack.c.l.bf16 %v19814_v34  ;;  %v19817_v42 = vunpack.c.l.bf16 %v19816_v45  ;;  %v19820_v22 = vld [vmem:[#allocation30_spill] sm:$0xff] }
 0x8a6   :  { %v19819_v21 = vunpack.c.l.bf16 %v19818_v47  ;;  %v19821_v48 = vunpack.c.l.bf16 %v19820_v22  ;;  %v19822_v49 = vld [vmem:[#allocation26_spill] sm:$0xff] }
 0x8a7   :  { %v17777_v20 = vadd.f32 %v19815_v24, %v17500_v14  ;;  %v17782_v59 = vadd.f32 %v19817_v42, %v17504_v19  ;;  %v19823_v34 = vunpack.c.l.bf16 %v19822_v49  ;;  %v19824_v24 = vld [vmem:[#allocation27_spill] sm:$0xff] }
 0x8a8   :  { %v17787_v6 = vadd.f32 %v19819_v21, %v17508_v8  ;;  %v17792_v51 = vadd.f32 %v19821_v48, %v17512_v40  ;;  %v19825_v45 = vunpack.c.l.bf16 %v19824_v24  ;;  %v19826_v42 = vld [vmem:[#allocation35_spill] sm:$0xff]  ;;  %v19828_v21 = vld [vmem:[#allocation36_spill] sm:$0xff] }
 0x8a9   :  { %v17797_v14 = vadd.f32 %v19823_v34, %v17516_v4  ;;  %v19827_v47 = vunpack.c.l.bf16 %v19826_v42  ;;  %v19829_v22 = vunpack.c.l.bf16 %v19828_v21  ;;  %v19830_v48 = vld [vmem:[#allocation32_spill] sm:$0xff]  ;;  %v19832_v34 = vld [vmem:[#allocation33_spill] sm:$0xff]  ;;  %v19835_v42 = vunpack.c.l.bf16 %v19738_v27 }
 0x8aa   :  { %v17802_v19 = vadd.f32 %v19825_v45, %v17520_v31  ;;  %v19831_v49 = vunpack.c.l.bf16 %v19830_v48  ;;  %v19833_v24 = vunpack.c.l.bf16 %v19832_v34  ;;  %v19834_v45 = vunpack.c.l.bf16 %v19737_v46  ;;  %v19842_v34 = vld [vmem:[#allocation45_spill] sm:$0xff] }
 0x8ab   :  { %v17807_v8 = vadd.f32 %v19827_v47, %v17524_v23  ;;  %v17812_v40 = vadd.f32 %v19829_v22, %v17528_v50  ;;  %v17832_v50 = vadd.f32 %v19835_v42, %v17544_v32  ;;  %v19836_v47 = vld [vmem:[#allocation38_spill] sm:$0xff]  ;;  %v19838_v22 = vld [vmem:[#allocation39_spill] sm:$0xff]  ;;  %v19843_v27 = vunpack.c.l.bf16 %v19842_v34 }
 0x8ac   :  { %v17817_v4 = vadd.f32 %v19831_v49, %v17532_v25  ;;  %v17822_v31 = vadd.f32 %v19833_v24, %v17536_v2  ;;  %v17827_v23 = vadd.f32 %v19834_v45, %v17540_v29  ;;  %v19837_v21 = vunpack.c.l.bf16 %v19836_v47  ;;  %v19840_v49 = vld [vmem:[#allocation44_spill] sm:$0xff]  ;;  %v19844_v24 = vld [vmem:[#allocation41_spill] sm:$0xff]  ;;  %v19846_v42 = vld [vmem:[#allocation42_spill] sm:$0xff] }
 0x8ad   :  { %v19839_v48 = vunpack.c.l.bf16 %v19838_v22  ;;  %v19841_v46 = vunpack.c.l.bf16 %v19840_v49  ;;  %v17852_v32 = vadd.f32 %v19843_v27, %v17560_v1  ;;  %v19845_v45 = vunpack.c.l.bf16 %v19844_v24  ;;  %v19854_v27 = vld [vmem:[#allocation48_spill] sm:$0xff] }
 0x8ae   :  { %v17837_v25 = vadd.f32 %v19837_v21, %v17548_v18  ;;  %v19847_v47 = vunpack.c.l.bf16 %v19846_v42  ;;  %v19848_v21 = vld [vmem:[#allocation50_spill] sm:$0xff]  ;;  %v19855_v24 = vunpack.c.l.bf16 %v19854_v27 }
 0x8af   :  { %v17842_v2 = vadd.f32 %v19839_v48, %v17552_v15  ;;  %v17847_v29 = vadd.f32 %v19841_v46, %v17556_v7  ;;  %v17857_v18 = vadd.f32 %v19845_v45, %v17564_v43  ;;  %v19849_v22 = vunpack.c.l.bf16 %v19848_v21  ;;  %v19850_v48 = vld [vmem:[#allocation51_spill] sm:$0xff]  ;;  %v19856_v45 = vld [vmem:[#allocation56_spill] sm:$0xff] }
 0x8b0   :  { %v17862_v15 = vadd.f32 %v19847_v47, %v17568_v38  ;;  %v19851_v49 = vunpack.c.l.bf16 %v19850_v48  ;;  %v19852_v46 = vld [vmem:[#allocation47_spill] sm:$0xff]  ;;  %v17882_v38 = vadd.f32 %v19855_v24, %v17584_v26  ;;  %v19857_v42 = vunpack.c.l.bf16 %v19856_v45  ;;  %v19858_v47 = vld [vmem:[#allocation57_spill] sm:$0xff] }
 0x8b1   :  { %v17867_v7 = vadd.f32 %v19849_v22, %v17572_v36  ;;  %v19853_v34 = vunpack.c.l.bf16 %v19852_v46  ;;  %v19859_v21 = vunpack.c.l.bf16 %v19858_v47  ;;  %v19860_v22 = vld [vmem:[#allocation53_spill] sm:$0xff]  ;;  %v19868_v24 = vld [vmem:[#allocation63_spill] sm:$0xff] }
 0x8b2   :  { %v17872_v1 = vadd.f32 %v19851_v49, %v17576_v10  ;;  %v17887_v36 = vadd.f32 %v19857_v42, %v17588_v12  ;;  %v19861_v48 = vunpack.c.l.bf16 %v19860_v22  ;;  %v19862_v49 = vld [vmem:[#allocation54_spill] sm:$0xff]  ;;  %v19869_v45 = vunpack.c.l.bf16 %v19868_v24  ;;  %v19871_v42 = vld [vmem:[#allocation139_spill] sm:$0xff]  ;;  %v19875_v22 = vld [vmem:[#allocation97_spill] sm:$0xff] }
 0x8b3   :  { %v17877_v43 = vadd.f32 %v19853_v34, %v17580_v5  ;;  %v17892_v10 = vadd.f32 %v19859_v21, %v17592_v39  ;;  %v19863_v46 = vunpack.c.l.bf16 %v19862_v49  ;;  %v19865_v34 = vld [vmem:[#allocation62_spill] sm:$0xff]  ;;  %v19872_v47 = vld [vmem:[#allocation59_spill] sm:$0xff] }
 0x8b4   :  { %v17897_v5 = vadd.f32 %v19861_v48, %v17596_v13  ;;  %v19866_v27 = vunpack.c.l.bf16 %v19865_v34  ;;  %v17912_v39 = vadd.f32 %v19869_v45, %v17608_v55  ;;  %v19873_v21 = vunpack.c.l.bf16 %v19872_v47  ;;  %v19876_v48 = vld [vmem:[#allocation60_spill] sm:$0xff]  ;;  %v19887_v45 = vld [vmem:[#allocation145_spill] sm:$0xff] }
 0x8b5   :  { %v17902_v26 = vadd.f32 %v19863_v46, %v17600_v54  ;;  %v19877_v49 = vunpack.c.l.bf16 %v19876_v48  ;;  %v19879_v46 = vld [vmem:[#allocation143_spill] sm:$0xff] }
 0x8b6   :  { %v17907_v12 = vadd.f32 %v19866_v27, %v17604_v53  ;;  %19870 = vst [vmem:[#allocation92_spill] sm:$0xff] %v17912_v39  ;;  %v17917_v13 = vadd.f32 %v19873_v21, %v19871_v42  ;;  %v19883_v27 = vld [vmem:[#allocation103_spill] sm:$0xff]  ;;  %v19888_v39 = vld [vmem:[#allocation65_spill] sm:$0xff]  ;;  %v19891_v21 = vld [vmem:[#allocation104_spill] sm:$0xff] }
 0x8b7   :  { %19864 = vst [vmem:[#allocation80_spill] sm:$0xff] %v17902_v26  ;;  %v17922_v54 = vadd.f32 %v19877_v49, %v19875_v22  ;;  %v19880_v26 = vld [vmem:[#allocation68_spill] sm:$0xff]  ;;  %v19889_v47 = vunpack.c.l.bf16 %v19888_v39  ;;  %v19895_v49 = vld [vmem:[#allocation147_spill] sm:$0xff] }
 0x8b8   :  { %19867 = vst [vmem:[#allocation119_spill] sm:$0xff] %v17907_v12  ;;  %19874 = vst [vmem:[#allocation76_spill] sm:$0xff] %v17917_v13  ;;  %v19881_v34 = vunpack.c.l.bf16 %v19880_v26  ;;  %v19884_v12 = vld [vmem:[#allocation69_spill] sm:$0xff]  ;;  %v19892_v13 = vld [vmem:[#allocation66_spill] sm:$0xff] }
 0x8b9   :  { %19878 = vst [vmem:[#allocation155_spill] sm:$0xff] %v17922_v54  ;;  %v19885_v24 = vunpack.c.l.bf16 %v19884_v12  ;;  %v17937_v42 = vadd.f32 %v19889_v47, %v19887_v45  ;;  %v19893_v48 = vunpack.c.l.bf16 %v19892_v13  ;;  %v19896_v54 = vld [vmem:[#allocation74_spill] sm:$0xff] }
 0x8ba   :  { %v17927_v53 = vadd.f32 %v19881_v34, %v19879_v46  ;;  %v19897_v26 = vunpack.c.l.bf16 %v19896_v54  ;;  %v19899_v34 = vld [vmem:[#allocation132_spill] sm:$0xff]  ;;  %v19907_v47 = vld [vmem:[#allocation106_spill] sm:$0xff] }
 0x8bb   :  { %v17932_v55 = vadd.f32 %v19885_v24, %v19883_v27  ;;  %19890 = vst [vmem:[#allocation70_spill] sm:$0xff] %v17937_v42  ;;  %v17942_v22 = vadd.f32 %v19893_v48, %v19891_v21  ;;  %v19903_v24 = vld [vmem:[#allocation149_spill] sm:$0xff]  ;;  %v19908_v42 = vld [vmem:[#allocation72_spill] sm:$0xff]  ;;  %v19911_v48 = vld [vmem:[#allocation151_spill] sm:$0xff] }
 0x8bc   :  { %19882 = vst [vmem:[#allocation102_spill] sm:$0xff] %v17927_v53  ;;  %v17947_v46 = vadd.f32 %v19897_v26, %v19895_v49  ;;  %v19900_v53 = vld [vmem:[#allocation75_spill] sm:$0xff]  ;;  %v19909_v13 = vunpack.c.l.bf16 %v19908_v42 }
 0x8bd   :  { %19886 = vst [vmem:[#allocation55_spill] sm:$0xff] %v17932_v55  ;;  %19894 = vst [vmem:[#allocation73_spill] sm:$0xff] %v17942_v22  ;;  %v19901_v12 = vunpack.c.l.bf16 %v19900_v53  ;;  %v19904_v55 = vld [vmem:[#allocation71_spill] sm:$0xff]  ;;  %v19912_v22 = vld [vmem:[#allocation81_spill] sm:$0xff] }
 0x8be   :  { %19898 = vst [vmem:[#allocation144_spill] sm:$0xff] %v17947_v46  ;;  %v19905_v39 = vunpack.c.l.bf16 %v19904_v55  ;;  %v17962_v21 = vadd.f32 %v19909_v13, %v19907_v47  ;;  %v19913_v54 = vunpack.c.l.bf16 %v19912_v22  ;;  %v19914_v26 = vld [vmem:[#allocation107_spill] sm:$0xff]  ;;  %v19915_v46 = vld [vmem:[#allocation82_spill] sm:$0xff]  ;;  %v19923_v13 = vld [vmem:[#allocation136_spill] sm:$0xff] }
 0x8bf   :  { %v17952_v27 = vadd.f32 %v19901_v12, %v19899_v34  ;;  %v19916_v53 = vunpack.c.l.bf16 %v19915_v46  ;;  %v19917_v12 = vld [vmem:[#allocation153_spill] sm:$0xff] }
 0x8c0   :  { %v17957_v45 = vadd.f32 %v19905_v39, %v19903_v24  ;;  %19910 = vst [vmem:[#allocation37_spill] sm:$0xff] %v17962_v21  ;;  %v17967_v49 = vadd.f32 %v19913_v54, %v19911_v48  ;;  %v19920_v39 = vld [vmem:[#allocation108_spill] sm:$0xff]  ;;  %v19924_v21 = vld [vmem:[#allocation46_spill] sm:$0xff] }
 0x8c1   :  { %19902 = vst [vmem:[#allocation61_spill] sm:$0xff] %v17952_v27  ;;  %v17972_v34 = vadd.f32 %v19916_v53, %v19914_v26  ;;  %v19918_v27 = vld [vmem:[#allocation77_spill] sm:$0xff]  ;;  %v19925_v22 = vunpack.c.l.bf16 %v19924_v21  ;;  %v19926_v54 = vld [vmem:[#allocation40_spill] sm:$0xff]  ;;  %v8736_v53 = vmax.f32 %v17677_v16, 0.0  ;;  %v8742_v21 = vmax.f32 %v17707_v56, 0.0 }
 0x8c2   :  { %19906 = vst [vmem:[#allocation142_spill] sm:$0xff] %v17957_v45  ;;  %v19919_v55 = vunpack.c.l.bf16 %v19918_v27  ;;  %v19921_v45 = vld [vmem:[#allocation78_spill] sm:$0xff]  ;;  %v19927_v46 = vunpack.c.l.bf16 %v19926_v54  ;;  %v8737_v27 = vmax.f32 %v17682_v62, 0.0  ;;  %v8746_v16 = vmax.f32 %v17727_v30, 0.0 }
 0x8c3   :  { %v19922_v42 = vunpack.c.l.bf16 %v19921_v45  ;;  %v17987_v48 = vadd.f32 %v19925_v22, %v19923_v13  ;;  %v8739_v45 = vmax.f32 %v17692_v11, 0.0  ;;  %v8744_v13 = vmax.f32 %v17717_v3, 0.0  ;;  %8800 = vst.msk [vmem:[%s18321_s7] sm:$0xff] %vm2265_vm7, %v8736_v53  ;;  %8806 = vst.msk [vmem:[%s18321_s7 + $0x30] sm:$0xff] %vm2265_vm7, %v8742_v21  ;;  %v19933_v22 = vld [vmem:[#allocation102_spill] sm:$0xff] }
 0x8c4   :  { %v17977_v24 = vadd.f32 %v19919_v55, %v19917_v12  ;;  %v17992_v26 = vadd.f32 %v19927_v46, %v17672_v61  ;;  %v8738_v12 = vmax.f32 %v17687_v58, 0.0  ;;  %v8740_v55 = vmax.f32 %v17697_v57, 0.0  ;;  %8801 = vst.msk [vmem:[%s18321_s7 + $0x8] sm:$0xff] %vm2265_vm7, %v8737_v27  ;;  %8810 = vst.msk [vmem:[%s18321_s7 + $0x50] sm:$0xff] %vm2265_vm7, %v8746_v16  ;;  %v19934_v46 = vld [vmem:[#allocation55_spill] sm:$0xff]  ;;  %v19935_v27 = vld [vmem:[#allocation70_spill] sm:$0xff] }
 0x8c5   :  { %v17982_v47 = vadd.f32 %v19922_v42, %v19920_v39  ;;  %v8741_v39 = vmax.f32 %v17702_v28, 0.0  ;;  %v8743_v42 = vmax.f32 %v17712_v60, 0.0  ;;  %v8745_v61 = vmax.f32 %v17722_v52, 0.0  ;;  %8803 = vst.msk [vmem:[%s18321_s7 + $0x18] sm:$0xff] %vm2265_vm7, %v8739_v45  ;;  %8808 = vst.msk [vmem:[%s18321_s7 + $0x40] sm:$0xff] %vm2265_vm7, %v8744_v13  ;;  %v19936_v45 = vld [vmem:[#allocation73_spill] sm:$0xff] }
 0x8c6   :  { %v8747_v62 = vmax.f32 %v17732_v37, 0.0  ;;  %8802 = vst.msk [vmem:[%s18321_s7 + $0x10] sm:$0xff] %vm2265_vm7, %v8738_v12  ;;  %v8748_v58 = vmax.f32 %v17737_v0, 0.0  ;;  %v8749_v11 = vmax.f32 %v17742_v63, 0.0  ;;  %v8750_v57 = vmax.f32 %v17747_v35, 0.0  ;;  %8804 = vst.msk [vmem:[%s18321_s7 + $0x20] sm:$0xff] %vm2265_vm7, %v8740_v55 }
 0x8c7   :  { %v8751_v28 = vmax.f32 %v17752_v9, 0.0  ;;  %8805 = vst.msk [vmem:[%s18321_s7 + $0x28] sm:$0xff] %vm2265_vm7, %v8741_v39  ;;  %8807 = vst.msk [vmem:[%s18321_s7 + $0x38] sm:$0xff] %vm2265_vm7, %v8743_v42  ;;  %v8752_v56 = vmax.f32 %v17757_v44, 0.0  ;;  %v8753_v60 = vmax.f32 %v17762_v17, 0.0  ;;  %v8754_v3 = vmax.f32 %v17767_v41, 0.0 }
 0x8c8   :  { %v8755_v52 = vmax.f32 %v17772_v33, 0.0  ;;  %8809 = vst.msk [vmem:[%s18321_s7 + $0x48] sm:$0xff] %vm2265_vm7, %v8745_v61  ;;  %8811 = vst.msk [vmem:[%s18321_s7 + $0x58] sm:$0xff] %vm2265_vm7, %v8747_v62  ;;  %v8756_v30 = vmax.f32 %v17777_v20, 0.0  ;;  %v8757_v37 = vmax.f32 %v17782_v59, 0.0  ;;  %v8758_v0 = vmax.f32 %v17787_v6, 0.0 }
 0x8c9   :  { %v8759_v63 = vmax.f32 %v17792_v51, 0.0  ;;  %8812 = vst.msk [vmem:[%s18321_s7 + $0x60] sm:$0xff] %vm2265_vm7, %v8748_v58  ;;  %8813 = vst.msk [vmem:[%s18321_s7 + $0x68] sm:$0xff] %vm2265_vm7, %v8749_v11  ;;  %v8760_v35 = vmax.f32 %v17797_v14, 0.0  ;;  %v8761_v9 = vmax.f32 %v17802_v19, 0.0  ;;  %v8762_v44 = vmax.f32 %v17807_v8, 0.0 }
 0x8ca   :  { %8814 = vst.msk [vmem:[%s18321_s7 + $0x70] sm:$0xff] %vm2265_vm7, %v8750_v57  ;;  %8815 = vst.msk [vmem:[%s18321_s7 + $0x78] sm:$0xff] %vm2265_vm7, %v8751_v28  ;;  %v8763_v17 = vmax.f32 %v17812_v40, 0.0  ;;  %v8764_v41 = vmax.f32 %v17817_v4, 0.0  ;;  %v8765_v33 = vmax.f32 %v17822_v31, 0.0  ;;  %v8766_v20 = vmax.f32 %v17827_v23, 0.0 }
 0x8cb   :  { %8816 = vst.msk [vmem:[%s18321_s7 + $0x80] sm:$0xff] %vm2265_vm7, %v8752_v56  ;;  %8817 = vst.msk [vmem:[%s18321_s7 + $0x88] sm:$0xff] %vm2265_vm7, %v8753_v60  ;;  %v8767_v59 = vmax.f32 %v17832_v50, 0.0  ;;  %v8768_v6 = vmax.f32 %v17837_v25, 0.0  ;;  %v8769_v51 = vmax.f32 %v17842_v2, 0.0  ;;  %v8770_v14 = vmax.f32 %v17847_v29, 0.0 }
 0x8cc   :  { %8818 = vst.msk [vmem:[%s18321_s7 + $0x90] sm:$0xff] %vm2265_vm7, %v8754_v3  ;;  %8819 = vst.msk [vmem:[%s18321_s7 + $0x98] sm:$0xff] %vm2265_vm7, %v8755_v52  ;;  %v8771_v19 = vmax.f32 %v17852_v32, 0.0  ;;  %v8772_v8 = vmax.f32 %v17857_v18, 0.0  ;;  %v8773_v40 = vmax.f32 %v17862_v15, 0.0  ;;  %v8774_v4 = vmax.f32 %v17867_v7, 0.0 }
 0x8cd   :  { %8820 = vst.msk [vmem:[%s18321_s7 + $0xa0] sm:$0xff] %vm2265_vm7, %v8756_v30  ;;  %8821 = vst.msk [vmem:[%s18321_s7 + $0xa8] sm:$0xff] %vm2265_vm7, %v8757_v37  ;;  %v8775_v31 = vmax.f32 %v17872_v1, 0.0  ;;  %v8776_v23 = vmax.f32 %v17877_v43, 0.0  ;;  %v8777_v50 = vmax.f32 %v17882_v38, 0.0  ;;  %v8778_v25 = vmax.f32 %v17887_v36, 0.0 }
 0x8ce   :  { %8822 = vst.msk [vmem:[%s18321_s7 + $0xb0] sm:$0xff] %vm2265_vm7, %v8758_v0  ;;  %8823 = vst.msk [vmem:[%s18321_s7 + $0xb8] sm:$0xff] %vm2265_vm7, %v8759_v63  ;;  %v8779_v2 = vmax.f32 %v17892_v10, 0.0  ;;  %v8780_v29 = vmax.f32 %v17897_v5, 0.0  ;;  %v19928_v32 = vld [vmem:[#allocation80_spill] sm:$0xff]  ;;  %v19929_v15 = vld [vmem:[#allocation119_spill] sm:$0xff] }
 0x8cf   :  { %8824 = vst.msk [vmem:[%s18321_s7 + $0xc0] sm:$0xff] %vm2265_vm7, %v8760_v35  ;;  %8825 = vst.msk [vmem:[%s18321_s7 + $0xc8] sm:$0xff] %vm2265_vm7, %v8761_v9  ;;  %v8781_v18 = vmax.f32 %v19928_v32, 0.0  ;;  %v8782_v7 = vmax.f32 %v19929_v15, 0.0  ;;  %v19930_v1 = vld [vmem:[#allocation92_spill] sm:$0xff]  ;;  %v19932_v10 = vld [vmem:[#allocation155_spill] sm:$0xff] }
 0x8d0   :  { %8826 = vst.msk [vmem:[%s18321_s7 + $0xd0] sm:$0xff] %vm2265_vm7, %v8762_v44  ;;  %8827 = vst.msk [vmem:[%s18321_s7 + $0xd8] sm:$0xff] %vm2265_vm7, %v8763_v17  ;;  %v8783_v43 = vmax.f32 %v19930_v1, 0.0  ;;  %v19931_v38 = vld [vmem:[#allocation76_spill] sm:$0xff]  ;;  %v8785_v5 = vmax.f32 %v19932_v10, 0.0  ;;  %v8786_v54 = vmax.f32 %v19933_v22, 0.0 }
 0x8d1   :  { %8828 = vst.msk [vmem:[%s18321_s7 + $0xe0] sm:$0xff] %vm2265_vm7, %v8764_v41  ;;  %8829 = vst.msk [vmem:[%s18321_s7 + $0xe8] sm:$0xff] %vm2265_vm7, %v8765_v33  ;;  %v8784_v36 = vmax.f32 %v19931_v38, 0.0  ;;  %v8787_v53 = vmax.f32 %v19934_v46, 0.0  ;;  %v8788_v12 = vmax.f32 %v19935_v27, 0.0  ;;  %v8789_v55 = vmax.f32 %v19936_v45, 0.0 }
 0x8d2   :  { %8830 = vst.msk [vmem:[%s18321_s7 + $0xf0] sm:$0xff] %vm2265_vm7, %v8766_v20  ;;  %8831 = vst.msk [vmem:[%s18321_s7 + $0xf8] sm:$0xff] %vm2265_vm7, %v8767_v59  ;;  %v19937_v39 = vld [vmem:[#allocation144_spill] sm:$0xff]  ;;  %v19938_v42 = vld [vmem:[#allocation61_spill] sm:$0xff]  ;;  %v8794_v11 = vmax.f32 %v17967_v49, 0.0  ;;  %v8795_v57 = vmax.f32 %v17972_v34, 0.0 }
 0x8d3   :  { %8832 = vst.msk [vmem:[%s18321_s7 + $0x100] sm:$0xff] %vm2265_vm7, %v8768_v6  ;;  %8833 = vst.msk [vmem:[%s18321_s7 + $0x108] sm:$0xff] %vm2265_vm7, %v8769_v51  ;;  %v8790_v21 = vmax.f32 %v19937_v39, 0.0  ;;  %v8791_v13 = vmax.f32 %v19938_v42, 0.0  ;;  %v19939_v61 = vld [vmem:[#allocation142_spill] sm:$0xff]  ;;  %v19940_v62 = vld [vmem:[#allocation37_spill] sm:$0xff] }
 0x8d4   :  { %8834 = vst.msk [vmem:[%s18321_s7 + $0x110] sm:$0xff] %vm2265_vm7, %v8770_v14  ;;  %8835 = vst.msk [vmem:[%s18321_s7 + $0x118] sm:$0xff] %vm2265_vm7, %v8771_v19  ;;  %v8792_v16 = vmax.f32 %v19939_v61, 0.0  ;;  %v8793_v58 = vmax.f32 %v19940_v62, 0.0  ;;  %v8796_v49 = vmax.f32 %v17977_v24, 0.0  ;;  %v8797_v34 = vmax.f32 %v17982_v47, 0.0 }
 0x8d5   :  { %8836 = vst.msk [vmem:[%s18321_s7 + $0x120] sm:$0xff] %vm2265_vm7, %v8772_v8  ;;  %8837 = vst.msk [vmem:[%s18321_s7 + $0x128] sm:$0xff] %vm2265_vm7, %v8773_v40  ;;  %v8798_v28 = vmax.f32 %v17987_v48, 0.0  ;;  %v8799_v56 = vmax.f32 %v17992_v26, 0.0 }
 0x8d6   :  { %8838 = vst.msk [vmem:[%s18321_s7 + $0x130] sm:$0xff] %vm2265_vm7, %v8774_v4  ;;  %8839 = vst.msk [vmem:[%s18321_s7 + $0x138] sm:$0xff] %vm2265_vm7, %v8775_v31 }
 0x8d7   :  { %8840 = vst.msk [vmem:[%s18321_s7 + $0x140] sm:$0xff] %vm2265_vm7, %v8776_v23  ;;  %8841 = vst.msk [vmem:[%s18321_s7 + $0x148] sm:$0xff] %vm2265_vm7, %v8777_v50 }
 0x8d8   :  { %8842 = vst.msk [vmem:[%s18321_s7 + $0x150] sm:$0xff] %vm2265_vm7, %v8778_v25  ;;  %8843 = vst.msk [vmem:[%s18321_s7 + $0x158] sm:$0xff] %vm2265_vm7, %v8779_v2 }
 0x8d9   :  { %8844 = vst.msk [vmem:[%s18321_s7 + $0x160] sm:$0xff] %vm2265_vm7, %v8780_v29  ;;  %8845 = vst.msk [vmem:[%s18321_s7 + $0x168] sm:$0xff] %vm2265_vm7, %v8781_v18 }
 0x8da   :  { %8846 = vst.msk [vmem:[%s18321_s7 + $0x170] sm:$0xff] %vm2265_vm7, %v8782_v7  ;;  %8847 = vst.msk [vmem:[%s18321_s7 + $0x178] sm:$0xff] %vm2265_vm7, %v8783_v43 }
 0x8db   :  { %8848 = vst.msk [vmem:[%s18321_s7 + $0x180] sm:$0xff] %vm2265_vm7, %v8784_v36  ;;  %8849 = vst.msk [vmem:[%s18321_s7 + $0x188] sm:$0xff] %vm2265_vm7, %v8785_v5 }
 0x8dc   :  { %8850 = vst.msk [vmem:[%s18321_s7 + $0x190] sm:$0xff] %vm2265_vm7, %v8786_v54  ;;  %8851 = vst.msk [vmem:[%s18321_s7 + $0x198] sm:$0xff] %vm2265_vm7, %v8787_v53 }
 0x8dd   :  { %8852 = vst.msk [vmem:[%s18321_s7 + $0x1a0] sm:$0xff] %vm2265_vm7, %v8788_v12  ;;  %8853 = vst.msk [vmem:[%s18321_s7 + $0x1a8] sm:$0xff] %vm2265_vm7, %v8789_v55 }
 0x8de   :  { %8854 = vst.msk [vmem:[%s18321_s7 + $0x1b0] sm:$0xff] %vm2265_vm7, %v8790_v21  ;;  %8855 = vst.msk [vmem:[%s18321_s7 + $0x1b8] sm:$0xff] %vm2265_vm7, %v8791_v13 }
 0x8df   :  { %8856 = vst.msk [vmem:[%s18321_s7 + $0x1c0] sm:$0xff] %vm2265_vm7, %v8792_v16  ;;  %8857 = vst.msk [vmem:[%s18321_s7 + $0x1c8] sm:$0xff] %vm2265_vm7, %v8793_v58 }
 0x8e0   :  { %8858 = vst.msk [vmem:[%s18321_s7 + $0x1d0] sm:$0xff] %vm2265_vm7, %v8794_v11  ;;  %8859 = vst.msk [vmem:[%s18321_s7 + $0x1d8] sm:$0xff] %vm2265_vm7, %v8795_v57 }
 0x8e1   :  { %8860 = vst.msk [vmem:[%s18321_s7 + $0x1e0] sm:$0xff] %vm2265_vm7, %v8796_v49  ;;  %8861 = vst.msk [vmem:[%s18321_s7 + $0x1e8] sm:$0xff] %vm2265_vm7, %v8797_v34 }
 0x8e2   :  { %8862 = vst.msk [vmem:[%s18321_s7 + $0x1f0] sm:$0xff] %vm2265_vm7, %v8798_v28  ;;  %8863 = vst.msk [vmem:[%s18321_s7 + $0x1f8] sm:$0xff] %vm2265_vm7, %v8799_v56 }

</bundles_post_ra>
